<compile_context>
chip_gen: v7x
topology: tpu7x:2x2x1
jax: 0.10.0
libtpu: 0.0.40
codegen_flags: <defaults>
</compile_context>

<pallas_src>
import jax
import jax.numpy as jnp
from jax.experimental import pallas as pl
from jax.experimental.pallas import tpu as pltpu

BN_EPS = 1e-5
KSIZE = 5
PAD = 2
KPAD = 128                    # 125 conv taps padded to a full lane width
FOLD = 8                      # spatial rows folded into lanes (8 * 16ch = 128)
MATMUL_DTYPE = jnp.bfloat16   # MXU operand dtype (accumulation stays f32)


# ----------------------------- kernels --------------------------------------

def _conv_stats_kernel(p_ref, w_ref, conv_ref, sum_ref, ssq_ref):
    """Pass 1: folded conv matmul (bias-free) + per-block partial BN stats."""
    conv = jnp.dot(p_ref[...], w_ref[...], preferred_element_type=jnp.float32)
    conv_bf = conv.astype(conv_ref.dtype)          # bf16 inter-pass activation
    conv_ref[...] = conv_bf
    # Stats on the rounded values (what pass 2 will normalize) for consistency.
    c32 = conv_bf.astype(jnp.float32)
    sum_ref[0] = jnp.sum(c32, axis=0, keepdims=True)
    ssq_ref[0] = jnp.sum(c32 * c32, axis=0, keepdims=True)


def _bn_res_elu_kernel(conv_ref, xf_ref, expand_ref, scale_ref, shift_ref,
                       out_ref):
    """Pass 2: BN affine + replicated-input residual + ELU (lane-dense)."""
    # Expand the folded residual (TM8, 8) -> (TM8, 128) with a tiny 0/1 matmul
    # (avoids materializing the 16x-replicated residual in HBM).
    xrep = jnp.dot(xf_ref[...], expand_ref[...],
                   preferred_element_type=jnp.float32)
    s = conv_ref[...].astype(jnp.float32) * scale_ref[...] + shift_ref[...] + xrep
    out_ref[...] = jnp.where(s > 0, s, jnp.exp(s) - 1.0)


# --------------------------- host-side glue ----------------------------------

def _round_up(x, m):
    return ((x + m - 1) // m) * m


def _choose_row_tile(m8, target=2048):
    """Folded-row tile: prefer an exact multiple-of-8 divisor of m8 (no row
    padding); otherwise use `target` and let the caller zero-pad the rows."""
    if m8 <= target:
        return _round_up(m8, FOLD)
    for d in range(target - (target % FOLD), FOLD - 1, -FOLD):
        if m8 % d == 0 and d * 4 >= target:
            return d
    return target


def _build_patches_folded(x, dtype):
    """x: (N, 1, D, H, W) -> bf16 folded im2col matrix (M/8, 8*128).

    Tap order is (kd, kh, kw) row-major, matching conv_w.reshape(O, 125); the
    3 pad lanes (125 -> 128) are fused into the stack so XLA writes the padded
    layout once instead of pad-copying afterwards.
    """
    N, _, D, H, W = x.shape
    xp = jnp.pad(x[:, 0], ((0, 0), (PAD, PAD), (PAD, PAD), (PAD, PAD)))
    xp = xp.astype(dtype)                                     # (N, D+4, H+4, W+4)
    cols = []
    for kd in range(KSIZE):
        for kh in range(KSIZE):
            for kw in range(KSIZE):
                cols.append(xp[:, kd:kd + D, kh:kh + H, kw:kw + W])
    zeros = jnp.zeros_like(cols[0])
    cols.extend([zeros] * (KPAD - KSIZE ** 3))                # pad 125 -> 128 taps
    p = jnp.stack(cols, axis=-1)                              # (N, D, H, W, 128)
    return p.reshape((N * D * H * W) // FOLD, FOLD * KPAD)    # (M/8, 1024)


@jax.jit
def input_transition(x, conv_w, conv_b, gamma, beta):
    """x: (N, 1, D, H, W) f32 -> (N, 16, D, H, W) f32.

    Note: conv_b is accepted for API parity but is mathematically cancelled by
    the batch-norm shift (the batch mean absorbs it), so it never enters the
    kernels.
    """
    del conv_b
    N, C, D, H, W = x.shape
    out_ch = conv_w.shape[0]
    # torch.cat([x]*16, dim=1) only matches the 16-channel BN output for C == 1.
    assert C == 1 and out_ch == 16, "InputTransition needs in_channels=1, outChans=16"

    M = N * D * H * W
    assert M % FOLD == 0, "N*D*H*W must be a multiple of 8"
    M8 = M // FOLD
    K = C * KSIZE ** 3
    LANES = FOLD * out_ch                        # 128

    TM8 = _choose_row_tile(M8)
    M8p = _round_up(M8, TM8)
    num_blocks = M8p // TM8

    # bf16 folded im2col (XLA glue). Zero-pad rows so every block is full size;
    # with the bias removed, padded rows contribute exactly zero to the stats.
    patches_f = _build_patches_folded(x, MATMUL_DTYPE)        # (M8, 1024)
    if M8p > M8:
        patches_f = jnp.pad(patches_f, ((0, M8p - M8), (0, 0)))

    # Block-diagonal weights so the folded matmul yields lane-dense conv output.
    w_mat = conv_w.reshape(out_ch, K).T                        # (125, 16)
    w_mat = jnp.pad(w_mat, ((0, KPAD - K), (0, 0)))            # (128, 16)
    w_bd = jnp.kron(jnp.eye(FOLD, dtype=w_mat.dtype), w_mat)   # (1024, 128)
    w_bd = w_bd.astype(MATMUL_DTYPE)

    # ---- pass 1: conv matmul + per-block partial batch stats ----------------
    conv_fold, sum_part, ssq_part = pl.pallas_call(
        _conv_stats_kernel,
        grid=(num_blocks,),
        in_specs=[
            pl.BlockSpec((TM8, FOLD * KPAD), lambda i: (i, 0)),    # patches tile
            pl.BlockSpec((FOLD * KPAD, LANES), lambda i: (0, 0)),  # weights (resident)
        ],
        out_specs=[
            pl.BlockSpec((TM8, LANES), lambda i: (i, 0)),          # conv tile (bf16)
            pl.BlockSpec((1, 1, LANES), lambda i: (i, 0, 0)),      # partial sum
            pl.BlockSpec((1, 1, LANES), lambda i: (i, 0, 0)),      # partial sumsq
        ],
        out_shape=[
            jax.ShapeDtypeStruct((M8p, LANES), MATMUL_DTYPE),
            jax.ShapeDtypeStruct((num_blocks, 1, LANES), jnp.float32),
            jax.ShapeDtypeStruct((num_blocks, 1, LANES), jnp.float32),
        ],
        compiler_params=pltpu.CompilerParams(
            dimension_semantics=("parallel",)),
    )(patches_f, w_bd)

    # Tiny XLA glue between passes: pairwise-reduce partial stats, build affine.
    lane_sum = jnp.sum(sum_part, axis=(0, 1))                  # (128,)
    lane_ssq = jnp.sum(ssq_part, axis=(0, 1))
    ch_sum = lane_sum.reshape(FOLD, out_ch).sum(axis=0)
    ch_ssq = lane_ssq.reshape(FOLD, out_ch).sum(axis=0)
    mean = ch_sum / M
    var = ch_ssq / M - mean * mean                             # biased batch variance
    inv_std = jax.lax.rsqrt(var + BN_EPS)
    scale = gamma.astype(jnp.float32) * inv_std
    shift = beta.astype(jnp.float32) - mean * scale
    scale_f = jnp.tile(scale, FOLD).reshape(1, LANES)
    shift_f = jnp.tile(shift, FOLD).reshape(1, LANES)

    # Folded residual input (4 B/row of 8 voxels) + in-kernel expansion matrix.
    x_fold = x.reshape(M8, FOLD).astype(jnp.float32)
    if M8p > M8:
        x_fold = jnp.pad(x_fold, ((0, M8p - M8), (0, 0)))
    expand = jnp.repeat(jnp.eye(FOLD, dtype=jnp.float32), out_ch, axis=1)  # (8, 128)

    # ---- pass 2: BN affine + residual + ELU ----------------------------------
    out_fold = pl.pallas_call(
        _bn_res_elu_kernel,
        grid=(num_blocks,),
        in_specs=[
            pl.BlockSpec((TM8, LANES), lambda i: (i, 0)),          # conv tile (bf16)
            pl.BlockSpec((TM8, FOLD), lambda i: (i, 0)),           # folded residual
            pl.BlockSpec((FOLD, LANES), lambda i: (0, 0)),         # expand (resident)
            pl.BlockSpec((1, LANES), lambda i: (0, 0)),            # scale (resident)
            pl.BlockSpec((1, LANES), lambda i: (0, 0)),            # shift (resident)
        ],
        out_specs=pl.BlockSpec((TM8, LANES), lambda i: (i, 0)),
        out_shape=jax.ShapeDtypeStruct((M8p, LANES), jnp.float32),
        compiler_params=pltpu.CompilerParams(
            dimension_semantics=("parallel",)),
    )(conv_fold, x_fold, expand, scale_f, shift_f)

    # Unfold: (M8, 128) -> (M, 16) -> (N, D, H, W, 16) -> NCDHW (module contract).
    out = out_fold[:M8].reshape(N, D, H, W, out_ch)
    return jnp.transpose(out, (0, 4, 1, 2, 3))


# ------------------------------ reference ------------------------------------

def _reference(x, conv_w, conv_b, gamma, beta):
    """Pure-JAX f32 reference (matches the PyTorch training-mode forward)."""
    conv = jax.lax.conv_general_dilated(
        x, conv_w, window_strides=(1, 1, 1), padding=[(PAD, PAD)] * 3,
        dimension_numbers=("NCDHW", "OIDHW", "NCDHW"),
        precision=jax.lax.Precision.HIGHEST)
    conv = conv + conv_b[None, :, None, None, None]
    axes = (0, 2, 3, 4)
    mean = jnp.mean(conv, axis=axes, keepdims=True)
    var = jnp.mean((conv - mean) ** 2, axis=axes, keepdims=True)
    bn = (conv - mean) * jax.lax.rsqrt(var + BN_EPS)
    bn = bn * gamma[None, :, None, None, None] + beta[None, :, None, None, None]
    s = bn + jnp.concatenate([x] * 16, axis=1)
    return jnp.where(s > 0, s, jnp.exp(s) - 1.0)


if __name__ == "__main__":
    key = jax.random.PRNGKey(0)
    k_x, k_w, k_b, k_g, k_be = jax.random.split(key, 5)

    N, C, D, H, W = 2, 1, 16, 16, 16    # in_channels=1, outChans=16
    out_ch = 16

    x = jax.random.normal(k_x, (N, C, D, H, W), dtype=jnp.float32)
    conv_w = 0.1 * jax.random.normal(k_w, (out_ch, C, KSIZE, KSIZE, KSIZE),
                                     dtype=jnp.float32)
    conv_b = 0.01 * jax.random.normal(k_b, (out_ch,), dtype=jnp.float32)
    gamma = 1.0 + 0.1 * jax.random.normal(k_g, (out_ch,), dtype=jnp.float32)
    beta = 0.1 * jax.random.normal(k_be, (out_ch,), dtype=jnp.float32)

    out = jax.block_until_ready(input_transition(x, conv_w, conv_b, gamma, beta))

    ref = _reference(x, conv_w, conv_b, gamma, beta)
    assert out.shape == (N, out_ch, D, H, W)
    # bf16 MXU operands + bf16 inter-pass conv (f32 accumulation everywhere) ->
    # compare against the f32 reference with a bf16-appropriate tolerance.
    max_err = float(jnp.max(jnp.abs(out - ref)))
    assert jnp.allclose(out, ref, rtol=2e-2, atol=2e-2), \
        f"mismatch vs reference (max abs err {max_err})"

    print("KERNEL_OK")
</pallas_src>

<mosaic_0001>
module attributes {stable_mosaic.version = 11 : i64} {
  func.func @_conv_stats_kernel(%arg0: i32, %arg1: memref<1024x1024xbf16, #tpu.memory_space<vmem>>, %arg2: memref<1024x128xbf16, #tpu.memory_space<vmem>>, %arg3: memref<1024x128xbf16, #tpu.memory_space<vmem>>, %arg4: memref<1x1x128xf32, #tpu.memory_space<vmem>>, %arg5: memref<1x1x128xf32, #tpu.memory_space<vmem>>) attributes {dimension_semantics = [#tpu.dimension_semantics<parallel>], iteration_bounds = array<i64: 1>, scalar_prefetch = 0 : i64, scratch_operands = 0 : i64, tpu.core_type = #tpu.core_type<tc>, window_params = [{transform_indices = @transform_0, window_bounds = array<i64: 1024, 1024>}, {pipeline_mode = #tpu.pipeline_mode<synchronous>, transform_indices = @transform_1, window_bounds = array<i64: 1024, 128>}, {transform_indices = @transform_2, window_bounds = array<i64: 1024, 128>}, {transform_indices = @transform_3, window_bounds = array<i64: 1, 1, 128>}, {transform_indices = @transform_4, window_bounds = array<i64: 1, 1, 128>}]} {
    %c0 = arith.constant 0 : index
    %c0_0 = arith.constant 0 : index
    %0 = vector.load %arg1[%c0, %c0_0] : memref<1024x1024xbf16, #tpu.memory_space<vmem>>, vector<1024x1024xbf16>
    %c0_1 = arith.constant 0 : index
    %c0_2 = arith.constant 0 : index
    %1 = vector.load %arg2[%c0_1, %c0_2] : memref<1024x128xbf16, #tpu.memory_space<vmem>>, vector<1024x128xbf16>
    %cst = arith.constant dense<0.000000e+00> : vector<1024x128xf32>
    %2 = tpu.matmul %0, %1, %cst {dimension_numbers = #tpu.dot_dimension_numbers<[1], [0], [0], [1], [0, 0, 1, 1], [], []>} : vector<1024x1024xbf16>, vector<1024x128xbf16>, vector<1024x128xf32> -> vector<1024x128xf32>
    %3 = arith.truncf %2 : vector<1024x128xf32> to vector<1024x128xbf16>
    %c0_3 = arith.constant 0 : index
    %c0_4 = arith.constant 0 : index
    %4 = vector.load %arg3[%c0_3, %c0_4] : memref<1024x128xbf16, #tpu.memory_space<vmem>>, vector<1024x128xbf16>
    tpu.vector_store %arg3[%c0_3, %c0_4], %3 {strides = array<i32>} : memref<1024x128xbf16, #tpu.memory_space<vmem>>, vector<1024x128xbf16>,
    %5 = arith.extf %3 : vector<1024x128xbf16> to vector<1024x128xf32>
    %cst_5 = arith.constant dense<0.000000e+00> : vector<128xf32>
    %6 = vector.multi_reduction <add>, %5, %cst_5 [0] : vector<1024x128xf32> to vector<128xf32>
    %7 = vector.shape_cast %6 : vector<128xf32> to vector<1x128xf32>
    %c0_6 = arith.constant 0 : index
    %c0_7 = arith.constant 0 : index
    %c0_8 = arith.constant 0 : index
    %8 = vector.load %arg4[%c0_6, %c0_7, %c0_8] : memref<1x1x128xf32, #tpu.memory_space<vmem>>, vector<1x1x128xf32>
    %9 = vector.shape_cast %8 : vector<1x1x128xf32> to vector<1x128xf32>
    %10 = vector.shape_cast %7 : vector<1x128xf32> to vector<1x1x128xf32>
    tpu.vector_store %arg4[%c0_6, %c0_7, %c0_8], %10 {strides = array<i32>} : memref<1x1x128xf32, #tpu.memory_space<vmem>>, vector<1x1x128xf32>,
    %11 = arith.mulf %5, %5 : vector<1024x128xf32>
    %cst_9 = arith.constant dense<0.000000e+00> : vector<128xf32>
    %12 = vector.multi_reduction <add>, %11, %cst_9 [0] : vector<1024x128xf32> to vector<128xf32>
    %13 = vector.shape_cast %12 : vector<128xf32> to vector<1x128xf32>
    %c0_10 = arith.constant 0 : index
    %c0_11 = arith.constant 0 : index
    %c0_12 = arith.constant 0 : index
    %14 = vector.load %arg5[%c0_10, %c0_11, %c0_12] : memref<1x1x128xf32, #tpu.memory_space<vmem>>, vector<1x1x128xf32>
    %15 = vector.shape_cast %14 : vector<1x1x128xf32> to vector<1x128xf32>
    %16 = vector.shape_cast %13 : vector<1x128xf32> to vector<1x1x128xf32>
    tpu.vector_store %arg5[%c0_10, %c0_11, %c0_12], %16 {strides = array<i32>} : memref<1x1x128xf32, #tpu.memory_space<vmem>>, vector<1x1x128xf32>,
    return
  }
  func.func @transform_0(%arg0: i32) -> (i32, i32) {
    %c0_i32 = arith.constant 0 : i32
    %c0_i32_0 = arith.constant 0 : i32
    return %arg0, %c0_i32 : i32, i32
  }
  func.func @transform_1(%arg0: i32) -> (i32, i32) {
    %c0_i32 = arith.constant 0 : i32
    %c0_i32_0 = arith.constant 0 : i32
    %c0_i32_1 = arith.constant 0 : i32
    return %c0_i32, %c0_i32_0 : i32, i32
  }
  func.func @transform_2(%arg0: i32) -> (i32, i32) {
    %c0_i32 = arith.constant 0 : i32
    %c0_i32_0 = arith.constant 0 : i32
    return %arg0, %c0_i32 : i32, i32
  }
  func.func @transform_3(%arg0: i32) -> (i32, i32, i32) {
    %c0_i32 = arith.constant 0 : i32
    %c0_i32_0 = arith.constant 0 : i32
    %c0_i32_1 = arith.constant 0 : i32
    return %arg0, %c0_i32, %c0_i32_0 : i32, i32, i32
  }
  func.func @transform_4(%arg0: i32) -> (i32, i32, i32) {
    %c0_i32 = arith.constant 0 : i32
    %c0_i32_0 = arith.constant 0 : i32
    %c0_i32_1 = arith.constant 0 : i32
    return %arg0, %c0_i32, %c0_i32_0 : i32, i32, i32
  }
}

module attributes {stable_mosaic.version = 11 : i64} {
  func.func @_bn_res_elu_kernel(%arg0: i32, %arg1: memref<1024x128xbf16, #tpu.memory_space<vmem>>, %arg2: memref<1024x8xf32, #tpu.memory_space<vmem>>, %arg3: memref<8x128xf32, #tpu.memory_space<vmem>>, %arg4: memref<1x128xf32, #tpu.memory_space<vmem>>, %arg5: memref<1x128xf32, #tpu.memory_space<vmem>>, %arg6: memref<1024x128xf32, #tpu.memory_space<vmem>>) attributes {dimension_semantics = [#tpu.dimension_semantics<parallel>], iteration_bounds = array<i64: 1>, scalar_prefetch = 0 : i64, scratch_operands = 0 : i64, tpu.core_type = #tpu.core_type<tc>, window_params = [{transform_indices = @transform_0, window_bounds = array<i64: 1024, 128>}, {transform_indices = @transform_1, window_bounds = array<i64: 1024, 8>}, {pipeline_mode = #tpu.pipeline_mode<synchronous>, transform_indices = @transform_2, window_bounds = array<i64: 8, 128>}, {pipeline_mode = #tpu.pipeline_mode<synchronous>, transform_indices = @transform_3, window_bounds = array<i64: 1, 128>}, {pipeline_mode = #tpu.pipeline_mode<synchronous>, transform_indices = @transform_4, window_bounds = array<i64: 1, 128>}, {transform_indices = @transform_5, window_bounds = array<i64: 1024, 128>}]} {
    %c0 = arith.constant 0 : index
    %c0_0 = arith.constant 0 : index
    %0 = vector.load %arg2[%c0, %c0_0] : memref<1024x8xf32, #tpu.memory_space<vmem>>, vector<1024x8xf32>
    %c0_1 = arith.constant 0 : index
    %c0_2 = arith.constant 0 : index
    %1 = vector.load %arg3[%c0_1, %c0_2] : memref<8x128xf32, #tpu.memory_space<vmem>>, vector<8x128xf32>
    %cst = arith.constant dense<0.000000e+00> : vector<1024x128xf32>
    %2 = tpu.matmul %0, %1, %cst {dimension_numbers = #tpu.dot_dimension_numbers<[1], [0], [0], [1], [0, 0, 1, 1], [], []>} : vector<1024x8xf32>, vector<8x128xf32>, vector<1024x128xf32> -> vector<1024x128xf32>
    %c0_3 = arith.constant 0 : index
    %c0_4 = arith.constant 0 : index
    %3 = vector.load %arg1[%c0_3, %c0_4] : memref<1024x128xbf16, #tpu.memory_space<vmem>>, vector<1024x128xbf16>
    %4 = arith.extf %3 : vector<1024x128xbf16> to vector<1024x128xf32>
    %c0_5 = arith.constant 0 : index
    %c0_6 = arith.constant 0 : index
    %5 = vector.load %arg4[%c0_5, %c0_6] : memref<1x128xf32, #tpu.memory_space<vmem>>, vector<1x128xf32>
    %6 = vector.broadcast %5 : vector<1x128xf32> to vector<1024x128xf32>
    %7 = arith.mulf %4, %6 : vector<1024x128xf32>
    %c0_7 = arith.constant 0 : index
    %c0_8 = arith.constant 0 : index
    %8 = vector.load %arg5[%c0_7, %c0_8] : memref<1x128xf32, #tpu.memory_space<vmem>>, vector<1x128xf32>
    %9 = vector.broadcast %8 : vector<1x128xf32> to vector<1024x128xf32>
    %10 = arith.addf %7, %9 : vector<1024x128xf32>
    %11 = arith.addf %10, %2 : vector<1024x128xf32>
    %cst_9 = arith.constant 0.000000e+00 : f32
    %12 = vector.broadcast %cst_9 : f32 to vector<1024x128xf32>
    %13 = arith.cmpf ogt, %11, %12 : vector<1024x128xf32>
    %14 = math.exp %11 : vector<1024x128xf32>
    %cst_10 = arith.constant 1.000000e+00 : f32
    %15 = vector.broadcast %cst_10 : f32 to vector<1024x128xf32>
    %16 = arith.subf %14, %15 : vector<1024x128xf32>
    %17 = arith.select %13, %11, %16 : vector<1024x128xi1>, vector<1024x128xf32>
    %c0_11 = arith.constant 0 : index
    %c0_12 = arith.constant 0 : index
    %18 = vector.load %arg6[%c0_11, %c0_12] : memref<1024x128xf32, #tpu.memory_space<vmem>>, vector<1024x128xf32>
    tpu.vector_store %arg6[%c0_11, %c0_12], %17 {strides = array<i32>} : memref<1024x128xf32, #tpu.memory_space<vmem>>, vector<1024x128xf32>,
    return
  }
  func.func @transform_0(%arg0: i32) -> (i32, i32) {
    %c0_i32 = arith.constant 0 : i32
    %c0_i32_0 = arith.constant 0 : i32
    return %arg0, %c0_i32 : i32, i32
  }
  func.func @transform_1(%arg0: i32) -> (i32, i32) {
    %c0_i32 = arith.constant 0 : i32
    %c0_i32_0 = arith.constant 0 : i32
    return %arg0, %c0_i32 : i32, i32
  }
  func.func @transform_2(%arg0: i32) -> (i32, i32) {
    %c0_i32 = arith.constant 0 : i32
    %c0_i32_0 = arith.constant 0 : i32
    %c0_i32_1 = arith.constant 0 : i32
    return %c0_i32, %c0_i32_0 : i32, i32
  }
  func.func @transform_3(%arg0: i32) -> (i32, i32) {
    %c0_i32 = arith.constant 0 : i32
    %c0_i32_0 = arith.constant 0 : i32
    %c0_i32_1 = arith.constant 0 : i32
    return %c0_i32, %c0_i32_0 : i32, i32
  }
  func.func @transform_4(%arg0: i32) -> (i32, i32) {
    %c0_i32 = arith.constant 0 : i32
    %c0_i32_0 = arith.constant 0 : i32
    %c0_i32_1 = arith.constant 0 : i32
    return %c0_i32, %c0_i32_0 : i32, i32
  }
  func.func @transform_5(%arg0: i32) -> (i32, i32) {
    %c0_i32 = arith.constant 0 : i32
    %c0_i32_0 = arith.constant 0 : i32
    return %arg0, %c0_i32 : i32, i32
  }
}

</mosaic_0001>

<bundles_post_ra>
// kernel: tile.13
= control target key start
LH: loop header
LB: loop body
LE: loop exit
PB: predicated region body
PF: predicated region fallthrough
CT: control target
= control target key end

     0   :  { %s22_s0 = inlined_call_operand.vmem [shape: f32[16], index: 0, kind: input, shape index: {}]   ;;  %s23_s1 = inlined_call_operand.vmem [shape: f32[8,16], index: 1, kind: output, shape index: {}]  }
   0x1   :  { %v4_v0 = vld [vmem:[%s22_s0] ss:$0 sm:$0xff] }
   0x2   :  { %5 = vst [vmem:[%s23_s1] sm:$0xff] %v4_v0 }

// kernel: tile.14
= control target key start
LH: loop header
LB: loop body
LE: loop exit
PB: predicated region body
PF: predicated region fallthrough
CT: control target
= control target key end

     0   :  { %s67_s10 = smov 112   ;;  %s68_s11 = smov 80   ;;  %vm3_vm0 = vcmask 130048   ;;  %vm9_vm1 = vcmask 1048448   ;;  %vm15_vm2 = vcmask 917248   ;;  %vm21_vm3 = vcmask 786048   ;;  %s111_s0 = inlined_call_operand.vmem [shape: f32[8,16], index: 0, kind: input, shape index: {}]   ;;  %s112_s1 = inlined_call_operand.vmem [shape: f32[1,128], index: 1, kind: output, shape index: {}]  }
   0x1   :  { %v53_v0 = vld [vmem:[%s111_s0 + $0x7] sm:$0x1]   ;;  %v55_v1 = vld [vmem:[%s111_s0 + $0x5] sm:$0x1]   ;;  %v54_v2 = vld [vmem:[%s111_s0 + $0x6] sm:$0x1]  }
   0x2   :  { %7 = vrot.lane.b32.xlu0 %v53_v0, %s67_s10  ;;  %19 = vrot.lane.b32.xlu1 %v55_v1, %s68_s11  ;;  %v56_v3 = vld [vmem:[%s111_s0 + $0x4] sm:$0x1]   ;;  %v2_v4 = vld [vmem:[%s111_s0] sm:$0x1]   ;;  %s69_s18 = smov 96   ;;  %s70_s19 = smov 64  }
   0x3   :  { %4 = vst.msk [vmem:[#allocation0] sm:$0x1] %vm3_vm0, %v2_v4   ;;  %v57_v5 = vld [vmem:[%s111_s0 + $0x3] sm:$0x1]   ;;  %v58_v6 = vld [vmem:[%s111_s0 + $0x2] sm:$0x1]  }
   0x4   :  { %s71_s24 = smov 48   ;;  %s72_s25 = smov 32   ;;  %v59_v7 = vld [vmem:[%s111_s0 + $0x1] sm:$0x1]   ;;  %vm27_vm4 = vcmask 654848   ;;  %vm33_vm5 = vcmask 523648  }
   0x5   :  { %s73_s0 = smov 16   ;;  %vm39_vm6 = vcmask 392448   ;;  %vm45_vm7 = vcmask 261248  }
   0x6   :  { %13 = vrot.lane.b32.xlu0 %v54_v2, %s69_s18  ;;  %25 = vrot.lane.b32.xlu1 %v56_v3, %s70_s19 }
   0xa   :  { %31 = vrot.lane.b32.xlu0 %v57_v5, %s71_s24  ;;  %37 = vrot.lane.b32.xlu1 %v58_v6, %s72_s25 }
   0xe   :  { %43 = vrot.lane.b32.xlu0 %v59_v7, %s73_s0 }
  0x74   :  { %v8_v8 = vpop.permute.xlu0 %7   ;;  %v20_v9 = vpop.permute.xlu1 %19  }
  0x75   :  { %10 = vst.msk [vmem:[#allocation0] sm:$0x1] %vm9_vm1, %v8_v8  }
  0x78   :  { %v14_v10 = vpop.permute.xlu0 %13   ;;  %v26_v11 = vpop.permute.xlu1 %25  }
  0x79   :  { %16 = vst.msk [vmem:[#allocation0] sm:$0x1] %vm15_vm2, %v14_v10  }
  0x7a   :  { %22 = vst.msk [vmem:[#allocation0] sm:$0x1] %vm21_vm3, %v20_v9  }
  0x7b   :  { %28 = vst.msk [vmem:[#allocation0] sm:$0x1] %vm27_vm4, %v26_v11  }
  0x7c   :  { %v32_v12 = vpop.permute.xlu0 %31   ;;  %v38_v13 = vpop.permute.xlu1 %37  }
  0x7d   :  { %34 = vst.msk [vmem:[#allocation0] sm:$0x1] %vm33_vm5, %v32_v12  }
  0x7e   :  { %40 = vst.msk [vmem:[#allocation0] sm:$0x1] %vm39_vm6, %v38_v13  }
  0x80   :  { %v44_v14 = vpop.permute.xlu0 %43  }
  0x81   :  { %46 = vst.msk [vmem:[#allocation0] sm:$0x1] %vm45_vm7, %v44_v14  }
  0x88   :  { %v50_v15 = vld [vmem:[#allocation0] sm:$0x1] }
  0x89   :  { %52 = vst [vmem:[%s112_s1] sm:$0x1] %v50_v15 }

// kernel: input_transition.3
= control target key start
LH: loop header
LB: loop body
LE: loop exit
PB: predicated region body
PF: predicated region fallthrough
CT: control target
= control target key end

     0   :  { %vm149_vm0 = vcmask 64512   ;;  %s6677_s2 = inlined_call_operand.vmem [shape: f32[8,128], index: 2, kind: input, shape index: {}]   ;;  %s6678_s1 = inlined_call_operand.vmem [shape: f32[1024,8], index: 1, kind: input, shape index: {}]   ;;  %s6679_s0 = inlined_call_operand.vmem [shape: bf16[1024,128], index: 0, kind: input, shape index: {}]   ;;  %s6680_s3 = inlined_call_operand.vmem [shape: f32[1,128], index: 3, kind: input, shape index: {}]   ;;  %s6681_s4 = inlined_call_operand.vmem [shape: f32[1,128], index: 4, kind: input, shape index: {}]   ;;  %s6682_s5 = inlined_call_operand.vmem [shape: f32[1024,128], index: 5, kind: output, shape index: {}]  }
   0x1   :  { %v148_v0 = vld [vmem:[%s6677_s2] sm:$0xff]  ;;  %v21_v3 = vld [vmem:[%s6678_s1 + $0x8] sm:$0xff]  ;;  %v22_v5 = vld [vmem:[%s6678_s1 + $0x10] sm:$0xff] }
   0x2   :  { %v20_v1 = vld [vmem:[%s6678_s1] sm:$0xff]  ;;  %3371 = vmatprep.subr.mxu0 %v148_v0  ;;  %3565 = vmatprep.subr.mxu1 %v148_v0  ;;  %v85_v4 = vld [vmem:[%s6678_s1 + $0x208] sm:$0xff]  ;;  %v86_v6 = vld [vmem:[%s6678_s1 + $0x210] sm:$0xff] }
   0x3   :  { %v84_v2 = vld [vmem:[%s6678_s1 + $0x200] sm:$0xff]  ;;  %3372 = vmatpush3.msra.mxu0 %v148_v0  ;;  %3566 = vmatpush3.msra.mxu1 %v148_v0  ;;  %v23_v7 = vld [vmem:[%s6678_s1 + $0x18] sm:$0xff]  ;;  %v25_v11 = vld [vmem:[%s6678_s1 + $0x28] sm:$0xff] }
   0x4   :  { %3373 = vmatprep.mubr.msk.f32.mxu0 %vm149_vm0, %v20_v1  ;;  %3469 = vmatprep.mubr.msk.f32.mxu1 %vm149_vm0, %v84_v2  ;;  %v87_v8 = vld [vmem:[%s6678_s1 + $0x218] sm:$0xff]  ;;  %v24_v9 = vld [vmem:[%s6678_s1 + $0x20] sm:$0xff]  ;;  %v89_v12 = vld [vmem:[%s6678_s1 + $0x228] sm:$0xff] }
   0x5   :  { %3374 = vmatmul.mubr.msk.f32.vlgmr.msra.gmra.mrb[0].mxu0 %vm149_vm0, %v21_v3  ;;  %3470 = vmatmul.mubr.msk.f32.vlgmr.msra.gmra.mrb[0].mxu1 %vm149_vm0, %v85_v4  ;;  %v88_v10 = vld [vmem:[%s6678_s1 + $0x220] sm:$0xff]  ;;  %v26_v13 = vld [vmem:[%s6678_s1 + $0x30] sm:$0xff]  ;;  %v27_v15 = vld [vmem:[%s6678_s1 + $0x38] sm:$0xff] }
   0x6   :  { %3376 = vmatprep.mubr.msk.f32.mxu0 %vm149_vm0, %v22_v5  ;;  %3472 = vmatprep.mubr.msk.f32.mxu1 %vm149_vm0, %v86_v6  ;;  %v90_v14 = vld [vmem:[%s6678_s1 + $0x230] sm:$0xff]  ;;  %v91_v16 = vld [vmem:[%s6678_s1 + $0x238] sm:$0xff]  ;;  %v28_v17 = vld [vmem:[%s6678_s1 + $0x40] sm:$0xff] }
   0x7   :  { %v92_v18 = vld [vmem:[%s6678_s1 + $0x240] sm:$0xff]  ;;  %v29_v19 = vld [vmem:[%s6678_s1 + $0x48] sm:$0xff]  ;;  %v30_v21 = vld [vmem:[%s6678_s1 + $0x50] sm:$0xff] }
   0x8   :  { %v93_v20 = vld [vmem:[%s6678_s1 + $0x248] sm:$0xff]  ;;  %v94_v22 = vld [vmem:[%s6678_s1 + $0x250] sm:$0xff]  ;;  %v31_v23 = vld [vmem:[%s6678_s1 + $0x58] sm:$0xff] }
   0x9   :  { %3377 = vmatmul.mubr.msk.f32.gmra.mrb[2].mxu0 %vm149_vm0, %v23_v7  ;;  %3473 = vmatmul.mubr.msk.f32.gmra.mrb[2].mxu1 %vm149_vm0, %v87_v8  ;;  %v95_v24 = vld [vmem:[%s6678_s1 + $0x258] sm:$0xff]  ;;  %v32_v25 = vld [vmem:[%s6678_s1 + $0x60] sm:$0xff]  ;;  %v33_v27 = vld [vmem:[%s6678_s1 + $0x68] sm:$0xff] }
   0xa   :  { %3379 = vmatprep.mubr.msk.f32.mxu0 %vm149_vm0, %v24_v9  ;;  %3475 = vmatprep.mubr.msk.f32.mxu1 %vm149_vm0, %v88_v10  ;;  %v96_v26 = vld [vmem:[%s6678_s1 + $0x260] sm:$0xff]  ;;  %v97_v28 = vld [vmem:[%s6678_s1 + $0x268] sm:$0xff]  ;;  %v34_v29 = vld [vmem:[%s6678_s1 + $0x70] sm:$0xff] }
   0xb   :  { %v98_v30 = vld [vmem:[%s6678_s1 + $0x270] sm:$0xff]  ;;  %v35_v31 = vld [vmem:[%s6678_s1 + $0x78] sm:$0xff]  ;;  %v36_v33 = vld [vmem:[%s6678_s1 + $0x80] sm:$0xff] }
   0xc   :  { %v99_v32 = vld [vmem:[%s6678_s1 + $0x278] sm:$0xff]  ;;  %v100_v34 = vld [vmem:[%s6678_s1 + $0x280] sm:$0xff]  ;;  %v37_v35 = vld [vmem:[%s6678_s1 + $0x88] sm:$0xff] }
   0xd   :  { %3380 = vmatmul.mubr.msk.f32.gmra.mrb[4].mxu0 %vm149_vm0, %v25_v11  ;;  %3476 = vmatmul.mubr.msk.f32.gmra.mrb[4].mxu1 %vm149_vm0, %v89_v12  ;;  %v101_v36 = vld [vmem:[%s6678_s1 + $0x288] sm:$0xff]  ;;  %v38_v37 = vld [vmem:[%s6678_s1 + $0x90] sm:$0xff]  ;;  %v39_v39 = vld [vmem:[%s6678_s1 + $0x98] sm:$0xff] }
   0xe   :  { %3382 = vmatprep.mubr.msk.f32.mxu0 %vm149_vm0, %v26_v13  ;;  %3478 = vmatprep.mubr.msk.f32.mxu1 %vm149_vm0, %v90_v14  ;;  %v102_v38 = vld [vmem:[%s6678_s1 + $0x290] sm:$0xff]  ;;  %v103_v40 = vld [vmem:[%s6678_s1 + $0x298] sm:$0xff]  ;;  %v40_v41 = vld [vmem:[%s6678_s1 + $0xa0] sm:$0xff] }
   0xf   :  { %v104_v42 = vld [vmem:[%s6678_s1 + $0x2a0] sm:$0xff]  ;;  %v41_v43 = vld [vmem:[%s6678_s1 + $0xa8] sm:$0xff]  ;;  %v42_v45 = vld [vmem:[%s6678_s1 + $0xb0] sm:$0xff] }
  0x10   :  { %v105_v44 = vld [vmem:[%s6678_s1 + $0x2a8] sm:$0xff]  ;;  %v106_v46 = vld [vmem:[%s6678_s1 + $0x2b0] sm:$0xff]  ;;  %v43_v47 = vld [vmem:[%s6678_s1 + $0xb8] sm:$0xff] }
  0x11   :  { %3383 = vmatmul.mubr.msk.f32.gmra.mrb[6].mxu0 %vm149_vm0, %v27_v15  ;;  %3479 = vmatmul.mubr.msk.f32.gmra.mrb[6].mxu1 %vm149_vm0, %v91_v16  ;;  %v107_v48 = vld [vmem:[%s6678_s1 + $0x2b8] sm:$0xff]  ;;  %v44_v49 = vld [vmem:[%s6678_s1 + $0xc0] sm:$0xff]  ;;  %v45_v51 = vld [vmem:[%s6678_s1 + $0xc8] sm:$0xff] }
  0x12   :  { %3385 = vmatprep.mubr.msk.f32.mxu0 %vm149_vm0, %v28_v17  ;;  %3481 = vmatprep.mubr.msk.f32.mxu1 %vm149_vm0, %v92_v18  ;;  %v108_v50 = vld [vmem:[%s6678_s1 + $0x2c0] sm:$0xff]  ;;  %v109_v52 = vld [vmem:[%s6678_s1 + $0x2c8] sm:$0xff]  ;;  %v46_v53 = vld [vmem:[%s6678_s1 + $0xd0] sm:$0xff] }
  0x13   :  { %v110_v54 = vld [vmem:[%s6678_s1 + $0x2d0] sm:$0xff]  ;;  %v47_v55 = vld [vmem:[%s6678_s1 + $0xd8] sm:$0xff]  ;;  %v48_v57 = vld [vmem:[%s6678_s1 + $0xe0] sm:$0xff] }
  0x14   :  { %v111_v56 = vld [vmem:[%s6678_s1 + $0x2d8] sm:$0xff]  ;;  %v112_v58 = vld [vmem:[%s6678_s1 + $0x2e0] sm:$0xff]  ;;  %v49_v59 = vld [vmem:[%s6678_s1 + $0xe8] sm:$0xff] }
  0x15   :  { %3386 = vmatmul.mubr.msk.f32.gmra.mrb[8].mxu0 %vm149_vm0, %v29_v19  ;;  %3482 = vmatmul.mubr.msk.f32.gmra.mrb[8].mxu1 %vm149_vm0, %v93_v20  ;;  %v113_v60 = vld [vmem:[%s6678_s1 + $0x2e8] sm:$0xff]  ;;  %v50_v61 = vld [vmem:[%s6678_s1 + $0xf0] sm:$0xff]  ;;  %v51_v63 = vld [vmem:[%s6678_s1 + $0xf8] sm:$0xff] }
  0x16   :  { %3388 = vmatprep.mubr.msk.f32.mxu0 %vm149_vm0, %v30_v21  ;;  %3484 = vmatprep.mubr.msk.f32.mxu1 %vm149_vm0, %v94_v22  ;;  %v114_v62 = vld [vmem:[%s6678_s1 + $0x2f0] sm:$0xff]  ;;  %v115_v0 = vld [vmem:[%s6678_s1 + $0x2f8] sm:$0xff]  ;;  %v52_v1 = vld [vmem:[%s6678_s1 + $0x100] sm:$0xff] }
  0x17   :  { %v116_v2 = vld [vmem:[%s6678_s1 + $0x300] sm:$0xff]  ;;  %v53_v3 = vld [vmem:[%s6678_s1 + $0x108] sm:$0xff]  ;;  %v54_v5 = vld [vmem:[%s6678_s1 + $0x110] sm:$0xff] }
  0x18   :  { %v117_v4 = vld [vmem:[%s6678_s1 + $0x308] sm:$0xff]  ;;  %v118_v6 = vld [vmem:[%s6678_s1 + $0x310] sm:$0xff]  ;;  %v55_v7 = vld [vmem:[%s6678_s1 + $0x118] sm:$0xff] }
  0x19   :  { %3389 = vmatmul.mubr.msk.f32.gmra.mrb[10].mxu0 %vm149_vm0, %v31_v23  ;;  %3485 = vmatmul.mubr.msk.f32.gmra.mrb[10].mxu1 %vm149_vm0, %v95_v24  ;;  %v119_v8 = vld [vmem:[%s6678_s1 + $0x318] sm:$0xff]  ;;  %v56_v9 = vld [vmem:[%s6678_s1 + $0x120] sm:$0xff]  ;;  %v57_v11 = vld [vmem:[%s6678_s1 + $0x128] sm:$0xff] }
  0x1a   :  { %3391 = vmatprep.mubr.msk.f32.mxu0 %vm149_vm0, %v32_v25  ;;  %3487 = vmatprep.mubr.msk.f32.mxu1 %vm149_vm0, %v96_v26  ;;  %v120_v10 = vld [vmem:[%s6678_s1 + $0x320] sm:$0xff]  ;;  %v121_v12 = vld [vmem:[%s6678_s1 + $0x328] sm:$0xff]  ;;  %v58_v13 = vld [vmem:[%s6678_s1 + $0x130] sm:$0xff] }
  0x1b   :  { %v122_v14 = vld [vmem:[%s6678_s1 + $0x330] sm:$0xff]  ;;  %v59_v15 = vld [vmem:[%s6678_s1 + $0x138] sm:$0xff]  ;;  %v60_v17 = vld [vmem:[%s6678_s1 + $0x140] sm:$0xff] }
  0x1c   :  { %v123_v16 = vld [vmem:[%s6678_s1 + $0x338] sm:$0xff]  ;;  %v124_v18 = vld [vmem:[%s6678_s1 + $0x340] sm:$0xff]  ;;  %v61_v19 = vld [vmem:[%s6678_s1 + $0x148] sm:$0xff] }
  0x1d   :  { %3392 = vmatmul.mubr.msk.f32.gmra.mrb[12].mxu0 %vm149_vm0, %v33_v27  ;;  %3488 = vmatmul.mubr.msk.f32.gmra.mrb[12].mxu1 %vm149_vm0, %v97_v28  ;;  %v125_v20 = vld [vmem:[%s6678_s1 + $0x348] sm:$0xff]  ;;  %v62_v21 = vld [vmem:[%s6678_s1 + $0x150] sm:$0xff]  ;;  %v63_v23 = vld [vmem:[%s6678_s1 + $0x158] sm:$0xff] }
  0x1e   :  { %3394 = vmatprep.mubr.msk.f32.mxu0 %vm149_vm0, %v34_v29  ;;  %3490 = vmatprep.mubr.msk.f32.mxu1 %vm149_vm0, %v98_v30  ;;  %v126_v22 = vld [vmem:[%s6678_s1 + $0x350] sm:$0xff]  ;;  %v127_v24 = vld [vmem:[%s6678_s1 + $0x358] sm:$0xff]  ;;  %v64_v25 = vld [vmem:[%s6678_s1 + $0x160] sm:$0xff] }
  0x1f   :  { %v128_v26 = vld [vmem:[%s6678_s1 + $0x360] sm:$0xff]  ;;  %v65_v27 = vld [vmem:[%s6678_s1 + $0x168] sm:$0xff]  ;;  %v66_v29 = vld [vmem:[%s6678_s1 + $0x170] sm:$0xff] }
  0x20   :  { %v129_v28 = vld [vmem:[%s6678_s1 + $0x368] sm:$0xff]  ;;  %v130_v30 = vld [vmem:[%s6678_s1 + $0x370] sm:$0xff] }
  0x21   :  { %3395 = vmatmul.mubr.msk.f32.gmra.mrb[14].mxu0 %vm149_vm0, %v35_v31  ;;  %3491 = vmatmul.mubr.msk.f32.gmra.mrb[14].mxu1 %vm149_vm0, %v99_v32  ;;  %v67_v31 = vld [vmem:[%s6678_s1 + $0x178] sm:$0xff] }
  0x22   :  { %3397 = vmatprep.mubr.msk.f32.mxu0 %vm149_vm0, %v36_v33  ;;  %3493 = vmatprep.mubr.msk.f32.mxu1 %vm149_vm0, %v100_v34  ;;  %v131_v32 = vld [vmem:[%s6678_s1 + $0x378] sm:$0xff]  ;;  %v68_v33 = vld [vmem:[%s6678_s1 + $0x180] sm:$0xff] }
  0x23   :  { %v132_v34 = vld [vmem:[%s6678_s1 + $0x380] sm:$0xff] }
  0x25   :  { %3398 = vmatmul.mubr.msk.f32.gmra.mrb[16].mxu0 %vm149_vm0, %v37_v35  ;;  %3494 = vmatmul.mubr.msk.f32.gmra.mrb[16].mxu1 %vm149_vm0, %v101_v36  ;;  %v69_v35 = vld [vmem:[%s6678_s1 + $0x188] sm:$0xff] }
  0x26   :  { %3400 = vmatprep.mubr.msk.f32.mxu0 %vm149_vm0, %v38_v37  ;;  %3496 = vmatprep.mubr.msk.f32.mxu1 %vm149_vm0, %v102_v38  ;;  %v133_v36 = vld [vmem:[%s6678_s1 + $0x388] sm:$0xff]  ;;  %v70_v37 = vld [vmem:[%s6678_s1 + $0x190] sm:$0xff] }
  0x27   :  { %v134_v38 = vld [vmem:[%s6678_s1 + $0x390] sm:$0xff] }
  0x29   :  { %3401 = vmatmul.mubr.msk.f32.gmra.mrb[18].mxu0 %vm149_vm0, %v39_v39  ;;  %3497 = vmatmul.mubr.msk.f32.gmra.mrb[18].mxu1 %vm149_vm0, %v103_v40  ;;  %v71_v39 = vld [vmem:[%s6678_s1 + $0x198] sm:$0xff] }
  0x2a   :  { %3403 = vmatprep.mubr.msk.f32.mxu0 %vm149_vm0, %v40_v41  ;;  %3499 = vmatprep.mubr.msk.f32.mxu1 %vm149_vm0, %v104_v42  ;;  %v135_v40 = vld [vmem:[%s6678_s1 + $0x398] sm:$0xff]  ;;  %v72_v41 = vld [vmem:[%s6678_s1 + $0x1a0] sm:$0xff] }
  0x2b   :  { %v136_v42 = vld [vmem:[%s6678_s1 + $0x3a0] sm:$0xff] }
  0x2d   :  { %3404 = vmatmul.mubr.msk.f32.gmra.mrb[20].mxu0 %vm149_vm0, %v41_v43  ;;  %3500 = vmatmul.mubr.msk.f32.gmra.mrb[20].mxu1 %vm149_vm0, %v105_v44  ;;  %v73_v43 = vld [vmem:[%s6678_s1 + $0x1a8] sm:$0xff] }
  0x2e   :  { %3406 = vmatprep.mubr.msk.f32.mxu0 %vm149_vm0, %v42_v45  ;;  %3502 = vmatprep.mubr.msk.f32.mxu1 %vm149_vm0, %v106_v46  ;;  %v137_v44 = vld [vmem:[%s6678_s1 + $0x3a8] sm:$0xff]  ;;  %v74_v45 = vld [vmem:[%s6678_s1 + $0x1b0] sm:$0xff] }
  0x2f   :  { %v138_v46 = vld [vmem:[%s6678_s1 + $0x3b0] sm:$0xff] }
  0x31   :  { %3407 = vmatmul.mubr.msk.f32.gmra.mrb[22].mxu0 %vm149_vm0, %v43_v47  ;;  %3503 = vmatmul.mubr.msk.f32.gmra.mrb[22].mxu1 %vm149_vm0, %v107_v48  ;;  %v75_v47 = vld [vmem:[%s6678_s1 + $0x1b8] sm:$0xff] }
  0x32   :  { %3409 = vmatprep.mubr.msk.f32.mxu0 %vm149_vm0, %v44_v49  ;;  %3505 = vmatprep.mubr.msk.f32.mxu1 %vm149_vm0, %v108_v50  ;;  %v139_v48 = vld [vmem:[%s6678_s1 + $0x3b8] sm:$0xff]  ;;  %v76_v49 = vld [vmem:[%s6678_s1 + $0x1c0] sm:$0xff] }
  0x33   :  { %v140_v50 = vld [vmem:[%s6678_s1 + $0x3c0] sm:$0xff] }
  0x35   :  { %3410 = vmatmul.mubr.msk.f32.gmra.mrb[24].mxu0 %vm149_vm0, %v45_v51  ;;  %3506 = vmatmul.mubr.msk.f32.gmra.mrb[24].mxu1 %vm149_vm0, %v109_v52  ;;  %v77_v51 = vld [vmem:[%s6678_s1 + $0x1c8] sm:$0xff] }
  0x36   :  { %3412 = vmatprep.mubr.msk.f32.mxu0 %vm149_vm0, %v46_v53  ;;  %3508 = vmatprep.mubr.msk.f32.mxu1 %vm149_vm0, %v110_v54  ;;  %v141_v52 = vld [vmem:[%s6678_s1 + $0x3c8] sm:$0xff]  ;;  %v78_v53 = vld [vmem:[%s6678_s1 + $0x1d0] sm:$0xff] }
  0x37   :  { %v142_v54 = vld [vmem:[%s6678_s1 + $0x3d0] sm:$0xff] }
  0x39   :  { %3413 = vmatmul.mubr.msk.f32.gmra.mrb[26].mxu0 %vm149_vm0, %v47_v55  ;;  %3509 = vmatmul.mubr.msk.f32.gmra.mrb[26].mxu1 %vm149_vm0, %v111_v56  ;;  %v79_v55 = vld [vmem:[%s6678_s1 + $0x1d8] sm:$0xff] }
  0x3a   :  { %3415 = vmatprep.mubr.msk.f32.mxu0 %vm149_vm0, %v48_v57  ;;  %3511 = vmatprep.mubr.msk.f32.mxu1 %vm149_vm0, %v112_v58  ;;  %v143_v56 = vld [vmem:[%s6678_s1 + $0x3d8] sm:$0xff]  ;;  %v80_v57 = vld [vmem:[%s6678_s1 + $0x1e0] sm:$0xff] }
  0x3b   :  { %v144_v58 = vld [vmem:[%s6678_s1 + $0x3e0] sm:$0xff] }
  0x3d   :  { %3416 = vmatmul.mubr.msk.f32.gmra.mrb[28].mxu0 %vm149_vm0, %v49_v59  ;;  %3512 = vmatmul.mubr.msk.f32.gmra.mrb[28].mxu1 %vm149_vm0, %v113_v60  ;;  %v81_v59 = vld [vmem:[%s6678_s1 + $0x1e8] sm:$0xff] }
  0x3e   :  { %3418 = vmatprep.mubr.msk.f32.mxu0 %vm149_vm0, %v50_v61  ;;  %3514 = vmatprep.mubr.msk.f32.mxu1 %vm149_vm0, %v114_v62  ;;  %v145_v60 = vld [vmem:[%s6678_s1 + $0x3e8] sm:$0xff]  ;;  %v82_v61 = vld [vmem:[%s6678_s1 + $0x1f0] sm:$0xff] }
  0x3f   :  { %v146_v62 = vld [vmem:[%s6678_s1 + $0x3f0] sm:$0xff] }
  0x41   :  { %3419 = vmatmul.mubr.msk.f32.gmra.mrb[30].mxu0 %vm149_vm0, %v51_v63  ;;  %3515 = vmatmul.mubr.msk.f32.gmra.mrb[30].mxu1 %vm149_vm0, %v115_v0  ;;  %v83_v63 = vld [vmem:[%s6678_s1 + $0x1f8] sm:$0xff] }
  0x42   :  { %3421 = vmatprep.mubr.msk.f32.mxu0 %vm149_vm0, %v52_v1  ;;  %3517 = vmatprep.mubr.msk.f32.mxu1 %vm149_vm0, %v116_v2  ;;  %v147_v0 = vld [vmem:[%s6678_s1 + $0x3f8] sm:$0xff]  ;;  %v2924_v1 = vld [vmem:[%s6679_s0] sm:$0xff]  }
  0x43   :  { %v3210_v2 = vld [vmem:[%s6679_s0 + $0x100] sm:$0xff]  }
  0x45   :  { %3422 = vmatmul.mubr.msk.f32.gmra.mrb[32].mxu0 %vm149_vm0, %v53_v3  ;;  %3518 = vmatmul.mubr.msk.f32.gmra.mrb[32].mxu1 %vm149_vm0, %v117_v4  ;;  %v2926_v3 = vunpack.c.h.bf16 %v2924_v1  ;;  %v3054_v4 = vunpack.c.h.bf16 %v3210_v2 }
  0x46   :  { %3424 = vmatprep.mubr.msk.f32.mxu0 %vm149_vm0, %v54_v5  ;;  %3520 = vmatprep.mubr.msk.f32.mxu1 %vm149_vm0, %v118_v6  ;;  %v4381_v5 = vld [vmem:[%s6680_s3] ss:$0 sm:$0xff]  ;;  %v2925_v6 = vunpack.c.l.bf16 %v2924_v1 }
  0x49   :  { %3425 = vmatmul.mubr.msk.f32.gmra.mrb[34].mxu0 %vm149_vm0, %v55_v7  ;;  %3521 = vmatmul.mubr.msk.f32.gmra.mrb[34].mxu1 %vm149_vm0, %v119_v8  ;;  %v3179_v7 = vld [vmem:[%s6679_s0 + $0x8] sm:$0xff]  }
  0x4a   :  { %3427 = vmatprep.mubr.msk.f32.mxu0 %vm149_vm0, %v56_v9  ;;  %3523 = vmatprep.mubr.msk.f32.mxu1 %vm149_vm0, %v120_v10  ;;  %v3211_v8 = vld [vmem:[%s6679_s0 + $0x108] sm:$0xff]   ;;  %v3053_v9 = vunpack.c.l.bf16 %v3210_v2  ;;  %v1503_v10 = vmul.f32 %v2926_v3, %v4381_v5 }
  0x4d   :  { %3428 = vmatmul.mubr.msk.f32.gmra.mrb[36].mxu0 %vm149_vm0, %v57_v11  ;;  %3524 = vmatmul.mubr.msk.f32.gmra.mrb[36].mxu1 %vm149_vm0, %v121_v12  ;;  %v1567_v11 = vmul.f32 %v3054_v4, %v4381_v5  ;;  %v2930_v12 = vunpack.c.h.bf16 %v3179_v7 }
  0x4e   :  { %3430 = vmatprep.mubr.msk.f32.mxu0 %vm149_vm0, %v58_v13  ;;  %3526 = vmatprep.mubr.msk.f32.mxu1 %vm149_vm0, %v122_v14  ;;  %v3180_v13 = vld [vmem:[%s6679_s0 + $0x10] sm:$0xff]   ;;  %v4397_v14 = vld [vmem:[%s6681_s4] ss:$0 sm:$0xff] }
  0x51   :  { %3431 = vmatmul.mubr.msk.f32.gmra.mrb[38].mxu0 %vm149_vm0, %v59_v15  ;;  %3527 = vmatmul.mubr.msk.f32.gmra.mrb[38].mxu1 %vm149_vm0, %v123_v16  ;;  %v1502_v15 = vmul.f32 %v2925_v6, %v4381_v5  ;;  %v3058_v16 = vunpack.c.h.bf16 %v3211_v8  ;;  %v3216_v6 = vld [vmem:[%s6679_s0 + $0x130] sm:$0xff]  }
  0x52   :  { %3433 = vmatprep.mubr.msk.f32.mxu0 %vm149_vm0, %v60_v17  ;;  %3529 = vmatprep.mubr.msk.f32.mxu1 %vm149_vm0, %v124_v18  ;;  %v3212_v17 = vld [vmem:[%s6679_s0 + $0x110] sm:$0xff]   ;;  %v2929_v18 = vunpack.c.l.bf16 %v3179_v7 }
  0x55   :  { %3434 = vmatmul.mubr.msk.f32.gmra.mrb[40].mxu0 %vm149_vm0, %v61_v19  ;;  %3530 = vmatmul.mubr.msk.f32.gmra.mrb[40].mxu1 %vm149_vm0, %v125_v20  ;;  %v3057_v19 = vunpack.c.l.bf16 %v3211_v8  ;;  %v1566_v20 = vmul.f32 %v3053_v9, %v4381_v5 }
  0x56   :  { %3436 = vmatprep.mubr.msk.f32.mxu0 %vm149_vm0, %v62_v21  ;;  %3532 = vmatprep.mubr.msk.f32.mxu1 %vm149_vm0, %v126_v22  ;;  %v2934_v21 = vunpack.c.h.bf16 %v3180_v13  ;;  %v3181_v22 = vld [vmem:[%s6679_s0 + $0x18] sm:$0xff]  }
  0x59   :  { %3437 = vmatmul.mubr.msk.f32.gmra.mrb[42].mxu0 %vm149_vm0, %v63_v23  ;;  %3533 = vmatmul.mubr.msk.f32.gmra.mrb[42].mxu1 %vm149_vm0, %v127_v24  ;;  %v3213_v23 = vld [vmem:[%s6679_s0 + $0x118] sm:$0xff]   ;;  %v4411_v24 = vadd.f32 %v4397_v14, %v1503_v10 }
  0x5a   :  { %3439 = vmatprep.mubr.msk.f32.mxu0 %vm149_vm0, %v64_v25  ;;  %3535 = vmatprep.mubr.msk.f32.mxu1 %vm149_vm0, %v128_v26  ;;  %v4414_v25 = vadd.f32 %v4397_v14, %v1567_v11  ;;  %v1505_v26 = vmul.f32 %v2930_v12, %v4381_v5 }
  0x5d   :  { %3440 = vmatmul.mubr.msk.f32.gmra.mrb[44].mxu0 %vm149_vm0, %v65_v27  ;;  %3536 = vmatmul.mubr.msk.f32.gmra.mrb[44].mxu1 %vm149_vm0, %v129_v28  ;;  %v3062_v27 = vunpack.c.h.bf16 %v3212_v17  ;;  %v4418_v28 = vadd.f32 %v4397_v14, %v1502_v15 }
  0x5e   :  { %3442 = vmatprep.mubr.msk.f32.mxu0 %vm149_vm0, %v66_v29  ;;  %3538 = vmatprep.mubr.msk.f32.mxu1 %vm149_vm0, %v130_v30  ;;  %v1569_v29 = vmul.f32 %v3058_v16, %v4381_v5  ;;  %v2933_v30 = vunpack.c.l.bf16 %v3180_v13  ;;  %v3185_v16 = vld [vmem:[%s6679_s0 + $0x38] sm:$0xff]  }
  0x61   :  { %3443 = vmatmul.mubr.msk.f32.gmra.mrb[46].mxu0 %vm149_vm0, %v67_v31  ;;  %3539 = vmatmul.mubr.msk.f32.gmra.mrb[46].mxu1 %vm149_vm0, %v131_v32  ;;  %v3061_v31 = vunpack.c.l.bf16 %v3212_v17  ;;  %v3182_v32 = vld [vmem:[%s6679_s0 + $0x20] sm:$0xff]   ;;  %v3217_v17 = vld [vmem:[%s6679_s0 + $0x138] sm:$0xff]  }
  0x62   :  { %3445 = vmatprep.mubr.msk.f32.mxu0 %vm149_vm0, %v68_v33  ;;  %3541 = vmatprep.mubr.msk.f32.mxu1 %vm149_vm0, %v132_v34  ;;  %v3214_v33 = vld [vmem:[%s6679_s0 + $0x120] sm:$0xff]   ;;  %v1504_v34 = vmul.f32 %v2929_v18, %v4381_v5 }
  0x65   :  { %3446 = vmatmul.mubr.msk.f32.gmra.mrb[48].mxu0 %vm149_vm0, %v69_v35  ;;  %3542 = vmatmul.mubr.msk.f32.gmra.mrb[48].mxu1 %vm149_vm0, %v133_v36  ;;  %v1568_v35 = vmul.f32 %v3057_v19, %v4381_v5  ;;  %v2938_v36 = vunpack.c.h.bf16 %v3181_v22 }
  0x66   :  { %3448 = vmatprep.mubr.msk.f32.mxu0 %vm149_vm0, %v70_v37  ;;  %3544 = vmatprep.mubr.msk.f32.mxu1 %vm149_vm0, %v134_v38  ;;  %v3066_v37 = vunpack.c.h.bf16 %v3213_v23  ;;  %v4430_v38 = vadd.f32 %v4397_v14, %v1566_v20 }
  0x69   :  { %3449 = vmatmul.mubr.msk.f32.gmra.mrb[50].mxu0 %vm149_vm0, %v71_v39  ;;  %3545 = vmatmul.mubr.msk.f32.gmra.mrb[50].mxu1 %vm149_vm0, %v135_v40  ;;  %v1507_v39 = vmul.f32 %v2934_v21, %v4381_v5  ;;  %v2937_v40 = vunpack.c.l.bf16 %v3181_v22  ;;  %v3078_v21 = vunpack.c.h.bf16 %v3216_v6 }
  0x6a   :  { %3451 = vmatprep.mubr.msk.f32.mxu0 %vm149_vm0, %v72_v41  ;;  %3547 = vmatprep.mubr.msk.f32.mxu1 %vm149_vm0, %v136_v42  ;;  %v3065_v41 = vunpack.c.l.bf16 %v3213_v23  ;;  %v4434_v42 = vadd.f32 %v4397_v14, %v1505_v26 }
  0x6d   :  { %3452 = vmatmul.mubr.msk.f32.gmra.mrb[52].mxu0 %vm149_vm0, %v73_v43  ;;  %3548 = vmatmul.mubr.msk.f32.gmra.mrb[52].mxu1 %vm149_vm0, %v137_v44  ;;  %v1571_v43 = vmul.f32 %v3062_v27, %v4381_v5  ;;  %v2942_v44 = vunpack.c.h.bf16 %v3182_v32  ;;  %v3077_v27 = vunpack.c.l.bf16 %v3216_v6 }
  0x6e   :  { %3454 = vmatprep.mubr.msk.f32.mxu0 %vm149_vm0, %v74_v45  ;;  %3550 = vmatprep.mubr.msk.f32.mxu1 %vm149_vm0, %v138_v46  ;;  %v3070_v45 = vunpack.c.h.bf16 %v3214_v33  ;;  %v4438_v46 = vadd.f32 %v4397_v14, %v1569_v29  ;;  %v3186_v29 = vld [vmem:[%s6679_s0 + $0x40] sm:$0xff]  }
  0x71   :  { %3455 = vmatmul.mubr.msk.f32.gmra.mrb[54].mxu0 %vm149_vm0, %v75_v47  ;;  %3551 = vmatmul.mubr.msk.f32.gmra.mrb[54].mxu1 %vm149_vm0, %v139_v48  ;;  %v1506_v47 = vmul.f32 %v2933_v30, %v4381_v5  ;;  %v1570_v48 = vmul.f32 %v3061_v31, %v4381_v5  ;;  %v3218_v30 = vld [vmem:[%s6679_s0 + $0x140] sm:$0xff]  }
  0x72   :  { %3457 = vmatprep.mubr.msk.f32.mxu0 %vm149_vm0, %v76_v49  ;;  %3553 = vmatprep.mubr.msk.f32.mxu1 %vm149_vm0, %v140_v50  ;;  %v2941_v49 = vunpack.c.l.bf16 %v3182_v32  ;;  %v3183_v50 = vld [vmem:[%s6679_s0 + $0x28] sm:$0xff]  }
  0x73   :  { %v4470_v1 = vadd.f32 %v4397_v14, %v1506_v47  ;;  %v4473_v2 = vadd.f32 %v4397_v14, %v1570_v48  ;;  %v2945_v9 = vunpack.c.l.bf16 %v3183_v50  ;;  %v1578_v48 = vmul.f32 %v3077_v27, %v4381_v5 }
  0x74   :  { %v1510_v3 = vmul.f32 %v2941_v49, %v4381_v5  ;;  %v2957_v49 = vunpack.c.l.bf16 %v3186_v29 }
  0x75   :  { %3458 = vmatmul.mubr.msk.f32.gmra.mrb[56].mxu0 %vm149_vm0, %v77_v51  ;;  %3554 = vmatmul.mubr.msk.f32.gmra.mrb[56].mxu1 %vm149_vm0, %v141_v52  ;;  %v4446_v51 = vadd.f32 %v4397_v14, %v1504_v34  ;;  %v4449_v52 = vadd.f32 %v4397_v14, %v1568_v35  ;;  %v1512_v31 = vmul.f32 %v2945_v9, %v4381_v5  ;;  %v3082_v34 = vunpack.c.h.bf16 %v3217_v17  ;;  %v3188_v9 = vld [vmem:[%s6679_s0 + $0x50] sm:$0xff]  }
  0x76   :  { %3460 = vmatprep.mubr.msk.f32.mxu0 %vm149_vm0, %v78_v53  ;;  %3556 = vmatprep.mubr.msk.f32.mxu1 %vm149_vm0, %v142_v54  ;;  %v1509_v53 = vmul.f32 %v2938_v36, %v4381_v5  ;;  %v1573_v54 = vmul.f32 %v3066_v37, %v4381_v5  ;;  %v4506_v22 = vadd.f32 %v4397_v14, %v1510_v3  ;;  %v2953_v37 = vunpack.c.l.bf16 %v3185_v16 }
  0x78   :  { %v4480_v7 = vadd.f32 %v4397_v14, %v1509_v53  ;;  %v4483_v8 = vadd.f32 %v4397_v14, %v1573_v54  ;;  %v4534_v53 = vadd.f32 %v4397_v14, %v1512_v31  ;;  %v2966_v31 = vunpack.c.h.bf16 %v3188_v9 }
  0x79   :  { %3461 = vmatmul.mubr.msk.f32.gmra.mrb[58].mxu0 %vm149_vm0, %v79_v55  ;;  %3557 = vmatmul.mubr.msk.f32.gmra.mrb[58].mxu1 %vm149_vm0, %v143_v56  ;;  %v3215_v55 = vld [vmem:[%s6679_s0 + $0x128] sm:$0xff]   ;;  %v4457_v56 = vadd.f32 %v4397_v14, %v1507_v39  ;;  %v3081_v39 = vunpack.c.l.bf16 %v3217_v17  ;;  %v3220_v17 = vld [vmem:[%s6679_s0 + $0x150] sm:$0xff]  }
  0x7a   :  { %3463 = vmatprep.mubr.msk.f32.mxu0 %vm149_vm0, %v80_v57  ;;  %3559 = vmatprep.mubr.msk.f32.mxu1 %vm149_vm0, %v144_v58  ;;  %v1508_v57 = vmul.f32 %v2937_v40, %v4381_v5  ;;  %v1572_v58 = vmul.f32 %v3065_v41, %v4381_v5  ;;  %v3074_v4 = vunpack.c.h.bf16 %v3215_v55  ;;  %v3073_v10 = vunpack.c.l.bf16 %v3215_v55 }
  0x7b   :  { %v1579_v41 = vmul.f32 %v3078_v21, %v4381_v5 }
  0x7c   :  { %v4486_v11 = vadd.f32 %v4397_v14, %v1508_v57  ;;  %v4489_v12 = vadd.f32 %v4397_v14, %v1572_v58  ;;  %v1577_v23 = vmul.f32 %v3074_v4, %v4381_v5  ;;  %v1576_v32 = vmul.f32 %v3073_v10, %v4381_v5  ;;  %v3219_v58 = vld [vmem:[%s6679_s0 + $0x148] sm:$0xff]  }
  0x7d   :  { %3464 = vmatmul.mubr.msk.f32.gmra.mrb[60].mxu0 %vm149_vm0, %v81_v59  ;;  %3560 = vmatmul.mubr.msk.f32.gmra.mrb[60].mxu1 %vm149_vm0, %v145_v60  ;;  %v3069_v59 = vunpack.c.l.bf16 %v3214_v33  ;;  %v4462_v60 = vadd.f32 %v4397_v14, %v1571_v43  ;;  %v2954_v33 = vunpack.c.h.bf16 %v3185_v16  ;;  %v2958_v43 = vunpack.c.h.bf16 %v3186_v29 }
  0x7e   :  { %3466 = vmatprep.mubr.msk.f32.mxu0 %vm149_vm0, %v82_v61  ;;  %3562 = vmatprep.mubr.msk.f32.mxu1 %vm149_vm0, %v146_v62  ;;  %v1511_v61 = vmul.f32 %v2942_v44, %v4381_v5  ;;  %v1575_v62 = vmul.f32 %v3070_v45, %v4381_v5  ;;  %v3086_v44 = vunpack.c.h.bf16 %v3218_v30  ;;  %v4526_v45 = vadd.f32 %v4397_v14, %v1577_v23 }
  0x7f   :  { %v1574_v13 = vmul.f32 %v3069_v59, %v4381_v5  ;;  %v4537_v54 = vadd.f32 %v4397_v14, %v1576_v32  ;;  %v1517_v55 = vmul.f32 %v2954_v33, %v4381_v5  ;;  %v1581_v57 = vmul.f32 %v3082_v34, %v4381_v5  ;;  %v3189_v32 = vld [vmem:[%s6679_s0 + $0x58] sm:$0xff]  }
  0x80   :  { %v4499_v18 = vadd.f32 %v4397_v14, %v1511_v61  ;;  %v4502_v19 = vadd.f32 %v4397_v14, %v1575_v62  ;;  %v1516_v61 = vmul.f32 %v2953_v37, %v4381_v5  ;;  %v1580_v62 = vmul.f32 %v3081_v39, %v4381_v5  ;;  %v3221_v33 = vld [vmem:[%s6679_s0 + $0x158] sm:$0xff]  }
  0x81   :  { %3467 = vmatmul.mubr.msk.f32.gmra.mrb[62].mxu0 %vm149_vm0, %v83_v63  ;;  %3563 = vmatmul.mubr.msk.f32.gmra.mrb[62].mxu1 %vm149_vm0, %v147_v0  ;;  %v2946_v63 = vunpack.c.h.bf16 %v3183_v50  ;;  %v3184_v0 = vld [vmem:[%s6679_s0 + $0x30] sm:$0xff]   ;;  %v4518_v35 = vadd.f32 %v4397_v14, %v1574_v13  ;;  %v3187_v50 = vld [vmem:[%s6679_s0 + $0x48] sm:$0xff]   ;;  %v1519_v3 = vmul.f32 %v2958_v43, %v4381_v5  ;;  %v1583_v4 = vmul.f32 %v3086_v44, %v4381_v5 }
  0x82   :  { %v2950_v15 = vunpack.c.h.bf16 %v3184_v0  ;;  %v2949_v26 = vunpack.c.l.bf16 %v3184_v0  ;;  %v4550_v0 = vadd.f32 %v4397_v14, %v1579_v41  ;;  %v2962_v6 = vunpack.c.h.bf16 %v3187_v50 }
  0x83   :  { %v1513_v20 = vmul.f32 %v2946_v63, %v4381_v5  ;;  %v3085_v63 = vunpack.c.l.bf16 %v3218_v30  ;;  %v4561_v13 = vadd.f32 %v4397_v14, %v1578_v48  ;;  %v3090_v16 = vunpack.c.h.bf16 %v3219_v58  ;;  %v3190_v48 = vld [vmem:[%s6679_s0 + $0x60] sm:$0xff]  }
  0x84   :  { %v1515_v36 = vmul.f32 %v2950_v15, %v4381_v5  ;;  %v1514_v47 = vmul.f32 %v2949_v26, %v4381_v5  ;;  %v1518_v15 = vmul.f32 %v2957_v49, %v4381_v5  ;;  %v4571_v21 = vadd.f32 %v4397_v14, %v1581_v57  ;;  %v3222_v49 = vld [vmem:[%s6679_s0 + $0x160] sm:$0xff]  }
  0x85   :  { %v4522_v40 = vadd.f32 %v4397_v14, %v1513_v20  ;;  %v4568_v20 = vadd.f32 %v4397_v14, %v1517_v55  ;;  %v2961_v23 = vunpack.c.l.bf16 %v3187_v50  ;;  %v3089_v26 = vunpack.c.l.bf16 %v3219_v58 }
  0x86   :  { %v4545_v59 = vadd.f32 %v4397_v14, %v1515_v36  ;;  %v4558_v10 = vadd.f32 %v4397_v14, %v1514_v47  ;;  %v4574_v27 = vadd.f32 %v4397_v14, %v1516_v61  ;;  %v4577_v29 = vadd.f32 %v4397_v14, %v1580_v62 }
  0x87   :  { %v1582_v30 = vmul.f32 %v3085_v63, %v4381_v5  ;;  %v4587_v34 = vadd.f32 %v4397_v14, %v1519_v3  ;;  %v4590_v36 = vadd.f32 %v4397_v14, %v1583_v4  ;;  %v1521_v37 = vmul.f32 %v2962_v6, %v4381_v5 }
  0x88   :  { %v3094_v39 = vunpack.c.h.bf16 %v3220_v17  ;;  %v4594_v41 = vadd.f32 %v4397_v14, %v1518_v15  ;;  %v1585_v43 = vmul.f32 %v3090_v16, %v4381_v5  ;;  %v2965_v44 = vunpack.c.l.bf16 %v3188_v9 }
  0x89   :  { %v3093_v47 = vunpack.c.l.bf16 %v3220_v17  ;;  %v1520_v50 = vmul.f32 %v2961_v23, %v4381_v5  ;;  %v1584_v55 = vmul.f32 %v3089_v26, %v4381_v5  ;;  %v2970_v57 = vunpack.c.h.bf16 %v3189_v32 }
  0x8a   :  { %v3098_v58 = vunpack.c.h.bf16 %v3221_v33  ;;  %v4606_v61 = vadd.f32 %v4397_v14, %v1582_v30  ;;  %v1523_v62 = vmul.f32 %v2966_v31, %v4381_v5  ;;  %v2969_v63 = vunpack.c.l.bf16 %v3189_v32  ;;  %v3191_v30 = vld [vmem:[%s6679_s0 + $0x68] sm:$0xff]  }
  0x8b   :  { %v3097_v3 = vunpack.c.l.bf16 %v3221_v33  ;;  %v4610_v4 = vadd.f32 %v4397_v14, %v1521_v37  ;;  %v1587_v6 = vmul.f32 %v3094_v39, %v4381_v5  ;;  %v2974_v9 = vunpack.c.h.bf16 %v3190_v48  ;;  %v3223_v39 = vld [vmem:[%s6679_s0 + $0x168] sm:$0xff]  }
  0x8c   :  { %v3102_v15 = vunpack.c.h.bf16 %v3222_v49  ;;  %v4614_v16 = vadd.f32 %v4397_v14, %v1585_v43  ;;  %v1522_v17 = vmul.f32 %v2965_v44, %v4381_v5  ;;  %v1586_v23 = vmul.f32 %v3093_v47, %v4381_v5 }
  0x8d   :  { %6684 = vst [vmem:[#allocation2_spill] sm:$0xff] %v4610_v4  ;;  %v2973_v26 = vunpack.c.l.bf16 %v3190_v48  ;;  %v4622_v31 = vadd.f32 %v4397_v14, %v1520_v50  ;;  %v4625_v32 = vadd.f32 %v4397_v14, %v1584_v55  ;;  %v1525_v33 = vmul.f32 %v2970_v57, %v4381_v5 }
  0x8e   :  { %6685 = vst [vmem:[#allocation3_spill] sm:$0xff] %v4614_v16  ;;  %v1589_v37 = vmul.f32 %v3098_v58, %v4381_v5  ;;  %v4633_v43 = vadd.f32 %v4397_v14, %v1523_v62  ;;  %v1524_v44 = vmul.f32 %v2969_v63, %v4381_v5  ;;  %v1588_v47 = vmul.f32 %v3097_v3, %v4381_v5 }
  0x8f   :  { %6686 = vst [vmem:[#allocation4_spill] sm:$0xff] %v4622_v31  ;;  %6687 = vst [vmem:[#allocation5_spill] sm:$0xff] %v4625_v32  ;;  %v3101_v48 = vunpack.c.l.bf16 %v3222_v49  ;;  %v4638_v50 = vadd.f32 %v4397_v14, %v1587_v6  ;;  %v1527_v55 = vmul.f32 %v2974_v9, %v4381_v5  ;;  %v1591_v57 = vmul.f32 %v3102_v15, %v4381_v5  ;;  %v3192_v32 = vld [vmem:[%s6679_s0 + $0x70] sm:$0xff]  }
  0x90   :  { %6688 = vst [vmem:[#allocation6_spill] sm:$0xff] %v4633_v43  ;;  %v2978_v58 = vunpack.c.h.bf16 %v3191_v30  ;;  %v4646_v62 = vadd.f32 %v4397_v14, %v1522_v17  ;;  %v4649_v63 = vadd.f32 %v4397_v14, %v1586_v23  ;;  %v1526_v49 = vmul.f32 %v2973_v26, %v4381_v5  ;;  %v3224_v6 = vld [vmem:[%s6679_s0 + $0x170] sm:$0xff]  }
  0x91   :  { %6689 = vst [vmem:[#allocation7_spill] sm:$0xff] %v4638_v50  ;;  %v3106_v3 = vunpack.c.h.bf16 %v3223_v39  ;;  %v4656_v9 = vadd.f32 %v4397_v14, %v1525_v33  ;;  %v4659_v15 = vadd.f32 %v4397_v14, %v1589_v37  ;;  %v2977_v50 = vunpack.c.l.bf16 %v3191_v30  ;;  %v3225_v33 = vld [vmem:[%s6679_s0 + $0x178] sm:$0xff]  }
  0x92   :  { %6690 = vst [vmem:[#allocation8_spill] sm:$0xff] %v4646_v62  ;;  %6691 = vst [vmem:[#allocation9_spill] sm:$0xff] %v4649_v63  ;;  %v3105_v43 = vunpack.c.l.bf16 %v3223_v39  ;;  %v4662_v17 = vadd.f32 %v4397_v14, %v1524_v44  ;;  %v4665_v23 = vadd.f32 %v4397_v14, %v1588_v47  ;;  %v1590_v26 = vmul.f32 %v3101_v48, %v4381_v5  ;;  %v3193_v62 = vld [vmem:[%s6679_s0 + $0x78] sm:$0xff]  }
  0x93   :  { %6692 = vst [vmem:[#allocation10_spill] sm:$0xff] %v4656_v9  ;;  %6693 = vst [vmem:[#allocation11_spill] sm:$0xff] %v4659_v15  ;;  %v2982_v63 = vunpack.c.h.bf16 %v3192_v32  ;;  %v4675_v30 = vadd.f32 %v4397_v14, %v1527_v55  ;;  %v4678_v37 = vadd.f32 %v4397_v14, %v1591_v57  ;;  %v1529_v39 = vmul.f32 %v2978_v58, %v4381_v5  ;;  %v3194_v15 = vld [vmem:[%s6679_s0 + $0x80] sm:$0xff]  }
  0x94   :  { %6694 = vst [vmem:[#allocation12_spill] sm:$0xff] %v4662_v17  ;;  %6695 = vst [vmem:[#allocation13_spill] sm:$0xff] %v4665_v23  ;;  %v3110_v44 = vunpack.c.h.bf16 %v3224_v6  ;;  %v4682_v47 = vadd.f32 %v4397_v14, %v1526_v49  ;;  %v1593_v48 = vmul.f32 %v3106_v3, %v4381_v5  ;;  %v2981_v23 = vunpack.c.l.bf16 %v3192_v32  ;;  %v3226_v55 = vld [vmem:[%s6679_s0 + $0x180] sm:$0xff]  }
  0x95   :  { %6696 = vst [vmem:[#allocation14_spill] sm:$0xff] %v4675_v30  ;;  %6697 = vst [vmem:[#allocation15_spill] sm:$0xff] %v4678_v37  ;;  %v3109_v17 = vunpack.c.l.bf16 %v3224_v6  ;;  %v1528_v57 = vmul.f32 %v2977_v50, %v4381_v5  ;;  %v1592_v58 = vmul.f32 %v3105_v43, %v4381_v5  ;;  %v2986_v37 = vunpack.c.h.bf16 %v3193_v62 }
  0x96   :  { %6698 = vst [vmem:[#allocation16_spill] sm:$0xff] %v4682_v47  ;;  %v3114_v30 = vunpack.c.h.bf16 %v3225_v33  ;;  %v4694_v49 = vadd.f32 %v4397_v14, %v1590_v26  ;;  %v1531_v32 = vmul.f32 %v2982_v63, %v4381_v5  ;;  %v2985_v3 = vunpack.c.l.bf16 %v3193_v62  ;;  %v3195_v62 = vld [vmem:[%s6679_s0 + $0x88] sm:$0xff]  }
  0x97   :  { %v3113_v6 = vunpack.c.l.bf16 %v3225_v33  ;;  %v4698_v47 = vadd.f32 %v4397_v14, %v1529_v39  ;;  %v1595_v9 = vmul.f32 %v3110_v44, %v4381_v5  ;;  %v2990_v31 = vunpack.c.h.bf16 %v3194_v15 }
  0x98   :  { %6699 = vst [vmem:[#allocation17_spill] sm:$0xff] %v4694_v49  ;;  %v3118_v16 = vunpack.c.h.bf16 %v3226_v55  ;;  %v4702_v50 = vadd.f32 %v4397_v14, %v1593_v48  ;;  %v1530_v43 = vmul.f32 %v2981_v23, %v4381_v5  ;;  %v1594_v4 = vmul.f32 %v3109_v17, %v4381_v5  ;;  %v3227_v23 = vld [vmem:[%s6679_s0 + $0x188] sm:$0xff]  }
  0x99   :  { %6700 = vst [vmem:[#allocation18_spill] sm:$0xff] %v4698_v47  ;;  %v2989_v26 = vunpack.c.l.bf16 %v3194_v15  ;;  %v4710_v63 = vadd.f32 %v4397_v14, %v1528_v57  ;;  %v4713_v33 = vadd.f32 %v4397_v14, %v1592_v58  ;;  %v1533_v39 = vmul.f32 %v2986_v37, %v4381_v5 }
  0x9a   :  { %6701 = vst [vmem:[#allocation19_spill] sm:$0xff] %v4702_v50  ;;  %v1597_v44 = vmul.f32 %v3114_v30, %v4381_v5  ;;  %v4721_v15 = vadd.f32 %v4397_v14, %v1531_v32  ;;  %v1532_v17 = vmul.f32 %v2985_v3, %v4381_v5  ;;  %v1596_v48 = vmul.f32 %v3113_v6, %v4381_v5 }
  0x9b   :  { %6702 = vst [vmem:[#allocation20_spill] sm:$0xff] %v4710_v63  ;;  %6703 = vst [vmem:[#allocation21_spill] sm:$0xff] %v4713_v33  ;;  %v3117_v57 = vunpack.c.l.bf16 %v3226_v55  ;;  %v4726_v63 = vadd.f32 %v4397_v14, %v1595_v9  ;;  %v1535_v58 = vmul.f32 %v2990_v31, %v4381_v5  ;;  %v1599_v37 = vmul.f32 %v3118_v16, %v4381_v5  ;;  %v3196_v33 = vld [vmem:[%s6679_s0 + $0x90] sm:$0xff]  }
  0x9c   :  { %6704 = vst [vmem:[#allocation22_spill] sm:$0xff] %v4721_v15  ;;  %v2994_v30 = vunpack.c.h.bf16 %v3195_v62  ;;  %v4734_v32 = vadd.f32 %v4397_v14, %v1530_v43  ;;  %v4737_v3 = vadd.f32 %v4397_v14, %v1594_v4  ;;  %v1534_v55 = vmul.f32 %v2989_v26, %v4381_v5  ;;  %v3228_v31 = vld [vmem:[%s6679_s0 + $0x190] sm:$0xff]  }
  0x9d   :  { %6705 = vst [vmem:[#allocation23_spill] sm:$0xff] %v4726_v63  ;;  %v3122_v6 = vunpack.c.h.bf16 %v3227_v23  ;;  %v4744_v16 = vadd.f32 %v4397_v14, %v1533_v39  ;;  %v4747_v9 = vadd.f32 %v4397_v14, %v1597_v44  ;;  %v2993_v63 = vunpack.c.l.bf16 %v3195_v62  ;;  %v3229_v39 = vld [vmem:[%s6679_s0 + $0x198] sm:$0xff]  }
  0x9e   :  { %6706 = vst [vmem:[#allocation24_spill] sm:$0xff] %v4734_v32  ;;  %6707 = vst [vmem:[#allocation25_spill] sm:$0xff] %v4737_v3  ;;  %v3121_v15 = vunpack.c.l.bf16 %v3227_v23  ;;  %v4750_v43 = vadd.f32 %v4397_v14, %v1532_v17  ;;  %v4753_v4 = vadd.f32 %v4397_v14, %v1596_v48  ;;  %v1598_v26 = vmul.f32 %v3117_v57, %v4381_v5  ;;  %v3197_v32 = vld [vmem:[%s6679_s0 + $0x98] sm:$0xff]  }
  0x9f   :  { %6708 = vst [vmem:[#allocation26_spill] sm:$0xff] %v4744_v16  ;;  %6709 = vst [vmem:[#allocation27_spill] sm:$0xff] %v4747_v9  ;;  %v2998_v3 = vunpack.c.h.bf16 %v3196_v33  ;;  %v4763_v62 = vadd.f32 %v4397_v14, %v1535_v58  ;;  %v4766_v44 = vadd.f32 %v4397_v14, %v1599_v37  ;;  %v1537_v23 = vmul.f32 %v2994_v30, %v4381_v5  ;;  %v3198_v9 = vld [vmem:[%s6679_s0 + $0xa0] sm:$0xff]  }
  0xa0   :  { %6710 = vst [vmem:[#allocation28_spill] sm:$0xff] %v4750_v43  ;;  %6711 = vst [vmem:[#allocation29_spill] sm:$0xff] %v4753_v4  ;;  %v3126_v17 = vunpack.c.h.bf16 %v3228_v31  ;;  %v4770_v48 = vadd.f32 %v4397_v14, %v1534_v55  ;;  %v1601_v57 = vmul.f32 %v3122_v6, %v4381_v5  ;;  %v2997_v4 = vunpack.c.l.bf16 %v3196_v33  ;;  %v3230_v58 = vld [vmem:[%s6679_s0 + $0x1a0] sm:$0xff]  }
  0xa1   :  { %6712 = vst [vmem:[#allocation30_spill] sm:$0xff] %v4763_v62  ;;  %6713 = vst [vmem:[#allocation31_spill] sm:$0xff] %v4766_v44  ;;  %v3125_v43 = vunpack.c.l.bf16 %v3228_v31  ;;  %v1536_v37 = vmul.f32 %v2993_v63, %v4381_v5  ;;  %v1600_v30 = vmul.f32 %v3121_v15, %v4381_v5  ;;  %v3002_v44 = vunpack.c.h.bf16 %v3197_v32 }
  0xa2   :  { %6714 = vst [vmem:[#allocation32_spill] sm:$0xff] %v4770_v48  ;;  %v3130_v62 = vunpack.c.h.bf16 %v3229_v39  ;;  %v4782_v55 = vadd.f32 %v4397_v14, %v1598_v26  ;;  %v1539_v33 = vmul.f32 %v2998_v3, %v4381_v5  ;;  %v3001_v6 = vunpack.c.l.bf16 %v3197_v32  ;;  %v3199_v32 = vld [vmem:[%s6679_s0 + $0xa8] sm:$0xff]  }
  0xa3   :  { %v3129_v31 = vunpack.c.l.bf16 %v3229_v39  ;;  %v4786_v48 = vadd.f32 %v4397_v14, %v1537_v23  ;;  %v1603_v16 = vmul.f32 %v3126_v17, %v4381_v5  ;;  %v3006_v50 = vunpack.c.h.bf16 %v3198_v9 }
  0xa4   :  { %v3134_v47 = vunpack.c.h.bf16 %v3230_v58  ;;  %v4790_v63 = vadd.f32 %v4397_v14, %v1601_v57  ;;  %v1538_v15 = vmul.f32 %v2997_v4, %v4381_v5  ;;  %v1602_v49 = vmul.f32 %v3125_v43, %v4381_v5  ;;  %v3231_v4 = vld [vmem:[%s6679_s0 + $0x1a8] sm:$0xff]  }
  0xa5   :  { %v3005_v26 = vunpack.c.l.bf16 %v3198_v9  ;;  %v4798_v3 = vadd.f32 %v4397_v14, %v1536_v37  ;;  %v4801_v39 = vadd.f32 %v4397_v14, %v1600_v30  ;;  %v1541_v23 = vmul.f32 %v3002_v44, %v4381_v5 }
  0xa6   :  { %6715 = vst [vmem:[#allocation33_spill] sm:$0xff] %v4790_v63  ;;  %v1605_v17 = vmul.f32 %v3130_v62, %v4381_v5  ;;  %v4809_v9 = vadd.f32 %v4397_v14, %v1539_v33  ;;  %v1540_v43 = vmul.f32 %v3001_v6, %v4381_v5  ;;  %v1604_v57 = vmul.f32 %v3129_v31, %v4381_v5 }
  0xa7   :  { %6716 = vst [vmem:[#allocation34_spill] sm:$0xff] %v4798_v3  ;;  %6717 = vst [vmem:[#allocation35_spill] sm:$0xff] %v4801_v39  ;;  %v3133_v37 = vunpack.c.l.bf16 %v3230_v58  ;;  %v4814_v3 = vadd.f32 %v4397_v14, %v1603_v16  ;;  %v1543_v30 = vmul.f32 %v3006_v50, %v4381_v5  ;;  %v1607_v44 = vmul.f32 %v3134_v47, %v4381_v5  ;;  %v3200_v58 = vld [vmem:[%s6679_s0 + $0xb0] sm:$0xff]  }
  0xa8   :  { %v3010_v62 = vunpack.c.h.bf16 %v3199_v32  ;;  %v4819_v39 = vadd.f32 %v4397_v14, %v1538_v15  ;;  %v4822_v63 = vadd.f32 %v4397_v14, %v1602_v49  ;;  %v1542_v33 = vmul.f32 %v3005_v26, %v4381_v5  ;;  %v3232_v50 = vld [vmem:[%s6679_s0 + $0x1b0] sm:$0xff]  }
  0xa9   :  { %6718 = vst [vmem:[#allocation36_spill] sm:$0xff] %v4814_v3  ;;  %v3138_v6 = vunpack.c.h.bf16 %v3231_v4  ;;  %v4832_v47 = vadd.f32 %v4397_v14, %v1541_v23  ;;  %v4835_v16 = vadd.f32 %v4397_v14, %v1605_v17  ;;  %v3009_v31 = vunpack.c.l.bf16 %v3199_v32 }
  0xaa   :  { %6719 = vst [vmem:[#allocation37_spill] sm:$0xff] %v4819_v39  ;;  %6720 = vst [vmem:[#allocation38_spill] sm:$0xff] %v4822_v63  ;;  %v3137_v49 = vunpack.c.l.bf16 %v3231_v4  ;;  %v4838_v15 = vadd.f32 %v4397_v14, %v1540_v43  ;;  %v4841_v26 = vadd.f32 %v4397_v14, %v1604_v57  ;;  %v1606_v63 = vmul.f32 %v3133_v37, %v4381_v5 }
  0xab   :  { %6721 = vst [vmem:[#allocation39_spill] sm:$0xff] %v4832_v47  ;;  %6722 = vst [vmem:[#allocation40_spill] sm:$0xff] %v4835_v16  ;;  %v3014_v39 = vunpack.c.h.bf16 %v3200_v58  ;;  %v4845_v3 = vadd.f32 %v4397_v14, %v1543_v30  ;;  %v4848_v23 = vadd.f32 %v4397_v14, %v1607_v44  ;;  %v1545_v17 = vmul.f32 %v3010_v62, %v4381_v5 }
  0xac   :  { %6723 = vst [vmem:[#allocation41_spill] sm:$0xff] %v4838_v15  ;;  %6724 = vst [vmem:[#allocation42_spill] sm:$0xff] %v4841_v26  ;;  %v3142_v16 = vunpack.c.h.bf16 %v3232_v50  ;;  %v4852_v43 = vadd.f32 %v4397_v14, %v1542_v33  ;;  %v1609_v57 = vmul.f32 %v3138_v6, %v4381_v5  ;;  %v3013_v26 = vunpack.c.l.bf16 %v3200_v58 }
  0xad   :  { %6725 = vst [vmem:[#allocation43_spill] sm:$0xff] %v4845_v3  ;;  %6726 = vst [vmem:[#allocation44_spill] sm:$0xff] %v4848_v23  ;;  %v3141_v15 = vunpack.c.l.bf16 %v3232_v50  ;;  %v1544_v62 = vmul.f32 %v3009_v31, %v4381_v5  ;;  %v1608_v3 = vmul.f32 %v3137_v49, %v4381_v5  ;;  %v4870_v6 = vadd.f32 %v4397_v14, %v1606_v63 }
  0xae   :  { %v4876_v50 = vadd.f32 %v4397_v14, %v1545_v17  ;;  %v1611_v31 = vmul.f32 %v3142_v16, %v4381_v5 }
  0xaf   :  { %v1610_v63 = vmul.f32 %v3141_v15, %v4381_v5  ;;  %v4890_v17 = vadd.f32 %v4397_v14, %v1608_v3 }
  0xd8   :  { %v3375_v32 = vpop.f32.mrb[0].mxu0  ;;  %v3471_v4 = vpop.f32.mrb[0].mxu1 }
  0xd9   :  { %v4856_v37 = vadd.f32 %v3375_v32, %v4411_v24  ;;  %v4859_v30 = vadd.f32 %v3471_v4, %v4414_v25  ;;  %v600_v44 = vpop.f32.mrb[1].mxu0  ;;  %v920_v23 = vpop.f32.mrb[1].mxu1  ;;  %v1547_v24 = vmul.f32 %v3014_v39, %v4381_v5  ;;  %v4884_v32 = vadd.f32 %v4397_v14, %v1609_v57  ;;  %v3201_v57 = vld [vmem:[%s6679_s0 + $0xb8] sm:$0xff]  }
  0xda   :  { %v4864_v47 = vadd.f32 %v4418_v28, %v600_v44  ;;  %v4867_v33 = vadd.f32 %v4430_v38, %v920_v23  ;;  %v1546_v38 = vmul.f32 %v3013_v26, %v4381_v5  ;;  %v4887_v4 = vadd.f32 %v4397_v14, %v1544_v62 }
  0xdb   :  { %v2023_v25 = vmul.f32 1.442695, %v4856_v37  ;;  %v2151_v58 = vmul.f32 1.442695, %v4859_v30  ;;  %vm1894_vm1 = vcmp.gt.f32.partialorder %v4856_v37, 0.0  ;;  %vm1958_vm2 = vcmp.gt.f32.partialorder %v4859_v30, 0.0 }
  0xdc   :  { %v2021_v28 = vmul.f32 1.442695, %v4864_v47  ;;  %v2149_v49 = vmul.f32 1.442695, %v4867_v33  ;;  %v3378_v23 = vpop.f32.mrb[2].mxu0  ;;  %v3474_v39 = vpop.f32.mrb[2].mxu1 }
  0xdd   :  { %3567 = vpow2.f32 %v2023_v25  ;;  %v4893_v16 = vadd.f32 %v3378_v23, %v4434_v42  ;;  %v4896_v26 = vadd.f32 %v3474_v39, %v4438_v46  ;;  %v610_v15 = vpop.f32.mrb[3].mxu0  ;;  %v930_v44 = vpop.f32.mrb[3].mxu1  ;;  %v4899_v25 = vadd.f32 %v4397_v14, %v1547_v24 }
  0xde   :  { %3569 = vpow2.f32 %v2151_v58  ;;  %v4905_v3 = vadd.f32 %v4446_v51, %v610_v15  ;;  %v4908_v62 = vadd.f32 %v4449_v52, %v930_v44  ;;  %v4911_v42 = vadd.f32 %v4397_v14, %v1611_v31  ;;  %v4926_v31 = vld [vmem:[%s6679_s0 + $0x1b8] sm:$0xff]  }
  0xdf   :  { %3571 = vpow2.f32 %v2021_v28  ;;  %v2027_v46 = vmul.f32 1.442695, %v4893_v16  ;;  %v4915_v23 = vadd.f32 %v4397_v14, %v1546_v38  ;;  %v4918_v39 = vadd.f32 %v4397_v14, %v1610_v63  ;;  %6730 = vst [vmem:[#allocation48_spill] sm:$0xff] %v4926_v31 }
  0xe0   :  { %6727 = vst [vmem:[#allocation45_spill] sm:$0xff] %v4911_v42  ;;  %3573 = vpow2.f32 %v2149_v49  ;;  %v3381_v58 = vpop.f32.mrb[4].mxu0  ;;  %v3477_v24 = vpop.f32.mrb[4].mxu1  ;;  %v2155_v51 = vmul.f32 1.442695, %v4896_v26  ;;  %v3018_v28 = vunpack.c.h.bf16 %v3201_v57  ;;  %vm1893_vm3 = vcmp.gt.f32.partialorder %v4864_v47, 0.0 }
  0xe1   :  { %6728 = vst [vmem:[#allocation46_spill] sm:$0xff] %v4915_v23  ;;  %6729 = vst [vmem:[#allocation47_spill] sm:$0xff] %v4918_v39  ;;  %v2025_v52 = vmul.f32 1.442695, %v4905_v3  ;;  %3575 = vpow2.f32 %v2027_v46  ;;  %v2153_v49 = vmul.f32 1.442695, %v4908_v62  ;;  %v4931_v38 = vadd.f32 %v3381_v58, %v4457_v56 }
  0xe2   :  { %v4934_v63 = vadd.f32 %v3477_v24, %v4462_v60  ;;  %v620_v15 = vpop.f32.mrb[5].mxu0  ;;  %v940_v44 = vpop.f32.mrb[5].mxu1  ;;  %3577 = vpow2.f32 %v2155_v51  ;;  %vm1957_vm4 = vcmp.gt.f32.partialorder %v4867_v33, 0.0  ;;  %vm1896_vm5 = vcmp.gt.f32.partialorder %v4893_v16, 0.0 }
  0xe3   :  { %v4938_v57 = vadd.f32 %v4470_v1, %v620_v15  ;;  %v4941_v39 = vadd.f32 %v4473_v2, %v940_v44  ;;  %3579 = vpow2.f32 %v2025_v52  ;;  %v2031_v56 = vmul.f32 1.442695, %v4931_v38 }
  0xe4   :  { %v3384_v46 = vpop.f32.mrb[6].mxu0  ;;  %v3480_v58 = vpop.f32.mrb[6].mxu1  ;;  %3581 = vpow2.f32 %v2153_v49  ;;  %v2159_v24 = vmul.f32 1.442695, %v4934_v63  ;;  %v1549_v1 = vmul.f32 %v3018_v28, %v4381_v5  ;;  %vm1960_vm6 = vcmp.gt.f32.partialorder %v4896_v26, 0.0 }
  0xe5   :  { %v2029_v51 = vmul.f32 1.442695, %v4938_v57  ;;  %v630_v23 = vpop.f32.mrb[7].mxu0  ;;  %3583 = vpow2.f32 %v2031_v56  ;;  %v2157_v2 = vmul.f32 1.442695, %v4941_v39  ;;  %v4952_v52 = vadd.f32 %v3384_v46, %v4480_v7  ;;  %v950_v15 = vpop.f32.mrb[7].mxu1 }
  0xe6   :  { %3585 = vpow2.f32 %v2159_v24  ;;  %v4956_v49 = vadd.f32 %v3480_v58, %v4483_v8  ;;  %v4959_v60 = vadd.f32 %v4486_v11, %v630_v23  ;;  %vm1895_vm7 = vcmp.gt.f32.partialorder %v4905_v3, 0.0 }
  0xe7   :  { %v3568_v44 = vpop.eup %3567  ;;  %3587 = vpow2.f32 %v2029_v51  ;;  %v2035_v56 = vmul.f32 1.442695, %v4952_v52  ;;  %v4964_v7 = vadd.f32 %v4489_v12, %v950_v15  ;;  %vm1959_vm8 = vcmp.gt.f32.partialorder %v4908_v62, 0.0 }
  0xe8   :  { %v3570_v5 = vpop.eup %3569  ;;  %v2796_v28 = vadd.f32 -1.0, %v3568_v44  ;;  %v3387_v46 = vpop.f32.mrb[8].mxu0  ;;  %3589 = vpow2.f32 %v2157_v2  ;;  %v2163_v8 = vmul.f32 1.442695, %v4956_v49  ;;  %v4969_v58 = vadd.f32 %v4397_v14, %v1549_v1 }
  0xe9   :  { %v3483_v31 = vpop.f32.mrb[8].mxu1  ;;  %v3572_v42 = vpop.eup %3571  ;;  %v2860_v24 = vadd.f32 -1.0, %v3570_v5  ;;  %vm1898_vm9 = vcmp.gt.f32.partialorder %v4931_v38, 0.0  ;;  %3591 = vpow2.f32 %v2035_v56  ;;  %v2033_v14 = vmul.f32 1.442695, %v4959_v60 }
  0xea   :  { %v640_v11 = vpop.f32.mrb[9].mxu0  ;;  %v960_v23 = vpop.f32.mrb[9].mxu1  ;;  %6731 = vst [vmem:[#allocation49_spill] sm:$0xff] %v4969_v58  ;;  %v2406_v12 = vsel %vm1894_vm1, %v4856_v37, %v2796_v28  ;;  %v2795_v15 = vadd.f32 -1.0, %v3572_v42  ;;  %3593 = vpow2.f32 %v2163_v8  ;;  %vm1962_vm10 = vcmp.gt.f32.partialorder %v4934_v63, 0.0 }
  0xeb   :  { %v3574_v51 = vpop.eup %3573  ;;  %2534 = vst [vmem:[%s6682_s5 + $0x8] sm:$0xff] %v2406_v12  ;;  %v2470_v2 = vsel %vm1958_vm2, %v4859_v30, %v2860_v24  ;;  %v2161_v42 = vmul.f32 1.442695, %v4964_v7  ;;  %v4991_v5 = vadd.f32 %v3387_v46, %v4499_v18  ;;  %3595 = vpow2.f32 %v2033_v14 }
  0xec   :  { %v2859_v44 = vadd.f32 -1.0, %v3574_v51  ;;  %v3576_v1 = vpop.eup %3575  ;;  %2598 = vst [vmem:[%s6682_s5 + $0x208] sm:$0xff] %v2470_v2  ;;  %v2405_v37 = vsel %vm1893_vm3, %v4864_v47, %v2795_v15  ;;  %v3390_v30 = vpop.f32.mrb[10].mxu0  ;;  %v5000_v47 = vadd.f32 %v3483_v31, %v4502_v19  ;;  %vm1897_vm11 = vcmp.gt.f32.partialorder %v4938_v57, 0.0 }
  0xed   :  { %v3486_v28 = vpop.f32.mrb[10].mxu1  ;;  %v3578_v56 = vpop.eup %3577  ;;  %2533 = vst [vmem:[%s6682_s5] sm:$0xff] %v2405_v37  ;;  %v2798_v8 = vadd.f32 -1.0, %v3576_v1  ;;  %3597 = vpow2.f32 %v2161_v42  ;;  %vm1961_vm12 = vcmp.gt.f32.partialorder %v4941_v39, 0.0  ;;  %v5023_v37 = vadd.f32 %v4506_v22, %v640_v11 }
  0xee   :  { %v2469_v24 = vsel %vm1957_vm4, %v4867_v33, %v2859_v44  ;;  %v5002_v51 = vpop.f32.mrb[11].mxu0  ;;  %v5004_v18 = vpop.f32.mrb[11].mxu1  ;;  %v2862_v12 = vadd.f32 -1.0, %v3578_v56  ;;  %v2039_v33 = vmul.f32 1.442695, %v4991_v5  ;;  %vm1900_vm13 = vcmp.gt.f32.partialorder %v4952_v52, 0.0 }
  0xef   :  { %v3580_v46 = vpop.eup %3579  ;;  %2597 = vst [vmem:[%s6682_s5 + $0x200] sm:$0xff] %v2469_v24  ;;  %v2408_v19 = vsel %vm1896_vm5, %v4893_v16, %v2798_v8  ;;  %v2167_v2 = vmul.f32 1.442695, %v5000_v47  ;;  %vm1964_vm14 = vcmp.gt.f32.partialorder %v4956_v49, 0.0  ;;  %vm1899_vm15 = vcmp.gt.f32.partialorder %v4959_v60, 0.0 }
  0xf0   :  { %v3582_v15 = vpop.eup %3581  ;;  %v2797_v31 = vadd.f32 -1.0, %v3580_v46  ;;  %2536 = vst [vmem:[%s6682_s5 + $0x18] sm:$0xff] %v2408_v19  ;;  %v2472_v14 = vsel %vm1960_vm6, %v4896_v26, %v2862_v12  ;;  %3599 = vpow2.f32 %v2039_v33  ;;  %v5025_v16 = vpop.f32.mrb[12].mxu0  ;;  %v5036_v26 = vadd.f32 %v4518_v35, %v960_v23 }
  0xf1   :  { %v3584_v44 = vpop.eup %3583  ;;  %v2861_v1 = vadd.f32 -1.0, %v3582_v15  ;;  %v5027_v42 = vpop.f32.mrb[12].mxu1  ;;  %2600 = vst [vmem:[%s6682_s5 + $0x218] sm:$0xff] %v2472_v14  ;;  %3601 = vpow2.f32 %v2167_v2  ;;  %vm1963_vm0 = vcmp.gt.f32.partialorder %v4964_v7, 0.0  ;;  %vm1902_vm1 = vcmp.gt.f32.partialorder %v4991_v5, 0.0 }
  0xf2   :  { %v3586_v56 = vpop.eup %3585  ;;  %v2407_v24 = vsel %vm1895_vm7, %v4905_v3, %v2797_v31  ;;  %v2800_v8 = vadd.f32 -1.0, %v3584_v44  ;;  %v5038_v22 = vpop.f32.mrb[13].mxu0  ;;  %v2037_v3 = vmul.f32 1.442695, %v5023_v37  ;;  %v2165_v19 = vmul.f32 1.442695, %v5036_v26 }
  0xf3   :  { %v5040_v11 = vpop.f32.mrb[13].mxu1  ;;  %v3588_v46 = vpop.eup %3587  ;;  %2535 = vst [vmem:[%s6682_s5 + $0x10] sm:$0xff] %v2407_v24  ;;  %v2471_v12 = vsel %vm1959_vm8, %v4908_v62, %v2861_v1  ;;  %v2864_v33 = vadd.f32 -1.0, %v3586_v56  ;;  %v5065_v44 = vadd.f32 %v3390_v30, %v4522_v40  ;;  %vm1966_vm2 = vcmp.gt.f32.partialorder %v5000_v47, 0.0 }
  0xf4   :  { %v3590_v35 = vpop.eup %3589  ;;  %2599 = vst [vmem:[%s6682_s5 + $0x210] sm:$0xff] %v2471_v12  ;;  %v2410_v23 = vsel %vm1898_vm9, %v4931_v38, %v2800_v8  ;;  %v2799_v15 = vadd.f32 -1.0, %v3588_v46  ;;  %3603 = vpow2.f32 %v2037_v3  ;;  %v5067_v38 = vpop.f32.mrb[14].mxu0  ;;  %vm1901_vm3 = vcmp.gt.f32.partialorder %v5023_v37, 0.0 }
  0xf5   :  { %v3592_v62 = vpop.eup %3591  ;;  %2538 = vst [vmem:[%s6682_s5 + $0x28] sm:$0xff] %v2410_v23  ;;  %v2474_v31 = vsel %vm1962_vm10, %v4934_v63, %v2864_v33  ;;  %v2863_v2 = vadd.f32 -1.0, %v3590_v35  ;;  %v5069_v14 = vpop.f32.mrb[14].mxu1  ;;  %3605 = vpow2.f32 %v2165_v19  ;;  %v5078_v63 = vadd.f32 %v3486_v28, %v4526_v45 }
  0xf6   :  { %v3594_v1 = vpop.eup %3593  ;;  %2602 = vst [vmem:[%s6682_s5 + $0x228] sm:$0xff] %v2474_v31  ;;  %v2409_v56 = vsel %vm1897_vm11, %v4938_v57, %v2799_v15  ;;  %v2802_v24 = vadd.f32 -1.0, %v3592_v62  ;;  %v5080_v40 = vpop.f32.mrb[15].mxu0  ;;  %v2043_v57 = vmul.f32 1.442695, %v5065_v44  ;;  %v5134_v31 = vadd.f32 %v5025_v16, %v4545_v59 }
  0xf7   :  { %v5082_v30 = vpop.f32.mrb[15].mxu1  ;;  %2537 = vst [vmem:[%s6682_s5 + $0x20] sm:$0xff] %v2409_v56  ;;  %v2473_v8 = vsel %vm1961_vm12, %v4941_v39, %v2863_v2  ;;  %v2866_v46 = vadd.f32 -1.0, %v3594_v1  ;;  %v3596_v12 = vpop.eup %3595  ;;  %v2171_v28 = vmul.f32 1.442695, %v5078_v63  ;;  %v5102_v39 = vadd.f32 %v4534_v53, %v5002_v51 }
  0xf8   :  { %2601 = vst [vmem:[%s6682_s5 + $0x220] sm:$0xff] %v2473_v8  ;;  %v2412_v45 = vsel %vm1900_vm13, %v4952_v52, %v2802_v24  ;;  %v3598_v33 = vpop.eup %3597  ;;  %v2801_v35 = vadd.f32 -1.0, %v3596_v12  ;;  %3607 = vpow2.f32 %v2043_v57  ;;  %v5112_v52 = vadd.f32 %v4537_v54, %v5004_v18  ;;  %v5114_v23 = vpop.f32.mrb[16].mxu0 }
  0xf9   :  { %2540 = vst [vmem:[%s6682_s5 + $0x38] sm:$0xff] %v2412_v45  ;;  %v2476_v3 = vsel %vm1964_vm14, %v4956_v49, %v2866_v46  ;;  %v5116_v15 = vpop.f32.mrb[16].mxu1  ;;  %v2865_v53 = vadd.f32 -1.0, %v3598_v33  ;;  %3609 = vpow2.f32 %v2171_v28  ;;  %v2041_v49 = vmul.f32 1.442695, %v5102_v39  ;;  %v5123_v51 = vpop.f32.mrb[17].mxu0 }
  0xfa   :  { %2604 = vst [vmem:[%s6682_s5 + $0x238] sm:$0xff] %v2476_v3  ;;  %v5125_v19 = vpop.f32.mrb[17].mxu1  ;;  %v3600_v54 = vpop.eup %3599  ;;  %v2411_v18 = vsel %vm1899_vm15, %v4959_v60, %v2801_v35  ;;  %v2169_v62 = vmul.f32 1.442695, %v5112_v52  ;;  %v5144_v60 = vadd.f32 %v5027_v42, %v4550_v0  ;;  %v2047_v16 = vmul.f32 1.442695, %v5134_v31 }
  0xfb   :  { %v3602_v2 = vpop.eup %3601  ;;  %2539 = vst [vmem:[%s6682_s5 + $0x30] sm:$0xff] %v2411_v18  ;;  %v2475_v1 = vsel %vm1963_vm0, %v4964_v7, %v2865_v53  ;;  %v2804_v56 = vadd.f32 -1.0, %v3600_v54  ;;  %3611 = vpow2.f32 %v2041_v49  ;;  %vm1965_vm4 = vcmp.gt.f32.partialorder %v5036_v26, 0.0 }
  0xfc   :  { %2603 = vst [vmem:[%s6682_s5 + $0x230] sm:$0xff] %v2475_v1  ;;  %v2868_v59 = vadd.f32 -1.0, %v3602_v2  ;;  %3613 = vpow2.f32 %v2169_v62  ;;  %v5151_v24 = vpop.f32.mrb[18].mxu0  ;;  %v5153_v8 = vpop.f32.mrb[18].mxu1  ;;  %v2175_v0 = vmul.f32 1.442695, %v5144_v60  ;;  %v5162_v42 = vadd.f32 %v4558_v10, %v5038_v22 }
  0xfd   :  { %v2414_v7 = vsel %vm1902_vm1, %v4991_v5, %v2804_v56  ;;  %v5164_v46 = vpop.f32.mrb[19].mxu0  ;;  %v5166_v57 = vpop.f32.mrb[19].mxu1  ;;  %3615 = vpow2.f32 %v2047_v16  ;;  %v5176_v45 = vadd.f32 %v4561_v13, %v5040_v11  ;;  %v5180_v10 = vadd.f32 %v5067_v38, %v4568_v20 }
  0xfe   :  { %v3604_v12 = vpop.eup %3603  ;;  %2542 = vst [vmem:[%s6682_s5 + $0x48] sm:$0xff] %v2414_v7  ;;  %v2478_v5 = vsel %vm1966_vm2, %v5000_v47, %v2868_v59  ;;  %vm1904_vm5 = vcmp.gt.f32.partialorder %v5065_v44, 0.0  ;;  %3617 = vpow2.f32 %v2175_v0  ;;  %v2045_v47 = vmul.f32 1.442695, %v5162_v42 }
  0xff   :  { %v3606_v22 = vpop.eup %3605  ;;  %2606 = vst [vmem:[%s6682_s5 + $0x248] sm:$0xff] %v2478_v5  ;;  %v2803_v28 = vadd.f32 -1.0, %v3604_v12  ;;  %vm1968_vm6 = vcmp.gt.f32.partialorder %v5078_v63, 0.0  ;;  %vm1903_vm7 = vcmp.gt.f32.partialorder %v5102_v39, 0.0  ;;  %v2173_v13 = vmul.f32 1.442695, %v5176_v45 }
 0x100   :  { %v2867_v33 = vadd.f32 -1.0, %v3606_v22  ;;  %v5190_v20 = vpop.f32.mrb[20].mxu0  ;;  %3619 = vpow2.f32 %v2045_v47  ;;  %v2051_v38 = vmul.f32 1.442695, %v5180_v10  ;;  %v5198_v3 = vadd.f32 %v5069_v14, %v4571_v21  ;;  %v5200_v35 = vpop.f32.mrb[20].mxu1 }
 0x101   :  { %v2413_v11 = vsel %vm1901_vm3, %v5023_v37, %v2803_v28  ;;  %v5202_v53 = vpop.f32.mrb[21].mxu0  ;;  %3621 = vpow2.f32 %v2173_v13  ;;  %v5212_v54 = vadd.f32 %v4574_v27, %v5080_v40  ;;  %v5216_v21 = vadd.f32 %v4577_v29, %v5082_v30  ;;  %v5218_v14 = vpop.f32.mrb[21].mxu1 }
 0x102   :  { %v3608_v49 = vpop.eup %3607  ;;  %2541 = vst [vmem:[%s6682_s5 + $0x40] sm:$0xff] %v2413_v11  ;;  %v2477_v37 = vsel %vm1965_vm4, %v5036_v26, %v2867_v33  ;;  %vm1967_vm8 = vcmp.gt.f32.partialorder %v5112_v52, 0.0  ;;  %3623 = vpow2.f32 %v2051_v38  ;;  %v2179_v26 = vmul.f32 1.442695, %v5198_v3 }
 0x103   :  { %v3610_v18 = vpop.eup %3609  ;;  %2605 = vst [vmem:[%s6682_s5 + $0x240] sm:$0xff] %v2477_v37  ;;  %v2806_v62 = vadd.f32 -1.0, %v3608_v49  ;;  %vm1906_vm9 = vcmp.gt.f32.partialorder %v5134_v31, 0.0  ;;  %vm1970_vm10 = vcmp.gt.f32.partialorder %v5144_v60, 0.0  ;;  %v2049_v27 = vmul.f32 1.442695, %v5212_v54 }
 0x104   :  { %v2870_v2 = vadd.f32 -1.0, %v3610_v18  ;;  %v5228_v29 = vpop.f32.mrb[22].mxu0  ;;  %3625 = vpow2.f32 %v2179_v26  ;;  %v2177_v1 = vmul.f32 1.442695, %v5216_v21  ;;  %v5236_v56 = vadd.f32 %v5114_v23, %v4587_v34  ;;  %v5238_v59 = vpop.f32.mrb[22].mxu1  ;;  %v6732_v37 = vld [vmem:[#allocation2_spill] sm:$0xff] }
 0x105   :  { %v3612_v40 = vpop.eup %3611  ;;  %v2416_v30 = vsel %vm1904_vm5, %v5065_v44, %v2806_v62  ;;  %v5240_v16 = vpop.f32.mrb[23].mxu0  ;;  %3627 = vpow2.f32 %v2049_v27  ;;  %v5250_v12 = vadd.f32 %v5116_v15, %v4590_v36  ;;  %vm1905_vm11 = vcmp.gt.f32.partialorder %v5162_v42, 0.0 }
 0x106   :  { %v3614_v7 = vpop.eup %3613  ;;  %2544 = vst [vmem:[%s6682_s5 + $0x58] sm:$0xff] %v2416_v30  ;;  %v2480_v44 = vsel %vm1968_vm6, %v5078_v63, %v2870_v2  ;;  %v2805_v0 = vadd.f32 -1.0, %v3612_v40  ;;  %v5252_v34 = vpop.f32.mrb[23].mxu1  ;;  %3629 = vpow2.f32 %v2177_v1  ;;  %v2055_v5 = vmul.f32 1.442695, %v5236_v56 }
 0x107   :  { %2608 = vst [vmem:[%s6682_s5 + $0x258] sm:$0xff] %v2480_v44  ;;  %v2869_v23 = vadd.f32 -1.0, %v3614_v7  ;;  %v3616_v22 = vpop.eup %3615  ;;  %vm1969_vm12 = vcmp.gt.f32.partialorder %v5176_v45, 0.0  ;;  %v2183_v36 = vmul.f32 1.442695, %v5250_v12  ;;  %v5266_v15 = vadd.f32 %v4594_v41, %v5123_v51 }
 0x108   :  { %v2415_v63 = vsel %vm1903_vm7, %v5102_v39, %v2805_v0  ;;  %v5268_v28 = vpop.f32.mrb[24].mxu0  ;;  %v5270_v47 = vpop.f32.mrb[24].mxu1  ;;  %v2808_v13 = vadd.f32 -1.0, %v3616_v22  ;;  %3631 = vpow2.f32 %v2055_v5  ;;  %v5280_v11 = vadd.f32 %v4606_v61, %v5125_v19 }
 0x109   :  { %v3618_v33 = vpop.eup %3617  ;;  %2543 = vst [vmem:[%s6682_s5 + $0x50] sm:$0xff] %v2415_v63  ;;  %v2479_v39 = vsel %vm1967_vm8, %v5112_v52, %v2869_v23  ;;  %v5282_v41 = vpop.f32.mrb[25].mxu0  ;;  %vm1908_vm13 = vcmp.gt.f32.partialorder %v5180_v10, 0.0  ;;  %3633 = vpow2.f32 %v2183_v36  ;;  %v2053_v52 = vmul.f32 1.442695, %v5266_v15  ;;  %v6734_v63 = vld [vmem:[#allocation4_spill] sm:$0xff] }
 0x10a   :  { %v5284_v51 = vpop.f32.mrb[25].mxu1  ;;  %2607 = vst [vmem:[%s6682_s5 + $0x250] sm:$0xff] %v2479_v39  ;;  %v2872_v38 = vadd.f32 -1.0, %v3618_v33  ;;  %v3620_v49 = vpop.eup %3619  ;;  %v2418_v61 = vsel %vm1906_vm9, %v5134_v31, %v2808_v13  ;;  %vm1972_vm14 = vcmp.gt.f32.partialorder %v5198_v3, 0.0  ;;  %v2181_v19 = vmul.f32 1.442695, %v5280_v11 }
 0x10b   :  { %v5298_v18 = vadd.f32 %v5151_v24, %v6732_v37  ;;  %v3622_v62 = vpop.eup %3621  ;;  %2546 = vst [vmem:[%s6682_s5 + $0x68] sm:$0xff] %v2418_v61  ;;  %v2807_v2 = vadd.f32 -1.0, %v3620_v49  ;;  %3635 = vpow2.f32 %v2053_v52  ;;  %v6733_v31 = vld [vmem:[#allocation3_spill] sm:$0xff]  ;;  %vm1907_vm15 = vcmp.gt.f32.partialorder %v5212_v54, 0.0 }
 0x10c   :  { %v2482_v26 = vsel %vm1970_vm10, %v5144_v60, %v2872_v38  ;;  %v5308_v27 = vadd.f32 %v5153_v8, %v6733_v31  ;;  %v5310_v40 = vpop.f32.mrb[26].mxu0  ;;  %v5312_v30 = vpop.f32.mrb[26].mxu1  ;;  %v2871_v1 = vadd.f32 -1.0, %v3622_v62  ;;  %3637 = vpow2.f32 %v2181_v19 }
 0x10d   :  { %v3624_v24 = vpop.eup %3623  ;;  %2610 = vst [vmem:[%s6682_s5 + $0x268] sm:$0xff] %v2482_v26  ;;  %v2059_v60 = vmul.f32 1.442695, %v5298_v18  ;;  %v5319_v7 = vpop.f32.mrb[27].mxu0  ;;  %v2417_v8 = vsel %vm1905_vm11, %v5162_v42, %v2807_v2  ;;  %vm1971_vm0 = vcmp.gt.f32.partialorder %v5216_v21, 0.0  ;;  %v5336_v36 = vadd.f32 %v6734_v63, %v5164_v46  ;;  %v6735_v42 = vld [vmem:[#allocation5_spill] sm:$0xff] }
 0x10e   :  { %v5321_v44 = vpop.f32.mrb[27].mxu1  ;;  %v2810_v0 = vadd.f32 -1.0, %v3624_v24  ;;  %v2187_v23 = vmul.f32 1.442695, %v5308_v27  ;;  %v3626_v5 = vpop.eup %3625  ;;  %2545 = vst [vmem:[%s6682_s5 + $0x60] sm:$0xff] %v2417_v8  ;;  %v2481_v22 = vsel %vm1969_vm12, %v5176_v45, %v2871_v1  ;;  %v5340_v33 = vadd.f32 %v6735_v42, %v5166_v57  ;;  %v6736_v45 = vld [vmem:[#allocation6_spill] sm:$0xff] }
 0x10f   :  { %3639 = vpow2.f32 %v2059_v60  ;;  %v3628_v39 = vpop.eup %3627  ;;  %2609 = vst [vmem:[%s6682_s5 + $0x260] sm:$0xff] %v2481_v22  ;;  %v2874_v38 = vadd.f32 -1.0, %v3626_v5  ;;  %v5350_v52 = vadd.f32 %v5190_v20, %v6736_v45  ;;  %vm1910_vm1 = vcmp.gt.f32.partialorder %v5236_v56, 0.0 }
 0x110   :  { %v2420_v13 = vsel %vm1908_vm13, %v5180_v10, %v2810_v0  ;;  %3641 = vpow2.f32 %v2187_v23  ;;  %v5352_v46 = vpop.f32.mrb[28].mxu0  ;;  %v5354_v49 = vpop.f32.mrb[28].mxu1  ;;  %v2809_v61 = vadd.f32 -1.0, %v3628_v39  ;;  %vm1974_vm2 = vcmp.gt.f32.partialorder %v5250_v12, 0.0 }
 0x111   :  { %v3630_v57 = vpop.eup %3629  ;;  %2548 = vst [vmem:[%s6682_s5 + $0x78] sm:$0xff] %v2420_v13  ;;  %v2057_v10 = vmul.f32 1.442695, %v5336_v36  ;;  %v5362_v19 = vpop.f32.mrb[29].mxu0  ;;  %v2484_v20 = vsel %vm1972_vm14, %v5198_v3, %v2874_v38  ;;  %vm1909_vm3 = vcmp.gt.f32.partialorder %v5266_v15, 0.0  ;;  %v6737_v3 = vld [vmem:[#allocation7_spill] sm:$0xff] }
 0x112   :  { %v2873_v37 = vadd.f32 -1.0, %v3630_v57  ;;  %v2185_v62 = vmul.f32 1.442695, %v5340_v33  ;;  %v5369_v26 = vpop.f32.mrb[29].mxu1  ;;  %v3632_v2 = vpop.eup %3631  ;;  %2612 = vst [vmem:[%s6682_s5 + $0x278] sm:$0xff] %v2484_v20  ;;  %v2419_v31 = vsel %vm1907_vm15, %v5212_v54, %v2809_v61  ;;  %v5380_v1 = vadd.f32 %v5200_v35, %v6737_v3  ;;  %v6738_v54 = vld [vmem:[#allocation8_spill] sm:$0xff] }
 0x113   :  { %3643 = vpow2.f32 %v2057_v10  ;;  %v2063_v24 = vmul.f32 1.442695, %v5350_v52  ;;  %v3634_v60 = vpop.eup %3633  ;;  %2547 = vst [vmem:[%s6682_s5 + $0x70] sm:$0xff] %v2419_v31  ;;  %v2812_v0 = vadd.f32 -1.0, %v3632_v2  ;;  %v5390_v23 = vadd.f32 %v6738_v54, %v5202_v53  ;;  %v6739_v38 = vld [vmem:[#allocation9_spill] sm:$0xff] }
 0x114   :  { %v2483_v8 = vsel %vm1971_vm0, %v5216_v21, %v2873_v37  ;;  %3645 = vpow2.f32 %v2185_v62  ;;  %v5392_v5 = vpop.f32.mrb[30].mxu0  ;;  %v5394_v22 = vpop.f32.mrb[30].mxu1  ;;  %v2876_v35 = vadd.f32 -1.0, %v3634_v60  ;;  %vm1973_vm4 = vcmp.gt.f32.partialorder %v5280_v11, 0.0 }
 0x115   :  { %2611 = vst [vmem:[%s6682_s5 + $0x270] sm:$0xff] %v2483_v8  ;;  %3647 = vpow2.f32 %v2063_v24  ;;  %v2191_v21 = vmul.f32 1.442695, %v5380_v1  ;;  %v5401_v63 = vpop.f32.mrb[31].mxu0  ;;  %v5403_v42 = vpop.f32.mrb[31].mxu1  ;;  %v2422_v39 = vsel %vm1910_vm1, %v5236_v56, %v2812_v0  ;;  %vm1912_vm5 = vcmp.gt.f32.partialorder %v5298_v18, 0.0 }
 0x116   :  { %v3636_v53 = vpop.eup %3635  ;;  %v2061_v13 = vmul.f32 1.442695, %v5390_v23  ;;  %v5412_v45 = vadd.f32 %v6739_v38, %v5218_v14  ;;  %2550 = vst [vmem:[%s6682_s5 + $0x88] sm:$0xff] %v2422_v39  ;;  %v2486_v61 = vsel %vm1974_vm2, %v5250_v12, %v2876_v35  ;;  %v6740_v56 = vld [vmem:[#allocation10_spill] sm:$0xff]  ;;  %vm1976_vm6 = vcmp.gt.f32.partialorder %v5308_v27, 0.0  ;;  %v6741_v24 = vld [vmem:[#allocation11_spill] sm:$0xff] }
 0x117   :  { %v3638_v57 = vpop.eup %3637  ;;  %v2811_v10 = vadd.f32 -1.0, %v3636_v53  ;;  %3649 = vpow2.f32 %v2191_v21  ;;  %v5422_v20 = vadd.f32 %v5228_v29, %v6740_v56  ;;  %2614 = vst [vmem:[%s6682_s5 + $0x288] sm:$0xff] %v2486_v61  ;;  %vm1911_vm7 = vcmp.gt.f32.partialorder %v5336_v36, 0.0  ;;  %v6742_v35 = vld [vmem:[#allocation12_spill] sm:$0xff] }
 0x118   :  { %v2875_v14 = vadd.f32 -1.0, %v3638_v57  ;;  %3651 = vpow2.f32 %v2061_v13  ;;  %v2189_v37 = vmul.f32 1.442695, %v5412_v45  ;;  %v5429_v62 = vpop.f32.mrb[32].mxu0  ;;  %v5431_v2 = vpop.f32.mrb[32].mxu1  ;;  %v5440_v3 = vadd.f32 %v5238_v59, %v6741_v24 }
 0x119   :  { %v3640_v12 = vpop.eup %3639  ;;  %v2421_v29 = vsel %vm1909_vm3, %v5266_v15, %v2811_v10  ;;  %v2067_v31 = vmul.f32 1.442695, %v5422_v20  ;;  %v5442_v60 = vpop.f32.mrb[33].mxu0  ;;  %v5454_v21 = vadd.f32 %v6742_v35, %v5240_v16  ;;  %vm1975_vm8 = vcmp.gt.f32.partialorder %v5340_v33, 0.0  ;;  %v6743_v16 = vld [vmem:[#allocation13_spill] sm:$0xff]  ;;  %v6744_v10 = vld [vmem:[#allocation14_spill] sm:$0xff] }
 0x11a   :  { %v5444_v8 = vpop.f32.mrb[33].mxu1  ;;  %v3642_v0 = vpop.eup %3641  ;;  %2549 = vst [vmem:[%s6682_s5 + $0x80] sm:$0xff] %v2421_v29  ;;  %v2485_v15 = vsel %vm1973_vm4, %v5280_v11, %v2875_v14  ;;  %v2814_v54 = vadd.f32 -1.0, %v3640_v12  ;;  %3653 = vpow2.f32 %v2189_v37  ;;  %v2195_v53 = vmul.f32 1.442695, %v5440_v3 }
 0x11b   :  { %2613 = vst [vmem:[%s6682_s5 + $0x280] sm:$0xff] %v2485_v15  ;;  %v2878_v59 = vadd.f32 -1.0, %v3642_v0  ;;  %3655 = vpow2.f32 %v2067_v31  ;;  %vm1914_vm9 = vcmp.gt.f32.partialorder %v5350_v52, 0.0  ;;  %v2065_v39 = vmul.f32 1.442695, %v5454_v21 }
 0x11c   :  { %v2424_v11 = vsel %vm1912_vm5, %v5298_v18, %v2814_v54  ;;  %v5468_v13 = vadd.f32 %v6743_v16, %v5252_v34  ;;  %v5470_v38 = vpop.f32.mrb[34].mxu0  ;;  %v5472_v57 = vpop.f32.mrb[34].mxu1  ;;  %3657 = vpow2.f32 %v2195_v53  ;;  %v5482_v56 = vadd.f32 %v5268_v28, %v6744_v10  ;;  %v6745_v34 = vld [vmem:[#allocation15_spill] sm:$0xff]  ;;  %v6747_v16 = vld [vmem:[#allocation17_spill] sm:$0xff] }
 0x11d   :  { %v3644_v61 = vpop.eup %3643  ;;  %2552 = vst [vmem:[%s6682_s5 + $0x98] sm:$0xff] %v2424_v11  ;;  %v2488_v18 = vsel %vm1976_vm6, %v5308_v27, %v2878_v59  ;;  %v5486_v14 = vadd.f32 %v5270_v47, %v6745_v34  ;;  %v5488_v37 = vpop.f32.mrb[35].mxu0  ;;  %vm1978_vm10 = vcmp.gt.f32.partialorder %v5380_v1, 0.0  ;;  %3659 = vpow2.f32 %v2065_v39 }
 0x11e   :  { %v5490_v12 = vpop.f32.mrb[35].mxu1  ;;  %v3646_v29 = vpop.eup %3645  ;;  %2616 = vst [vmem:[%s6682_s5 + $0x298] sm:$0xff] %v2488_v18  ;;  %v2813_v31 = vadd.f32 -1.0, %v3644_v61  ;;  %v2193_v28 = vmul.f32 1.442695, %v5468_v13  ;;  %vm1913_vm11 = vcmp.gt.f32.partialorder %v5390_v23, 0.0  ;;  %v5520_v61 = vadd.f32 %v6747_v16, %v5284_v51 }
 0x11f   :  { %v3648_v27 = vpop.eup %3647  ;;  %v2877_v24 = vadd.f32 -1.0, %v3646_v29  ;;  %vm1977_vm12 = vcmp.gt.f32.partialorder %v5412_v45, 0.0  ;;  %v2071_v47 = vmul.f32 1.442695, %v5482_v56  ;;  %v2199_v54 = vmul.f32 1.442695, %v5486_v14 }
 0x120   :  { %v2423_v0 = vsel %vm1911_vm7, %v5336_v36, %v2813_v31  ;;  %v2816_v15 = vadd.f32 -1.0, %v3648_v27  ;;  %3661 = vpow2.f32 %v2193_v28  ;;  %v5504_v35 = vpop.f32.mrb[36].mxu0  ;;  %v5506_v59 = vpop.f32.mrb[36].mxu1  ;;  %v6746_v36 = vld [vmem:[#allocation16_spill] sm:$0xff]  ;;  %vm1916_vm13 = vcmp.gt.f32.partialorder %v5422_v20, 0.0 }
 0x121   :  { %v3650_v53 = vpop.eup %3649  ;;  %2551 = vst [vmem:[%s6682_s5 + $0x90] sm:$0xff] %v2423_v0  ;;  %v2487_v11 = vsel %vm1975_vm8, %v5340_v33, %v2877_v24  ;;  %3663 = vpow2.f32 %v2071_v47  ;;  %v5516_v39 = vadd.f32 %v6746_v36, %v5282_v41  ;;  %v5522_v18 = vpop.f32.mrb[37].mxu0  ;;  %v6748_v41 = vld [vmem:[#allocation18_spill] sm:$0xff]  ;;  %vm1980_vm14 = vcmp.gt.f32.partialorder %v5440_v3, 0.0 }
 0x122   :  { %v5524_v10 = vpop.f32.mrb[37].mxu1  ;;  %v3652_v34 = vpop.eup %3651  ;;  %2615 = vst [vmem:[%s6682_s5 + $0x290] sm:$0xff] %v2487_v11  ;;  %v2426_v33 = vsel %vm1914_vm9, %v5350_v52, %v2816_v15  ;;  %v2880_v29 = vadd.f32 -1.0, %v3650_v53  ;;  %3665 = vpow2.f32 %v2199_v54  ;;  %v5534_v31 = vadd.f32 %v5310_v40, %v6748_v41 }
 0x123   :  { %2554 = vst [vmem:[%s6682_s5 + $0xa8] sm:$0xff] %v2426_v33  ;;  %v2815_v51 = vadd.f32 -1.0, %v3652_v34  ;;  %v2069_v28 = vmul.f32 1.442695, %v5516_v39  ;;  %vm1915_vm15 = vcmp.gt.f32.partialorder %v5454_v21, 0.0  ;;  %v6750_v34 = vld [vmem:[#allocation20_spill] sm:$0xff] }
 0x124   :  { %v3654_v27 = vpop.eup %3653  ;;  %v2490_v52 = vsel %vm1978_vm10, %v5380_v1, %v2880_v29  ;;  %v2197_v40 = vmul.f32 1.442695, %v5520_v61  ;;  %v2075_v24 = vmul.f32 1.442695, %v5534_v31  ;;  %v5548_v47 = vpop.f32.mrb[38].mxu0  ;;  %v6749_v1 = vld [vmem:[#allocation19_spill] sm:$0xff]  ;;  %v5569_v33 = vadd.f32 %v6750_v34, %v5319_v7 }
 0x125   :  { %v3656_v0 = vpop.eup %3655  ;;  %2618 = vst [vmem:[%s6682_s5 + $0x2a8] sm:$0xff] %v2490_v52  ;;  %v2425_v15 = vsel %vm1913_vm11, %v5390_v23, %v2815_v51  ;;  %v2879_v54 = vadd.f32 -1.0, %v3654_v27  ;;  %3667 = vpow2.f32 %v2069_v28  ;;  %v5558_v53 = vadd.f32 %v5312_v30, %v6749_v1  ;;  %v5560_v11 = vpop.f32.mrb[38].mxu1  ;;  %v6751_v23 = vld [vmem:[#allocation21_spill] sm:$0xff] }
 0x126   :  { %v5562_v36 = vpop.f32.mrb[39].mxu0  ;;  %2553 = vst [vmem:[%s6682_s5 + $0xa0] sm:$0xff] %v2425_v15  ;;  %v2818_v16 = vadd.f32 -1.0, %v3656_v0  ;;  %3669 = vpow2.f32 %v2197_v40  ;;  %v5573_v29 = vadd.f32 %v6751_v23, %v5321_v44  ;;  %v5575_v30 = vpop.f32.mrb[39].mxu1  ;;  %vm1979_vm0 = vcmp.gt.f32.partialorder %v5468_v13, 0.0  ;;  %v6753_v23 = vld [vmem:[#allocation23_spill] sm:$0xff] }
 0x127   :  { %v3658_v41 = vpop.eup %3657  ;;  %v2489_v51 = vsel %vm1977_vm12, %v5412_v45, %v2879_v54  ;;  %3671 = vpow2.f32 %v2075_v24  ;;  %v2203_v28 = vmul.f32 1.442695, %v5558_v53  ;;  %vm1918_vm1 = vcmp.gt.f32.partialorder %v5482_v56, 0.0 }
 0x128   :  { %v3660_v27 = vpop.eup %3659  ;;  %2617 = vst [vmem:[%s6682_s5 + $0x2a0] sm:$0xff] %v2489_v51  ;;  %v2428_v7 = vsel %vm1916_vm13, %v5422_v20, %v2818_v16  ;;  %v2882_v44 = vadd.f32 -1.0, %v3658_v41  ;;  %v2073_v52 = vmul.f32 1.442695, %v5569_v33  ;;  %v5590_v45 = vpop.f32.mrb[40].mxu0  ;;  %vm1982_vm2 = vcmp.gt.f32.partialorder %v5486_v14, 0.0 }
 0x129   :  { %v5592_v40 = vpop.f32.mrb[40].mxu1  ;;  %2556 = vst [vmem:[%s6682_s5 + $0xb8] sm:$0xff] %v2428_v7  ;;  %v2817_v24 = vadd.f32 -1.0, %v3660_v27  ;;  %3673 = vpow2.f32 %v2203_v28  ;;  %v2201_v0 = vmul.f32 1.442695, %v5573_v29  ;;  %v5599_v20 = vpop.f32.mrb[41].mxu0  ;;  %v5612_v41 = vadd.f32 %v5354_v49, %v6753_v23 }
 0x12a   :  { %v5601_v15 = vpop.f32.mrb[41].mxu1  ;;  %v3662_v54 = vpop.eup %3661  ;;  %v2492_v1 = vsel %vm1980_vm14, %v5440_v3, %v2882_v44  ;;  %3675 = vpow2.f32 %v2073_v52  ;;  %v6752_v16 = vld [vmem:[#allocation22_spill] sm:$0xff]  ;;  %v6754_v3 = vld [vmem:[#allocation24_spill] sm:$0xff]  ;;  %vm1917_vm3 = vcmp.gt.f32.partialorder %v5516_v39, 0.0  ;;  %vm1981_vm4 = vcmp.gt.f32.partialorder %v5520_v61, 0.0 }
 0x12b   :  { %v5608_v34 = vadd.f32 %v5352_v46, %v6752_v16  ;;  %v3664_v51 = vpop.eup %3663  ;;  %2620 = vst [vmem:[%s6682_s5 + $0x2b8] sm:$0xff] %v2492_v1  ;;  %v2427_v28 = vsel %vm1915_vm15, %v5454_v21, %v2817_v24  ;;  %v2881_v27 = vadd.f32 -1.0, %v3662_v54  ;;  %3677 = vpow2.f32 %v2201_v0  ;;  %v6755_v16 = vld [vmem:[#allocation25_spill] sm:$0xff] }
 0x12c   :  { %v5622_v7 = vadd.f32 %v6754_v3, %v5362_v19  ;;  %v3666_v46 = vpop.eup %3665  ;;  %2555 = vst [vmem:[%s6682_s5 + $0xb0] sm:$0xff] %v2427_v28  ;;  %v2820_v49 = vadd.f32 -1.0, %v3664_v51  ;;  %v5630_v52 = vpop.f32.mrb[42].mxu0  ;;  %vm1920_vm5 = vcmp.gt.f32.partialorder %v5534_v31, 0.0  ;;  %v2207_v24 = vmul.f32 1.442695, %v5612_v41 }
 0x12d   :  { %v2079_v44 = vmul.f32 1.442695, %v5608_v34  ;;  %v2491_v21 = vsel %vm1979_vm0, %v5468_v13, %v2881_v27  ;;  %v2884_v19 = vadd.f32 -1.0, %v3666_v46  ;;  %v5637_v0 = vpop.f32.mrb[42].mxu1  ;;  %v5639_v54 = vpop.f32.mrb[43].mxu0  ;;  %v5650_v23 = vadd.f32 %v6755_v16, %v5369_v26  ;;  %v6757_v46 = vld [vmem:[#allocation27_spill] sm:$0xff] }
 0x12e   :  { %2619 = vst [vmem:[%s6682_s5 + $0x2b0] sm:$0xff] %v2491_v21  ;;  %v2430_v1 = vsel %vm1918_vm1, %v5482_v56, %v2820_v49  ;;  %v2077_v13 = vmul.f32 1.442695, %v5622_v7  ;;  %v5652_v51 = vpop.f32.mrb[43].mxu1  ;;  %v6756_v56 = vld [vmem:[#allocation26_spill] sm:$0xff]  ;;  %v5666_v26 = vadd.f32 %v5394_v22, %v6757_v46  ;;  %vm1984_vm6 = vcmp.gt.f32.partialorder %v5558_v53, 0.0 }
 0x12f   :  { %3679 = vpow2.f32 %v2079_v44  ;;  %v3668_v28 = vpop.eup %3667  ;;  %2558 = vst [vmem:[%s6682_s5 + $0xc8] sm:$0xff] %v2430_v1  ;;  %v2494_v27 = vsel %vm1982_vm2, %v5486_v14, %v2884_v19  ;;  %v5662_v3 = vadd.f32 %v5392_v5, %v6756_v56  ;;  %v2205_v14 = vmul.f32 1.442695, %v5650_v23 }
 0x130   :  { %3681 = vpow2.f32 %v2207_v24  ;;  %v3670_v49 = vpop.eup %3669  ;;  %2622 = vst [vmem:[%s6682_s5 + $0x2c8] sm:$0xff] %v2494_v27  ;;  %v2819_v44 = vadd.f32 -1.0, %v3668_v28  ;;  %v5673_v21 = vpop.f32.mrb[44].mxu0  ;;  %vm1919_vm7 = vcmp.gt.f32.partialorder %v5569_v33, 0.0  ;;  %vm1983_vm8 = vcmp.gt.f32.partialorder %v5573_v29, 0.0 }
 0x131   :  { %3683 = vpow2.f32 %v2077_v13  ;;  %v5675_v19 = vpop.f32.mrb[44].mxu1  ;;  %v3672_v5 = vpop.eup %3671  ;;  %v2883_v24 = vadd.f32 -1.0, %v3670_v49  ;;  %v2083_v22 = vmul.f32 1.442695, %v5662_v3  ;;  %v2211_v28 = vmul.f32 1.442695, %v5666_v26 }
 0x132   :  { %v5680_v1 = vpop.f32.mrb[45].mxu0  ;;  %v2429_v13 = vsel %vm1917_vm3, %v5516_v39, %v2819_v44  ;;  %v2822_v16 = vadd.f32 -1.0, %v3672_v5  ;;  %3685 = vpow2.f32 %v2205_v14  ;;  %v5686_v27 = vpop.f32.mrb[45].mxu1  ;;  %v6758_v49 = vld [vmem:[#allocation28_spill] sm:$0xff]  ;;  %v6759_v39 = vld [vmem:[#allocation29_spill] sm:$0xff]  ;;  %vm1922_vm9 = vcmp.gt.f32.partialorder %v5608_v34, 0.0 }
 0x133   :  { %v3674_v56 = vpop.eup %3673  ;;  %2557 = vst [vmem:[%s6682_s5 + $0xc0] sm:$0xff] %v2429_v13  ;;  %v2493_v46 = vsel %vm1981_vm4, %v5520_v61, %v2883_v24  ;;  %3687 = vpow2.f32 %v2083_v22  ;;  %v5696_v58 = vadd.f32 %v6758_v49, %v5401_v63  ;;  %v5700_v44 = vadd.f32 %v6759_v39, %v5403_v42  ;;  %v6760_v61 = vld [vmem:[#allocation30_spill] sm:$0xff] }
 0x134   :  { %v3676_v14 = vpop.eup %3675  ;;  %2621 = vst [vmem:[%s6682_s5 + $0x2c0] sm:$0xff] %v2493_v46  ;;  %v2432_v5 = vsel %vm1920_vm5, %v5534_v31, %v2822_v16  ;;  %v2886_v13 = vadd.f32 -1.0, %v3674_v56  ;;  %3689 = vpow2.f32 %v2211_v28  ;;  %v5710_v24 = vadd.f32 %v5429_v62, %v6760_v61  ;;  %v5712_v63 = vpop.f32.mrb[46].mxu0 }
 0x135   :  { %v5714_v22 = vpop.f32.mrb[46].mxu1  ;;  %v3678_v42 = vpop.eup %3677  ;;  %2560 = vst [vmem:[%s6682_s5 + $0xd8] sm:$0xff] %v2432_v5  ;;  %v2821_v46 = vadd.f32 -1.0, %v3676_v14  ;;  %vm1986_vm10 = vcmp.gt.f32.partialorder %v5612_v41, 0.0  ;;  %v2081_v31 = vmul.f32 1.442695, %v5696_v58 }
 0x136   :  { %v5722_v16 = vpop.f32.mrb[47].mxu0  ;;  %v2496_v62 = vsel %vm1984_vm6, %v5558_v53, %v2886_v13  ;;  %v2885_v28 = vadd.f32 -1.0, %v3678_v42  ;;  %vm1921_vm11 = vcmp.gt.f32.partialorder %v5622_v7, 0.0  ;;  %v2209_v56 = vmul.f32 1.442695, %v5700_v44  ;;  %v5729_v49 = vpop.f32.mrb[47].mxu1 }
 0x137   :  { %2624 = vst [vmem:[%s6682_s5 + $0x2d8] sm:$0xff] %v2496_v62  ;;  %v2431_v39 = vsel %vm1919_vm7, %v5569_v33, %v2821_v46  ;;  %3691 = vpow2.f32 %v2081_v31  ;;  %v2087_v14 = vmul.f32 1.442695, %v5710_v24  ;;  %v6761_v5 = vld [vmem:[#allocation31_spill] sm:$0xff]  ;;  %v6762_v42 = vld [vmem:[#allocation32_spill] sm:$0xff]  ;;  %v5754_v46 = vadd.f32 %v4782_v55, %v5444_v8 }
 0x138   :  { %v5740_v53 = vadd.f32 %v5431_v2, %v6761_v5  ;;  %2559 = vst [vmem:[%s6682_s5 + $0xd0] sm:$0xff] %v2431_v39  ;;  %v2495_v61 = vsel %vm1983_vm8, %v5573_v29, %v2885_v28  ;;  %3693 = vpow2.f32 %v2209_v56  ;;  %v5750_v33 = vadd.f32 %v6762_v42, %v5442_v60  ;;  %v5756_v2 = vpop.f32.mrb[48].mxu0  ;;  %v5758_v31 = vpop.f32.mrb[48].mxu1 }
 0x139   :  { %v3680_v13 = vpop.eup %3679  ;;  %2623 = vst [vmem:[%s6682_s5 + $0x2d0] sm:$0xff] %v2495_v61  ;;  %vm1985_vm12 = vcmp.gt.f32.partialorder %v5650_v23, 0.0  ;;  %3695 = vpow2.f32 %v2087_v14  ;;  %v5765_v29 = vpop.f32.mrb[49].mxu0  ;;  %vm1924_vm13 = vcmp.gt.f32.partialorder %v5662_v3, 0.0  ;;  %vm1988_vm14 = vcmp.gt.f32.partialorder %v5666_v26, 0.0 }
 0x13a   :  { %v3682_v62 = vpop.eup %3681  ;;  %v2824_v39 = vadd.f32 -1.0, %v3680_v13  ;;  %v2215_v60 = vmul.f32 1.442695, %v5740_v53  ;;  %v5767_v28 = vpop.f32.mrb[49].mxu1  ;;  %v2085_v56 = vmul.f32 1.442695, %v5750_v33 }
 0x13b   :  { %6763 = vst [vmem:[#allocation2_spill] sm:$0xff] %v5767_v28  ;;  %v3684_v55 = vpop.eup %3683  ;;  %v2888_v8 = vadd.f32 -1.0, %v3682_v62  ;;  %v2213_v14 = vmul.f32 1.442695, %v5754_v46  ;;  %v5784_v62 = vadd.f32 %v5470_v38, %v4786_v48  ;;  %v6764_v28 = vld [vmem:[#allocation33_spill] sm:$0xff]  ;;  %v6765_v48 = vld [vmem:[#allocation34_spill] sm:$0xff] }
 0x13c   :  { %v2434_v5 = vsel %vm1922_vm9, %v5608_v34, %v2824_v39  ;;  %v2823_v13 = vadd.f32 -1.0, %v3684_v55  ;;  %3697 = vpow2.f32 %v2215_v60  ;;  %v3686_v61 = vpop.eup %3685  ;;  %v5788_v34 = vadd.f32 %v5472_v57, %v6764_v28  ;;  %v5790_v39 = vpop.f32.mrb[50].mxu0 }
 0x13d   :  { %2562 = vst [vmem:[%s6682_s5 + $0xe8] sm:$0xff] %v2434_v5  ;;  %v2498_v42 = vsel %vm1986_vm10, %v5612_v41, %v2888_v8  ;;  %3699 = vpow2.f32 %v2085_v56  ;;  %v5792_v60 = vpop.f32.mrb[50].mxu1  ;;  %v3688_v55 = vpop.eup %3687  ;;  %v2887_v8 = vadd.f32 -1.0, %v3686_v61  ;;  %v5802_v38 = vadd.f32 %v6765_v48, %v5488_v37 }
 0x13e   :  { %2626 = vst [vmem:[%s6682_s5 + $0x2e8] sm:$0xff] %v2498_v42  ;;  %v2433_v41 = vsel %vm1921_vm11, %v5622_v7, %v2823_v13  ;;  %3701 = vpow2.f32 %v2213_v14  ;;  %v5804_v57 = vpop.f32.mrb[51].mxu0  ;;  %v5806_v28 = vpop.f32.mrb[51].mxu1  ;;  %v2826_v5 = vadd.f32 -1.0, %v3688_v55  ;;  %vm1923_vm15 = vcmp.gt.f32.partialorder %v5696_v58, 0.0  ;;  %v6766_v55 = vld [vmem:[#allocation35_spill] sm:$0xff] }
 0x13f   :  { %v3690_v56 = vpop.eup %3689  ;;  %2561 = vst [vmem:[%s6682_s5 + $0xe0] sm:$0xff] %v2433_v41  ;;  %vm1987_vm0 = vcmp.gt.f32.partialorder %v5700_v44, 0.0  ;;  %v2091_v7 = vmul.f32 1.442695, %v5784_v62  ;;  %v2497_v37 = vsel %vm1985_vm12, %v5650_v23, %v2887_v8  ;;  %vm1926_vm1 = vcmp.gt.f32.partialorder %v5710_v24, 0.0 }
 0x140   :  { %v2890_v13 = vadd.f32 -1.0, %v3690_v56  ;;  %v2219_v14 = vmul.f32 1.442695, %v5788_v34  ;;  %2625 = vst [vmem:[%s6682_s5 + $0x2e0] sm:$0xff] %v2497_v37  ;;  %v2436_v61 = vsel %vm1924_vm13, %v5662_v3, %v2826_v5  ;;  %v2089_v42 = vmul.f32 1.442695, %v5802_v38 }
 0x141   :  { %3703 = vpow2.f32 %v2091_v7  ;;  %v5828_v41 = vadd.f32 %v6766_v55, %v5490_v12  ;;  %v5830_v23 = vpop.f32.mrb[52].mxu0  ;;  %v5832_v8 = vpop.f32.mrb[52].mxu1  ;;  %2564 = vst [vmem:[%s6682_s5 + $0xf8] sm:$0xff] %v2436_v61  ;;  %v5842_v56 = vadd.f32 %v5504_v35, %v4809_v9  ;;  %v6767_v12 = vld [vmem:[#allocation36_spill] sm:$0xff]  ;;  %vm1990_vm2 = vcmp.gt.f32.partialorder %v5740_v53, 0.0 }
 0x142   :  { %v3692_v48 = vpop.eup %3691  ;;  %v2500_v3 = vsel %vm1988_vm14, %v5666_v26, %v2890_v13  ;;  %3705 = vpow2.f32 %v2219_v14  ;;  %v5846_v5 = vadd.f32 %v5506_v59, %v6767_v12  ;;  %v5848_v7 = vpop.f32.mrb[53].mxu0  ;;  %vm1925_vm3 = vcmp.gt.f32.partialorder %v5750_v33, 0.0 }
 0x143   :  { %v5850_v37 = vpop.f32.mrb[53].mxu1  ;;  %v3694_v55 = vpop.eup %3693  ;;  %2628 = vst [vmem:[%s6682_s5 + $0x2f8] sm:$0xff] %v2500_v3  ;;  %v2825_v61 = vadd.f32 -1.0, %v3692_v48  ;;  %3707 = vpow2.f32 %v2089_v42  ;;  %v2217_v9 = vmul.f32 1.442695, %v5828_v41  ;;  %vm1989_vm4 = vcmp.gt.f32.partialorder %v5754_v46, 0.0 }
 0x144   :  { %6768 = vst [vmem:[#allocation3_spill] sm:$0xff] %v5850_v37  ;;  %v3696_v35 = vpop.eup %3695  ;;  %v2889_v26 = vadd.f32 -1.0, %v3694_v55  ;;  %v2095_v59 = vmul.f32 1.442695, %v5842_v56  ;;  %v2223_v48 = vmul.f32 1.442695, %v5846_v5 }
 0x145   :  { %v2435_v13 = vsel %vm1923_vm15, %v5696_v58, %v2825_v61  ;;  %v2828_v14 = vadd.f32 -1.0, %v3696_v35  ;;  %3709 = vpow2.f32 %v2217_v9  ;;  %v5864_v3 = vpop.f32.mrb[54].mxu0  ;;  %v5866_v42 = vpop.f32.mrb[54].mxu1  ;;  %v6771_v58 = vld [vmem:[#allocation37_spill] sm:$0xff]  ;;  %v6772_v9 = vld [vmem:[#allocation38_spill] sm:$0xff]  ;;  %vm1928_vm5 = vcmp.gt.f32.partialorder %v5784_v62, 0.0 }
 0x146   :  { %6769 = vst [vmem:[#allocation4_spill] sm:$0xff] %v5864_v3  ;;  %6770 = vst [vmem:[#allocation5_spill] sm:$0xff] %v5866_v42  ;;  %v3698_v12 = vpop.eup %3697  ;;  %v2499_v55 = vsel %vm1987_vm0, %v5700_v44, %v2889_v26  ;;  %3711 = vpow2.f32 %v2095_v59  ;;  %v5876_v61 = vadd.f32 %v6771_v58, %v5522_v18  ;;  %v5880_v35 = vadd.f32 %v6772_v9, %v5524_v10  ;;  %v5882_v3 = vpop.f32.mrb[55].mxu0  ;;  %v6773_v18 = vld [vmem:[#allocation39_spill] sm:$0xff]  ;;  %v6774_v58 = vld [vmem:[#allocation40_spill] sm:$0xff] }
 0x147   :  { %2563 = vst [vmem:[%s6682_s5 + $0xf0] sm:$0xff] %v2435_v13  ;;  %v5884_v42 = vpop.f32.mrb[55].mxu1  ;;  %v3700_v37 = vpop.eup %3699  ;;  %2627 = vst [vmem:[%s6682_s5 + $0x2f0] sm:$0xff] %v2499_v55  ;;  %v2438_v44 = vsel %vm1926_vm1, %v5710_v24, %v2828_v14  ;;  %v2892_v26 = vadd.f32 -1.0, %v3698_v12  ;;  %3713 = vpow2.f32 %v2223_v48  ;;  %v5894_v59 = vadd.f32 %v5548_v47, %v6773_v18 }
 0x148   :  { %v3702_v10 = vpop.eup %3701  ;;  %2566 = vst [vmem:[%s6682_s5 + $0x108] sm:$0xff] %v2438_v44  ;;  %v2827_v13 = vadd.f32 -1.0, %v3700_v37  ;;  %vm1992_vm6 = vcmp.gt.f32.partialorder %v5788_v34, 0.0  ;;  %v2093_v55 = vmul.f32 1.442695, %v5876_v61  ;;  %vm1927_vm7 = vcmp.gt.f32.partialorder %v5802_v38, 0.0 }
 0x149   :  { %v2502_v24 = vsel %vm1990_vm2, %v5740_v53, %v2892_v26  ;;  %v2891_v14 = vadd.f32 -1.0, %v3702_v10  ;;  %v2221_v47 = vmul.f32 1.442695, %v5880_v35  ;;  %v5907_v48 = vpop.f32.mrb[56].mxu0  ;;  %v5909_v12 = vpop.f32.mrb[56].mxu1  ;;  %v5920_v9 = vadd.f32 %v5560_v11, %v6774_v58  ;;  %v6775_v10 = vld [vmem:[#allocation41_spill] sm:$0xff] }
 0x14a   :  { %2630 = vst [vmem:[%s6682_s5 + $0x308] sm:$0xff] %v2502_v24  ;;  %v2437_v37 = vsel %vm1925_vm3, %v5750_v33, %v2827_v13  ;;  %3715 = vpow2.f32 %v2093_v55  ;;  %v2099_v53 = vmul.f32 1.442695, %v5894_v59  ;;  %v5922_v44 = vpop.f32.mrb[57].mxu0  ;;  %v5924_v26 = vpop.f32.mrb[57].mxu1  ;;  %v5934_v13 = vadd.f32 %v6775_v10, %v5562_v36  ;;  %v6776_v11 = vld [vmem:[#allocation42_spill] sm:$0xff] }
 0x14b   :  { %v3704_v18 = vpop.eup %3703  ;;  %2565 = vst [vmem:[%s6682_s5 + $0x100] sm:$0xff] %v2437_v37  ;;  %v2501_v33 = vsel %vm1989_vm4, %v5754_v46, %v2891_v14  ;;  %3717 = vpow2.f32 %v2221_v47  ;;  %v5938_v55 = vadd.f32 %v6776_v11, %v5575_v30  ;;  %vm1991_vm8 = vcmp.gt.f32.partialorder %v5828_v41, 0.0 }
 0x14c   :  { %v3706_v24 = vpop.eup %3705  ;;  %2629 = vst [vmem:[%s6682_s5 + $0x300] sm:$0xff] %v2501_v33  ;;  %v2830_v58 = vadd.f32 -1.0, %v3704_v18  ;;  %3719 = vpow2.f32 %v2099_v53  ;;  %v2227_v46 = vmul.f32 1.442695, %v5920_v9  ;;  %vm1930_vm9 = vcmp.gt.f32.partialorder %v5842_v56, 0.0  ;;  %v5948_v30 = vpop.f32.mrb[58].mxu0 }
 0x14d   :  { %v3708_v14 = vpop.eup %3707  ;;  %v2894_v47 = vadd.f32 -1.0, %v3706_v24  ;;  %vm1994_vm10 = vcmp.gt.f32.partialorder %v5846_v5, 0.0  ;;  %v2097_v36 = vmul.f32 1.442695, %v5934_v13  ;;  %6777 = vst [vmem:[#allocation6_spill] sm:$0xff] %v5948_v30  ;;  %v5954_v33 = vpop.f32.mrb[58].mxu1 }
 0x14e   :  { %v2440_v37 = vsel %vm1928_vm5, %v5784_v62, %v2830_v58  ;;  %v2829_v18 = vadd.f32 -1.0, %v3708_v14  ;;  %3721 = vpow2.f32 %v2227_v46  ;;  %v2225_v53 = vmul.f32 1.442695, %v5938_v55  ;;  %v5956_v10 = vpop.f32.mrb[59].mxu0  ;;  %v6779_v30 = vld [vmem:[#allocation43_spill] sm:$0xff]  ;;  %v6780_v58 = vld [vmem:[#allocation44_spill] sm:$0xff] }
 0x14f   :  { %6778 = vst [vmem:[#allocation7_spill] sm:$0xff] %v5956_v10  ;;  %v3710_v11 = vpop.eup %3709  ;;  %2568 = vst [vmem:[%s6682_s5 + $0x118] sm:$0xff] %v2440_v37  ;;  %v2504_v24 = vsel %vm1992_vm6, %v5788_v34, %v2894_v47  ;;  %3723 = vpow2.f32 %v2097_v36  ;;  %v5966_v62 = vadd.f32 %v5590_v45, %v6779_v30  ;;  %v5970_v46 = vadd.f32 %v5592_v40, %v6780_v58  ;;  %v5972_v14 = vpop.f32.mrb[59].mxu1 }
 0x150   :  { %v3712_v10 = vpop.eup %3711  ;;  %2632 = vst [vmem:[%s6682_s5 + $0x318] sm:$0xff] %v2504_v24  ;;  %v2439_v34 = vsel %vm1927_vm7, %v5802_v38, %v2829_v18  ;;  %v2893_v47 = vadd.f32 -1.0, %v3710_v11  ;;  %3725 = vpow2.f32 %v2225_v53  ;;  %v5982_v45 = vadd.f32 %v4852_v43, %v5599_v20  ;;  %v5990_v37 = vpop.f32.mrb[60].mxu0 }
 0x151   :  { %v3714_v36 = vpop.eup %3713  ;;  %2567 = vst [vmem:[%s6682_s5 + $0x110] sm:$0xff] %v2439_v34  ;;  %v2832_v40 = vadd.f32 -1.0, %v3712_v10  ;;  %vm1929_vm11 = vcmp.gt.f32.partialorder %v5876_v61, 0.0  ;;  %vm1993_vm12 = vcmp.gt.f32.partialorder %v5880_v35, 0.0  ;;  %v2103_v30 = vmul.f32 1.442695, %v5966_v62 }
 0x152   :  { %v2503_v38 = vsel %vm1991_vm8, %v5828_v41, %v2893_v47  ;;  %v2896_v43 = vadd.f32 -1.0, %v3714_v36  ;;  %vm1932_vm13 = vcmp.gt.f32.partialorder %v5894_v59, 0.0  ;;  %v2231_v20 = vmul.f32 1.442695, %v5970_v46  ;;  %v5997_v18 = vpop.f32.mrb[60].mxu1  ;;  %v5999_v53 = vpop.f32.mrb[61].mxu0 }
 0x153   :  { %2631 = vst [vmem:[%s6682_s5 + $0x310] sm:$0xff] %v2503_v38  ;;  %v2442_v10 = vsel %vm1930_vm9, %v5842_v56, %v2832_v40  ;;  %3727 = vpow2.f32 %v2103_v30  ;;  %v2101_v41 = vmul.f32 1.442695, %v5982_v45  ;;  %v6010_v11 = vadd.f32 %v4870_v6, %v5601_v15  ;;  %v6012_v24 = vpop.f32.mrb[61].mxu1 }
 0x154   :  { %v3716_v58 = vpop.eup %3715  ;;  %2570 = vst [vmem:[%s6682_s5 + $0x128] sm:$0xff] %v2442_v10  ;;  %v2506_v34 = vsel %vm1994_vm10, %v5846_v5, %v2896_v43  ;;  %3729 = vpow2.f32 %v2231_v20  ;;  %v6022_v56 = vadd.f32 %v5630_v52, %v4876_v50  ;;  %v6026_v6 = vadd.f32 %v5637_v0, %v4884_v32  ;;  %v6033_v36 = vpop.f32.mrb[62].mxu0 }
 0x155   :  { %v3718_v15 = vpop.eup %3717  ;;  %2634 = vst [vmem:[%s6682_s5 + $0x328] sm:$0xff] %v2506_v34  ;;  %v2831_v47 = vadd.f32 -1.0, %v3716_v58  ;;  %vm1996_vm14 = vcmp.gt.f32.partialorder %v5920_v9, 0.0  ;;  %3731 = vpow2.f32 %v2101_v41  ;;  %v2229_v5 = vmul.f32 1.442695, %v6010_v11  ;;  %v6035_v40 = vpop.f32.mrb[62].mxu1 }
 0x156   :  { %v3720_v50 = vpop.eup %3719  ;;  %v2895_v52 = vadd.f32 -1.0, %v3718_v15  ;;  %vm1931_vm15 = vcmp.gt.f32.partialorder %v5934_v13, 0.0  ;;  %vm1995_vm0 = vcmp.gt.f32.partialorder %v5938_v55, 0.0  ;;  %v2107_v32 = vmul.f32 1.442695, %v6022_v56  ;;  %v6040_v0 = vpop.f32.mrb[63].mxu0 }
 0x157   :  { %v2441_v30 = vsel %vm1929_vm11, %v5876_v61, %v2831_v47  ;;  %v2834_v38 = vadd.f32 -1.0, %v3720_v50  ;;  %3733 = vpow2.f32 %v2229_v5  ;;  %v2235_v43 = vmul.f32 1.442695, %v6026_v6  ;;  %v6046_v20 = vpop.f32.mrb[63].mxu1  ;;  %v6781_v50 = vld [vmem:[#allocation45_spill] sm:$0xff] }
 0x158   :  { %v3722_v10 = vpop.eup %3721  ;;  %2569 = vst [vmem:[%s6682_s5 + $0x120] sm:$0xff] %v2441_v30  ;;  %v2505_v41 = vsel %vm1993_vm12, %v5880_v35, %v2895_v52  ;;  %3735 = vpow2.f32 %v2107_v32  ;;  %v6056_v58 = vadd.f32 %v4887_v4, %v5639_v54  ;;  %v6060_v61 = vadd.f32 %v4890_v17, %v5652_v51  ;;  %v6782_v30 = vld [vmem:[#allocation46_spill] sm:$0xff] }
 0x159   :  { %v3724_v34 = vpop.eup %3723  ;;  %2633 = vst [vmem:[%s6682_s5 + $0x320] sm:$0xff] %v2505_v41  ;;  %v2444_v15 = vsel %vm1932_vm13, %v5894_v59, %v2834_v38  ;;  %v2898_v47 = vadd.f32 -1.0, %v3722_v10  ;;  %3737 = vpow2.f32 %v2235_v43  ;;  %v6070_v35 = vadd.f32 %v5673_v21, %v4899_v25  ;;  %v6783_v38 = vld [vmem:[#allocation47_spill] sm:$0xff] }
 0x15a   :  { %v3726_v4 = vpop.eup %3725  ;;  %2572 = vst [vmem:[%s6682_s5 + $0x138] sm:$0xff] %v2444_v15  ;;  %v2833_v17 = vadd.f32 -1.0, %v3724_v34  ;;  %vm1934_vm1 = vcmp.gt.f32.partialorder %v5966_v62, 0.0  ;;  %vm1998_vm2 = vcmp.gt.f32.partialorder %v5970_v46, 0.0  ;;  %v2105_v54 = vmul.f32 1.442695, %v6056_v58 }
 0x15b   :  { %v2508_v51 = vsel %vm1996_vm14, %v5920_v9, %v2898_v47  ;;  %v2897_v59 = vadd.f32 -1.0, %v3726_v4  ;;  %vm1933_vm3 = vcmp.gt.f32.partialorder %v5982_v45, 0.0  ;;  %v2233_v25 = vmul.f32 1.442695, %v6060_v61 }
 0x15c   :  { %2636 = vst [vmem:[%s6682_s5 + $0x338] sm:$0xff] %v2508_v51  ;;  %v2443_v21 = vsel %vm1931_vm15, %v5934_v13, %v2833_v17  ;;  %3739 = vpow2.f32 %v2105_v54  ;;  %v2111_v5 = vmul.f32 1.442695, %v6070_v35  ;;  %v6092_v52 = vadd.f32 %v5675_v19, %v6781_v50  ;;  %v6784_v54 = vld [vmem:[#allocation49_spill] sm:$0xff] }
 0x15d   :  { %v3728_v9 = vpop.eup %3727  ;;  %2571 = vst [vmem:[%s6682_s5 + $0x130] sm:$0xff] %v2443_v21  ;;  %v2507_v32 = vsel %vm1995_vm0, %v5938_v55, %v2897_v59  ;;  %3741 = vpow2.f32 %v2233_v25  ;;  %v6102_v13 = vadd.f32 %v6782_v30, %v5680_v1  ;;  %v6106_v43 = vadd.f32 %v6783_v38, %v5686_v27  ;;  %v6785_v59 = vld [vmem:[#allocation48_spill] sm:$0xff]  ;;  %v3824_v50 = vld [vmem:[%s6679_s0 + $0xb8] sm:$0xff]  }
 0x15e   :  { %v3730_v19 = vpop.eup %3729  ;;  %2635 = vst [vmem:[%s6682_s5 + $0x330] sm:$0xff] %v2507_v32  ;;  %v2836_v10 = vadd.f32 -1.0, %v3728_v9  ;;  %vm1997_vm4 = vcmp.gt.f32.partialorder %v6010_v11, 0.0  ;;  %3743 = vpow2.f32 %v2111_v5  ;;  %v2239_v55 = vmul.f32 1.442695, %v6092_v52  ;;  %v6151_v32 = vld [vmem:[%s6679_s0 + $0xc0] sm:$0xff]  }
 0x15f   :  { %v3732_v41 = vpop.eup %3731  ;;  %v2900_v34 = vadd.f32 -1.0, %v3730_v19  ;;  %vm1936_vm5 = vcmp.gt.f32.partialorder %v6022_v56, 0.0  ;;  %vm2000_vm6 = vcmp.gt.f32.partialorder %v6026_v6, 0.0  ;;  %v2109_v1 = vmul.f32 1.442695, %v6102_v13 }
 0x160   :  { %v2446_v27 = vsel %vm1934_vm1, %v5966_v62, %v2836_v10  ;;  %v2835_v15 = vadd.f32 -1.0, %v3732_v41  ;;  %vm1935_vm7 = vcmp.gt.f32.partialorder %v6056_v58, 0.0  ;;  %3745 = vpow2.f32 %v2239_v55  ;;  %v6134_v62 = vld [vmem:[%s6680_s3] ss:$0 sm:$0xff] }
 0x161   :  { %v2237_v47 = vmul.f32 1.442695, %v6106_v43  ;;  %v3734_v4 = vpop.eup %3733  ;;  %2574 = vst [vmem:[%s6682_s5 + $0x148] sm:$0xff] %v2446_v27  ;;  %v2510_v17 = vsel %vm1998_vm2, %v5970_v46, %v2900_v34  ;;  %3747 = vpow2.f32 %v2109_v1  ;;  %v6129_v51 = vadd.f32 %v5712_v63, %v6784_v54  ;;  %v6161_v19 = vld [vmem:[%s6681_s4] ss:$0 sm:$0xff]  ;;  %v3826_v27 = vld [vmem:[%s6679_s0 + $0x1b8] sm:$0xff]  }
 0x162   :  { %v6786_v25 = vunpack.c.h.bf16 %v6785_v59  ;;  %v3736_v5 = vpop.eup %3735  ;;  %2638 = vst [vmem:[%s6682_s5 + $0x348] sm:$0xff] %v2510_v17  ;;  %v2445_v46 = vsel %vm1933_vm3, %v5982_v45, %v2835_v15  ;;  %v2899_v63 = vadd.f32 -1.0, %v3734_v4  ;;  %v3017_v9 = vunpack.c.l.bf16 %v3824_v50  ;;  %v6167_v55 = vld [vmem:[%s6679_s0 + $0x1c0] sm:$0xff]  }
 0x163   :  { %3749 = vpow2.f32 %v2237_v47  ;;  %v3738_v30 = vpop.eup %3737  ;;  %2573 = vst [vmem:[%s6682_s5 + $0x140] sm:$0xff] %v2445_v46  ;;  %v2838_v38 = vadd.f32 -1.0, %v3736_v5  ;;  %vm1999_vm8 = vcmp.gt.f32.partialorder %v6060_v61, 0.0  ;;  %v2115_v45 = vmul.f32 1.442695, %v6129_v51 }
 0x164   :  { %v1613_v21 = vmul.f32 %v6134_v62, %v6786_v25  ;;  %v2509_v41 = vsel %vm1997_vm4, %v6010_v11, %v2899_v63  ;;  %v2902_v34 = vadd.f32 -1.0, %v3738_v30  ;;  %v1548_v1 = vmul.f32 %v6134_v62, %v3017_v9 }
 0x165   :  { %v3145_v15 = vunpack.c.l.bf16 %v3826_v27  ;;  %2637 = vst [vmem:[%s6682_s5 + $0x340] sm:$0xff] %v2509_v41  ;;  %v2448_v47 = vsel %vm1936_vm5, %v6022_v56, %v2838_v38  ;;  %3751 = vpow2.f32 %v2115_v45  ;;  %v3022_v11 = vunpack.c.h.bf16 %v6151_v32 }
 0x166   :  { %v1748_v10 = vadd.f32 %v6161_v19, %v1613_v21  ;;  %v3740_v17 = vpop.eup %3739  ;;  %2576 = vst [vmem:[%s6682_s5 + $0x158] sm:$0xff] %v2448_v47  ;;  %v2512_v54 = vsel %vm2000_vm6, %v6026_v6, %v2902_v34  ;;  %v1683_v59 = vadd.f32 %v6161_v19, %v1548_v1  ;;  %v3150_v56 = vunpack.c.h.bf16 %v6167_v55 }
 0x167   :  { %v1612_v25 = vmul.f32 %v6134_v62, %v3145_v15  ;;  %v3742_v21 = vpop.eup %3741  ;;  %2640 = vst [vmem:[%s6682_s5 + $0x358] sm:$0xff] %v2512_v54  ;;  %vm1938_vm9 = vcmp.gt.f32.partialorder %v6070_v35, 0.0  ;;  %v1551_v46 = vmul.f32 %v6134_v62, %v3022_v11  ;;  %vm2002_vm10 = vcmp.gt.f32.partialorder %v6092_v52, 0.0 }
 0x168   :  { %v6183_v4 = vadd.f32 %v5714_v22, %v1748_v10  ;;  %v2837_v22 = vadd.f32 -1.0, %v3740_v17  ;;  %v3744_v63 = vpop.eup %3743  ;;  %v2901_v6 = vadd.f32 -1.0, %v3742_v21  ;;  %v6202_v50 = vadd.f32 %v1683_v59, %v5722_v16 }
 0x169   :  { %v1747_v9 = vadd.f32 %v6161_v19, %v1612_v25  ;;  %v1615_v30 = vmul.f32 %v6134_v62, %v3150_v56  ;;  %v2840_v45 = vadd.f32 -1.0, %v3744_v63  ;;  %v1686_v10 = vadd.f32 %v6161_v19, %v1551_v46 }
 0x16a   :  { %v2243_v5 = vmul.f32 1.442695, %v6183_v4  ;;  %v2447_v38 = vsel %vm1935_vm7, %v6056_v58, %v2837_v22  ;;  %v3746_v41 = vpop.eup %3745  ;;  %v2511_v16 = vsel %vm1999_vm8, %v6060_v61, %v2901_v6  ;;  %v2113_v34 = vmul.f32 1.442695, %v6202_v50 }
 0x16b   :  { %2575 = vst [vmem:[%s6682_s5 + $0x150] sm:$0xff] %v2447_v38  ;;  %v6219_v1 = vadd.f32 %v1747_v9, %v5729_v49  ;;  %v3748_v58 = vpop.eup %3747  ;;  %2639 = vst [vmem:[%s6682_s5 + $0x350] sm:$0xff] %v2511_v16  ;;  %v2450_v27 = vsel %vm1938_vm9, %v6070_v35, %v2840_v45  ;;  %v2904_v15 = vadd.f32 -1.0, %v3746_v41  ;;  %v6228_v47 = vadd.f32 %v5756_v2, %v1686_v10  ;;  %v3203_v35 = vld [vmem:[%s6679_s0 + $0xc8] sm:$0xff]  }
 0x16c   :  { %3753 = vpow2.f32 %v2243_v5  ;;  %v1750_v61 = vadd.f32 %v6161_v19, %v1615_v30  ;;  %2578 = vst [vmem:[%s6682_s5 + $0x168] sm:$0xff] %v2450_v27  ;;  %vm1937_vm11 = vcmp.gt.f32.partialorder %v6102_v13, 0.0  ;;  %v2839_v49 = vadd.f32 -1.0, %v3748_v58 }
 0x16d   :  { %v3750_v11 = vpop.eup %3749  ;;  %3755 = vpow2.f32 %v2113_v34  ;;  %v2241_v17 = vmul.f32 1.442695, %v6219_v1  ;;  %v2514_v2 = vsel %vm2002_vm10, %v6092_v52, %v2904_v15  ;;  %vm2001_vm12 = vcmp.gt.f32.partialorder %v6106_v43, 0.0  ;;  %v3235_v52 = vld [vmem:[%s6679_s0 + $0x1c8] sm:$0xff]  }
 0x16e   :  { %v2903_v54 = vadd.f32 -1.0, %v3750_v11  ;;  %v2119_v59 = vmul.f32 1.442695, %v6228_v47  ;;  %2642 = vst [vmem:[%s6682_s5 + $0x368] sm:$0xff] %v2514_v2  ;;  %v2449_v25 = vsel %vm1937_vm11, %v6102_v13, %v2839_v49  ;;  %v6249_v56 = vadd.f32 %v5758_v31, %v1750_v61  ;;  %v3204_v61 = vld [vmem:[%s6679_s0 + $0xd0] sm:$0xff]   ;;  %v6787_v11 = vld [vmem:[#allocation2_spill] sm:$0xff] }
 0x16f   :  { %3757 = vpow2.f32 %v2241_v17  ;;  %v3021_v21 = vunpack.c.l.bf16 %v6151_v32  ;;  %v3752_v22 = vpop.eup %3751  ;;  %2577 = vst [vmem:[%s6682_s5 + $0x160] sm:$0xff] %v2449_v25  ;;  %v3149_v13 = vunpack.c.l.bf16 %v6167_v55  ;;  %v3026_v46 = vunpack.c.h.bf16 %v3203_v35 }
 0x170   :  { %v2513_v5 = vsel %vm2001_vm12, %v6106_v43, %v2903_v54  ;;  %3759 = vpow2.f32 %v2119_v59  ;;  %vm1940_vm13 = vcmp.gt.f32.partialorder %v6129_v51, 0.0  ;;  %v2842_v31 = vadd.f32 -1.0, %v3752_v22 }
 0x171   :  { %2641 = vst [vmem:[%s6682_s5 + $0x360] sm:$0xff] %v2513_v5  ;;  %v2247_v32 = vmul.f32 1.442695, %v6249_v56  ;;  %v1550_v63 = vmul.f32 %v6134_v62, %v3021_v21  ;;  %v1614_v6 = vmul.f32 %v6134_v62, %v3149_v13  ;;  %v1553_v9 = vmul.f32 %v6134_v62, %v3026_v46 }
 0x172   :  { %v3154_v43 = vunpack.c.h.bf16 %v3235_v52  ;;  %v3025_v30 = vunpack.c.l.bf16 %v3203_v35  ;;  %v2452_v55 = vsel %vm1940_vm13, %v6129_v51, %v2842_v31  ;;  %v3153_v45 = vunpack.c.l.bf16 %v3235_v52 }
 0x173   :  { %3761 = vpow2.f32 %v2247_v32  ;;  %v1685_v38 = vadd.f32 %v6161_v19, %v1550_v63  ;;  %2580 = vst [vmem:[%s6682_s5 + $0x178] sm:$0xff] %v2452_v55  ;;  %v1749_v41 = vadd.f32 %v6161_v19, %v1614_v6  ;;  %v1688_v16 = vadd.f32 %v6161_v19, %v1553_v9  ;;  %v6327_v9 = vld [vmem:[%s6679_s0 + $0xd8] sm:$0xff]  }
 0x174   :  { %v1617_v34 = vmul.f32 %v6134_v62, %v3154_v43  ;;  %v1552_v58 = vmul.f32 %v6134_v62, %v3025_v30  ;;  %vm2004_vm14 = vcmp.gt.f32.partialorder %v6183_v4, 0.0  ;;  %v1616_v15 = vmul.f32 %v6134_v62, %v3153_v45 }
 0x175   :  { %v6279_v27 = vadd.f32 %v1685_v38, %v5765_v29  ;;  %v6286_v49 = vadd.f32 %v1749_v41, %v6787_v11  ;;  %v6289_v17 = vadd.f32 %v5790_v39, %v1688_v16  ;;  %vm1939_vm15 = vcmp.gt.f32.partialorder %v6202_v50, 0.0  ;;  %v6339_v38 = vld [vmem:[%s6679_s0 + $0x1d8] sm:$0xff]  }
 0x176   :  { %v3754_v10 = vpop.eup %3753  ;;  %v1752_v35 = vadd.f32 %v6161_v19, %v1617_v34  ;;  %v1687_v2 = vadd.f32 %v6161_v19, %v1552_v58  ;;  %v1751_v25 = vadd.f32 %v6161_v19, %v1616_v15  ;;  %v3030_v52 = vunpack.c.h.bf16 %v3204_v61 }
 0x177   :  { %v2906_v51 = vadd.f32 -1.0, %v3754_v10  ;;  %v3756_v54 = vpop.eup %3755  ;;  %v2117_v59 = vmul.f32 1.442695, %v6279_v27  ;;  %v2245_v39 = vmul.f32 1.442695, %v6286_v49  ;;  %vm2003_vm0 = vcmp.gt.f32.partialorder %v6219_v1, 0.0 }
 0x178   :  { %v2841_v21 = vadd.f32 -1.0, %v3756_v54  ;;  %v2123_v5 = vmul.f32 1.442695, %v6289_v17  ;;  %v6306_v13 = vadd.f32 %v1687_v2, %v5804_v57  ;;  %v6310_v63 = vadd.f32 %v1751_v25, %v5806_v28  ;;  %v3236_v57 = vld [vmem:[%s6679_s0 + $0x1d0] sm:$0xff]  }
 0x179   :  { %v2516_v29 = vsel %vm2004_vm14, %v6183_v4, %v2906_v51  ;;  %v3758_v22 = vpop.eup %3757  ;;  %3763 = vpow2.f32 %v2117_v59  ;;  %v6303_v4 = vadd.f32 %v5792_v60, %v1752_v35  ;;  %vm1942_vm1 = vcmp.gt.f32.partialorder %v6228_v47, 0.0 }
 0x17a   :  { %2644 = vst [vmem:[%s6682_s5 + $0x378] sm:$0xff] %v2516_v29  ;;  %v3760_v46 = vpop.eup %3759  ;;  %v2451_v31 = vsel %vm1939_vm15, %v6202_v50, %v2841_v21  ;;  %v2905_v32 = vadd.f32 -1.0, %v3758_v22  ;;  %3765 = vpow2.f32 %v2245_v39  ;;  %vm2006_vm2 = vcmp.gt.f32.partialorder %v6249_v56, 0.0 }
 0x17b   :  { %2579 = vst [vmem:[%s6682_s5 + $0x170] sm:$0xff] %v2451_v31  ;;  %v2844_v6 = vadd.f32 -1.0, %v3760_v46  ;;  %3767 = vpow2.f32 %v2123_v5  ;;  %v2251_v60 = vmul.f32 1.442695, %v6303_v4  ;;  %v2121_v28 = vmul.f32 1.442695, %v6306_v13 }
 0x17c   :  { %v2515_v50 = vsel %vm2003_vm0, %v6219_v1, %v2905_v32  ;;  %vm1941_vm3 = vcmp.gt.f32.partialorder %v6279_v27, 0.0  ;;  %v2249_v1 = vmul.f32 1.442695, %v6310_v63  ;;  %v1555_v55 = vmul.f32 %v6134_v62, %v3030_v52  ;;  %v6788_v32 = vld [vmem:[#allocation3_spill] sm:$0xff] }
 0x17d   :  { %v3762_v43 = vpop.eup %3761  ;;  %2643 = vst [vmem:[%s6682_s5 + $0x370] sm:$0xff] %v2515_v50  ;;  %v2454_v30 = vsel %vm1942_vm1, %v6228_v47, %v2844_v6  ;;  %3769 = vpow2.f32 %v2251_v60  ;;  %v3158_v10 = vunpack.c.h.bf16 %v3236_v57  ;;  %v3029_v47 = vunpack.c.l.bf16 %v3204_v61  ;;  %v6789_v60 = vld [vmem:[#allocation4_spill] sm:$0xff] }
 0x17e   :  { %2582 = vst [vmem:[%s6682_s5 + $0x188] sm:$0xff] %v2454_v30  ;;  %v2908_v45 = vadd.f32 -1.0, %v3762_v43  ;;  %3771 = vpow2.f32 %v2121_v28  ;;  %v1690_v41 = vadd.f32 %v6161_v19, %v1555_v55  ;;  %v3157_v16 = vunpack.c.l.bf16 %v3236_v57 }
 0x17f   :  { %3773 = vpow2.f32 %v2249_v1  ;;  %v3034_v34 = vunpack.c.h.bf16 %v6327_v9  ;;  %v1619_v51 = vmul.f32 %v6134_v62, %v3158_v10  ;;  %v1554_v15 = vmul.f32 %v6134_v62, %v3029_v47 }
 0x180   :  { %v2518_v58 = vsel %vm2006_vm2, %v6249_v56, %v2908_v45  ;;  %v3162_v11 = vunpack.c.h.bf16 %v6339_v38  ;;  %vm2005_vm4 = vcmp.gt.f32.partialorder %v6286_v49, 0.0  ;;  %v6357_v61 = vadd.f32 %v5830_v23, %v1690_v41 }
 0x181   :  { %2646 = vst [vmem:[%s6682_s5 + $0x388] sm:$0xff] %v2518_v58  ;;  %v1618_v35 = vmul.f32 %v6134_v62, %v3157_v16  ;;  %v1557_v2 = vmul.f32 %v6134_v62, %v3034_v34  ;;  %vm1944_vm5 = vcmp.gt.f32.partialorder %v6289_v17, 0.0  ;;  %v1754_v56 = vadd.f32 %v6161_v19, %v1619_v51  ;;  %v3206_v16 = vld [vmem:[%s6679_s0 + $0xe0] sm:$0xff]   ;;  %v6790_v58 = vld [vmem:[#allocation5_spill] sm:$0xff] }
 0x182   :  { %v1689_v54 = vadd.f32 %v6161_v19, %v1554_v15  ;;  %v1621_v29 = vmul.f32 %v6134_v62, %v3162_v11  ;;  %vm2008_vm6 = vcmp.gt.f32.partialorder %v6303_v4, 0.0  ;;  %v2127_v25 = vmul.f32 1.442695, %v6357_v61  ;;  %v3238_v15 = vld [vmem:[%s6679_s0 + $0x1e0] sm:$0xff]  }
 0x183   :  { %v3764_v59 = vpop.eup %3763  ;;  %v1753_v23 = vadd.f32 %v6161_v19, %v1618_v35  ;;  %v1692_v21 = vadd.f32 %v6161_v19, %v1557_v2  ;;  %vm1943_vm7 = vcmp.gt.f32.partialorder %v6306_v13, 0.0  ;;  %v6371_v22 = vadd.f32 %v5832_v8, %v1754_v56  ;;  %v6431_v2 = vld [vmem:[%s6679_s0 + $0xe8] sm:$0xff]  }
 0x184   :  { %v3766_v39 = vpop.eup %3765  ;;  %v2843_v52 = vadd.f32 -1.0, %v3764_v59  ;;  %v6374_v5 = vadd.f32 %v1689_v54, %v5848_v7  ;;  %3775 = vpow2.f32 %v2127_v25  ;;  %v1756_v43 = vadd.f32 %v6161_v19, %v1621_v29 }
 0x185   :  { %v3768_v46 = vpop.eup %3767  ;;  %v2907_v31 = vadd.f32 -1.0, %v3766_v39  ;;  %v6377_v6 = vadd.f32 %v1753_v23, %v6788_v32  ;;  %v6380_v57 = vadd.f32 %v6789_v60, %v1692_v21  ;;  %v2255_v8 = vmul.f32 1.442695, %v6371_v22 }
 0x186   :  { %v2453_v50 = vsel %vm1941_vm3, %v6279_v27, %v2843_v52  ;;  %v2846_v28 = vadd.f32 -1.0, %v3768_v46  ;;  %v2125_v1 = vmul.f32 1.442695, %v6374_v5  ;;  %v3033_v55 = vunpack.c.l.bf16 %v6327_v9 }
 0x187   :  { %v3770_v7 = vpop.eup %3769  ;;  %2581 = vst [vmem:[%s6682_s5 + $0x180] sm:$0xff] %v2453_v50  ;;  %v2517_v30 = vsel %vm2005_vm4, %v6286_v49, %v2907_v31  ;;  %v3161_v27 = vunpack.c.l.bf16 %v6339_v38  ;;  %3777 = vpow2.f32 %v2255_v8  ;;  %v2253_v41 = vmul.f32 1.442695, %v6377_v6 }
 0x188   :  { %v3772_v45 = vpop.eup %3771  ;;  %2645 = vst [vmem:[%s6682_s5 + $0x380] sm:$0xff] %v2517_v30  ;;  %v2456_v10 = vsel %vm1944_vm5, %v6289_v17, %v2846_v28  ;;  %v2910_v47 = vadd.f32 -1.0, %v3770_v7  ;;  %vm2007_vm8 = vcmp.gt.f32.partialorder %v6310_v63, 0.0  ;;  %3779 = vpow2.f32 %v2125_v1 }
 0x189   :  { %v3774_v49 = vpop.eup %3773  ;;  %2584 = vst [vmem:[%s6682_s5 + $0x198] sm:$0xff] %v2456_v10  ;;  %v2845_v9 = vadd.f32 -1.0, %v3772_v45  ;;  %v2131_v38 = vmul.f32 1.442695, %v6380_v57  ;;  %3781 = vpow2.f32 %v2253_v41  ;;  %v6415_v51 = vadd.f32 %v6790_v58, %v1756_v43 }
 0x18a   :  { %v2520_v17 = vsel %vm2008_vm6, %v6303_v4, %v2910_v47  ;;  %v2909_v34 = vadd.f32 -1.0, %v3774_v49  ;;  %v1556_v4 = vmul.f32 %v6134_v62, %v3033_v55  ;;  %v1620_v35 = vmul.f32 %v6134_v62, %v3161_v27 }
 0x18b   :  { %2648 = vst [vmem:[%s6682_s5 + $0x398] sm:$0xff] %v2520_v17  ;;  %v2455_v11 = vsel %vm1943_vm7, %v6306_v13, %v2845_v9  ;;  %3783 = vpow2.f32 %v2131_v38  ;;  %vm1946_vm9 = vcmp.gt.f32.partialorder %v6357_v61, 0.0  ;;  %v2259_v13 = vmul.f32 1.442695, %v6415_v51 }
 0x18c   :  { %2583 = vst [vmem:[%s6682_s5 + $0x190] sm:$0xff] %v2455_v11  ;;  %v2519_v56 = vsel %vm2007_vm8, %v6310_v63, %v2909_v34  ;;  %v3038_v54 = vunpack.c.h.bf16 %v3206_v16  ;;  %v1691_v29 = vadd.f32 %v6161_v19, %v1556_v4  ;;  %v1755_v59 = vadd.f32 %v6161_v19, %v1620_v35 }
 0x18d   :  { %2647 = vst [vmem:[%s6682_s5 + $0x390] sm:$0xff] %v2519_v56  ;;  %v3166_v25 = vunpack.c.h.bf16 %v3238_v15  ;;  %v3037_v23 = vunpack.c.l.bf16 %v3206_v16  ;;  %3785 = vpow2.f32 %v2259_v13  ;;  %v3165_v39 = vunpack.c.l.bf16 %v3238_v15  ;;  %v6791_v13 = vld [vmem:[#allocation6_spill] sm:$0xff] }
 0x18e   :  { %v1559_v21 = vmul.f32 %v6134_v62, %v3038_v54  ;;  %v3042_v63 = vunpack.c.h.bf16 %v6431_v2  ;;  %v3776_v52 = vpop.eup %3775  ;;  %v6449_v46 = vadd.f32 %v1691_v29, %v5882_v3  ;;  %v6452_v31 = vadd.f32 %v1755_v59, %v5884_v42 }
 0x18f   :  { %v1623_v32 = vmul.f32 %v6134_v62, %v3166_v25  ;;  %v1558_v60 = vmul.f32 %v6134_v62, %v3037_v23  ;;  %v2848_v50 = vadd.f32 -1.0, %v3776_v52  ;;  %v1622_v8 = vmul.f32 %v6134_v62, %v3165_v39  ;;  %v3240_v23 = vld [vmem:[%s6679_s0 + $0x1f0] sm:$0xff]  }
 0x190   :  { %v1694_v28 = vadd.f32 %v6161_v19, %v1559_v21  ;;  %v1561_v43 = vmul.f32 %v6134_v62, %v3042_v63  ;;  %vm2010_vm10 = vcmp.gt.f32.partialorder %v6371_v22, 0.0  ;;  %vm1945_vm11 = vcmp.gt.f32.partialorder %v6374_v5, 0.0 }
 0x191   :  { %v2129_v3 = vmul.f32 1.442695, %v6449_v46  ;;  %v2257_v42 = vmul.f32 1.442695, %v6452_v31  ;;  %v3778_v7 = vpop.eup %3777  ;;  %v2458_v30 = vsel %vm1946_vm9, %v6357_v61, %v2848_v50  ;;  %v1758_v55 = vadd.f32 %v6161_v19, %v1623_v32 }
 0x192   :  { %v6467_v1 = vadd.f32 %v5907_v48, %v1694_v28  ;;  %v1693_v27 = vadd.f32 %v6161_v19, %v1558_v60  ;;  %v3780_v45 = vpop.eup %3779  ;;  %2586 = vst [vmem:[%s6682_s5 + $0x1a8] sm:$0xff] %v2458_v30  ;;  %v2912_v10 = vadd.f32 -1.0, %v3778_v7  ;;  %vm2009_vm12 = vcmp.gt.f32.partialorder %v6377_v6, 0.0 }
 0x193   :  { %3787 = vpow2.f32 %v2129_v3  ;;  %v1757_v47 = vadd.f32 %v6161_v19, %v1622_v8  ;;  %v3782_v41 = vpop.eup %3781  ;;  %v2847_v61 = vadd.f32 -1.0, %v3780_v45  ;;  %v1696_v49 = vadd.f32 %v6161_v19, %v1561_v43 }
 0x194   :  { %3789 = vpow2.f32 %v2257_v42  ;;  %v2135_v48 = vmul.f32 1.442695, %v6467_v1  ;;  %v2522_v38 = vsel %vm2010_vm10, %v6371_v22, %v2912_v10  ;;  %v2911_v16 = vadd.f32 -1.0, %v3782_v41 }
 0x195   :  { %v3784_v9 = vpop.eup %3783  ;;  %v6482_v17 = vadd.f32 %v5909_v12, %v1758_v55  ;;  %v6485_v34 = vadd.f32 %v1693_v27, %v5922_v44  ;;  %2650 = vst [vmem:[%s6682_s5 + $0x3a8] sm:$0xff] %v2522_v38  ;;  %v2457_v58 = vsel %vm1945_vm11, %v6374_v5, %v2847_v61  ;;  %v6494_v11 = vadd.f32 %v1757_v47, %v5924_v26  ;;  %v3239_v12 = vld [vmem:[%s6679_s0 + $0x1e8] sm:$0xff]   ;;  %v3208_v26 = vld [vmem:[%s6679_s0 + $0xf0] sm:$0xff]  }
 0x196   :  { %v2850_v15 = vadd.f32 -1.0, %v3784_v9  ;;  %3791 = vpow2.f32 %v2135_v48  ;;  %2585 = vst [vmem:[%s6682_s5 + $0x1a0] sm:$0xff] %v2457_v58  ;;  %v2521_v44 = vsel %vm2009_vm12, %v6377_v6, %v2911_v16  ;;  %vm1948_vm13 = vcmp.gt.f32.partialorder %v6380_v57, 0.0  ;;  %v6792_v61 = vld [vmem:[#allocation7_spill] sm:$0xff] }
 0x197   :  { %vm2012_vm14 = vcmp.gt.f32.partialorder %v6415_v51, 0.0  ;;  %v2263_v22 = vmul.f32 1.442695, %v6482_v17  ;;  %v3786_v5 = vpop.eup %3785  ;;  %2649 = vst [vmem:[%s6682_s5 + $0x3a0] sm:$0xff] %v2521_v44  ;;  %vm1947_vm15 = vcmp.gt.f32.partialorder %v6449_v46, 0.0  ;;  %v6522_v54 = vadd.f32 %v6791_v13, %v1696_v49 }
 0x198   :  { %v2460_v4 = vsel %vm1948_vm13, %v6380_v57, %v2850_v15  ;;  %v2133_v6 = vmul.f32 1.442695, %v6485_v34  ;;  %v2261_v35 = vmul.f32 1.442695, %v6494_v11  ;;  %v2914_v56 = vadd.f32 -1.0, %v3786_v5 }
 0x199   :  { %2588 = vst [vmem:[%s6682_s5 + $0x1b8] sm:$0xff] %v2460_v4  ;;  %3793 = vpow2.f32 %v2263_v22  ;;  %v3170_v29 = vunpack.c.h.bf16 %v3239_v12  ;;  %v3041_v59 = vunpack.c.l.bf16 %v6431_v2  ;;  %v3169_v57 = vunpack.c.l.bf16 %v3239_v12 }
 0x19a   :  { %3795 = vpow2.f32 %v2133_v6  ;;  %v3046_v25 = vunpack.c.h.bf16 %v3208_v26  ;;  %v2524_v21 = vsel %vm2012_vm14, %v6415_v51, %v2914_v56  ;;  %vm2011_vm0 = vcmp.gt.f32.partialorder %v6452_v31, 0.0  ;;  %v3209_v6 = vld [vmem:[%s6679_s0 + $0xf8] sm:$0xff]  }
 0x19b   :  { %3797 = vpow2.f32 %v2261_v35  ;;  %v2139_v39 = vmul.f32 1.442695, %v6522_v54  ;;  %2652 = vst [vmem:[%s6682_s5 + $0x3b8] sm:$0xff] %v2524_v21  ;;  %v1625_v2 = vmul.f32 %v6134_v62, %v3170_v29  ;;  %v1560_v63 = vmul.f32 %v6134_v62, %v3041_v59 }
 0x19c   :  { %v1624_v52 = vmul.f32 %v6134_v62, %v3169_v57  ;;  %v1563_v32 = vmul.f32 %v6134_v62, %v3046_v25  ;;  %v3174_v51 = vunpack.c.h.bf16 %v3240_v23  ;;  %v3045_v50 = vunpack.c.l.bf16 %v3208_v26 }
 0x19d   :  { %v3788_v60 = vpop.eup %3787  ;;  %3799 = vpow2.f32 %v2139_v39  ;;  %v3173_v28 = vunpack.c.l.bf16 %v3240_v23  ;;  %v1760_v3 = vadd.f32 %v6161_v19, %v1625_v2  ;;  %v1695_v42 = vadd.f32 %v6161_v19, %v1560_v63 }
 0x19e   :  { %v3790_v8 = vpop.eup %3789  ;;  %v2849_v43 = vadd.f32 -1.0, %v3788_v60  ;;  %v1759_v7 = vadd.f32 %v6161_v19, %v1624_v52  ;;  %v1698_v55 = vadd.f32 %v6161_v19, %v1563_v32  ;;  %v1627_v27 = vmul.f32 %v6134_v62, %v3174_v51 }
 0x19f   :  { %v2913_v30 = vadd.f32 -1.0, %v3790_v8  ;;  %v1562_v45 = vmul.f32 %v6134_v62, %v3045_v50  ;;  %v6550_v41 = vadd.f32 %v5954_v33, %v1760_v3  ;;  %v6553_v48 = vadd.f32 %v1695_v42, %v6792_v61 }
 0x1a0   :  { %v3792_v10 = vpop.eup %3791  ;;  %v2459_v47 = vsel %vm1947_vm15, %v6449_v46, %v2849_v43  ;;  %v6556_v49 = vadd.f32 %v1759_v7, %v5972_v14  ;;  %v6565_v46 = vadd.f32 %v5990_v37, %v1698_v55  ;;  %v1762_v33 = vadd.f32 %v6161_v19, %v1627_v27 }
 0x1a1   :  { %2587 = vst [vmem:[%s6682_s5 + $0x1b0] sm:$0xff] %v2459_v47  ;;  %v2523_v9 = vsel %vm2011_vm0, %v6452_v31, %v2913_v30  ;;  %v2852_v38 = vadd.f32 -1.0, %v3792_v10  ;;  %vm1950_vm1 = vcmp.gt.f32.partialorder %v6467_v1, 0.0  ;;  %v2267_v14 = vmul.f32 1.442695, %v6550_v41 }
 0x1a2   :  { %2651 = vst [vmem:[%s6682_s5 + $0x3b0] sm:$0xff] %v2523_v9  ;;  %v2137_v16 = vmul.f32 1.442695, %v6553_v48  ;;  %vm2014_vm2 = vcmp.gt.f32.partialorder %v6482_v17, 0.0  ;;  %vm1949_vm3 = vcmp.gt.f32.partialorder %v6485_v34, 0.0  ;;  %v6583_v22 = vadd.f32 %v5997_v18, %v1762_v33  ;;  %v3241_v18 = vld [vmem:[%s6679_s0 + $0x1f8] sm:$0xff]  }
 0x1a3   :  { %v3794_v58 = vpop.eup %3793  ;;  %v2462_v15 = vsel %vm1950_vm1, %v6467_v1, %v2852_v38  ;;  %v2265_v37 = vmul.f32 1.442695, %v6556_v49  ;;  %3801 = vpow2.f32 %v2267_v14  ;;  %v2143_v44 = vmul.f32 1.442695, %v6565_v46 }
 0x1a4   :  { %v3796_v31 = vpop.eup %3795  ;;  %2590 = vst [vmem:[%s6682_s5 + $0x1c8] sm:$0xff] %v2462_v15  ;;  %v2916_v12 = vadd.f32 -1.0, %v3794_v58  ;;  %3803 = vpow2.f32 %v2137_v16  ;;  %v1697_v5 = vadd.f32 %v6161_v19, %v1562_v45  ;;  %v1626_v4 = vmul.f32 %v6134_v62, %v3173_v28 }
 0x1a5   :  { %v3798_v26 = vpop.eup %3797  ;;  %v2851_v1 = vadd.f32 -1.0, %v3796_v31  ;;  %vm2013_vm4 = vcmp.gt.f32.partialorder %v6494_v11, 0.0  ;;  %3805 = vpow2.f32 %v2265_v37  ;;  %v3050_v21 = vunpack.c.h.bf16 %v3209_v6 }
 0x1a6   :  { %v2526_v35 = vsel %vm2014_vm2, %v6482_v17, %v2916_v12  ;;  %v2915_v56 = vadd.f32 -1.0, %v3798_v26  ;;  %3807 = vpow2.f32 %v2143_v44  ;;  %v2271_v17 = vmul.f32 1.442695, %v6583_v22 }
 0x1a7   :  { %v3800_v13 = vpop.eup %3799  ;;  %2654 = vst [vmem:[%s6682_s5 + $0x3c8] sm:$0xff] %v2526_v35  ;;  %v2461_v29 = vsel %vm1949_vm3, %v6485_v34, %v2851_v1  ;;  %v6603_v59 = vadd.f32 %v1697_v5, %v5999_v53  ;;  %v1761_v23 = vadd.f32 %v6161_v19, %v1626_v4  ;;  %vm1952_vm5 = vcmp.gt.f32.partialorder %v6522_v54, 0.0 }
 0x1a8   :  { %2589 = vst [vmem:[%s6682_s5 + $0x1c0] sm:$0xff] %v2461_v29  ;;  %v2525_v57 = vsel %vm2013_vm4, %v6494_v11, %v2915_v56  ;;  %v2854_v25 = vadd.f32 -1.0, %v3800_v13  ;;  %3809 = vpow2.f32 %v2271_v17  ;;  %v3178_v34 = vunpack.c.h.bf16 %v3241_v18 }
 0x1a9   :  { %2653 = vst [vmem:[%s6682_s5 + $0x3c0] sm:$0xff] %v2525_v57  ;;  %v2141_v53 = vmul.f32 1.442695, %v6603_v59  ;;  %v1889_v2 = vadd.f32 %v1761_v23, %v6012_v24  ;;  %v1565_v11 = vmul.f32 %v6134_v62, %v3050_v21  ;;  %v3049_v63 = vunpack.c.l.bf16 %v3209_v6 }
 0x1aa   :  { %v2464_v39 = vsel %vm1952_vm5, %v6522_v54, %v2854_v25  ;;  %v1629_v52 = vmul.f32 %v6134_v62, %v3178_v34  ;;  %v3177_v32 = vunpack.c.l.bf16 %v3241_v18  ;;  %vm2016_vm6 = vcmp.gt.f32.partialorder %v6550_v41, 0.0 }
 0x1ab   :  { %2592 = vst [vmem:[%s6682_s5 + $0x1d8] sm:$0xff] %v2464_v39  ;;  %3811 = vpow2.f32 %v2141_v53  ;;  %v2269_v60 = vmul.f32 1.442695, %v1889_v2  ;;  %v1700_v51 = vadd.f32 %v6161_v19, %v1565_v11  ;;  %v1564_v50 = vmul.f32 %v6134_v62, %v3049_v63 }
 0x1ac   :  { %v1764_v54 = vadd.f32 %v6161_v19, %v1629_v52  ;;  %v1628_v24 = vmul.f32 %v6134_v62, %v3177_v32  ;;  %vm1951_vm7 = vcmp.gt.f32.partialorder %v6553_v48, 0.0  ;;  %vm2015_vm8 = vcmp.gt.f32.partialorder %v6556_v49, 0.0 }
 0x1ad   :  { %v3802_v28 = vpop.eup %3801  ;;  %3813 = vpow2.f32 %v2269_v60  ;;  %v1828_v8 = vadd.f32 %v6033_v36, %v1700_v51  ;;  %v1699_v43 = vadd.f32 %v6161_v19, %v1564_v50  ;;  %vm1954_vm9 = vcmp.gt.f32.partialorder %v6565_v46, 0.0 }
 0x1ae   :  { %v3804_v3 = vpop.eup %3803  ;;  %v2918_v42 = vadd.f32 -1.0, %v3802_v28  ;;  %v1892_v7 = vadd.f32 %v6035_v40, %v1764_v54  ;;  %v1763_v30 = vadd.f32 %v6161_v19, %v1628_v24  ;;  %vm2018_vm10 = vcmp.gt.f32.partialorder %v6583_v22, 0.0 }
 0x1af   :  { %v3806_v55 = vpop.eup %3805  ;;  %v2853_v27 = vadd.f32 -1.0, %v3804_v3  ;;  %v2147_v45 = vmul.f32 1.442695, %v1828_v8  ;;  %v1827_v62 = vadd.f32 %v1699_v43, %v6040_v0  ;;  %vm1953_vm11 = vcmp.gt.f32.partialorder %v6603_v59, 0.0 }
 0x1b0   :  { %v3808_v10 = vpop.eup %3807  ;;  %v2528_v36 = vsel %vm2016_vm6, %v6550_v41, %v2918_v42  ;;  %v2917_v47 = vadd.f32 -1.0, %v3806_v55  ;;  %v2275_v61 = vmul.f32 1.442695, %v1892_v7  ;;  %v1891_v38 = vadd.f32 %v1763_v30, %v6046_v20 }
 0x1b1   :  { %2656 = vst [vmem:[%s6682_s5 + $0x3d8] sm:$0xff] %v2528_v36  ;;  %v2463_v40 = vsel %vm1951_vm7, %v6553_v48, %v2853_v27  ;;  %v2856_v19 = vadd.f32 -1.0, %v3808_v10  ;;  %3815 = vpow2.f32 %v2147_v45  ;;  %v2145_v41 = vmul.f32 1.442695, %v1827_v62 }
 0x1b2   :  { %v3810_v9 = vpop.eup %3809  ;;  %2591 = vst [vmem:[%s6682_s5 + $0x1d0] sm:$0xff] %v2463_v40  ;;  %v2527_v0 = vsel %vm2015_vm8, %v6556_v49, %v2917_v47  ;;  %3817 = vpow2.f32 %v2275_v61  ;;  %v2273_v49 = vmul.f32 1.442695, %v1891_v38  ;;  %vm2017_vm12 = vcmp.gt.f32.partialorder %v1889_v2, 0.0 }
 0x1b3   :  { %2655 = vst [vmem:[%s6682_s5 + $0x3d0] sm:$0xff] %v2527_v0  ;;  %v2466_v48 = vsel %vm1954_vm9, %v6565_v46, %v2856_v19  ;;  %v2920_v33 = vadd.f32 -1.0, %v3810_v9  ;;  %3819 = vpow2.f32 %v2145_v41  ;;  %vm1956_vm13 = vcmp.gt.f32.partialorder %v1828_v8, 0.0 }
 0x1b4   :  { %2594 = vst [vmem:[%s6682_s5 + $0x1e8] sm:$0xff] %v2466_v48  ;;  %3821 = vpow2.f32 %v2273_v49  ;;  %vm2020_vm14 = vcmp.gt.f32.partialorder %v1892_v7, 0.0  ;;  %vm1955_vm15 = vcmp.gt.f32.partialorder %v1827_v62, 0.0  ;;  %vm2019_vm0 = vcmp.gt.f32.partialorder %v1891_v38, 0.0 }
 0x1b5   :  { %v3812_v14 = vpop.eup %3811  ;;  %v2530_v16 = vsel %vm2018_vm10, %v6583_v22, %v2920_v33 }
 0x1b6   :  { %v2855_v58 = vadd.f32 -1.0, %v3812_v14  ;;  %2658 = vst [vmem:[%s6682_s5 + $0x3e8] sm:$0xff] %v2530_v16 }
 0x1b7   :  { %v3814_v20 = vpop.eup %3813 }
 0x1b8   :  { %v2465_v46 = vsel %vm1953_vm11, %v6603_v59, %v2855_v58  ;;  %v2919_v15 = vadd.f32 -1.0, %v3814_v20 }
 0x1b9   :  { %2593 = vst [vmem:[%s6682_s5 + $0x1e0] sm:$0xff] %v2465_v46 }
 0x1ba   :  { %v2529_v37 = vsel %vm2017_vm12, %v1889_v2, %v2919_v15 }
 0x1bb   :  { %v3816_v31 = vpop.eup %3815  ;;  %2657 = vst [vmem:[%s6682_s5 + $0x3e0] sm:$0xff] %v2529_v37 }
 0x1bc   :  { %v3818_v12 = vpop.eup %3817  ;;  %v2858_v44 = vadd.f32 -1.0, %v3816_v31 }
 0x1bd   :  { %v2922_v22 = vadd.f32 -1.0, %v3818_v12  ;;  %v3820_v26 = vpop.eup %3819 }
 0x1be   :  { %v2468_v1 = vsel %vm1956_vm13, %v1828_v8, %v2858_v44  ;;  %v2857_v4 = vadd.f32 -1.0, %v3820_v26  ;;  %v3822_v6 = vpop.eup %3821 }
 0x1bf   :  { %2596 = vst [vmem:[%s6682_s5 + $0x1f8] sm:$0xff] %v2468_v1  ;;  %v2532_v5 = vsel %vm2020_vm14, %v1892_v7, %v2922_v22  ;;  %v2921_v56 = vadd.f32 -1.0, %v3822_v6 }
 0x1c0   :  { %2660 = vst [vmem:[%s6682_s5 + $0x3f8] sm:$0xff] %v2532_v5  ;;  %v2467_v35 = vsel %vm1955_vm15, %v1827_v62, %v2857_v4 }
 0x1c1   :  { %2595 = vst [vmem:[%s6682_s5 + $0x1f0] sm:$0xff] %v2467_v35  ;;  %v2531_v18 = vsel %vm2019_vm0, %v1891_v38, %v2921_v56 }
 0x1c2   :  { %2659 = vst [vmem:[%s6682_s5 + $0x3f0] sm:$0xff] %v2531_v18 }

// kernel: input_transition.2
= control target key start
LH: loop header
LB: loop body
LE: loop exit
PB: predicated region body
PF: predicated region fallthrough
CT: control target
= control target key end

     0   :  { %v8875_v0 = vmov 0   ;;  %s10903_s1 = inlined_call_operand.vmem [shape: bf16[1024,128], index: 1, kind: input, shape index: {}]   ;;  %s10904_s0 = inlined_call_operand.vmem [shape: bf16[1024,1024], index: 0, kind: input, shape index: {}]   ;;  %s10905_s2 = inlined_call_operand.vmem [shape: bf16[1024,128], index: 2, kind: output, shape index: {0}]   ;;  %s10906_s3 = inlined_call_operand.vmem [shape: f32[1,1,128], index: 3, kind: output, shape index: {1}]   ;;  %s10907_s4 = inlined_call_operand.vmem [shape: f32[1,1,128], index: 4, kind: output, shape index: {2}]  }
   0x1   :  { %3599 = vmatprep.subr.bf16.mxu1 %v8875_v0  ;;  %4689 = vmatprep.subr.bf16.mxu0 %v8875_v0  ;;  %v8811_v1 = vld [vmem:[%s10903_s1] sm:$0xff]   ;;  %v8813_v3 = vld [vmem:[%s10903_s1 + $0x8] sm:$0xff]   ;;  %v8815_v5 = vld [vmem:[%s10903_s1 + $0x10] sm:$0xff]  }
   0x2   :  { %v8812_v2 = vld [vmem:[%s10903_s1 + $0x100] sm:$0xff]   ;;  %3600 = vmatpush1.bf16.msra.mxu1 %v8811_v1  ;;  %v8814_v4 = vld [vmem:[%s10903_s1 + $0x108] sm:$0xff]   ;;  %v8816_v6 = vld [vmem:[%s10903_s1 + $0x110] sm:$0xff]  }
   0x3   :  { %4690 = vmatpush1.bf16.msra.mxu0 %v8812_v2  ;;  %3601 = vmatprep.subr.bf16.mxu1 %v8875_v0  ;;  %v8817_v7 = vld [vmem:[%s10903_s1 + $0x18] sm:$0xff]   ;;  %v8819_v9 = vld [vmem:[%s10903_s1 + $0x20] sm:$0xff]   ;;  %v8821_v11 = vld [vmem:[%s10903_s1 + $0x28] sm:$0xff]  }
   0x4   :  { %4691 = vmatprep.subr.bf16.mxu0 %v8875_v0  ;;  %v8818_v8 = vld [vmem:[%s10903_s1 + $0x118] sm:$0xff]   ;;  %v8820_v10 = vld [vmem:[%s10903_s1 + $0x120] sm:$0xff]   ;;  %v8822_v12 = vld [vmem:[%s10903_s1 + $0x128] sm:$0xff]  }
   0x5   :  { %v8823_v13 = vld [vmem:[%s10903_s1 + $0x30] sm:$0xff]   ;;  %v8825_v15 = vld [vmem:[%s10903_s1 + $0x38] sm:$0xff]   ;;  %v8827_v17 = vld [vmem:[%s10903_s1 + $0x40] sm:$0xff]  }
   0x6   :  { %3602 = vmatpush1.bf16.msra.mxu1 %v8813_v3  ;;  %v8824_v14 = vld [vmem:[%s10903_s1 + $0x130] sm:$0xff]   ;;  %v8826_v16 = vld [vmem:[%s10903_s1 + $0x138] sm:$0xff]   ;;  %v8828_v18 = vld [vmem:[%s10903_s1 + $0x140] sm:$0xff]  }
   0x7   :  { %4692 = vmatpush1.bf16.msra.mxu0 %v8814_v4  ;;  %3603 = vmatprep.subr.bf16.mxu1 %v8875_v0  ;;  %v8976_v19 = vld [vmem:[%s10904_s0] sm:$0xff]  ;;  %v8986_v21 = vld [vmem:[%s10904_s0 + $0x10] sm:$0xff]  ;;  %v8829_v24 = vld [vmem:[%s10903_s1 + $0x48] sm:$0xff]  }
   0x8   :  { %4693 = vmatprep.subr.bf16.mxu0 %v8875_v0  ;;  %v8981_v20 = vld [vmem:[%s10904_s0 + $0x20] sm:$0xff]  ;;  %v21_v23 = vld [vmem:[%s10904_s0 + $0x30] sm:$0xff]  ;;  %v8830_v26 = vld [vmem:[%s10903_s1 + $0x148] sm:$0xff]  }
   0x9   :  { %v6956_v22 = vcombine.high %v8976_v19, %v8981_v20  ;;  %v6960_v25 = vcombine.high %v8986_v21, %v21_v23  ;;  %v8831_v27 = vld [vmem:[%s10903_s1 + $0x50] sm:$0xff]   ;;  %v8833_v29 = vld [vmem:[%s10903_s1 + $0x58] sm:$0xff]   ;;  %v8835_v31 = vld [vmem:[%s10903_s1 + $0x60] sm:$0xff]   ;;  %v6955_v41 = vcombine.low %v8976_v19, %v8981_v20  ;;  %v6959_v44 = vcombine.low %v8986_v21, %v21_v23 }
   0xa   :  { %3604 = vmatpush1.bf16.msra.mxu1 %v8815_v5  ;;  %v8832_v28 = vld [vmem:[%s10903_s1 + $0x150] sm:$0xff]   ;;  %v8834_v30 = vld [vmem:[%s10903_s1 + $0x158] sm:$0xff]   ;;  %v8836_v32 = vld [vmem:[%s10903_s1 + $0x160] sm:$0xff]  }
   0xb   :  { %4694 = vmatpush1.bf16.msra.mxu0 %v8816_v6  ;;  %3605 = vmatprep.subr.bf16.mxu1 %v8875_v0  ;;  %v8837_v33 = vld [vmem:[%s10903_s1 + $0x68] sm:$0xff]   ;;  %v8839_v35 = vld [vmem:[%s10903_s1 + $0x70] sm:$0xff]   ;;  %v8841_v37 = vld [vmem:[%s10903_s1 + $0x78] sm:$0xff]  }
   0xc   :  { %4695 = vmatprep.subr.bf16.mxu0 %v8875_v0  ;;  %3631 = vmatprep.mubr.bf16.mxu1 %v6956_v22  ;;  %v8838_v34 = vld [vmem:[%s10903_s1 + $0x168] sm:$0xff]   ;;  %v8840_v36 = vld [vmem:[%s10903_s1 + $0x170] sm:$0xff]   ;;  %v8842_v38 = vld [vmem:[%s10903_s1 + $0x178] sm:$0xff]  }
   0xd   :  { %4721 = vmatprep.mubr.bf16.mxu0 %v6960_v25  ;;  %v23_v39 = vld [vmem:[%s10904_s0 + $0x40] sm:$0xff]  ;;  %v25_v42 = vld [vmem:[%s10904_s0 + $0x50] sm:$0xff]  ;;  %v8845_v51 = vld [vmem:[%s10903_s1 + $0x88] sm:$0xff]  }
   0xe   :  { %3606 = vmatpush1.bf16.msra.mxu1 %v8817_v7  ;;  %v27_v40 = vld [vmem:[%s10904_s0 + $0x60] sm:$0xff]  ;;  %v29_v43 = vld [vmem:[%s10904_s0 + $0x70] sm:$0xff]  ;;  %v8846_v54 = vld [vmem:[%s10903_s1 + $0x188] sm:$0xff]  }
   0xf   :  { %4696 = vmatpush1.bf16.msra.mxu0 %v8818_v8  ;;  %3607 = vmatprep.subr.bf16.mxu1 %v8875_v0  ;;  %v8843_v45 = vld [vmem:[%s10903_s1 + $0x80] sm:$0xff]   ;;  %v6964_v47 = vcombine.high %v23_v39, %v27_v40  ;;  %v6968_v48 = vcombine.high %v25_v42, %v29_v43  ;;  %v33_v52 = vld [vmem:[%s10904_s0 + $0x90] sm:$0xff]  ;;  %v6963_v55 = vcombine.low %v23_v39, %v27_v40  ;;  %v8849_v2 = vld [vmem:[%s10903_s1 + $0x98] sm:$0xff]  }
  0x10   :  { %4697 = vmatprep.subr.bf16.mxu0 %v8875_v0  ;;  %v8844_v46 = vld [vmem:[%s10903_s1 + $0x180] sm:$0xff]   ;;  %v37_v53 = vld [vmem:[%s10904_s0 + $0xb0] sm:$0xff]  ;;  %v6967_v57 = vcombine.low %v25_v42, %v29_v43  ;;  %v8850_v3 = vld [vmem:[%s10903_s1 + $0x198] sm:$0xff]  }
  0x11   :  { %v31_v49 = vld [vmem:[%s10904_s0 + $0x80] sm:$0xff]  ;;  %v8847_v56 = vld [vmem:[%s10903_s1 + $0x90] sm:$0xff]   ;;  %v6976_v60 = vcombine.high %v33_v52, %v37_v53  ;;  %v6975_v6 = vcombine.low %v33_v52, %v37_v53 }
  0x12   :  { %3608 = vmatpush1.bf16.msra.mxu1 %v8819_v9  ;;  %v35_v50 = vld [vmem:[%s10904_s0 + $0xa0] sm:$0xff]  ;;  %v8848_v59 = vld [vmem:[%s10903_s1 + $0x190] sm:$0xff]  }
  0x13   :  { %4698 = vmatpush1.bf16.msra.mxu0 %v8820_v10  ;;  %3609 = vmatprep.subr.bf16.mxu1 %v8875_v0  ;;  %v6972_v58 = vcombine.high %v31_v49, %v35_v50  ;;  %v39_v61 = vld [vmem:[%s10904_s0 + $0xc0] sm:$0xff]  ;;  %v41_v63 = vld [vmem:[%s10904_s0 + $0xd0] sm:$0xff]  ;;  %v6971_v4 = vcombine.low %v31_v49, %v35_v50 }
  0x14   :  { %4699 = vmatprep.subr.bf16.mxu0 %v8875_v0  ;;  %v43_v62 = vld [vmem:[%s10904_s0 + $0xe0] sm:$0xff]  ;;  %v45_v1 = vld [vmem:[%s10904_s0 + $0xf0] sm:$0xff] }
  0x15   :  { %v8851_v5 = vld [vmem:[%s10903_s1 + $0xa0] sm:$0xff]   ;;  %v6980_v7 = vcombine.high %v39_v61, %v43_v62  ;;  %v6984_v9 = vcombine.high %v41_v63, %v45_v1  ;;  %v57_v20 = vld [vmem:[%s10904_s0 + $0x150] sm:$0xff] }
  0x16   :  { %3610 = vmatpush1.bf16.msra.mxu1 %v8821_v11  ;;  %v8852_v8 = vld [vmem:[%s10903_s1 + $0x1a0] sm:$0xff]   ;;  %v61_v21 = vld [vmem:[%s10904_s0 + $0x170] sm:$0xff] }
  0x17   :  { %4700 = vmatpush1.bf16.msra.mxu0 %v8822_v12  ;;  %3611 = vmatprep.subr.bf16.mxu1 %v8875_v0  ;;  %v47_v10 = vld [vmem:[%s10904_s0 + $0x100] sm:$0xff]  ;;  %v49_v12 = vld [vmem:[%s10904_s0 + $0x110] sm:$0xff]  ;;  %v7000_v25 = vcombine.high %v57_v20, %v61_v21 }
  0x18   :  { %4701 = vmatprep.subr.bf16.mxu0 %v8875_v0  ;;  %v51_v11 = vld [vmem:[%s10904_s0 + $0x120] sm:$0xff]  ;;  %v77_v39 = vld [vmem:[%s10904_s0 + $0x1f0] sm:$0xff] }
  0x19   :  { %v59_v19 = vld [vmem:[%s10904_s0 + $0x160] sm:$0xff]  ;;  %v6987_v22 = vcombine.low %v47_v10, %v51_v11 }
  0x1a   :  { %3612 = vmatpush1.bf16.msra.mxu1 %v8823_v13  ;;  %v53_v13 = vld [vmem:[%s10904_s0 + $0x130] sm:$0xff]  ;;  %v87_v52 = vld [vmem:[%s10904_s0 + $0x240] sm:$0xff] }
  0x1b   :  { %4702 = vmatpush1.bf16.msra.mxu0 %v8824_v14  ;;  %3613 = vmatprep.subr.bf16.mxu1 %v8875_v0  ;;  %v6979_v14 = vcombine.low %v39_v61, %v43_v62  ;;  %v6991_v23 = vcombine.low %v49_v12, %v53_v13  ;;  %v91_v53 = vld [vmem:[%s10904_s0 + $0x260] sm:$0xff]  ;;  %v8856_v61 = vld [vmem:[%s10903_s1 + $0x1b0] sm:$0xff]  }
  0x1c   :  { %4703 = vmatprep.subr.bf16.mxu0 %v8875_v0  ;;  %v95_v62 = vld [vmem:[%s10904_s0 + $0x280] sm:$0xff] }
  0x1e   :  { %3614 = vmatpush1.bf16.msra.mxu1 %v8825_v15  ;;  %v6983_v15 = vcombine.low %v41_v63, %v45_v1  ;;  %v99_v63 = vld [vmem:[%s10904_s0 + $0x2a0] sm:$0xff]  ;;  %v97_v1 = vld [vmem:[%s10904_s0 + $0x290] sm:$0xff] }
  0x1f   :  { %4704 = vmatpush1.bf16.msra.mxu0 %v8826_v16  ;;  %3615 = vmatprep.subr.bf16.mxu1 %v8875_v0  ;;  %v6988_v16 = vcombine.high %v47_v10, %v51_v11  ;;  %v109_v10 = vld [vmem:[%s10904_s0 + $0x2f0] sm:$0xff]  ;;  %v7035_v11 = vcombine.low %v95_v62, %v99_v63 }
  0x20   :  { %4705 = vmatprep.subr.bf16.mxu0 %v8875_v0 }
  0x22   :  { %3616 = vmatpush1.bf16.msra.mxu1 %v8827_v17  ;;  %v6992_v17 = vcombine.high %v49_v12, %v53_v13 }
  0x23   :  { %4706 = vmatpush1.bf16.msra.mxu0 %v8828_v18  ;;  %3617 = vmatprep.subr.bf16.mxu1 %v8875_v0  ;;  %v55_v18 = vld [vmem:[%s10904_s0 + $0x140] sm:$0xff] }
  0x24   :  { %4707 = vmatprep.subr.bf16.mxu0 %v8875_v0 }
  0x26   :  { %3618 = vmatpush1.bf16.msra.mxu1 %v8829_v24  ;;  %v6996_v24 = vcombine.high %v55_v18, %v59_v19 }
  0x27   :  { %4708 = vmatpush1.bf16.msra.mxu0 %v8830_v26  ;;  %3619 = vmatprep.subr.bf16.mxu1 %v8875_v0  ;;  %v8853_v26 = vld [vmem:[%s10903_s1 + $0xa8] sm:$0xff]  }
  0x28   :  { %4709 = vmatprep.subr.bf16.mxu0 %v8875_v0 }
  0x2a   :  { %3620 = vmatpush1.bf16.msra.mxu1 %v8831_v27  ;;  %v8854_v27 = vld [vmem:[%s10903_s1 + $0x1a8] sm:$0xff]  }
  0x2b   :  { %4710 = vmatpush1.bf16.msra.mxu0 %v8832_v28  ;;  %3621 = vmatprep.subr.bf16.mxu1 %v8875_v0  ;;  %v63_v28 = vld [vmem:[%s10904_s0 + $0x180] sm:$0xff] }
  0x2c   :  { %4711 = vmatprep.subr.bf16.mxu0 %v8875_v0 }
  0x2e   :  { %3622 = vmatpush1.bf16.msra.mxu1 %v8833_v29  ;;  %v67_v29 = vld [vmem:[%s10904_s0 + $0x1a0] sm:$0xff] }
  0x2f   :  { %4712 = vmatpush1.bf16.msra.mxu0 %v8834_v30  ;;  %3623 = vmatprep.subr.bf16.mxu1 %v8875_v0  ;;  %v65_v30 = vld [vmem:[%s10904_s0 + $0x190] sm:$0xff]  ;;  %v7003_v40 = vcombine.low %v63_v28, %v67_v29 }
  0x30   :  { %4713 = vmatprep.subr.bf16.mxu0 %v8875_v0 }
  0x32   :  { %3624 = vmatpush1.bf16.msra.mxu1 %v8835_v31  ;;  %v69_v31 = vld [vmem:[%s10904_s0 + $0x1b0] sm:$0xff] }
  0x33   :  { %4714 = vmatpush1.bf16.msra.mxu0 %v8836_v32  ;;  %3625 = vmatprep.subr.bf16.mxu1 %v8875_v0  ;;  %v6995_v32 = vcombine.low %v55_v18, %v59_v19  ;;  %v117_v18 = vld [vmem:[%s10904_s0 + $0x330] sm:$0xff] }
  0x34   :  { %4715 = vmatprep.subr.bf16.mxu0 %v8875_v0 }
  0x36   :  { %3626 = vmatpush1.bf16.msra.mxu1 %v8837_v33  ;;  %v6999_v33 = vcombine.low %v57_v20, %v61_v21 }
  0x37   :  { %4716 = vmatpush1.bf16.msra.mxu0 %v8838_v34  ;;  %3627 = vmatprep.subr.bf16.mxu1 %v8875_v0  ;;  %v7004_v34 = vcombine.high %v63_v28, %v67_v29 }
  0x38   :  { %4717 = vmatprep.subr.bf16.mxu0 %v8875_v0 }
  0x3a   :  { %3628 = vmatpush1.bf16.msra.mxu1 %v8839_v35  ;;  %v7008_v35 = vcombine.high %v65_v30, %v69_v31 }
  0x3b   :  { %4718 = vmatpush1.bf16.msra.mxu0 %v8840_v36  ;;  %3629 = vmatprep.subr.bf16.mxu1 %v8875_v0  ;;  %v71_v36 = vld [vmem:[%s10904_s0 + $0x1c0] sm:$0xff] }
  0x3c   :  { %4719 = vmatprep.subr.bf16.mxu0 %v8875_v0 }
  0x3e   :  { %3630 = vmatpush1.bf16.msra.mxu1 %v8841_v37  ;;  %v75_v37 = vld [vmem:[%s10904_s0 + $0x1e0] sm:$0xff] }
  0x3f   :  { %4720 = vmatpush1.bf16.msra.mxu0 %v8842_v38  ;;  %4144 = vmatprep.subr.bf16.mxu1 %v8875_v0  ;;  %v73_v38 = vld [vmem:[%s10904_s0 + $0x1d0] sm:$0xff]  ;;  %v7012_v42 = vcombine.high %v71_v36, %v75_v37 }
  0x40   :  { %5234 = vmatprep.subr.bf16.mxu0 %v8875_v0  ;;  %v7016_v43 = vcombine.high %v73_v38, %v77_v39  ;;  %v7015_v49 = vcombine.low %v73_v38, %v77_v39 }
  0x41   :  { %3632 = vmatmul.mubr.bf16.vlgmr.msra.gmra.mrb[0].mxu1 %v6955_v41  ;;  %v7007_v41 = vcombine.low %v65_v30, %v69_v31  ;;  %v8857_v31 = vld [vmem:[%s10903_s1 + $0xb8] sm:$0xff]  }
  0x42   :  { %4722 = vmatmul.mubr.bf16.vlgmr.msra.gmra.mrb[0].mxu0 %v6959_v44  ;;  %4145 = vmatpush1.bf16.msra.mxu1 %v8843_v45  ;;  %v79_v44 = vld [vmem:[%s10904_s0 + $0x200] sm:$0xff] }
  0x43   :  { %5235 = vmatpush1.bf16.msra.mxu0 %v8844_v46  ;;  %3639 = vmatprep.mubr.bf16.mxu1 %v6964_v47  ;;  %v83_v45 = vld [vmem:[%s10904_s0 + $0x220] sm:$0xff]  ;;  %v81_v46 = vld [vmem:[%s10904_s0 + $0x210] sm:$0xff] }
  0x44   :  { %4729 = vmatprep.mubr.bf16.mxu0 %v6968_v48  ;;  %4146 = vmatprep.subr.bf16.mxu1 %v8875_v0  ;;  %v85_v47 = vld [vmem:[%s10904_s0 + $0x230] sm:$0xff]  ;;  %v7011_v48 = vcombine.low %v71_v36, %v75_v37  ;;  %v7020_v50 = vcombine.high %v79_v44, %v83_v45 }
  0x45   :  { %5236 = vmatprep.subr.bf16.mxu0 %v8875_v0  ;;  %v133_v36 = vld [vmem:[%s10904_s0 + $0x3b0] sm:$0xff] }
  0x46   :  { %4147 = vmatpush1.bf16.msra.mxu1 %v8845_v51  ;;  %v7024_v51 = vcombine.high %v81_v46, %v85_v47 }
  0x47   :  { %5237 = vmatpush1.bf16.msra.mxu0 %v8846_v54  ;;  %4148 = vmatprep.subr.bf16.mxu1 %v8875_v0  ;;  %v89_v54 = vld [vmem:[%s10904_s0 + $0x250] sm:$0xff] }
  0x48   :  { %5238 = vmatprep.subr.bf16.mxu0 %v8875_v0 }
  0x49   :  { %3640 = vmatmul.mubr.bf16.gmra.mrb[4].mxu1 %v6963_v55  ;;  %v93_v55 = vld [vmem:[%s10904_s0 + $0x270] sm:$0xff] }
  0x4a   :  { %4730 = vmatmul.mubr.bf16.gmra.mrb[4].mxu0 %v6967_v57  ;;  %3647 = vmatprep.mubr.bf16.mxu1 %v6972_v58  ;;  %v7023_v57 = vcombine.low %v81_v46, %v85_v47  ;;  %v7028_v58 = vcombine.high %v87_v52, %v91_v53 }
  0x4b   :  { %4737 = vmatprep.mubr.bf16.mxu0 %v6976_v60  ;;  %4149 = vmatpush1.bf16.msra.mxu1 %v8847_v56  ;;  %v7019_v56 = vcombine.low %v79_v44, %v83_v45  ;;  %v8855_v60 = vld [vmem:[%s10903_s1 + $0xb0] sm:$0xff]  }
  0x4c   :  { %5239 = vmatpush1.bf16.msra.mxu0 %v8848_v59  ;;  %4150 = vmatprep.subr.bf16.mxu1 %v8875_v0  ;;  %v7032_v59 = vcombine.high %v89_v54, %v93_v55  ;;  %v141_v44 = vld [vmem:[%s10904_s0 + $0x3f0] sm:$0xff] }
  0x4d   :  { %5240 = vmatprep.subr.bf16.mxu0 %v8875_v0 }
  0x4f   :  { %4151 = vmatpush1.bf16.msra.mxu1 %v8849_v2  ;;  %v101_v2 = vld [vmem:[%s10904_s0 + $0x2b0] sm:$0xff] }
  0x50   :  { %5241 = vmatpush1.bf16.msra.mxu0 %v8850_v3  ;;  %4152 = vmatprep.subr.bf16.mxu1 %v8875_v0  ;;  %v7027_v3 = vcombine.low %v87_v52, %v91_v53  ;;  %v7039_v12 = vcombine.low %v97_v1, %v101_v2  ;;  %v149_v52 = vld [vmem:[%s10904_s0 + $0x430] sm:$0xff] }
  0x51   :  { %3648 = vmatmul.mubr.bf16.gmra.mrb[8].mxu1 %v6971_v4  ;;  %5242 = vmatprep.subr.bf16.mxu0 %v8875_v0  ;;  %v7031_v4 = vcombine.low %v89_v54, %v93_v55 }
  0x52   :  { %4738 = vmatmul.mubr.bf16.gmra.mrb[8].mxu0 %v6975_v6  ;;  %3655 = vmatprep.mubr.bf16.mxu1 %v6980_v7  ;;  %v7040_v6 = vcombine.high %v97_v1, %v101_v2  ;;  %v103_v7 = vld [vmem:[%s10904_s0 + $0x2c0] sm:$0xff] }
  0x53   :  { %4745 = vmatprep.mubr.bf16.mxu0 %v6984_v9  ;;  %4153 = vmatpush1.bf16.msra.mxu1 %v8851_v5  ;;  %v7036_v5 = vcombine.high %v95_v62, %v99_v63  ;;  %v105_v9 = vld [vmem:[%s10904_s0 + $0x2d0] sm:$0xff]  ;;  %v8859_v2 = vld [vmem:[%s10903_s1 + $0xc0] sm:$0xff]  }
  0x54   :  { %5243 = vmatpush1.bf16.msra.mxu0 %v8852_v8  ;;  %4154 = vmatprep.subr.bf16.mxu1 %v8875_v0  ;;  %v107_v8 = vld [vmem:[%s10904_s0 + $0x2e0] sm:$0xff]  ;;  %v7047_v20 = vcombine.low %v105_v9, %v109_v10 }
  0x55   :  { %5244 = vmatprep.subr.bf16.mxu0 %v8875_v0  ;;  %v7044_v13 = vcombine.high %v103_v7, %v107_v8  ;;  %v7043_v19 = vcombine.low %v103_v7, %v107_v8  ;;  %v165_v7 = vld [vmem:[%s10904_s0 + $0x4b0] sm:$0xff] }
  0x57   :  { %4155 = vmatpush1.bf16.msra.mxu1 %v8853_v26  ;;  %v125_v26 = vld [vmem:[%s10904_s0 + $0x370] sm:$0xff] }
  0x58   :  { %5245 = vmatpush1.bf16.msra.mxu0 %v8854_v27  ;;  %4156 = vmatprep.subr.bf16.mxu1 %v8875_v0 }
  0x59   :  { %3656 = vmatmul.mubr.bf16.gmra.mrb[12].mxu1 %v6979_v14  ;;  %5246 = vmatprep.subr.bf16.mxu0 %v8875_v0  ;;  %v7048_v14 = vcombine.high %v105_v9, %v109_v10 }
  0x5a   :  { %4746 = vmatmul.mubr.bf16.gmra.mrb[12].mxu0 %v6983_v15  ;;  %3663 = vmatprep.mubr.bf16.mxu1 %v6988_v16  ;;  %v111_v15 = vld [vmem:[%s10904_s0 + $0x300] sm:$0xff] }
  0x5b   :  { %4753 = vmatprep.mubr.bf16.mxu0 %v6992_v17  ;;  %4157 = vmatpush1.bf16.msra.mxu1 %v8855_v60  ;;  %v115_v16 = vld [vmem:[%s10904_s0 + $0x320] sm:$0xff]  ;;  %v113_v17 = vld [vmem:[%s10904_s0 + $0x310] sm:$0xff] }
  0x5c   :  { %5247 = vmatpush1.bf16.msra.mxu0 %v8856_v61  ;;  %4158 = vmatprep.subr.bf16.mxu1 %v8875_v0  ;;  %v7052_v21 = vcombine.high %v111_v15, %v115_v16  ;;  %v7051_v27 = vcombine.low %v111_v15, %v115_v16  ;;  %v7055_v28 = vcombine.low %v113_v17, %v117_v18  ;;  %v157_v60 = vld [vmem:[%s10904_s0 + $0x470] sm:$0xff] }
  0x5d   :  { %5248 = vmatprep.subr.bf16.mxu0 %v8875_v0  ;;  %v173_v15 = vld [vmem:[%s10904_s0 + $0x4f0] sm:$0xff] }
  0x5f   :  { %4159 = vmatpush1.bf16.msra.mxu1 %v8857_v31  ;;  %v189_v31 = vld [vmem:[%s10904_s0 + $0x570] sm:$0xff] }
  0x60   :  { %4160 = vmatprep.subr.bf16.mxu1 %v8875_v0 }
  0x61   :  { %3664 = vmatmul.mubr.bf16.gmra.mrb[16].mxu1 %v6987_v22  ;;  %v7056_v22 = vcombine.high %v113_v17, %v117_v18 }
  0x62   :  { %4754 = vmatmul.mubr.bf16.gmra.mrb[16].mxu0 %v6991_v23  ;;  %3671 = vmatprep.mubr.bf16.mxu1 %v6996_v24  ;;  %v119_v23 = vld [vmem:[%s10904_s0 + $0x340] sm:$0xff] }
  0x63   :  { %4761 = vmatprep.mubr.bf16.mxu0 %v7000_v25  ;;  %v123_v24 = vld [vmem:[%s10904_s0 + $0x360] sm:$0xff]  ;;  %v121_v25 = vld [vmem:[%s10904_s0 + $0x350] sm:$0xff]  ;;  %4161 = vmatpush1.bf16.msra.mxu1 %v8859_v2 }
  0x64   :  { %v7060_v29 = vcombine.high %v119_v23, %v123_v24  ;;  %v7064_v30 = vcombine.high %v121_v25, %v125_v26  ;;  %v7059_v37 = vcombine.low %v119_v23, %v123_v24  ;;  %v7063_v38 = vcombine.low %v121_v25, %v125_v26  ;;  %4162 = vmatprep.subr.bf16.mxu1 %v8875_v0  ;;  %v181_v23 = vld [vmem:[%s10904_s0 + $0x530] sm:$0xff] }
  0x65   :  { %v221_v2 = vld [vmem:[%s10904_s0 + $0x670] sm:$0xff] }
  0x69   :  { %3672 = vmatmul.mubr.bf16.gmra.mrb[20].mxu1 %v6995_v32  ;;  %v8858_v32 = vld [vmem:[%s10903_s1 + $0x1b8] sm:$0xff]  }
  0x6a   :  { %4762 = vmatmul.mubr.bf16.gmra.mrb[20].mxu0 %v6999_v33  ;;  %3679 = vmatprep.mubr.bf16.mxu1 %v7004_v34  ;;  %v127_v33 = vld [vmem:[%s10904_s0 + $0x380] sm:$0xff] }
  0x6b   :  { %4769 = vmatprep.mubr.bf16.mxu0 %v7008_v35  ;;  %v131_v34 = vld [vmem:[%s10904_s0 + $0x3a0] sm:$0xff]  ;;  %v129_v35 = vld [vmem:[%s10904_s0 + $0x390] sm:$0xff]  ;;  %5249 = vmatpush1.bf16.msra.mxu0 %v8858_v32 }
  0x6c   :  { %5250 = vmatprep.subr.bf16.mxu0 %v8875_v0  ;;  %v7068_v39 = vcombine.high %v127_v33, %v131_v34  ;;  %v7067_v45 = vcombine.low %v127_v33, %v131_v34  ;;  %v7071_v46 = vcombine.low %v129_v35, %v133_v36 }
  0x71   :  { %3680 = vmatmul.mubr.bf16.gmra.mrb[24].mxu1 %v7003_v40  ;;  %v7072_v40 = vcombine.high %v129_v35, %v133_v36  ;;  %v8861_v36 = vld [vmem:[%s10903_s1 + $0xc8] sm:$0xff]  }
  0x72   :  { %4770 = vmatmul.mubr.bf16.gmra.mrb[24].mxu0 %v7007_v41  ;;  %3687 = vmatprep.mubr.bf16.mxu1 %v7012_v42  ;;  %v135_v41 = vld [vmem:[%s10904_s0 + $0x3c0] sm:$0xff] }
  0x73   :  { %4777 = vmatprep.mubr.bf16.mxu0 %v7016_v43  ;;  %v139_v42 = vld [vmem:[%s10904_s0 + $0x3e0] sm:$0xff]  ;;  %v137_v43 = vld [vmem:[%s10904_s0 + $0x3d0] sm:$0xff]  ;;  %4163 = vmatpush1.bf16.msra.mxu1 %v8861_v36 }
  0x74   :  { %v7076_v47 = vcombine.high %v135_v41, %v139_v42  ;;  %v7075_v53 = vcombine.low %v135_v41, %v139_v42  ;;  %v7079_v54 = vcombine.low %v137_v43, %v141_v44  ;;  %v197_v41 = vld [vmem:[%s10904_s0 + $0x5b0] sm:$0xff]  ;;  %4164 = vmatprep.subr.bf16.mxu1 %v8875_v0 }
  0x75   :  { %v253_v36 = vld [vmem:[%s10904_s0 + $0x770] sm:$0xff] }
  0x79   :  { %3688 = vmatmul.mubr.bf16.gmra.mrb[28].mxu1 %v7011_v48  ;;  %v7080_v48 = vcombine.high %v137_v43, %v141_v44 }
  0x7a   :  { %4778 = vmatmul.mubr.bf16.gmra.mrb[28].mxu0 %v7015_v49  ;;  %3695 = vmatprep.mubr.bf16.mxu1 %v7020_v50  ;;  %v143_v49 = vld [vmem:[%s10904_s0 + $0x400] sm:$0xff] }
  0x7b   :  { %4785 = vmatprep.mubr.bf16.mxu0 %v7024_v51  ;;  %v147_v50 = vld [vmem:[%s10904_s0 + $0x420] sm:$0xff]  ;;  %v145_v51 = vld [vmem:[%s10904_s0 + $0x410] sm:$0xff] }
  0x7c   :  { %v7084_v55 = vcombine.high %v143_v49, %v147_v50  ;;  %v7083_v61 = vcombine.low %v143_v49, %v147_v50  ;;  %v7087_v62 = vcombine.low %v145_v51, %v149_v52  ;;  %v205_v49 = vld [vmem:[%s10904_s0 + $0x5f0] sm:$0xff] }
  0x81   :  { %3696 = vmatmul.mubr.bf16.gmra.mrb[32].mxu1 %v7019_v56  ;;  %v7088_v56 = vcombine.high %v145_v51, %v149_v52 }
  0x82   :  { %4786 = vmatmul.mubr.bf16.gmra.mrb[32].mxu0 %v7023_v57  ;;  %3703 = vmatprep.mubr.bf16.mxu1 %v7028_v58  ;;  %v151_v57 = vld [vmem:[%s10904_s0 + $0x440] sm:$0xff] }
  0x83   :  { %4793 = vmatprep.mubr.bf16.mxu0 %v7032_v59  ;;  %v155_v58 = vld [vmem:[%s10904_s0 + $0x460] sm:$0xff]  ;;  %v153_v59 = vld [vmem:[%s10904_s0 + $0x450] sm:$0xff] }
  0x84   :  { %v7092_v63 = vcombine.high %v151_v57, %v155_v58  ;;  %v7096_v1 = vcombine.high %v153_v59, %v157_v60  ;;  %v7091_v8 = vcombine.low %v151_v57, %v155_v58  ;;  %v7095_v9 = vcombine.low %v153_v59, %v157_v60  ;;  %v213_v57 = vld [vmem:[%s10904_s0 + $0x630] sm:$0xff] }
  0x89   :  { %3704 = vmatmul.mubr.bf16.gmra.mrb[36].mxu1 %v7027_v3  ;;  %v8860_v3 = vld [vmem:[%s10903_s1 + $0x1c0] sm:$0xff]  }
  0x8a   :  { %4794 = vmatmul.mubr.bf16.gmra.mrb[36].mxu0 %v7031_v4  ;;  %3711 = vmatprep.mubr.bf16.mxu1 %v7036_v5  ;;  %v159_v4 = vld [vmem:[%s10904_s0 + $0x480] sm:$0xff] }
  0x8b   :  { %4801 = vmatprep.mubr.bf16.mxu0 %v7040_v6  ;;  %v163_v5 = vld [vmem:[%s10904_s0 + $0x4a0] sm:$0xff]  ;;  %v161_v6 = vld [vmem:[%s10904_s0 + $0x490] sm:$0xff]  ;;  %5251 = vmatpush1.bf16.msra.mxu0 %v8860_v3 }
  0x8c   :  { %5252 = vmatprep.subr.bf16.mxu0 %v8875_v0  ;;  %v7100_v10 = vcombine.high %v159_v4, %v163_v5  ;;  %v7099_v16 = vcombine.low %v159_v4, %v163_v5  ;;  %v7103_v17 = vcombine.low %v161_v6, %v165_v7 }
  0x91   :  { %3712 = vmatmul.mubr.bf16.gmra.mrb[40].mxu1 %v7035_v11  ;;  %v7104_v11 = vcombine.high %v161_v6, %v165_v7  ;;  %v8863_v7 = vld [vmem:[%s10903_s1 + $0xd0] sm:$0xff]  }
  0x92   :  { %4802 = vmatmul.mubr.bf16.gmra.mrb[40].mxu0 %v7039_v12  ;;  %3719 = vmatprep.mubr.bf16.mxu1 %v7044_v13  ;;  %v167_v12 = vld [vmem:[%s10904_s0 + $0x4c0] sm:$0xff] }
  0x93   :  { %4809 = vmatprep.mubr.bf16.mxu0 %v7048_v14  ;;  %v171_v13 = vld [vmem:[%s10904_s0 + $0x4e0] sm:$0xff]  ;;  %v169_v14 = vld [vmem:[%s10904_s0 + $0x4d0] sm:$0xff]  ;;  %4165 = vmatpush1.bf16.msra.mxu1 %v8863_v7 }
  0x94   :  { %v7108_v18 = vcombine.high %v167_v12, %v171_v13  ;;  %v7107_v24 = vcombine.low %v167_v12, %v171_v13  ;;  %v7111_v25 = vcombine.low %v169_v14, %v173_v15  ;;  %v229_v12 = vld [vmem:[%s10904_s0 + $0x6b0] sm:$0xff]  ;;  %4166 = vmatprep.subr.bf16.mxu1 %v8875_v0 }
  0x95   :  { %v285_v7 = vld [vmem:[%s10904_s0 + $0x870] sm:$0xff] }
  0x99   :  { %3720 = vmatmul.mubr.bf16.gmra.mrb[44].mxu1 %v7043_v19  ;;  %v7112_v19 = vcombine.high %v169_v14, %v173_v15 }
  0x9a   :  { %4810 = vmatmul.mubr.bf16.gmra.mrb[44].mxu0 %v7047_v20  ;;  %3727 = vmatprep.mubr.bf16.mxu1 %v7052_v21  ;;  %v175_v20 = vld [vmem:[%s10904_s0 + $0x500] sm:$0xff] }
  0x9b   :  { %4817 = vmatprep.mubr.bf16.mxu0 %v7056_v22  ;;  %v179_v21 = vld [vmem:[%s10904_s0 + $0x520] sm:$0xff]  ;;  %v177_v22 = vld [vmem:[%s10904_s0 + $0x510] sm:$0xff] }
  0x9c   :  { %v7116_v26 = vcombine.high %v175_v20, %v179_v21  ;;  %v7115_v32 = vcombine.low %v175_v20, %v179_v21  ;;  %v7119_v33 = vcombine.low %v177_v22, %v181_v23  ;;  %v237_v20 = vld [vmem:[%s10904_s0 + $0x6f0] sm:$0xff] }
  0xa1   :  { %3728 = vmatmul.mubr.bf16.gmra.mrb[48].mxu1 %v7051_v27  ;;  %v7120_v27 = vcombine.high %v177_v22, %v181_v23 }
  0xa2   :  { %4818 = vmatmul.mubr.bf16.gmra.mrb[48].mxu0 %v7055_v28  ;;  %3735 = vmatprep.mubr.bf16.mxu1 %v7060_v29  ;;  %v183_v28 = vld [vmem:[%s10904_s0 + $0x540] sm:$0xff] }
  0xa3   :  { %4825 = vmatprep.mubr.bf16.mxu0 %v7064_v30  ;;  %v187_v29 = vld [vmem:[%s10904_s0 + $0x560] sm:$0xff]  ;;  %v185_v30 = vld [vmem:[%s10904_s0 + $0x550] sm:$0xff] }
  0xa4   :  { %v7124_v34 = vcombine.high %v183_v28, %v187_v29  ;;  %v7128_v35 = vcombine.high %v185_v30, %v189_v31  ;;  %v7123_v42 = vcombine.low %v183_v28, %v187_v29  ;;  %v7127_v43 = vcombine.low %v185_v30, %v189_v31  ;;  %v245_v28 = vld [vmem:[%s10904_s0 + $0x730] sm:$0xff] }
  0xa9   :  { %3736 = vmatmul.mubr.bf16.gmra.mrb[52].mxu1 %v7059_v37  ;;  %v8862_v37 = vld [vmem:[%s10903_s1 + $0x1c8] sm:$0xff]  }
  0xaa   :  { %4826 = vmatmul.mubr.bf16.gmra.mrb[52].mxu0 %v7063_v38  ;;  %3743 = vmatprep.mubr.bf16.mxu1 %v7068_v39  ;;  %v191_v38 = vld [vmem:[%s10904_s0 + $0x580] sm:$0xff] }
  0xab   :  { %4833 = vmatprep.mubr.bf16.mxu0 %v7072_v40  ;;  %v195_v39 = vld [vmem:[%s10904_s0 + $0x5a0] sm:$0xff]  ;;  %v193_v40 = vld [vmem:[%s10904_s0 + $0x590] sm:$0xff]  ;;  %5253 = vmatpush1.bf16.msra.mxu0 %v8862_v37 }
  0xac   :  { %5254 = vmatprep.subr.bf16.mxu0 %v8875_v0  ;;  %v7132_v44 = vcombine.high %v191_v38, %v195_v39  ;;  %v7131_v50 = vcombine.low %v191_v38, %v195_v39  ;;  %v7135_v51 = vcombine.low %v193_v40, %v197_v41 }
  0xb1   :  { %3744 = vmatmul.mubr.bf16.gmra.mrb[56].mxu1 %v7067_v45  ;;  %v7136_v45 = vcombine.high %v193_v40, %v197_v41  ;;  %v8865_v41 = vld [vmem:[%s10903_s1 + $0xd8] sm:$0xff]  }
  0xb2   :  { %4834 = vmatmul.mubr.bf16.gmra.mrb[56].mxu0 %v7071_v46  ;;  %3751 = vmatprep.mubr.bf16.mxu1 %v7076_v47  ;;  %v199_v46 = vld [vmem:[%s10904_s0 + $0x5c0] sm:$0xff] }
  0xb3   :  { %4841 = vmatprep.mubr.bf16.mxu0 %v7080_v48  ;;  %v203_v47 = vld [vmem:[%s10904_s0 + $0x5e0] sm:$0xff]  ;;  %v201_v48 = vld [vmem:[%s10904_s0 + $0x5d0] sm:$0xff]  ;;  %4167 = vmatpush1.bf16.msra.mxu1 %v8865_v41 }
  0xb4   :  { %v7140_v52 = vcombine.high %v199_v46, %v203_v47  ;;  %v7139_v58 = vcombine.low %v199_v46, %v203_v47  ;;  %v7143_v59 = vcombine.low %v201_v48, %v205_v49  ;;  %v261_v46 = vld [vmem:[%s10904_s0 + $0x7b0] sm:$0xff]  ;;  %4168 = vmatprep.subr.bf16.mxu1 %v8875_v0 }
  0xb5   :  { %v317_v41 = vld [vmem:[%s10904_s0 + $0x970] sm:$0xff] }
  0xb9   :  { %3752 = vmatmul.mubr.bf16.gmra.mrb[60].mxu1 %v7075_v53  ;;  %v7144_v53 = vcombine.high %v201_v48, %v205_v49 }
  0xba   :  { %4842 = vmatmul.mubr.bf16.gmra.mrb[60].mxu0 %v7079_v54  ;;  %3759 = vmatprep.mubr.bf16.mxu1 %v7084_v55  ;;  %v207_v54 = vld [vmem:[%s10904_s0 + $0x600] sm:$0xff] }
  0xbb   :  { %4849 = vmatprep.mubr.bf16.mxu0 %v7088_v56  ;;  %v211_v55 = vld [vmem:[%s10904_s0 + $0x620] sm:$0xff]  ;;  %v209_v56 = vld [vmem:[%s10904_s0 + $0x610] sm:$0xff] }
  0xbc   :  { %v7148_v60 = vcombine.high %v207_v54, %v211_v55  ;;  %v7147_v3 = vcombine.low %v207_v54, %v211_v55  ;;  %v7151_v4 = vcombine.low %v209_v56, %v213_v57  ;;  %v269_v54 = vld [vmem:[%s10904_s0 + $0x7f0] sm:$0xff] }
  0xc1   :  { %3760 = vmatmul.mubr.bf16.gmra.mrb[64].mxu1 %v7083_v61  ;;  %v7152_v61 = vcombine.high %v209_v56, %v213_v57 }
  0xc2   :  { %4850 = vmatmul.mubr.bf16.gmra.mrb[64].mxu0 %v7087_v62  ;;  %3767 = vmatprep.mubr.bf16.mxu1 %v7092_v63  ;;  %v215_v62 = vld [vmem:[%s10904_s0 + $0x640] sm:$0xff] }
  0xc3   :  { %4857 = vmatprep.mubr.bf16.mxu0 %v7096_v1  ;;  %v219_v63 = vld [vmem:[%s10904_s0 + $0x660] sm:$0xff]  ;;  %v217_v1 = vld [vmem:[%s10904_s0 + $0x650] sm:$0xff] }
  0xc4   :  { %v7156_v5 = vcombine.high %v215_v62, %v219_v63  ;;  %v7160_v6 = vcombine.high %v217_v1, %v221_v2  ;;  %v7155_v13 = vcombine.low %v215_v62, %v219_v63  ;;  %v7159_v14 = vcombine.low %v217_v1, %v221_v2  ;;  %v277_v62 = vld [vmem:[%s10904_s0 + $0x830] sm:$0xff] }
  0xc9   :  { %3768 = vmatmul.mubr.bf16.gmra.mrb[68].mxu1 %v7091_v8  ;;  %v8864_v8 = vld [vmem:[%s10903_s1 + $0x1d0] sm:$0xff]  }
  0xca   :  { %4858 = vmatmul.mubr.bf16.gmra.mrb[68].mxu0 %v7095_v9  ;;  %3775 = vmatprep.mubr.bf16.mxu1 %v7100_v10  ;;  %v223_v9 = vld [vmem:[%s10904_s0 + $0x680] sm:$0xff] }
  0xcb   :  { %4865 = vmatprep.mubr.bf16.mxu0 %v7104_v11  ;;  %v227_v10 = vld [vmem:[%s10904_s0 + $0x6a0] sm:$0xff]  ;;  %v225_v11 = vld [vmem:[%s10904_s0 + $0x690] sm:$0xff]  ;;  %5255 = vmatpush1.bf16.msra.mxu0 %v8864_v8 }
  0xcc   :  { %5256 = vmatprep.subr.bf16.mxu0 %v8875_v0  ;;  %v7164_v15 = vcombine.high %v223_v9, %v227_v10  ;;  %v7163_v21 = vcombine.low %v223_v9, %v227_v10  ;;  %v7167_v22 = vcombine.low %v225_v11, %v229_v12 }
  0xd1   :  { %3776 = vmatmul.mubr.bf16.gmra.mrb[72].mxu1 %v7099_v16  ;;  %v7168_v16 = vcombine.high %v225_v11, %v229_v12  ;;  %v8867_v12 = vld [vmem:[%s10903_s1 + $0xe0] sm:$0xff]  }
  0xd2   :  { %4866 = vmatmul.mubr.bf16.gmra.mrb[72].mxu0 %v7103_v17  ;;  %3783 = vmatprep.mubr.bf16.mxu1 %v7108_v18  ;;  %v231_v17 = vld [vmem:[%s10904_s0 + $0x6c0] sm:$0xff] }
  0xd3   :  { %4873 = vmatprep.mubr.bf16.mxu0 %v7112_v19  ;;  %v235_v18 = vld [vmem:[%s10904_s0 + $0x6e0] sm:$0xff]  ;;  %v233_v19 = vld [vmem:[%s10904_s0 + $0x6d0] sm:$0xff]  ;;  %4169 = vmatpush1.bf16.msra.mxu1 %v8867_v12 }
  0xd4   :  { %v7172_v23 = vcombine.high %v231_v17, %v235_v18  ;;  %v7171_v29 = vcombine.low %v231_v17, %v235_v18  ;;  %v7175_v30 = vcombine.low %v233_v19, %v237_v20  ;;  %v293_v17 = vld [vmem:[%s10904_s0 + $0x8b0] sm:$0xff]  ;;  %4170 = vmatprep.subr.bf16.mxu1 %v8875_v0 }
  0xd5   :  { %v349_v12 = vld [vmem:[%s10904_s0 + $0xa70] sm:$0xff] }
  0xd9   :  { %3784 = vmatmul.mubr.bf16.gmra.mrb[76].mxu1 %v7107_v24  ;;  %v7176_v24 = vcombine.high %v233_v19, %v237_v20 }
  0xda   :  { %4874 = vmatmul.mubr.bf16.gmra.mrb[76].mxu0 %v7111_v25  ;;  %3791 = vmatprep.mubr.bf16.mxu1 %v7116_v26  ;;  %v239_v25 = vld [vmem:[%s10904_s0 + $0x700] sm:$0xff] }
  0xdb   :  { %4881 = vmatprep.mubr.bf16.mxu0 %v7120_v27  ;;  %v243_v26 = vld [vmem:[%s10904_s0 + $0x720] sm:$0xff]  ;;  %v241_v27 = vld [vmem:[%s10904_s0 + $0x710] sm:$0xff] }
  0xdc   :  { %v7180_v31 = vcombine.high %v239_v25, %v243_v26  ;;  %v7179_v37 = vcombine.low %v239_v25, %v243_v26  ;;  %v7183_v38 = vcombine.low %v241_v27, %v245_v28  ;;  %v301_v25 = vld [vmem:[%s10904_s0 + $0x8f0] sm:$0xff] }
  0xe1   :  { %3792 = vmatmul.mubr.bf16.gmra.mrb[80].mxu1 %v7115_v32  ;;  %v7184_v32 = vcombine.high %v241_v27, %v245_v28 }
  0xe2   :  { %4882 = vmatmul.mubr.bf16.gmra.mrb[80].mxu0 %v7119_v33  ;;  %3799 = vmatprep.mubr.bf16.mxu1 %v7124_v34  ;;  %v247_v33 = vld [vmem:[%s10904_s0 + $0x740] sm:$0xff] }
  0xe3   :  { %4889 = vmatprep.mubr.bf16.mxu0 %v7128_v35  ;;  %v251_v34 = vld [vmem:[%s10904_s0 + $0x760] sm:$0xff]  ;;  %v249_v35 = vld [vmem:[%s10904_s0 + $0x750] sm:$0xff] }
  0xe4   :  { %v7188_v39 = vcombine.high %v247_v33, %v251_v34  ;;  %v7192_v40 = vcombine.high %v249_v35, %v253_v36  ;;  %v7187_v47 = vcombine.low %v247_v33, %v251_v34  ;;  %v7191_v48 = vcombine.low %v249_v35, %v253_v36  ;;  %v309_v33 = vld [vmem:[%s10904_s0 + $0x930] sm:$0xff] }
  0xe9   :  { %3800 = vmatmul.mubr.bf16.gmra.mrb[84].mxu1 %v7123_v42  ;;  %v8866_v42 = vld [vmem:[%s10903_s1 + $0x1d8] sm:$0xff]  }
  0xea   :  { %4890 = vmatmul.mubr.bf16.gmra.mrb[84].mxu0 %v7127_v43  ;;  %3807 = vmatprep.mubr.bf16.mxu1 %v7132_v44  ;;  %v255_v43 = vld [vmem:[%s10904_s0 + $0x780] sm:$0xff] }
  0xeb   :  { %4897 = vmatprep.mubr.bf16.mxu0 %v7136_v45  ;;  %v259_v44 = vld [vmem:[%s10904_s0 + $0x7a0] sm:$0xff]  ;;  %v257_v45 = vld [vmem:[%s10904_s0 + $0x790] sm:$0xff]  ;;  %5257 = vmatpush1.bf16.msra.mxu0 %v8866_v42 }
  0xec   :  { %5258 = vmatprep.subr.bf16.mxu0 %v8875_v0  ;;  %v7196_v49 = vcombine.high %v255_v43, %v259_v44  ;;  %v7195_v55 = vcombine.low %v255_v43, %v259_v44  ;;  %v7199_v56 = vcombine.low %v257_v45, %v261_v46 }
  0xf1   :  { %3808 = vmatmul.mubr.bf16.gmra.mrb[88].mxu1 %v7131_v50  ;;  %v7200_v50 = vcombine.high %v257_v45, %v261_v46  ;;  %v8869_v46 = vld [vmem:[%s10903_s1 + $0xe8] sm:$0xff]  }
  0xf2   :  { %4898 = vmatmul.mubr.bf16.gmra.mrb[88].mxu0 %v7135_v51  ;;  %3815 = vmatprep.mubr.bf16.mxu1 %v7140_v52  ;;  %v263_v51 = vld [vmem:[%s10904_s0 + $0x7c0] sm:$0xff] }
  0xf3   :  { %4905 = vmatprep.mubr.bf16.mxu0 %v7144_v53  ;;  %v267_v52 = vld [vmem:[%s10904_s0 + $0x7e0] sm:$0xff]  ;;  %v265_v53 = vld [vmem:[%s10904_s0 + $0x7d0] sm:$0xff]  ;;  %4171 = vmatpush1.bf16.msra.mxu1 %v8869_v46 }
  0xf4   :  { %v7204_v57 = vcombine.high %v263_v51, %v267_v52  ;;  %v7203_v63 = vcombine.low %v263_v51, %v267_v52  ;;  %v7207_v1 = vcombine.low %v265_v53, %v269_v54  ;;  %v325_v51 = vld [vmem:[%s10904_s0 + $0x9b0] sm:$0xff]  ;;  %4172 = vmatprep.subr.bf16.mxu1 %v8875_v0 }
  0xf9   :  { %3816 = vmatmul.mubr.bf16.gmra.mrb[92].mxu1 %v7139_v58  ;;  %v7208_v58 = vcombine.high %v265_v53, %v269_v54 }
  0xfa   :  { %4906 = vmatmul.mubr.bf16.gmra.mrb[92].mxu0 %v7143_v59  ;;  %3823 = vmatprep.mubr.bf16.mxu1 %v7148_v60  ;;  %v271_v59 = vld [vmem:[%s10904_s0 + $0x800] sm:$0xff] }
  0xfb   :  { %4913 = vmatprep.mubr.bf16.mxu0 %v7152_v61  ;;  %v275_v60 = vld [vmem:[%s10904_s0 + $0x820] sm:$0xff]  ;;  %v273_v61 = vld [vmem:[%s10904_s0 + $0x810] sm:$0xff] }
  0xfc   :  { %v7212_v2 = vcombine.high %v271_v59, %v275_v60  ;;  %v7211_v8 = vcombine.low %v271_v59, %v275_v60  ;;  %v7215_v9 = vcombine.low %v273_v61, %v277_v62  ;;  %v333_v59 = vld [vmem:[%s10904_s0 + $0x9f0] sm:$0xff] }
 0x101   :  { %3824 = vmatmul.mubr.bf16.gmra.mrb[96].mxu1 %v7147_v3  ;;  %v7216_v3 = vcombine.high %v273_v61, %v277_v62 }
 0x102   :  { %4914 = vmatmul.mubr.bf16.gmra.mrb[96].mxu0 %v7151_v4  ;;  %3831 = vmatprep.mubr.bf16.mxu1 %v7156_v5  ;;  %v279_v4 = vld [vmem:[%s10904_s0 + $0x840] sm:$0xff] }
 0x103   :  { %4921 = vmatprep.mubr.bf16.mxu0 %v7160_v6  ;;  %v283_v5 = vld [vmem:[%s10904_s0 + $0x860] sm:$0xff]  ;;  %v281_v6 = vld [vmem:[%s10904_s0 + $0x850] sm:$0xff] }
 0x104   :  { %v7220_v10 = vcombine.high %v279_v4, %v283_v5  ;;  %v7224_v11 = vcombine.high %v281_v6, %v285_v7  ;;  %v7219_v18 = vcombine.low %v279_v4, %v283_v5  ;;  %v7223_v19 = vcombine.low %v281_v6, %v285_v7  ;;  %v341_v4 = vld [vmem:[%s10904_s0 + $0xa30] sm:$0xff] }
 0x109   :  { %3832 = vmatmul.mubr.bf16.gmra.mrb[100].mxu1 %v7155_v13  ;;  %v8868_v13 = vld [vmem:[%s10903_s1 + $0x1e0] sm:$0xff]  }
 0x10a   :  { %4922 = vmatmul.mubr.bf16.gmra.mrb[100].mxu0 %v7159_v14  ;;  %3839 = vmatprep.mubr.bf16.mxu1 %v7164_v15  ;;  %v287_v14 = vld [vmem:[%s10904_s0 + $0x880] sm:$0xff] }
 0x10b   :  { %4929 = vmatprep.mubr.bf16.mxu0 %v7168_v16  ;;  %v291_v15 = vld [vmem:[%s10904_s0 + $0x8a0] sm:$0xff]  ;;  %v289_v16 = vld [vmem:[%s10904_s0 + $0x890] sm:$0xff]  ;;  %5259 = vmatpush1.bf16.msra.mxu0 %v8868_v13 }
 0x10c   :  { %5260 = vmatprep.subr.bf16.mxu0 %v8875_v0  ;;  %v7228_v20 = vcombine.high %v287_v14, %v291_v15  ;;  %v7227_v26 = vcombine.low %v287_v14, %v291_v15  ;;  %v7231_v27 = vcombine.low %v289_v16, %v293_v17 }
 0x111   :  { %3840 = vmatmul.mubr.bf16.gmra.mrb[104].mxu1 %v7163_v21  ;;  %v7232_v21 = vcombine.high %v289_v16, %v293_v17  ;;  %v8871_v17 = vld [vmem:[%s10903_s1 + $0xf0] sm:$0xff]  }
 0x112   :  { %4930 = vmatmul.mubr.bf16.gmra.mrb[104].mxu0 %v7167_v22  ;;  %3847 = vmatprep.mubr.bf16.mxu1 %v7172_v23  ;;  %v295_v22 = vld [vmem:[%s10904_s0 + $0x8c0] sm:$0xff] }
 0x113   :  { %4937 = vmatprep.mubr.bf16.mxu0 %v7176_v24  ;;  %v299_v23 = vld [vmem:[%s10904_s0 + $0x8e0] sm:$0xff]  ;;  %v297_v24 = vld [vmem:[%s10904_s0 + $0x8d0] sm:$0xff]  ;;  %4173 = vmatpush1.bf16.msra.mxu1 %v8871_v17 }
 0x114   :  { %v7236_v28 = vcombine.high %v295_v22, %v299_v23  ;;  %v7235_v34 = vcombine.low %v295_v22, %v299_v23  ;;  %v7239_v35 = vcombine.low %v297_v24, %v301_v25  ;;  %v357_v22 = vld [vmem:[%s10904_s0 + $0xab0] sm:$0xff]  ;;  %4174 = vmatprep.subr.bf16.mxu1 %v8875_v0 }
 0x119   :  { %3848 = vmatmul.mubr.bf16.gmra.mrb[108].mxu1 %v7171_v29  ;;  %v7240_v29 = vcombine.high %v297_v24, %v301_v25 }
 0x11a   :  { %4938 = vmatmul.mubr.bf16.gmra.mrb[108].mxu0 %v7175_v30  ;;  %3855 = vmatprep.mubr.bf16.mxu1 %v7180_v31  ;;  %v303_v30 = vld [vmem:[%s10904_s0 + $0x900] sm:$0xff] }
 0x11b   :  { %4945 = vmatprep.mubr.bf16.mxu0 %v7184_v32  ;;  %v307_v31 = vld [vmem:[%s10904_s0 + $0x920] sm:$0xff]  ;;  %v305_v32 = vld [vmem:[%s10904_s0 + $0x910] sm:$0xff] }
 0x11c   :  { %v7244_v36 = vcombine.high %v303_v30, %v307_v31  ;;  %v7243_v42 = vcombine.low %v303_v30, %v307_v31  ;;  %v7247_v43 = vcombine.low %v305_v32, %v309_v33 }
 0x121   :  { %3856 = vmatmul.mubr.bf16.gmra.mrb[112].mxu1 %v7179_v37  ;;  %v7248_v37 = vcombine.high %v305_v32, %v309_v33 }
 0x122   :  { %4946 = vmatmul.mubr.bf16.gmra.mrb[112].mxu0 %v7183_v38  ;;  %3863 = vmatprep.mubr.bf16.mxu1 %v7188_v39  ;;  %v311_v38 = vld [vmem:[%s10904_s0 + $0x940] sm:$0xff] }
 0x123   :  { %4953 = vmatprep.mubr.bf16.mxu0 %v7192_v40  ;;  %v315_v39 = vld [vmem:[%s10904_s0 + $0x960] sm:$0xff]  ;;  %v313_v40 = vld [vmem:[%s10904_s0 + $0x950] sm:$0xff] }
 0x124   :  { %v7252_v44 = vcombine.high %v311_v38, %v315_v39  ;;  %v7256_v45 = vcombine.high %v313_v40, %v317_v41  ;;  %v7251_v52 = vcombine.low %v311_v38, %v315_v39  ;;  %v7255_v53 = vcombine.low %v313_v40, %v317_v41 }
 0x129   :  { %3864 = vmatmul.mubr.bf16.gmra.mrb[116].mxu1 %v7187_v47  ;;  %v8870_v47 = vld [vmem:[%s10903_s1 + $0x1e8] sm:$0xff]  }
 0x12a   :  { %4954 = vmatmul.mubr.bf16.gmra.mrb[116].mxu0 %v7191_v48  ;;  %3871 = vmatprep.mubr.bf16.mxu1 %v7196_v49  ;;  %v319_v48 = vld [vmem:[%s10904_s0 + $0x980] sm:$0xff] }
 0x12b   :  { %4961 = vmatprep.mubr.bf16.mxu0 %v7200_v50  ;;  %v323_v49 = vld [vmem:[%s10904_s0 + $0x9a0] sm:$0xff]  ;;  %v321_v50 = vld [vmem:[%s10904_s0 + $0x990] sm:$0xff]  ;;  %5261 = vmatpush1.bf16.msra.mxu0 %v8870_v47 }
 0x12c   :  { %5262 = vmatprep.subr.bf16.mxu0 %v8875_v0  ;;  %v7260_v54 = vcombine.high %v319_v48, %v323_v49  ;;  %v7259_v60 = vcombine.low %v319_v48, %v323_v49  ;;  %v7263_v61 = vcombine.low %v321_v50, %v325_v51 }
 0x131   :  { %3872 = vmatmul.mubr.bf16.gmra.mrb[120].mxu1 %v7195_v55  ;;  %v7264_v55 = vcombine.high %v321_v50, %v325_v51  ;;  %v8873_v50 = vld [vmem:[%s10903_s1 + $0xf8] sm:$0xff]  }
 0x132   :  { %4962 = vmatmul.mubr.bf16.gmra.mrb[120].mxu0 %v7199_v56  ;;  %3879 = vmatprep.mubr.bf16.mxu1 %v7204_v57  ;;  %v327_v56 = vld [vmem:[%s10904_s0 + $0x9c0] sm:$0xff]  ;;  %v8874_v51 = vld [vmem:[%s10903_s1 + $0x1f8] sm:$0xff]  }
 0x133   :  { %4969 = vmatprep.mubr.bf16.mxu0 %v7208_v58  ;;  %v331_v57 = vld [vmem:[%s10904_s0 + $0x9e0] sm:$0xff]  ;;  %v329_v58 = vld [vmem:[%s10904_s0 + $0x9d0] sm:$0xff]  ;;  %4175 = vmatpush1.bf16.msra.mxu1 %v8873_v50 }
 0x134   :  { %v7268_v62 = vcombine.high %v327_v56, %v331_v57  ;;  %v7267_v5 = vcombine.low %v327_v56, %v331_v57  ;;  %v7271_v6 = vcombine.low %v329_v58, %v333_v59 }
 0x139   :  { %3880 = vmatmul.mubr.bf16.gmra.mrb[124].mxu1 %v7203_v63  ;;  %v7272_v63 = vcombine.high %v329_v58, %v333_v59 }
 0x13a   :  { %4970 = vmatmul.mubr.bf16.gmra.mrb[124].mxu0 %v7207_v1  ;;  %3887 = vmatprep.mubr.bf16.mxu1 %v7212_v2  ;;  %v335_v1 = vld [vmem:[%s10904_s0 + $0xa00] sm:$0xff] }
 0x13b   :  { %4977 = vmatprep.mubr.bf16.mxu0 %v7216_v3  ;;  %v339_v2 = vld [vmem:[%s10904_s0 + $0xa20] sm:$0xff]  ;;  %v337_v3 = vld [vmem:[%s10904_s0 + $0xa10] sm:$0xff] }
 0x13c   :  { %v7276_v7 = vcombine.high %v335_v1, %v339_v2  ;;  %v7275_v13 = vcombine.low %v335_v1, %v339_v2  ;;  %v7279_v14 = vcombine.low %v337_v3, %v341_v4 }
 0x141   :  { %3888 = vmatmul.mubr.bf16.gmra.mrb[128].mxu1 %v7211_v8  ;;  %v7280_v8 = vcombine.high %v337_v3, %v341_v4 }
 0x142   :  { %4978 = vmatmul.mubr.bf16.gmra.mrb[128].mxu0 %v7215_v9  ;;  %3895 = vmatprep.mubr.bf16.mxu1 %v7220_v10  ;;  %v343_v9 = vld [vmem:[%s10904_s0 + $0xa40] sm:$0xff] }
 0x143   :  { %4985 = vmatprep.mubr.bf16.mxu0 %v7224_v11  ;;  %v347_v10 = vld [vmem:[%s10904_s0 + $0xa60] sm:$0xff]  ;;  %v345_v11 = vld [vmem:[%s10904_s0 + $0xa50] sm:$0xff] }
 0x144   :  { %v7284_v15 = vcombine.high %v343_v9, %v347_v10  ;;  %v7288_v16 = vcombine.high %v345_v11, %v349_v12  ;;  %v7283_v23 = vcombine.low %v343_v9, %v347_v10  ;;  %v7287_v24 = vcombine.low %v345_v11, %v349_v12 }
 0x149   :  { %3896 = vmatmul.mubr.bf16.gmra.mrb[132].mxu1 %v7219_v18  ;;  %v8872_v18 = vld [vmem:[%s10903_s1 + $0x1f0] sm:$0xff]  }
 0x14a   :  { %4986 = vmatmul.mubr.bf16.gmra.mrb[132].mxu0 %v7223_v19  ;;  %3903 = vmatprep.mubr.bf16.mxu1 %v7228_v20  ;;  %v351_v19 = vld [vmem:[%s10904_s0 + $0xa80] sm:$0xff] }
 0x14b   :  { %4993 = vmatprep.mubr.bf16.mxu0 %v7232_v21  ;;  %v355_v20 = vld [vmem:[%s10904_s0 + $0xaa0] sm:$0xff]  ;;  %v353_v21 = vld [vmem:[%s10904_s0 + $0xa90] sm:$0xff]  ;;  %5263 = vmatpush1.bf16.msra.mxu0 %v8872_v18 }
 0x14c   :  { %5264 = vmatprep.subr.bf16.mxu0 %v8875_v0  ;;  %v7292_v25 = vcombine.high %v351_v19, %v355_v20  ;;  %v365_v0 = vld [vmem:[%s10904_s0 + $0xaf0] sm:$0xff]  ;;  %v7291_v30 = vcombine.low %v351_v19, %v355_v20  ;;  %v7295_v31 = vcombine.low %v353_v21, %v357_v22 }
 0x14f   :  { %5265 = vmatpush1.bf16.msra.mxu0 %v8874_v51 }
 0x151   :  { %3904 = vmatmul.mubr.bf16.gmra.mrb[136].mxu1 %v7227_v26  ;;  %v7296_v26 = vcombine.high %v353_v21, %v357_v22  ;;  %v415_v21 = vld [vmem:[%s10904_s0 + $0xc80] sm:$0xff] }
 0x152   :  { %4994 = vmatmul.mubr.bf16.gmra.mrb[136].mxu0 %v7231_v27  ;;  %3911 = vmatprep.mubr.bf16.mxu1 %v7236_v28  ;;  %v359_v27 = vld [vmem:[%s10904_s0 + $0xac0] sm:$0xff] }
 0x153   :  { %5001 = vmatprep.mubr.bf16.mxu0 %v7240_v29  ;;  %v363_v28 = vld [vmem:[%s10904_s0 + $0xae0] sm:$0xff]  ;;  %v361_v29 = vld [vmem:[%s10904_s0 + $0xad0] sm:$0xff] }
 0x154   :  { %v7300_v32 = vcombine.high %v359_v27, %v363_v28  ;;  %v7304_v33 = vcombine.high %v361_v29, %v365_v0  ;;  %v7299_v38 = vcombine.low %v359_v27, %v363_v28  ;;  %v7303_v39 = vcombine.low %v361_v29, %v365_v0  ;;  %v419_v22 = vld [vmem:[%s10904_s0 + $0xca0] sm:$0xff] }
 0x155   :  { %v7356_v27 = vcombine.high %v415_v21, %v419_v22  ;;  %v423_v29 = vld [vmem:[%s10904_s0 + $0xcc0] sm:$0xff] }
 0x156   :  { %v427_v0 = vld [vmem:[%s10904_s0 + $0xce0] sm:$0xff] }
 0x159   :  { %3912 = vmatmul.mubr.bf16.gmra.mrb[140].mxu1 %v7235_v34  ;;  %v367_v34 = vld [vmem:[%s10904_s0 + $0xb00] sm:$0xff] }
 0x15a   :  { %5002 = vmatmul.mubr.bf16.gmra.mrb[140].mxu0 %v7239_v35  ;;  %3919 = vmatprep.mubr.bf16.mxu1 %v7244_v36  ;;  %v371_v35 = vld [vmem:[%s10904_s0 + $0xb20] sm:$0xff]  ;;  %v369_v36 = vld [vmem:[%s10904_s0 + $0xb10] sm:$0xff] }
 0x15b   :  { %5009 = vmatprep.mubr.bf16.mxu0 %v7248_v37  ;;  %v373_v37 = vld [vmem:[%s10904_s0 + $0xb30] sm:$0xff]  ;;  %v7308_v40 = vcombine.high %v367_v34, %v371_v35  ;;  %v7307_v46 = vcombine.low %v367_v34, %v371_v35  ;;  %v7364_v34 = vcombine.high %v423_v29, %v427_v0 }
 0x15c   :  { %v7312_v41 = vcombine.high %v369_v36, %v373_v37  ;;  %v7311_v47 = vcombine.low %v369_v36, %v373_v37  ;;  %v431_v36 = vld [vmem:[%s10904_s0 + $0xd00] sm:$0xff] }
 0x15d   :  { %v435_v37 = vld [vmem:[%s10904_s0 + $0xd20] sm:$0xff] }
 0x161   :  { %3920 = vmatmul.mubr.bf16.gmra.mrb[144].mxu1 %v7243_v42  ;;  %v375_v42 = vld [vmem:[%s10904_s0 + $0xb40] sm:$0xff] }
 0x162   :  { %5010 = vmatmul.mubr.bf16.gmra.mrb[144].mxu0 %v7247_v43  ;;  %3927 = vmatprep.mubr.bf16.mxu1 %v7252_v44  ;;  %v379_v43 = vld [vmem:[%s10904_s0 + $0xb60] sm:$0xff]  ;;  %v377_v44 = vld [vmem:[%s10904_s0 + $0xb50] sm:$0xff] }
 0x163   :  { %5017 = vmatprep.mubr.bf16.mxu0 %v7256_v45  ;;  %v381_v45 = vld [vmem:[%s10904_s0 + $0xb70] sm:$0xff]  ;;  %v7316_v48 = vcombine.high %v375_v42, %v379_v43  ;;  %v7315_v56 = vcombine.low %v375_v42, %v379_v43  ;;  %v7372_v42 = vcombine.high %v431_v36, %v435_v37 }
 0x164   :  { %v7320_v49 = vcombine.high %v377_v44, %v381_v45  ;;  %v7319_v57 = vcombine.low %v377_v44, %v381_v45  ;;  %v439_v44 = vld [vmem:[%s10904_s0 + $0xd40] sm:$0xff] }
 0x165   :  { %v443_v45 = vld [vmem:[%s10904_s0 + $0xd60] sm:$0xff] }
 0x166   :  { %v7380_v50 = vcombine.high %v439_v44, %v443_v45 }
 0x169   :  { %3928 = vmatmul.mubr.bf16.gmra.mrb[148].mxu1 %v7251_v52  ;;  %v383_v52 = vld [vmem:[%s10904_s0 + $0xb80] sm:$0xff] }
 0x16a   :  { %5018 = vmatmul.mubr.bf16.gmra.mrb[148].mxu0 %v7255_v53  ;;  %3935 = vmatprep.mubr.bf16.mxu1 %v7260_v54  ;;  %v387_v53 = vld [vmem:[%s10904_s0 + $0xba0] sm:$0xff]  ;;  %v385_v54 = vld [vmem:[%s10904_s0 + $0xb90] sm:$0xff] }
 0x16b   :  { %5025 = vmatprep.mubr.bf16.mxu0 %v7264_v55  ;;  %v389_v55 = vld [vmem:[%s10904_s0 + $0xbb0] sm:$0xff]  ;;  %v7324_v58 = vcombine.high %v383_v52, %v387_v53  ;;  %v7323_v1 = vcombine.low %v383_v52, %v387_v53  ;;  %v447_v52 = vld [vmem:[%s10904_s0 + $0xd80] sm:$0xff] }
 0x16c   :  { %v7328_v59 = vcombine.high %v385_v54, %v389_v55  ;;  %v7327_v2 = vcombine.low %v385_v54, %v389_v55  ;;  %v451_v53 = vld [vmem:[%s10904_s0 + $0xda0] sm:$0xff]  ;;  %v449_v54 = vld [vmem:[%s10904_s0 + $0xd90] sm:$0xff] }
 0x16d   :  { %v453_v55 = vld [vmem:[%s10904_s0 + $0xdb0] sm:$0xff] }
 0x171   :  { %3936 = vmatmul.mubr.bf16.gmra.mrb[152].mxu1 %v7259_v60  ;;  %v391_v60 = vld [vmem:[%s10904_s0 + $0xbc0] sm:$0xff] }
 0x172   :  { %5026 = vmatmul.mubr.bf16.gmra.mrb[152].mxu0 %v7263_v61  ;;  %3943 = vmatprep.mubr.bf16.mxu1 %v7268_v62  ;;  %v395_v61 = vld [vmem:[%s10904_s0 + $0xbe0] sm:$0xff]  ;;  %v393_v62 = vld [vmem:[%s10904_s0 + $0xbd0] sm:$0xff] }
 0x173   :  { %5033 = vmatprep.mubr.bf16.mxu0 %v7272_v63  ;;  %v397_v63 = vld [vmem:[%s10904_s0 + $0xbf0] sm:$0xff]  ;;  %v7332_v3 = vcombine.high %v391_v60, %v395_v61  ;;  %v7331_v9 = vcombine.low %v391_v60, %v395_v61  ;;  %v455_v60 = vld [vmem:[%s10904_s0 + $0xdc0] sm:$0xff] }
 0x174   :  { %v7336_v4 = vcombine.high %v393_v62, %v397_v63  ;;  %v7335_v10 = vcombine.low %v393_v62, %v397_v63  ;;  %v459_v61 = vld [vmem:[%s10904_s0 + $0xde0] sm:$0xff]  ;;  %v457_v62 = vld [vmem:[%s10904_s0 + $0xdd0] sm:$0xff] }
 0x175   :  { %v461_v63 = vld [vmem:[%s10904_s0 + $0xdf0] sm:$0xff] }
 0x179   :  { %3944 = vmatmul.mubr.bf16.gmra.mrb[156].mxu1 %v7267_v5  ;;  %v399_v5 = vld [vmem:[%s10904_s0 + $0xc00] sm:$0xff] }
 0x17a   :  { %5034 = vmatmul.mubr.bf16.gmra.mrb[156].mxu0 %v7271_v6  ;;  %3951 = vmatprep.mubr.bf16.mxu1 %v7276_v7  ;;  %v403_v6 = vld [vmem:[%s10904_s0 + $0xc20] sm:$0xff]  ;;  %v401_v7 = vld [vmem:[%s10904_s0 + $0xc10] sm:$0xff] }
 0x17b   :  { %5041 = vmatprep.mubr.bf16.mxu0 %v7280_v8  ;;  %v405_v8 = vld [vmem:[%s10904_s0 + $0xc30] sm:$0xff]  ;;  %v7340_v11 = vcombine.high %v399_v5, %v403_v6  ;;  %v7339_v17 = vcombine.low %v399_v5, %v403_v6  ;;  %v463_v5 = vld [vmem:[%s10904_s0 + $0xe00] sm:$0xff] }
 0x17c   :  { %v7344_v12 = vcombine.high %v401_v7, %v405_v8  ;;  %v7343_v18 = vcombine.low %v401_v7, %v405_v8  ;;  %v467_v6 = vld [vmem:[%s10904_s0 + $0xe20] sm:$0xff]  ;;  %v465_v7 = vld [vmem:[%s10904_s0 + $0xe10] sm:$0xff] }
 0x17d   :  { %v469_v8 = vld [vmem:[%s10904_s0 + $0xe30] sm:$0xff] }
 0x181   :  { %3952 = vmatmul.mubr.bf16.gmra.mrb[160].mxu1 %v7275_v13  ;;  %v407_v13 = vld [vmem:[%s10904_s0 + $0xc40] sm:$0xff] }
 0x182   :  { %5042 = vmatmul.mubr.bf16.gmra.mrb[160].mxu0 %v7279_v14  ;;  %3959 = vmatprep.mubr.bf16.mxu1 %v7284_v15  ;;  %v411_v14 = vld [vmem:[%s10904_s0 + $0xc60] sm:$0xff]  ;;  %v409_v15 = vld [vmem:[%s10904_s0 + $0xc50] sm:$0xff] }
 0x183   :  { %5049 = vmatprep.mubr.bf16.mxu0 %v7288_v16  ;;  %v413_v16 = vld [vmem:[%s10904_s0 + $0xc70] sm:$0xff]  ;;  %v7348_v19 = vcombine.high %v407_v13, %v411_v14 }
 0x184   :  { %v7352_v20 = vcombine.high %v409_v15, %v413_v16 }
 0x189   :  { %3960 = vmatmul.mubr.bf16.gmra.mrb[164].mxu1 %v7283_v23  ;;  %v417_v23 = vld [vmem:[%s10904_s0 + $0xc90] sm:$0xff] }
 0x18a   :  { %5050 = vmatmul.mubr.bf16.gmra.mrb[164].mxu0 %v7287_v24  ;;  %3967 = vmatprep.mubr.bf16.mxu1 %v7292_v25  ;;  %v421_v24 = vld [vmem:[%s10904_s0 + $0xcb0] sm:$0xff]  ;;  %v7347_v25 = vcombine.low %v407_v13, %v411_v14  ;;  %v471_v13 = vld [vmem:[%s10904_s0 + $0xe40] sm:$0xff] }
 0x18b   :  { %5057 = vmatprep.mubr.bf16.mxu0 %v7296_v26  ;;  %v7351_v26 = vcombine.low %v409_v15, %v413_v16  ;;  %v7360_v28 = vcombine.high %v417_v23, %v421_v24  ;;  %v475_v14 = vld [vmem:[%s10904_s0 + $0xe60] sm:$0xff]  ;;  %v473_v15 = vld [vmem:[%s10904_s0 + $0xe50] sm:$0xff] }
 0x18c   :  { %v477_v16 = vld [vmem:[%s10904_s0 + $0xe70] sm:$0xff] }
 0x191   :  { %3968 = vmatmul.mubr.bf16.gmra.mrb[168].mxu1 %v7291_v30  ;;  %v425_v30 = vld [vmem:[%s10904_s0 + $0xcd0] sm:$0xff] }
 0x192   :  { %5058 = vmatmul.mubr.bf16.gmra.mrb[168].mxu0 %v7295_v31  ;;  %3975 = vmatprep.mubr.bf16.mxu1 %v7300_v32  ;;  %v429_v31 = vld [vmem:[%s10904_s0 + $0xcf0] sm:$0xff]  ;;  %v7355_v32 = vcombine.low %v415_v21, %v419_v22  ;;  %v479_v21 = vld [vmem:[%s10904_s0 + $0xe80] sm:$0xff] }
 0x193   :  { %5065 = vmatprep.mubr.bf16.mxu0 %v7304_v33  ;;  %v7359_v33 = vcombine.low %v417_v23, %v421_v24  ;;  %v7368_v35 = vcombine.high %v425_v30, %v429_v31  ;;  %v483_v22 = vld [vmem:[%s10904_s0 + $0xea0] sm:$0xff]  ;;  %v481_v23 = vld [vmem:[%s10904_s0 + $0xe90] sm:$0xff] }
 0x194   :  { %v485_v24 = vld [vmem:[%s10904_s0 + $0xeb0] sm:$0xff] }
 0x199   :  { %3976 = vmatmul.mubr.bf16.gmra.mrb[172].mxu1 %v7299_v38  ;;  %v433_v38 = vld [vmem:[%s10904_s0 + $0xd10] sm:$0xff] }
 0x19a   :  { %5066 = vmatmul.mubr.bf16.gmra.mrb[172].mxu0 %v7303_v39  ;;  %3983 = vmatprep.mubr.bf16.mxu1 %v7308_v40  ;;  %v437_v39 = vld [vmem:[%s10904_s0 + $0xd30] sm:$0xff]  ;;  %v7363_v40 = vcombine.low %v423_v29, %v427_v0  ;;  %v487_v29 = vld [vmem:[%s10904_s0 + $0xec0] sm:$0xff] }
 0x19b   :  { %5073 = vmatprep.mubr.bf16.mxu0 %v7312_v41  ;;  %v7367_v41 = vcombine.low %v425_v30, %v429_v31  ;;  %v7376_v43 = vcombine.high %v433_v38, %v437_v39  ;;  %v491_v0 = vld [vmem:[%s10904_s0 + $0xee0] sm:$0xff]  ;;  %v489_v30 = vld [vmem:[%s10904_s0 + $0xed0] sm:$0xff] }
 0x19c   :  { %v493_v31 = vld [vmem:[%s10904_s0 + $0xef0] sm:$0xff] }
 0x1a1   :  { %3984 = vmatmul.mubr.bf16.gmra.mrb[176].mxu1 %v7307_v46  ;;  %v441_v46 = vld [vmem:[%s10904_s0 + $0xd50] sm:$0xff] }
 0x1a2   :  { %5074 = vmatmul.mubr.bf16.gmra.mrb[176].mxu0 %v7311_v47  ;;  %3991 = vmatprep.mubr.bf16.mxu1 %v7316_v48  ;;  %v445_v47 = vld [vmem:[%s10904_s0 + $0xd70] sm:$0xff]  ;;  %v7371_v48 = vcombine.low %v431_v36, %v435_v37  ;;  %v495_v36 = vld [vmem:[%s10904_s0 + $0xf00] sm:$0xff] }
 0x1a3   :  { %5081 = vmatprep.mubr.bf16.mxu0 %v7320_v49  ;;  %v7375_v49 = vcombine.low %v433_v38, %v437_v39  ;;  %v7384_v51 = vcombine.high %v441_v46, %v445_v47  ;;  %v499_v37 = vld [vmem:[%s10904_s0 + $0xf20] sm:$0xff]  ;;  %v497_v38 = vld [vmem:[%s10904_s0 + $0xf10] sm:$0xff] }
 0x1a4   :  { %v501_v39 = vld [vmem:[%s10904_s0 + $0xf30] sm:$0xff] }
 0x1a9   :  { %3992 = vmatmul.mubr.bf16.gmra.mrb[180].mxu1 %v7315_v56  ;;  %v7379_v56 = vcombine.low %v439_v44, %v443_v45  ;;  %v503_v44 = vld [vmem:[%s10904_s0 + $0xf40] sm:$0xff] }
 0x1aa   :  { %5082 = vmatmul.mubr.bf16.gmra.mrb[180].mxu0 %v7319_v57  ;;  %3999 = vmatprep.mubr.bf16.mxu1 %v7324_v58  ;;  %v7383_v57 = vcombine.low %v441_v46, %v445_v47  ;;  %v7388_v58 = vcombine.high %v447_v52, %v451_v53  ;;  %v507_v45 = vld [vmem:[%s10904_s0 + $0xf60] sm:$0xff]  ;;  %v505_v46 = vld [vmem:[%s10904_s0 + $0xf50] sm:$0xff] }
 0x1ab   :  { %5089 = vmatprep.mubr.bf16.mxu0 %v7328_v59  ;;  %v7392_v59 = vcombine.high %v449_v54, %v453_v55  ;;  %v509_v47 = vld [vmem:[%s10904_s0 + $0xf70] sm:$0xff] }
 0x1b1   :  { %4000 = vmatmul.mubr.bf16.gmra.mrb[184].mxu1 %v7323_v1  ;;  %v7387_v1 = vcombine.low %v447_v52, %v451_v53  ;;  %v511_v52 = vld [vmem:[%s10904_s0 + $0xf80] sm:$0xff] }
 0x1b2   :  { %5090 = vmatmul.mubr.bf16.gmra.mrb[184].mxu0 %v7327_v2  ;;  %4007 = vmatprep.mubr.bf16.mxu1 %v7332_v3  ;;  %v7391_v2 = vcombine.low %v449_v54, %v453_v55  ;;  %v7396_v3 = vcombine.high %v455_v60, %v459_v61  ;;  %v515_v53 = vld [vmem:[%s10904_s0 + $0xfa0] sm:$0xff]  ;;  %v513_v54 = vld [vmem:[%s10904_s0 + $0xf90] sm:$0xff] }
 0x1b3   :  { %5097 = vmatprep.mubr.bf16.mxu0 %v7336_v4  ;;  %v7400_v4 = vcombine.high %v457_v62, %v461_v63  ;;  %v517_v55 = vld [vmem:[%s10904_s0 + $0xfb0] sm:$0xff] }
 0x1b9   :  { %4008 = vmatmul.mubr.bf16.gmra.mrb[188].mxu1 %v7331_v9  ;;  %v7395_v9 = vcombine.low %v455_v60, %v459_v61  ;;  %v519_v60 = vld [vmem:[%s10904_s0 + $0xfc0] sm:$0xff] }
 0x1ba   :  { %5098 = vmatmul.mubr.bf16.gmra.mrb[188].mxu0 %v7335_v10  ;;  %4015 = vmatprep.mubr.bf16.mxu1 %v7340_v11  ;;  %v7399_v10 = vcombine.low %v457_v62, %v461_v63  ;;  %v7404_v11 = vcombine.high %v463_v5, %v467_v6  ;;  %v523_v61 = vld [vmem:[%s10904_s0 + $0xfe0] sm:$0xff]  ;;  %v521_v62 = vld [vmem:[%s10904_s0 + $0xfd0] sm:$0xff] }
 0x1bb   :  { %5105 = vmatprep.mubr.bf16.mxu0 %v7344_v12  ;;  %v7408_v12 = vcombine.high %v465_v7, %v469_v8  ;;  %v525_v63 = vld [vmem:[%s10904_s0 + $0xff0] sm:$0xff] }
 0x1c1   :  { %4016 = vmatmul.mubr.bf16.gmra.mrb[192].mxu1 %v7339_v17  ;;  %v7403_v17 = vcombine.low %v463_v5, %v467_v6  ;;  %v16_v5 = vld [vmem:[%s10904_s0 + $0x8] sm:$0xff] }
 0x1c2   :  { %5106 = vmatmul.mubr.bf16.gmra.mrb[192].mxu0 %v7343_v18  ;;  %4023 = vmatprep.mubr.bf16.mxu1 %v7348_v19  ;;  %v7407_v18 = vcombine.low %v465_v7, %v469_v8  ;;  %v7412_v19 = vcombine.high %v471_v13, %v475_v14  ;;  %v20_v6 = vld [vmem:[%s10904_s0 + $0x28] sm:$0xff]  ;;  %v18_v7 = vld [vmem:[%s10904_s0 + $0x18] sm:$0xff] }
 0x1c3   :  { %5113 = vmatprep.mubr.bf16.mxu0 %v7352_v20  ;;  %v7416_v20 = vcombine.high %v473_v15, %v477_v16  ;;  %v22_v8 = vld [vmem:[%s10904_s0 + $0x38] sm:$0xff] }
 0x1c9   :  { %4024 = vmatmul.mubr.bf16.gmra.mrb[196].mxu1 %v7347_v25  ;;  %v7411_v25 = vcombine.low %v471_v13, %v475_v14  ;;  %v24_v13 = vld [vmem:[%s10904_s0 + $0x48] sm:$0xff] }
 0x1ca   :  { %5114 = vmatmul.mubr.bf16.gmra.mrb[196].mxu0 %v7351_v26  ;;  %4031 = vmatprep.mubr.bf16.mxu1 %v7356_v27  ;;  %v7415_v26 = vcombine.low %v473_v15, %v477_v16  ;;  %v7420_v27 = vcombine.high %v479_v21, %v483_v22  ;;  %v28_v14 = vld [vmem:[%s10904_s0 + $0x68] sm:$0xff]  ;;  %v26_v15 = vld [vmem:[%s10904_s0 + $0x58] sm:$0xff] }
 0x1cb   :  { %5121 = vmatprep.mubr.bf16.mxu0 %v7360_v28  ;;  %v7424_v28 = vcombine.high %v481_v23, %v485_v24  ;;  %v30_v16 = vld [vmem:[%s10904_s0 + $0x78] sm:$0xff] }
 0x1d1   :  { %4032 = vmatmul.mubr.bf16.gmra.mrb[200].mxu1 %v7355_v32  ;;  %v7419_v32 = vcombine.low %v479_v21, %v483_v22  ;;  %v32_v21 = vld [vmem:[%s10904_s0 + $0x88] sm:$0xff] }
 0x1d2   :  { %5122 = vmatmul.mubr.bf16.gmra.mrb[200].mxu0 %v7359_v33  ;;  %4039 = vmatprep.mubr.bf16.mxu1 %v7364_v34  ;;  %v7423_v33 = vcombine.low %v481_v23, %v485_v24  ;;  %v7428_v34 = vcombine.high %v487_v29, %v491_v0  ;;  %v36_v22 = vld [vmem:[%s10904_s0 + $0xa8] sm:$0xff]  ;;  %v34_v23 = vld [vmem:[%s10904_s0 + $0x98] sm:$0xff] }
 0x1d3   :  { %5129 = vmatprep.mubr.bf16.mxu0 %v7368_v35  ;;  %v7432_v35 = vcombine.high %v489_v30, %v493_v31  ;;  %v38_v24 = vld [vmem:[%s10904_s0 + $0xb8] sm:$0xff] }
 0x1d9   :  { %4040 = vmatmul.mubr.bf16.gmra.mrb[204].mxu1 %v7363_v40  ;;  %v7427_v40 = vcombine.low %v487_v29, %v491_v0  ;;  %v40_v29 = vld [vmem:[%s10904_s0 + $0xc8] sm:$0xff] }
 0x1da   :  { %5130 = vmatmul.mubr.bf16.gmra.mrb[204].mxu0 %v7367_v41  ;;  %4047 = vmatprep.mubr.bf16.mxu1 %v7372_v42  ;;  %v7431_v41 = vcombine.low %v489_v30, %v493_v31  ;;  %v7436_v42 = vcombine.high %v495_v36, %v499_v37  ;;  %v44_v0 = vld [vmem:[%s10904_s0 + $0xe8] sm:$0xff]  ;;  %v42_v30 = vld [vmem:[%s10904_s0 + $0xd8] sm:$0xff] }
 0x1db   :  { %5137 = vmatprep.mubr.bf16.mxu0 %v7376_v43  ;;  %v7440_v43 = vcombine.high %v497_v38, %v501_v39  ;;  %v46_v31 = vld [vmem:[%s10904_s0 + $0xf8] sm:$0xff] }
 0x1e1   :  { %4048 = vmatmul.mubr.bf16.gmra.mrb[208].mxu1 %v7371_v48  ;;  %v7435_v48 = vcombine.low %v495_v36, %v499_v37  ;;  %v48_v36 = vld [vmem:[%s10904_s0 + $0x108] sm:$0xff] }
 0x1e2   :  { %5138 = vmatmul.mubr.bf16.gmra.mrb[208].mxu0 %v7375_v49  ;;  %4055 = vmatprep.mubr.bf16.mxu1 %v7380_v50  ;;  %v7439_v49 = vcombine.low %v497_v38, %v501_v39  ;;  %v7444_v50 = vcombine.high %v503_v44, %v507_v45  ;;  %v52_v37 = vld [vmem:[%s10904_s0 + $0x128] sm:$0xff]  ;;  %v50_v38 = vld [vmem:[%s10904_s0 + $0x118] sm:$0xff] }
 0x1e3   :  { %5145 = vmatprep.mubr.bf16.mxu0 %v7384_v51  ;;  %v7448_v51 = vcombine.high %v505_v46, %v509_v47  ;;  %v54_v39 = vld [vmem:[%s10904_s0 + $0x138] sm:$0xff] }
 0x1e9   :  { %4056 = vmatmul.mubr.bf16.gmra.mrb[212].mxu1 %v7379_v56  ;;  %v7443_v56 = vcombine.low %v503_v44, %v507_v45  ;;  %v56_v44 = vld [vmem:[%s10904_s0 + $0x148] sm:$0xff] }
 0x1ea   :  { %5146 = vmatmul.mubr.bf16.gmra.mrb[212].mxu0 %v7383_v57  ;;  %4063 = vmatprep.mubr.bf16.mxu1 %v7388_v58  ;;  %v7447_v57 = vcombine.low %v505_v46, %v509_v47  ;;  %v7452_v58 = vcombine.high %v511_v52, %v515_v53  ;;  %v60_v45 = vld [vmem:[%s10904_s0 + $0x168] sm:$0xff]  ;;  %v58_v46 = vld [vmem:[%s10904_s0 + $0x158] sm:$0xff] }
 0x1eb   :  { %5153 = vmatprep.mubr.bf16.mxu0 %v7392_v59  ;;  %v7456_v59 = vcombine.high %v513_v54, %v517_v55  ;;  %v62_v47 = vld [vmem:[%s10904_s0 + $0x178] sm:$0xff] }
 0x1f1   :  { %4064 = vmatmul.mubr.bf16.gmra.mrb[216].mxu1 %v7387_v1  ;;  %v7451_v1 = vcombine.low %v511_v52, %v515_v53  ;;  %v64_v52 = vld [vmem:[%s10904_s0 + $0x188] sm:$0xff] }
 0x1f2   :  { %5154 = vmatmul.mubr.bf16.gmra.mrb[216].mxu0 %v7391_v2  ;;  %4071 = vmatprep.mubr.bf16.mxu1 %v7396_v3  ;;  %v7455_v2 = vcombine.low %v513_v54, %v517_v55  ;;  %v7460_v3 = vcombine.high %v519_v60, %v523_v61  ;;  %v68_v53 = vld [vmem:[%s10904_s0 + $0x1a8] sm:$0xff]  ;;  %v66_v54 = vld [vmem:[%s10904_s0 + $0x198] sm:$0xff] }
 0x1f3   :  { %5161 = vmatprep.mubr.bf16.mxu0 %v7400_v4  ;;  %v7464_v4 = vcombine.high %v521_v62, %v525_v63  ;;  %v70_v55 = vld [vmem:[%s10904_s0 + $0x1b8] sm:$0xff] }
 0x1f9   :  { %4072 = vmatmul.mubr.bf16.gmra.mrb[220].mxu1 %v7395_v9  ;;  %v7459_v9 = vcombine.low %v519_v60, %v523_v61  ;;  %v72_v60 = vld [vmem:[%s10904_s0 + $0x1c8] sm:$0xff] }
 0x1fa   :  { %5162 = vmatmul.mubr.bf16.gmra.mrb[220].mxu0 %v7399_v10  ;;  %4079 = vmatprep.mubr.bf16.mxu1 %v7404_v11  ;;  %v7463_v10 = vcombine.low %v521_v62, %v525_v63  ;;  %v6958_v11 = vcombine.high %v16_v5, %v20_v6  ;;  %v76_v61 = vld [vmem:[%s10904_s0 + $0x1e8] sm:$0xff]  ;;  %v74_v62 = vld [vmem:[%s10904_s0 + $0x1d8] sm:$0xff] }
 0x1fb   :  { %5169 = vmatprep.mubr.bf16.mxu0 %v7408_v12  ;;  %v6962_v12 = vcombine.high %v18_v7, %v22_v8  ;;  %v78_v63 = vld [vmem:[%s10904_s0 + $0x1f8] sm:$0xff] }
 0x201   :  { %4080 = vmatmul.mubr.bf16.gmra.mrb[224].mxu1 %v7403_v17  ;;  %v6957_v17 = vcombine.low %v16_v5, %v20_v6  ;;  %v80_v5 = vld [vmem:[%s10904_s0 + $0x208] sm:$0xff] }
 0x202   :  { %5170 = vmatmul.mubr.bf16.gmra.mrb[224].mxu0 %v7407_v18  ;;  %4087 = vmatprep.mubr.bf16.mxu1 %v7412_v19  ;;  %v6961_v18 = vcombine.low %v18_v7, %v22_v8  ;;  %v6966_v19 = vcombine.high %v24_v13, %v28_v14  ;;  %v84_v6 = vld [vmem:[%s10904_s0 + $0x228] sm:$0xff]  ;;  %v82_v7 = vld [vmem:[%s10904_s0 + $0x218] sm:$0xff] }
 0x203   :  { %5177 = vmatprep.mubr.bf16.mxu0 %v7416_v20  ;;  %v6970_v20 = vcombine.high %v26_v15, %v30_v16  ;;  %v86_v8 = vld [vmem:[%s10904_s0 + $0x238] sm:$0xff] }
 0x209   :  { %4088 = vmatmul.mubr.bf16.gmra.mrb[228].mxu1 %v7411_v25  ;;  %v6965_v25 = vcombine.low %v24_v13, %v28_v14  ;;  %v88_v13 = vld [vmem:[%s10904_s0 + $0x248] sm:$0xff] }
 0x20a   :  { %5178 = vmatmul.mubr.bf16.gmra.mrb[228].mxu0 %v7415_v26  ;;  %4095 = vmatprep.mubr.bf16.mxu1 %v7420_v27  ;;  %v6969_v26 = vcombine.low %v26_v15, %v30_v16  ;;  %v6974_v27 = vcombine.high %v32_v21, %v36_v22  ;;  %v92_v14 = vld [vmem:[%s10904_s0 + $0x268] sm:$0xff]  ;;  %v90_v15 = vld [vmem:[%s10904_s0 + $0x258] sm:$0xff] }
 0x20b   :  { %5185 = vmatprep.mubr.bf16.mxu0 %v7424_v28  ;;  %v6978_v28 = vcombine.high %v34_v23, %v38_v24  ;;  %v94_v16 = vld [vmem:[%s10904_s0 + $0x278] sm:$0xff] }
 0x211   :  { %4096 = vmatmul.mubr.bf16.gmra.mrb[232].mxu1 %v7419_v32  ;;  %v6973_v32 = vcombine.low %v32_v21, %v36_v22  ;;  %v96_v21 = vld [vmem:[%s10904_s0 + $0x288] sm:$0xff] }
 0x212   :  { %5186 = vmatmul.mubr.bf16.gmra.mrb[232].mxu0 %v7423_v33  ;;  %4103 = vmatprep.mubr.bf16.mxu1 %v7428_v34  ;;  %v6977_v33 = vcombine.low %v34_v23, %v38_v24  ;;  %v6982_v34 = vcombine.high %v40_v29, %v44_v0  ;;  %v100_v22 = vld [vmem:[%s10904_s0 + $0x2a8] sm:$0xff]  ;;  %v98_v23 = vld [vmem:[%s10904_s0 + $0x298] sm:$0xff] }
 0x213   :  { %5193 = vmatprep.mubr.bf16.mxu0 %v7432_v35  ;;  %v6986_v35 = vcombine.high %v42_v30, %v46_v31  ;;  %v102_v24 = vld [vmem:[%s10904_s0 + $0x2b8] sm:$0xff] }
 0x219   :  { %4104 = vmatmul.mubr.bf16.gmra.mrb[236].mxu1 %v7427_v40  ;;  %v6981_v40 = vcombine.low %v40_v29, %v44_v0  ;;  %v104_v29 = vld [vmem:[%s10904_s0 + $0x2c8] sm:$0xff] }
 0x21a   :  { %5194 = vmatmul.mubr.bf16.gmra.mrb[236].mxu0 %v7431_v41  ;;  %4111 = vmatprep.mubr.bf16.mxu1 %v7436_v42  ;;  %v6985_v41 = vcombine.low %v42_v30, %v46_v31  ;;  %v6990_v42 = vcombine.high %v48_v36, %v52_v37  ;;  %v108_v0 = vld [vmem:[%s10904_s0 + $0x2e8] sm:$0xff]  ;;  %v106_v30 = vld [vmem:[%s10904_s0 + $0x2d8] sm:$0xff] }
 0x21b   :  { %5201 = vmatprep.mubr.bf16.mxu0 %v7440_v43  ;;  %v6994_v43 = vcombine.high %v50_v38, %v54_v39  ;;  %v110_v31 = vld [vmem:[%s10904_s0 + $0x2f8] sm:$0xff] }
 0x221   :  { %4112 = vmatmul.mubr.bf16.gmra.mrb[240].mxu1 %v7435_v48  ;;  %v6989_v48 = vcombine.low %v48_v36, %v52_v37  ;;  %v112_v36 = vld [vmem:[%s10904_s0 + $0x308] sm:$0xff] }
 0x222   :  { %5202 = vmatmul.mubr.bf16.gmra.mrb[240].mxu0 %v7439_v49  ;;  %4119 = vmatprep.mubr.bf16.mxu1 %v7444_v50  ;;  %v6993_v49 = vcombine.low %v50_v38, %v54_v39  ;;  %v6998_v50 = vcombine.high %v56_v44, %v60_v45  ;;  %v116_v37 = vld [vmem:[%s10904_s0 + $0x328] sm:$0xff]  ;;  %v114_v38 = vld [vmem:[%s10904_s0 + $0x318] sm:$0xff] }
 0x223   :  { %5209 = vmatprep.mubr.bf16.mxu0 %v7448_v51  ;;  %v7002_v51 = vcombine.high %v58_v46, %v62_v47  ;;  %v118_v39 = vld [vmem:[%s10904_s0 + $0x338] sm:$0xff] }
 0x229   :  { %4120 = vmatmul.mubr.bf16.gmra.mrb[244].mxu1 %v7443_v56  ;;  %v6997_v56 = vcombine.low %v56_v44, %v60_v45  ;;  %v120_v44 = vld [vmem:[%s10904_s0 + $0x348] sm:$0xff] }
 0x22a   :  { %5210 = vmatmul.mubr.bf16.gmra.mrb[244].mxu0 %v7447_v57  ;;  %4127 = vmatprep.mubr.bf16.mxu1 %v7452_v58  ;;  %v7001_v57 = vcombine.low %v58_v46, %v62_v47  ;;  %v7006_v58 = vcombine.high %v64_v52, %v68_v53  ;;  %v124_v45 = vld [vmem:[%s10904_s0 + $0x368] sm:$0xff]  ;;  %v122_v46 = vld [vmem:[%s10904_s0 + $0x358] sm:$0xff] }
 0x22b   :  { %5217 = vmatprep.mubr.bf16.mxu0 %v7456_v59  ;;  %v7010_v59 = vcombine.high %v66_v54, %v70_v55  ;;  %v126_v47 = vld [vmem:[%s10904_s0 + $0x378] sm:$0xff] }
 0x231   :  { %4128 = vmatmul.mubr.bf16.gmra.mrb[248].mxu1 %v7451_v1  ;;  %v7005_v1 = vcombine.low %v64_v52, %v68_v53  ;;  %v128_v52 = vld [vmem:[%s10904_s0 + $0x388] sm:$0xff] }
 0x232   :  { %5218 = vmatmul.mubr.bf16.gmra.mrb[248].mxu0 %v7455_v2  ;;  %4135 = vmatprep.mubr.bf16.mxu1 %v7460_v3  ;;  %v7009_v2 = vcombine.low %v66_v54, %v70_v55  ;;  %v7014_v3 = vcombine.high %v72_v60, %v76_v61  ;;  %v132_v53 = vld [vmem:[%s10904_s0 + $0x3a8] sm:$0xff]  ;;  %v130_v54 = vld [vmem:[%s10904_s0 + $0x398] sm:$0xff] }
 0x233   :  { %5225 = vmatprep.mubr.bf16.mxu0 %v7464_v4  ;;  %v7018_v4 = vcombine.high %v74_v62, %v78_v63  ;;  %v134_v55 = vld [vmem:[%s10904_s0 + $0x3b8] sm:$0xff] }
 0x239   :  { %4136 = vmatmul.mubr.bf16.gmra.mrb[252].mxu1 %v7459_v9  ;;  %v7013_v9 = vcombine.low %v72_v60, %v76_v61  ;;  %v136_v60 = vld [vmem:[%s10904_s0 + $0x3c8] sm:$0xff] }
 0x23a   :  { %5226 = vmatmul.mubr.bf16.gmra.mrb[252].mxu0 %v7463_v10  ;;  %4176 = vmatprep.mubr.bf16.mxu1 %v6958_v11  ;;  %v7017_v10 = vcombine.low %v74_v62, %v78_v63  ;;  %v7022_v11 = vcombine.high %v80_v5, %v84_v6  ;;  %v140_v61 = vld [vmem:[%s10904_s0 + $0x3e8] sm:$0xff]  ;;  %v138_v62 = vld [vmem:[%s10904_s0 + $0x3d8] sm:$0xff] }
 0x23b   :  { %5266 = vmatprep.mubr.bf16.mxu0 %v6962_v12  ;;  %v7026_v12 = vcombine.high %v82_v7, %v86_v8  ;;  %v142_v63 = vld [vmem:[%s10904_s0 + $0x3f8] sm:$0xff] }
 0x241   :  { %4177 = vmatmul.mubr.bf16.vlgmr.msra.gmra.mrb[0].mxu1 %v6957_v17  ;;  %v7021_v17 = vcombine.low %v80_v5, %v84_v6  ;;  %v144_v5 = vld [vmem:[%s10904_s0 + $0x408] sm:$0xff] }
 0x242   :  { %5267 = vmatmul.mubr.bf16.vlgmr.msra.gmra.mrb[0].mxu0 %v6961_v18  ;;  %4184 = vmatprep.mubr.bf16.mxu1 %v6966_v19  ;;  %v7025_v18 = vcombine.low %v82_v7, %v86_v8  ;;  %v7030_v19 = vcombine.high %v88_v13, %v92_v14  ;;  %v148_v6 = vld [vmem:[%s10904_s0 + $0x428] sm:$0xff]  ;;  %v146_v7 = vld [vmem:[%s10904_s0 + $0x418] sm:$0xff] }
 0x243   :  { %5274 = vmatprep.mubr.bf16.mxu0 %v6970_v20  ;;  %v7034_v20 = vcombine.high %v90_v15, %v94_v16  ;;  %v150_v8 = vld [vmem:[%s10904_s0 + $0x438] sm:$0xff] }
 0x249   :  { %4185 = vmatmul.mubr.bf16.gmra.mrb[4].mxu1 %v6965_v25  ;;  %v7029_v25 = vcombine.low %v88_v13, %v92_v14  ;;  %v152_v13 = vld [vmem:[%s10904_s0 + $0x448] sm:$0xff] }
 0x24a   :  { %5275 = vmatmul.mubr.bf16.gmra.mrb[4].mxu0 %v6969_v26  ;;  %4192 = vmatprep.mubr.bf16.mxu1 %v6974_v27  ;;  %v7033_v26 = vcombine.low %v90_v15, %v94_v16  ;;  %v7038_v27 = vcombine.high %v96_v21, %v100_v22  ;;  %v156_v14 = vld [vmem:[%s10904_s0 + $0x468] sm:$0xff]  ;;  %v154_v15 = vld [vmem:[%s10904_s0 + $0x458] sm:$0xff] }
 0x24b   :  { %5282 = vmatprep.mubr.bf16.mxu0 %v6978_v28  ;;  %v7042_v28 = vcombine.high %v98_v23, %v102_v24  ;;  %v158_v16 = vld [vmem:[%s10904_s0 + $0x478] sm:$0xff] }
 0x251   :  { %4193 = vmatmul.mubr.bf16.gmra.mrb[8].mxu1 %v6973_v32  ;;  %v7037_v32 = vcombine.low %v96_v21, %v100_v22  ;;  %v160_v21 = vld [vmem:[%s10904_s0 + $0x488] sm:$0xff] }
 0x252   :  { %5283 = vmatmul.mubr.bf16.gmra.mrb[8].mxu0 %v6977_v33  ;;  %4200 = vmatprep.mubr.bf16.mxu1 %v6982_v34  ;;  %v7041_v33 = vcombine.low %v98_v23, %v102_v24  ;;  %v7046_v34 = vcombine.high %v104_v29, %v108_v0  ;;  %v164_v22 = vld [vmem:[%s10904_s0 + $0x4a8] sm:$0xff]  ;;  %v162_v23 = vld [vmem:[%s10904_s0 + $0x498] sm:$0xff] }
 0x253   :  { %5290 = vmatprep.mubr.bf16.mxu0 %v6986_v35  ;;  %v7050_v35 = vcombine.high %v106_v30, %v110_v31  ;;  %v166_v24 = vld [vmem:[%s10904_s0 + $0x4b8] sm:$0xff] }
 0x259   :  { %4201 = vmatmul.mubr.bf16.gmra.mrb[12].mxu1 %v6981_v40  ;;  %v7045_v40 = vcombine.low %v104_v29, %v108_v0  ;;  %v168_v29 = vld [vmem:[%s10904_s0 + $0x4c8] sm:$0xff] }
 0x25a   :  { %5291 = vmatmul.mubr.bf16.gmra.mrb[12].mxu0 %v6985_v41  ;;  %4208 = vmatprep.mubr.bf16.mxu1 %v6990_v42  ;;  %v7049_v41 = vcombine.low %v106_v30, %v110_v31  ;;  %v7054_v42 = vcombine.high %v112_v36, %v116_v37  ;;  %v172_v0 = vld [vmem:[%s10904_s0 + $0x4e8] sm:$0xff]  ;;  %v170_v30 = vld [vmem:[%s10904_s0 + $0x4d8] sm:$0xff] }
 0x25b   :  { %5298 = vmatprep.mubr.bf16.mxu0 %v6994_v43  ;;  %v7058_v43 = vcombine.high %v114_v38, %v118_v39  ;;  %v174_v31 = vld [vmem:[%s10904_s0 + $0x4f8] sm:$0xff] }
 0x261   :  { %4209 = vmatmul.mubr.bf16.gmra.mrb[16].mxu1 %v6989_v48  ;;  %v7053_v48 = vcombine.low %v112_v36, %v116_v37  ;;  %v176_v36 = vld [vmem:[%s10904_s0 + $0x508] sm:$0xff] }
 0x262   :  { %5299 = vmatmul.mubr.bf16.gmra.mrb[16].mxu0 %v6993_v49  ;;  %4216 = vmatprep.mubr.bf16.mxu1 %v6998_v50  ;;  %v7057_v49 = vcombine.low %v114_v38, %v118_v39  ;;  %v7062_v50 = vcombine.high %v120_v44, %v124_v45  ;;  %v180_v37 = vld [vmem:[%s10904_s0 + $0x528] sm:$0xff]  ;;  %v178_v38 = vld [vmem:[%s10904_s0 + $0x518] sm:$0xff] }
 0x263   :  { %5306 = vmatprep.mubr.bf16.mxu0 %v7002_v51  ;;  %v7066_v51 = vcombine.high %v122_v46, %v126_v47  ;;  %v182_v39 = vld [vmem:[%s10904_s0 + $0x538] sm:$0xff] }
 0x269   :  { %4217 = vmatmul.mubr.bf16.gmra.mrb[20].mxu1 %v6997_v56  ;;  %v7061_v56 = vcombine.low %v120_v44, %v124_v45  ;;  %v184_v44 = vld [vmem:[%s10904_s0 + $0x548] sm:$0xff] }
 0x26a   :  { %5307 = vmatmul.mubr.bf16.gmra.mrb[20].mxu0 %v7001_v57  ;;  %4224 = vmatprep.mubr.bf16.mxu1 %v7006_v58  ;;  %v7065_v57 = vcombine.low %v122_v46, %v126_v47  ;;  %v7070_v58 = vcombine.high %v128_v52, %v132_v53  ;;  %v188_v45 = vld [vmem:[%s10904_s0 + $0x568] sm:$0xff]  ;;  %v186_v46 = vld [vmem:[%s10904_s0 + $0x558] sm:$0xff] }
 0x26b   :  { %5314 = vmatprep.mubr.bf16.mxu0 %v7010_v59  ;;  %v7074_v59 = vcombine.high %v130_v54, %v134_v55  ;;  %v190_v47 = vld [vmem:[%s10904_s0 + $0x578] sm:$0xff] }
 0x271   :  { %4225 = vmatmul.mubr.bf16.gmra.mrb[24].mxu1 %v7005_v1  ;;  %v7069_v1 = vcombine.low %v128_v52, %v132_v53  ;;  %v192_v52 = vld [vmem:[%s10904_s0 + $0x588] sm:$0xff] }
 0x272   :  { %5315 = vmatmul.mubr.bf16.gmra.mrb[24].mxu0 %v7009_v2  ;;  %4232 = vmatprep.mubr.bf16.mxu1 %v7014_v3  ;;  %v7073_v2 = vcombine.low %v130_v54, %v134_v55  ;;  %v7078_v3 = vcombine.high %v136_v60, %v140_v61  ;;  %v196_v53 = vld [vmem:[%s10904_s0 + $0x5a8] sm:$0xff]  ;;  %v194_v54 = vld [vmem:[%s10904_s0 + $0x598] sm:$0xff] }
 0x273   :  { %5322 = vmatprep.mubr.bf16.mxu0 %v7018_v4  ;;  %v7082_v4 = vcombine.high %v138_v62, %v142_v63  ;;  %v198_v55 = vld [vmem:[%s10904_s0 + $0x5b8] sm:$0xff] }
 0x279   :  { %4233 = vmatmul.mubr.bf16.gmra.mrb[28].mxu1 %v7013_v9  ;;  %v7077_v9 = vcombine.low %v136_v60, %v140_v61  ;;  %v200_v60 = vld [vmem:[%s10904_s0 + $0x5c8] sm:$0xff] }
 0x27a   :  { %5323 = vmatmul.mubr.bf16.gmra.mrb[28].mxu0 %v7017_v10  ;;  %4240 = vmatprep.mubr.bf16.mxu1 %v7022_v11  ;;  %v7081_v10 = vcombine.low %v138_v62, %v142_v63  ;;  %v7086_v11 = vcombine.high %v144_v5, %v148_v6  ;;  %v204_v61 = vld [vmem:[%s10904_s0 + $0x5e8] sm:$0xff]  ;;  %v202_v62 = vld [vmem:[%s10904_s0 + $0x5d8] sm:$0xff] }
 0x27b   :  { %5330 = vmatprep.mubr.bf16.mxu0 %v7026_v12  ;;  %v7090_v12 = vcombine.high %v146_v7, %v150_v8  ;;  %v206_v63 = vld [vmem:[%s10904_s0 + $0x5f8] sm:$0xff] }
 0x281   :  { %4241 = vmatmul.mubr.bf16.gmra.mrb[32].mxu1 %v7021_v17  ;;  %v7085_v17 = vcombine.low %v144_v5, %v148_v6  ;;  %v208_v5 = vld [vmem:[%s10904_s0 + $0x608] sm:$0xff] }
 0x282   :  { %5331 = vmatmul.mubr.bf16.gmra.mrb[32].mxu0 %v7025_v18  ;;  %4248 = vmatprep.mubr.bf16.mxu1 %v7030_v19  ;;  %v7089_v18 = vcombine.low %v146_v7, %v150_v8  ;;  %v7094_v19 = vcombine.high %v152_v13, %v156_v14  ;;  %v212_v6 = vld [vmem:[%s10904_s0 + $0x628] sm:$0xff]  ;;  %v210_v7 = vld [vmem:[%s10904_s0 + $0x618] sm:$0xff] }
 0x283   :  { %5338 = vmatprep.mubr.bf16.mxu0 %v7034_v20  ;;  %v7098_v20 = vcombine.high %v154_v15, %v158_v16  ;;  %v214_v8 = vld [vmem:[%s10904_s0 + $0x638] sm:$0xff] }
 0x289   :  { %4249 = vmatmul.mubr.bf16.gmra.mrb[36].mxu1 %v7029_v25  ;;  %v7093_v25 = vcombine.low %v152_v13, %v156_v14  ;;  %v216_v13 = vld [vmem:[%s10904_s0 + $0x648] sm:$0xff] }
 0x28a   :  { %5339 = vmatmul.mubr.bf16.gmra.mrb[36].mxu0 %v7033_v26  ;;  %4256 = vmatprep.mubr.bf16.mxu1 %v7038_v27  ;;  %v7097_v26 = vcombine.low %v154_v15, %v158_v16  ;;  %v7102_v27 = vcombine.high %v160_v21, %v164_v22  ;;  %v220_v14 = vld [vmem:[%s10904_s0 + $0x668] sm:$0xff]  ;;  %v218_v15 = vld [vmem:[%s10904_s0 + $0x658] sm:$0xff] }
 0x28b   :  { %5346 = vmatprep.mubr.bf16.mxu0 %v7042_v28  ;;  %v7106_v28 = vcombine.high %v162_v23, %v166_v24  ;;  %v222_v16 = vld [vmem:[%s10904_s0 + $0x678] sm:$0xff] }
 0x291   :  { %4257 = vmatmul.mubr.bf16.gmra.mrb[40].mxu1 %v7037_v32  ;;  %v7101_v32 = vcombine.low %v160_v21, %v164_v22  ;;  %v224_v21 = vld [vmem:[%s10904_s0 + $0x688] sm:$0xff] }
 0x292   :  { %5347 = vmatmul.mubr.bf16.gmra.mrb[40].mxu0 %v7041_v33  ;;  %4264 = vmatprep.mubr.bf16.mxu1 %v7046_v34  ;;  %v7105_v33 = vcombine.low %v162_v23, %v166_v24  ;;  %v7110_v34 = vcombine.high %v168_v29, %v172_v0  ;;  %v228_v22 = vld [vmem:[%s10904_s0 + $0x6a8] sm:$0xff]  ;;  %v226_v23 = vld [vmem:[%s10904_s0 + $0x698] sm:$0xff] }
 0x293   :  { %5354 = vmatprep.mubr.bf16.mxu0 %v7050_v35  ;;  %v7114_v35 = vcombine.high %v170_v30, %v174_v31  ;;  %v230_v24 = vld [vmem:[%s10904_s0 + $0x6b8] sm:$0xff] }
 0x299   :  { %4265 = vmatmul.mubr.bf16.gmra.mrb[44].mxu1 %v7045_v40  ;;  %v7109_v40 = vcombine.low %v168_v29, %v172_v0  ;;  %v232_v29 = vld [vmem:[%s10904_s0 + $0x6c8] sm:$0xff] }
 0x29a   :  { %5355 = vmatmul.mubr.bf16.gmra.mrb[44].mxu0 %v7049_v41  ;;  %4272 = vmatprep.mubr.bf16.mxu1 %v7054_v42  ;;  %v7113_v41 = vcombine.low %v170_v30, %v174_v31  ;;  %v7118_v42 = vcombine.high %v176_v36, %v180_v37  ;;  %v236_v0 = vld [vmem:[%s10904_s0 + $0x6e8] sm:$0xff]  ;;  %v234_v30 = vld [vmem:[%s10904_s0 + $0x6d8] sm:$0xff] }
 0x29b   :  { %5362 = vmatprep.mubr.bf16.mxu0 %v7058_v43  ;;  %v7122_v43 = vcombine.high %v178_v38, %v182_v39  ;;  %v238_v31 = vld [vmem:[%s10904_s0 + $0x6f8] sm:$0xff] }
 0x2a1   :  { %4273 = vmatmul.mubr.bf16.gmra.mrb[48].mxu1 %v7053_v48  ;;  %v7117_v48 = vcombine.low %v176_v36, %v180_v37  ;;  %v240_v36 = vld [vmem:[%s10904_s0 + $0x708] sm:$0xff] }
 0x2a2   :  { %5363 = vmatmul.mubr.bf16.gmra.mrb[48].mxu0 %v7057_v49  ;;  %4280 = vmatprep.mubr.bf16.mxu1 %v7062_v50  ;;  %v7121_v49 = vcombine.low %v178_v38, %v182_v39  ;;  %v7126_v50 = vcombine.high %v184_v44, %v188_v45  ;;  %v244_v37 = vld [vmem:[%s10904_s0 + $0x728] sm:$0xff]  ;;  %v242_v39 = vld [vmem:[%s10904_s0 + $0x718] sm:$0xff] }
 0x2a3   :  { %5370 = vmatprep.mubr.bf16.mxu0 %v7066_v51  ;;  %v7130_v51 = vcombine.high %v186_v46, %v190_v47 }
 0x2a9   :  { %4281 = vmatmul.mubr.bf16.gmra.mrb[52].mxu1 %v7061_v56  ;;  %v7125_v56 = vcombine.low %v184_v44, %v188_v45 }
 0x2aa   :  { %5371 = vmatmul.mubr.bf16.gmra.mrb[52].mxu0 %v7065_v57  ;;  %4288 = vmatprep.mubr.bf16.mxu1 %v7070_v58  ;;  %v7129_v57 = vcombine.low %v186_v46, %v190_v47  ;;  %v7134_v58 = vcombine.high %v192_v52, %v196_v53  ;;  %v7177_v47 = vcombine.low %v234_v30, %v238_v31 }
 0x2ab   :  { %5378 = vmatprep.mubr.bf16.mxu0 %v7074_v59  ;;  %v7138_v59 = vcombine.high %v194_v54, %v198_v55 }
 0x2b1   :  { %4289 = vmatmul.mubr.bf16.gmra.mrb[56].mxu1 %v7069_v1  ;;  %v7133_v1 = vcombine.low %v192_v52, %v196_v53 }
 0x2b2   :  { %5379 = vmatmul.mubr.bf16.gmra.mrb[56].mxu0 %v7073_v2  ;;  %4296 = vmatprep.mubr.bf16.mxu1 %v7078_v3  ;;  %v7137_v2 = vcombine.low %v194_v54, %v198_v55  ;;  %v7142_v3 = vcombine.high %v200_v60, %v204_v61  ;;  %v248_v55 = vld [vmem:[%s10904_s0 + $0x748] sm:$0xff] }
 0x2b3   :  { %5386 = vmatprep.mubr.bf16.mxu0 %v7082_v4  ;;  %v7146_v4 = vcombine.high %v202_v62, %v206_v63 }
 0x2b9   :  { %4297 = vmatmul.mubr.bf16.gmra.mrb[60].mxu1 %v7077_v9  ;;  %v7141_v9 = vcombine.low %v200_v60, %v204_v61 }
 0x2ba   :  { %5387 = vmatmul.mubr.bf16.gmra.mrb[60].mxu0 %v7081_v10  ;;  %4304 = vmatprep.mubr.bf16.mxu1 %v7086_v11  ;;  %v7145_v10 = vcombine.low %v202_v62, %v206_v63  ;;  %v7150_v11 = vcombine.high %v208_v5, %v212_v6  ;;  %v7181_v62 = vcombine.low %v240_v36, %v244_v37 }
 0x2bb   :  { %5394 = vmatprep.mubr.bf16.mxu0 %v7090_v12  ;;  %v7154_v12 = vcombine.high %v210_v7, %v214_v8 }
 0x2c1   :  { %4305 = vmatmul.mubr.bf16.gmra.mrb[64].mxu1 %v7085_v17  ;;  %v7149_v17 = vcombine.low %v208_v5, %v212_v6 }
 0x2c2   :  { %5395 = vmatmul.mubr.bf16.gmra.mrb[64].mxu0 %v7089_v18  ;;  %4312 = vmatprep.mubr.bf16.mxu1 %v7094_v19  ;;  %v7153_v18 = vcombine.low %v210_v7, %v214_v8  ;;  %v7158_v19 = vcombine.high %v216_v13, %v220_v14 }
 0x2c3   :  { %5402 = vmatprep.mubr.bf16.mxu0 %v7098_v20  ;;  %v7162_v20 = vcombine.high %v218_v15, %v222_v16 }
 0x2c9   :  { %4313 = vmatmul.mubr.bf16.gmra.mrb[68].mxu1 %v7093_v25  ;;  %v7157_v25 = vcombine.low %v216_v13, %v220_v14 }
 0x2ca   :  { %5403 = vmatmul.mubr.bf16.gmra.mrb[68].mxu0 %v7097_v26  ;;  %4320 = vmatprep.mubr.bf16.mxu1 %v7102_v27  ;;  %v7161_v26 = vcombine.low %v218_v15, %v222_v16  ;;  %v7166_v27 = vcombine.high %v224_v21, %v228_v22  ;;  %v256_v15 = vld [vmem:[%s10904_s0 + $0x788] sm:$0xff] }
 0x2cb   :  { %5410 = vmatprep.mubr.bf16.mxu0 %v7106_v28  ;;  %v7170_v28 = vcombine.high %v226_v23, %v230_v24  ;;  %v260_v16 = vld [vmem:[%s10904_s0 + $0x7a8] sm:$0xff] }
 0x2d1   :  { %4321 = vmatmul.mubr.bf16.gmra.mrb[72].mxu1 %v7101_v32  ;;  %v7165_v32 = vcombine.low %v224_v21, %v228_v22  ;;  %v258_v21 = vld [vmem:[%s10904_s0 + $0x798] sm:$0xff] }
 0x2d2   :  { %5411 = vmatmul.mubr.bf16.gmra.mrb[72].mxu0 %v7105_v33  ;;  %4328 = vmatprep.mubr.bf16.mxu1 %v7110_v34  ;;  %v7169_v33 = vcombine.low %v226_v23, %v230_v24  ;;  %v7174_v34 = vcombine.high %v232_v29, %v236_v0  ;;  %v262_v22 = vld [vmem:[%s10904_s0 + $0x7b8] sm:$0xff] }
 0x2d3   :  { %5418 = vmatprep.mubr.bf16.mxu0 %v7114_v35  ;;  %v7178_v35 = vcombine.high %v234_v30, %v238_v31 }
 0x2d9   :  { %4329 = vmatmul.mubr.bf16.gmra.mrb[76].mxu1 %v7109_v40  ;;  %v246_v40 = vld [vmem:[%s10904_s0 + $0x738] sm:$0xff] }
 0x2da   :  { %5419 = vmatmul.mubr.bf16.gmra.mrb[76].mxu0 %v7113_v41  ;;  %4336 = vmatprep.mubr.bf16.mxu1 %v7118_v42  ;;  %v7185_v63 = vcombine.low %v242_v39, %v246_v40 }
 0x2db   :  { %5426 = vmatprep.mubr.bf16.mxu0 %v7122_v43  ;;  %v7173_v43 = vcombine.low %v232_v29, %v236_v0 }
 0x2e1   :  { %4337 = vmatmul.mubr.bf16.gmra.mrb[80].mxu1 %v7117_v48  ;;  %v7182_v48 = vcombine.high %v240_v36, %v244_v37 }
 0x2e2   :  { %5427 = vmatmul.mubr.bf16.gmra.mrb[80].mxu0 %v7121_v49  ;;  %4344 = vmatprep.mubr.bf16.mxu1 %v7126_v50 }
 0x2e3   :  { %5434 = vmatprep.mubr.bf16.mxu0 %v7130_v51  ;;  %v7186_v51 = vcombine.high %v242_v39, %v246_v40 }
 0x2e9   :  { %4345 = vmatmul.mubr.bf16.gmra.mrb[84].mxu1 %v7125_v56  ;;  %v252_v56 = vld [vmem:[%s10904_s0 + $0x768] sm:$0xff] }
 0x2ea   :  { %5435 = vmatmul.mubr.bf16.gmra.mrb[84].mxu0 %v7129_v57  ;;  %4352 = vmatprep.mubr.bf16.mxu1 %v7134_v58  ;;  %v250_v58 = vld [vmem:[%s10904_s0 + $0x758] sm:$0xff]  ;;  %v7190_v6 = vcombine.high %v248_v55, %v252_v56 }
 0x2eb   :  { %5442 = vmatprep.mubr.bf16.mxu0 %v7138_v59  ;;  %v254_v59 = vld [vmem:[%s10904_s0 + $0x778] sm:$0xff] }
 0x2f1   :  { %4353 = vmatmul.mubr.bf16.gmra.mrb[88].mxu1 %v7133_v1 }
 0x2f2   :  { %5443 = vmatmul.mubr.bf16.gmra.mrb[88].mxu0 %v7137_v2  ;;  %4360 = vmatprep.mubr.bf16.mxu1 %v7142_v3 }
 0x2f3   :  { %5450 = vmatprep.mubr.bf16.mxu0 %v7146_v4 }
 0x2f9   :  { %4361 = vmatmul.mubr.bf16.gmra.mrb[92].mxu1 %v7141_v9  ;;  %v7194_v9 = vcombine.high %v250_v58, %v254_v59 }
 0x2fa   :  { %5451 = vmatmul.mubr.bf16.gmra.mrb[92].mxu0 %v7145_v10  ;;  %4368 = vmatprep.mubr.bf16.mxu1 %v7150_v11 }
 0x2fb   :  { %5458 = vmatprep.mubr.bf16.mxu0 %v7154_v12 }
 0x301   :  { %4369 = vmatmul.mubr.bf16.gmra.mrb[96].mxu1 %v7149_v17 }
 0x302   :  { %5459 = vmatmul.mubr.bf16.gmra.mrb[96].mxu0 %v7153_v18  ;;  %4376 = vmatprep.mubr.bf16.mxu1 %v7158_v19 }
 0x303   :  { %5466 = vmatprep.mubr.bf16.mxu0 %v7162_v20 }
 0x309   :  { %4377 = vmatmul.mubr.bf16.gmra.mrb[100].mxu1 %v7157_v25  ;;  %v7189_v25 = vcombine.low %v248_v55, %v252_v56 }
 0x30a   :  { %5467 = vmatmul.mubr.bf16.gmra.mrb[100].mxu0 %v7161_v26  ;;  %4384 = vmatprep.mubr.bf16.mxu1 %v7166_v27  ;;  %v7193_v26 = vcombine.low %v250_v58, %v254_v59  ;;  %v7198_v27 = vcombine.high %v256_v15, %v260_v16 }
 0x30b   :  { %5474 = vmatprep.mubr.bf16.mxu0 %v7170_v28 }
 0x311   :  { %4385 = vmatmul.mubr.bf16.gmra.mrb[104].mxu1 %v7165_v32 }
 0x312   :  { %5475 = vmatmul.mubr.bf16.gmra.mrb[104].mxu0 %v7169_v33  ;;  %4392 = vmatprep.mubr.bf16.mxu1 %v7174_v34 }
 0x313   :  { %5482 = vmatprep.mubr.bf16.mxu0 %v7178_v35  ;;  %v7202_v35 = vcombine.high %v258_v21, %v262_v22 }
 0x314   :  { %v4178_v38 = vpop.f32.mrb[0].mxu1 }
 0x315   :  { %v5268_v41 = vpop.f32.mrb[0].mxu0  ;;  %v4180_v42 = vpop.f32.mrb[1].mxu1 }
 0x316   :  { %v8170_v44 = vadd.f32 %v5268_v41, %v4178_v38  ;;  %v5270_v45 = vpop.f32.mrb[1].mxu0  ;;  %v4181_v46 = vpop.f32.mrb[2].mxu1 }
 0x317   :  { %v5271_v49 = vpop.f32.mrb[2].mxu0  ;;  %v4183_v50 = vpop.f32.mrb[3].mxu1 }
 0x318   :  { %v8171_v52 = vadd.f32 %v5271_v49, %v4181_v46  ;;  %v5273_v53 = vpop.f32.mrb[3].mxu0  ;;  %v270_v49 = vld [vmem:[%s10904_s0 + $0x7f8] sm:$0xff] }
 0x319   :  { %4393 = vmatmul.mubr.bf16.gmra.mrb[108].mxu1 %v7173_v43  ;;  %v264_v43 = vld [vmem:[%s10904_s0 + $0x7c8] sm:$0xff]  ;;  %v7201_v53 = vcombine.low %v258_v21, %v262_v22 }
 0x31a   :  { %v5779_v54 = vpack.c.bf16 %v8171_v52, %v8170_v44  ;;  %5483 = vmatmul.mubr.bf16.gmra.mrb[108].mxu0 %v7177_v47  ;;  %4400 = vmatprep.mubr.bf16.mxu1 %v7182_v48  ;;  %v268_v44 = vld [vmem:[%s10904_s0 + $0x7e8] sm:$0xff]  ;;  %v266_v48 = vld [vmem:[%s10904_s0 + $0x7d8] sm:$0xff]  ;;  %v7197_v52 = vcombine.low %v256_v15, %v260_v16 }
 0x31b   :  { %5490 = vmatprep.mubr.bf16.mxu0 %v7186_v51  ;;  %v7206_v59 = vcombine.high %v264_v43, %v268_v44  ;;  %v7205_v16 = vcombine.low %v264_v43, %v268_v44 }
 0x31c   :  { %7791 = vst [vmem:[%s10905_s2] sm:$0xff] %v5779_v54   ;;  %v4186_v57 = vpop.f32.mrb[4].mxu1  ;;  %v6419_v1 = vunpack.c.l.bf16 %v5779_v54  ;;  %v6420_v2 = vunpack.c.h.bf16 %v5779_v54 }
 0x31d   :  { %v5276_v60 = vpop.f32.mrb[4].mxu0  ;;  %v4188_v61 = vpop.f32.mrb[5].mxu1 }
 0x31e   :  { %v8172_v3 = vadd.f32 %v5276_v60, %v4186_v57  ;;  %v5278_v4 = vpop.f32.mrb[5].mxu0  ;;  %v4189_v5 = vpop.f32.mrb[6].mxu1  ;;  %v6681_v12 = vmul.f32 %v6419_v1, %v6419_v1  ;;  %v6682_v13 = vmul.f32 %v6420_v2, %v6420_v2  ;;  %v6547_v17 = vadd.f32 %v6420_v2, %v6419_v1 }
 0x31f   :  { %v5279_v7 = vpop.f32.mrb[6].mxu0  ;;  %v4191_v8 = vpop.f32.mrb[7].mxu1 }
 0x320   :  { %v8173_v10 = vadd.f32 %v5279_v7, %v4189_v5  ;;  %v5281_v11 = vpop.f32.mrb[7].mxu0  ;;  %v6809_v28 = vadd.f32 %v6682_v13, %v6681_v12  ;;  %v272_v7 = vld [vmem:[%s10904_s0 + $0x808] sm:$0xff]  ;;  %v274_v12 = vld [vmem:[%s10904_s0 + $0x818] sm:$0xff] }
 0x321   :  { %4401 = vmatmul.mubr.bf16.gmra.mrb[112].mxu1 %v7181_v62  ;;  %v7210_v62 = vcombine.high %v266_v48, %v270_v49  ;;  %v276_v8 = vld [vmem:[%s10904_s0 + $0x828] sm:$0xff]  ;;  %v278_v13 = vld [vmem:[%s10904_s0 + $0x838] sm:$0xff] }
 0x322   :  { %v5780_v14 = vpack.c.bf16 %v8173_v10, %v8172_v3  ;;  %5491 = vmatmul.mubr.bf16.gmra.mrb[112].mxu0 %v7185_v63  ;;  %4408 = vmatprep.mubr.bf16.mxu1 %v7190_v6  ;;  %v7217_v43 = vcombine.low %v274_v12, %v278_v13 }
 0x323   :  { %5498 = vmatprep.mubr.bf16.mxu0 %v7194_v9 }
 0x324   :  { %8107 = vst [vmem:[%s10905_s2 + $0x8] sm:$0xff] %v5780_v14   ;;  %v6421_v18 = vunpack.c.l.bf16 %v5780_v14  ;;  %v6422_v19 = vunpack.c.h.bf16 %v5780_v14  ;;  %v4194_v20 = vpop.f32.mrb[8].mxu1 }
 0x325   :  { %v5284_v23 = vpop.f32.mrb[8].mxu0  ;;  %v4196_v24 = vpop.f32.mrb[9].mxu1 }
 0x326   :  { %v6548_v29 = vadd.f32 %v6547_v17, %v6421_v18  ;;  %v6683_v0 = vmul.f32 %v6421_v18, %v6421_v18  ;;  %v8174_v30 = vadd.f32 %v5284_v23, %v4194_v20  ;;  %v5286_v31 = vpop.f32.mrb[9].mxu0  ;;  %v4197_v32 = vpop.f32.mrb[10].mxu1  ;;  %v6684_v37 = vmul.f32 %v6422_v19, %v6422_v19 }
 0x327   :  { %v5287_v33 = vpop.f32.mrb[10].mxu0  ;;  %v4199_v34 = vpop.f32.mrb[11].mxu1  ;;  %v7209_v17 = vcombine.low %v266_v48, %v270_v49  ;;  %v7214_v23 = vcombine.high %v272_v7, %v276_v8 }
 0x328   :  { %v6549_v36 = vadd.f32 %v6548_v29, %v6422_v19  ;;  %v6810_v38 = vadd.f32 %v6809_v28, %v6683_v0  ;;  %v8175_v39 = vadd.f32 %v5287_v33, %v4197_v32  ;;  %v5289_v40 = vpop.f32.mrb[11].mxu0  ;;  %v280_v33 = vld [vmem:[%s10904_s0 + $0x848] sm:$0xff] }
 0x329   :  { %4409 = vmatmul.mubr.bf16.gmra.mrb[116].mxu1 %v7189_v25  ;;  %v284_v34 = vld [vmem:[%s10904_s0 + $0x868] sm:$0xff] }
 0x32a   :  { %v6811_v41 = vadd.f32 %v6810_v38, %v6684_v37  ;;  %v5781_v42 = vpack.c.bf16 %v8175_v39, %v8174_v30  ;;  %5499 = vmatmul.mubr.bf16.gmra.mrb[116].mxu0 %v7193_v26  ;;  %4416 = vmatprep.mubr.bf16.mxu1 %v7198_v27  ;;  %v7218_v26 = vcombine.high %v274_v12, %v278_v13  ;;  %v282_v38 = vld [vmem:[%s10904_s0 + $0x858] sm:$0xff] }
 0x32b   :  { %5506 = vmatprep.mubr.bf16.mxu0 %v7202_v35  ;;  %v286_v39 = vld [vmem:[%s10904_s0 + $0x878] sm:$0xff]  ;;  %v7222_v49 = vcombine.high %v280_v33, %v284_v34 }
 0x32c   :  { %8108 = vst [vmem:[%s10905_s2 + $0x10] sm:$0xff] %v5781_v42   ;;  %v6423_v45 = vunpack.c.l.bf16 %v5781_v42  ;;  %v6424_v46 = vunpack.c.h.bf16 %v5781_v42  ;;  %v4202_v47 = vpop.f32.mrb[12].mxu1  ;;  %v7213_v42 = vcombine.low %v272_v7, %v276_v8  ;;  %v7225_v7 = vcombine.low %v282_v38, %v286_v39 }
 0x32d   :  { %v5292_v50 = vpop.f32.mrb[12].mxu0  ;;  %v4204_v51 = vpop.f32.mrb[13].mxu1 }
 0x32e   :  { %v6550_v54 = vadd.f32 %v6549_v36, %v6423_v45  ;;  %v6685_v55 = vmul.f32 %v6423_v45, %v6423_v45  ;;  %v8176_v56 = vadd.f32 %v5292_v50, %v4202_v47  ;;  %v5294_v57 = vpop.f32.mrb[13].mxu0  ;;  %v4205_v58 = vpop.f32.mrb[14].mxu1  ;;  %v6686_v1 = vmul.f32 %v6424_v46, %v6424_v46 }
 0x32f   :  { %v5295_v60 = vpop.f32.mrb[14].mxu0  ;;  %v4207_v61 = vpop.f32.mrb[15].mxu1 }
 0x330   :  { %v6551_v63 = vadd.f32 %v6550_v54, %v6424_v46  ;;  %v6812_v2 = vadd.f32 %v6811_v41, %v6685_v55  ;;  %v8177_v3 = vadd.f32 %v5295_v60, %v4205_v58  ;;  %v5297_v4 = vpop.f32.mrb[15].mxu0  ;;  %v288_v60 = vld [vmem:[%s10904_s0 + $0x888] sm:$0xff] }
 0x331   :  { %4417 = vmatmul.mubr.bf16.gmra.mrb[120].mxu1 %v7197_v52  ;;  %v7226_v52 = vcombine.high %v282_v38, %v286_v39  ;;  %v292_v61 = vld [vmem:[%s10904_s0 + $0x8a8] sm:$0xff] }
 0x332   :  { %v6813_v5 = vadd.f32 %v6812_v2, %v6686_v1  ;;  %v5782_v6 = vpack.c.bf16 %v8177_v3, %v8176_v56  ;;  %5507 = vmatmul.mubr.bf16.gmra.mrb[120].mxu0 %v7201_v53  ;;  %4424 = vmatprep.mubr.bf16.mxu1 %v7206_v59  ;;  %v290_v2 = vld [vmem:[%s10904_s0 + $0x898] sm:$0xff]  ;;  %v7230_v13 = vcombine.high %v288_v60, %v292_v61 }
 0x333   :  { %5514 = vmatprep.mubr.bf16.mxu0 %v7210_v62  ;;  %v294_v3 = vld [vmem:[%s10904_s0 + $0x8b8] sm:$0xff] }
 0x334   :  { %8109 = vst [vmem:[%s10905_s2 + $0x18] sm:$0xff] %v5782_v6   ;;  %v6425_v9 = vunpack.c.l.bf16 %v5782_v6  ;;  %v6426_v10 = vunpack.c.h.bf16 %v5782_v6  ;;  %v4210_v11 = vpop.f32.mrb[16].mxu1  ;;  %v7221_v6 = vcombine.low %v280_v33, %v284_v34  ;;  %v7233_v33 = vcombine.low %v290_v2, %v294_v3 }
 0x335   :  { %v5300_v14 = vpop.f32.mrb[16].mxu0  ;;  %v4212_v15 = vpop.f32.mrb[17].mxu1 }
 0x336   :  { %v6552_v18 = vadd.f32 %v6551_v63, %v6425_v9  ;;  %v6687_v19 = vmul.f32 %v6425_v9, %v6425_v9  ;;  %v8178_v20 = vadd.f32 %v5300_v14, %v4210_v11  ;;  %v5302_v21 = vpop.f32.mrb[17].mxu0  ;;  %v4213_v22 = vpop.f32.mrb[18].mxu1  ;;  %v6688_v28 = vmul.f32 %v6426_v10, %v6426_v10 }
 0x337   :  { %v5303_v24 = vpop.f32.mrb[18].mxu0  ;;  %v4215_v25 = vpop.f32.mrb[19].mxu1 }
 0x338   :  { %v6553_v27 = vadd.f32 %v6552_v18, %v6426_v10  ;;  %v6814_v29 = vadd.f32 %v6813_v5, %v6687_v19  ;;  %v8179_v0 = vadd.f32 %v5303_v24, %v4213_v22  ;;  %v5305_v30 = vpop.f32.mrb[19].mxu0  ;;  %v296_v24 = vld [vmem:[%s10904_s0 + $0x8c8] sm:$0xff] }
 0x339   :  { %4425 = vmatmul.mubr.bf16.gmra.mrb[124].mxu1 %v7205_v16  ;;  %v7234_v16 = vcombine.high %v290_v2, %v294_v3  ;;  %v300_v25 = vld [vmem:[%s10904_s0 + $0x8e8] sm:$0xff] }
 0x33a   :  { %v6815_v31 = vadd.f32 %v6814_v29, %v6688_v28  ;;  %v5783_v32 = vpack.c.bf16 %v8179_v0, %v8178_v20  ;;  %5515 = vmatmul.mubr.bf16.gmra.mrb[124].mxu0 %v7209_v17  ;;  %4432 = vmatprep.mubr.bf16.mxu1 %v7214_v23  ;;  %v298_v29 = vld [vmem:[%s10904_s0 + $0x8d8] sm:$0xff]  ;;  %v7238_v39 = vcombine.high %v296_v24, %v300_v25 }
 0x33b   :  { %5522 = vmatprep.mubr.bf16.mxu0 %v7218_v26  ;;  %v302_v0 = vld [vmem:[%s10904_s0 + $0x8f8] sm:$0xff] }
 0x33c   :  { %8110 = vst [vmem:[%s10905_s2 + $0x20] sm:$0xff] %v5783_v32   ;;  %v6427_v35 = vunpack.c.l.bf16 %v5783_v32  ;;  %v6428_v36 = vunpack.c.h.bf16 %v5783_v32  ;;  %v4218_v37 = vpop.f32.mrb[20].mxu1  ;;  %v7229_v32 = vcombine.low %v288_v60, %v292_v61  ;;  %v7241_v60 = vcombine.low %v298_v29, %v302_v0 }
 0x33d   :  { %v5308_v40 = vpop.f32.mrb[20].mxu0  ;;  %v4220_v41 = vpop.f32.mrb[21].mxu1 }
 0x33e   :  { %v6554_v44 = vadd.f32 %v6553_v27, %v6427_v35  ;;  %v6689_v45 = vmul.f32 %v6427_v35, %v6427_v35  ;;  %v8180_v46 = vadd.f32 %v5308_v40, %v4218_v37  ;;  %v5310_v47 = vpop.f32.mrb[21].mxu0  ;;  %v4221_v48 = vpop.f32.mrb[22].mxu1  ;;  %v6690_v54 = vmul.f32 %v6428_v36, %v6428_v36 }
 0x33f   :  { %v5311_v50 = vpop.f32.mrb[22].mxu0  ;;  %v4223_v51 = vpop.f32.mrb[23].mxu1 }
 0x340   :  { %v6555_v53 = vadd.f32 %v6554_v44, %v6428_v36  ;;  %v6816_v55 = vadd.f32 %v6815_v31, %v6689_v45  ;;  %v8181_v56 = vadd.f32 %v5311_v50, %v4221_v48  ;;  %v5313_v57 = vpop.f32.mrb[23].mxu0  ;;  %v304_v50 = vld [vmem:[%s10904_s0 + $0x908] sm:$0xff] }
 0x341   :  { %4433 = vmatmul.mubr.bf16.gmra.mrb[128].mxu1 %v7213_v42  ;;  %v7242_v42 = vcombine.high %v298_v29, %v302_v0  ;;  %v308_v51 = vld [vmem:[%s10904_s0 + $0x928] sm:$0xff] }
 0x342   :  { %v6817_v58 = vadd.f32 %v6816_v55, %v6690_v54  ;;  %v5784_v59 = vpack.c.bf16 %v8181_v56, %v8180_v46  ;;  %5523 = vmatmul.mubr.bf16.gmra.mrb[128].mxu0 %v7217_v43  ;;  %4440 = vmatprep.mubr.bf16.mxu1 %v7222_v49  ;;  %v306_v55 = vld [vmem:[%s10904_s0 + $0x918] sm:$0xff]  ;;  %v7246_v3 = vcombine.high %v304_v50, %v308_v51 }
 0x343   :  { %5530 = vmatprep.mubr.bf16.mxu0 %v7226_v52  ;;  %v310_v56 = vld [vmem:[%s10904_s0 + $0x938] sm:$0xff] }
 0x344   :  { %8111 = vst [vmem:[%s10905_s2 + $0x28] sm:$0xff] %v5784_v59   ;;  %v6429_v62 = vunpack.c.l.bf16 %v5784_v59  ;;  %v6430_v63 = vunpack.c.h.bf16 %v5784_v59  ;;  %v4226_v1 = vpop.f32.mrb[24].mxu1  ;;  %v7237_v59 = vcombine.low %v296_v24, %v300_v25  ;;  %v7249_v24 = vcombine.low %v306_v55, %v310_v56 }
 0x345   :  { %v5316_v4 = vpop.f32.mrb[24].mxu0  ;;  %v4228_v5 = vpop.f32.mrb[25].mxu1 }
 0x346   :  { %v6556_v8 = vadd.f32 %v6555_v53, %v6429_v62  ;;  %v6691_v9 = vmul.f32 %v6429_v62, %v6429_v62  ;;  %v8182_v10 = vadd.f32 %v5316_v4, %v4226_v1  ;;  %v5318_v11 = vpop.f32.mrb[25].mxu0  ;;  %v4229_v12 = vpop.f32.mrb[26].mxu1  ;;  %v6692_v18 = vmul.f32 %v6430_v63, %v6430_v63 }
 0x347   :  { %v5319_v14 = vpop.f32.mrb[26].mxu0  ;;  %v4231_v15 = vpop.f32.mrb[27].mxu1 }
 0x348   :  { %v6557_v17 = vadd.f32 %v6556_v8, %v6430_v63  ;;  %v6818_v19 = vadd.f32 %v6817_v58, %v6691_v9  ;;  %v8183_v20 = vadd.f32 %v5319_v14, %v4229_v12  ;;  %v5321_v21 = vpop.f32.mrb[27].mxu0  ;;  %v312_v14 = vld [vmem:[%s10904_s0 + $0x948] sm:$0xff] }
 0x349   :  { %4441 = vmatmul.mubr.bf16.gmra.mrb[132].mxu1 %v7221_v6  ;;  %v7250_v6 = vcombine.high %v306_v55, %v310_v56  ;;  %v316_v15 = vld [vmem:[%s10904_s0 + $0x968] sm:$0xff] }
 0x34a   :  { %v6819_v22 = vadd.f32 %v6818_v19, %v6692_v18  ;;  %v5785_v23 = vpack.c.bf16 %v8183_v20, %v8182_v10  ;;  %5531 = vmatmul.mubr.bf16.gmra.mrb[132].mxu0 %v7225_v7  ;;  %4448 = vmatprep.mubr.bf16.mxu1 %v7230_v13  ;;  %v314_v19 = vld [vmem:[%s10904_s0 + $0x958] sm:$0xff]  ;;  %v7254_v0 = vcombine.high %v312_v14, %v316_v15 }
 0x34b   :  { %5538 = vmatprep.mubr.bf16.mxu0 %v7234_v16  ;;  %v318_v20 = vld [vmem:[%s10904_s0 + $0x978] sm:$0xff] }
 0x34c   :  { %8112 = vst [vmem:[%s10905_s2 + $0x30] sm:$0xff] %v5785_v23   ;;  %v6431_v26 = vunpack.c.l.bf16 %v5785_v23  ;;  %v6432_v27 = vunpack.c.h.bf16 %v5785_v23  ;;  %v4234_v28 = vpop.f32.mrb[28].mxu1  ;;  %v7245_v23 = vcombine.low %v304_v50, %v308_v51  ;;  %v7257_v50 = vcombine.low %v314_v19, %v318_v20 }
 0x34d   :  { %v5324_v30 = vpop.f32.mrb[28].mxu0  ;;  %v4236_v31 = vpop.f32.mrb[29].mxu1 }
 0x34e   :  { %v6558_v34 = vadd.f32 %v6557_v17, %v6431_v26  ;;  %v6693_v35 = vmul.f32 %v6431_v26, %v6431_v26  ;;  %v8184_v36 = vadd.f32 %v5324_v30, %v4234_v28  ;;  %v5326_v37 = vpop.f32.mrb[29].mxu0  ;;  %v4237_v38 = vpop.f32.mrb[30].mxu1  ;;  %v6694_v44 = vmul.f32 %v6432_v27, %v6432_v27 }
 0x34f   :  { %v5327_v40 = vpop.f32.mrb[30].mxu0  ;;  %v4239_v41 = vpop.f32.mrb[31].mxu1 }
 0x350   :  { %v6559_v43 = vadd.f32 %v6558_v34, %v6432_v27  ;;  %v6820_v45 = vadd.f32 %v6819_v22, %v6693_v35  ;;  %v8185_v46 = vadd.f32 %v5327_v40, %v4237_v38  ;;  %v5329_v47 = vpop.f32.mrb[31].mxu0  ;;  %v320_v40 = vld [vmem:[%s10904_s0 + $0x988] sm:$0xff] }
 0x351   :  { %4449 = vmatmul.mubr.bf16.gmra.mrb[136].mxu1 %v7229_v32  ;;  %v7258_v32 = vcombine.high %v314_v19, %v318_v20  ;;  %v324_v41 = vld [vmem:[%s10904_s0 + $0x9a8] sm:$0xff] }
 0x352   :  { %v6821_v48 = vadd.f32 %v6820_v45, %v6694_v44  ;;  %v5786_v49 = vpack.c.bf16 %v8185_v46, %v8184_v36  ;;  %5539 = vmatmul.mubr.bf16.gmra.mrb[136].mxu0 %v7233_v33  ;;  %4456 = vmatprep.mubr.bf16.mxu1 %v7238_v39  ;;  %v322_v45 = vld [vmem:[%s10904_s0 + $0x998] sm:$0xff]  ;;  %v7262_v56 = vcombine.high %v320_v40, %v324_v41 }
 0x353   :  { %5546 = vmatprep.mubr.bf16.mxu0 %v7242_v42  ;;  %v326_v46 = vld [vmem:[%s10904_s0 + $0x9b8] sm:$0xff] }
 0x354   :  { %8113 = vst [vmem:[%s10905_s2 + $0x38] sm:$0xff] %v5786_v49   ;;  %v6433_v52 = vunpack.c.l.bf16 %v5786_v49  ;;  %v6434_v53 = vunpack.c.h.bf16 %v5786_v49  ;;  %v4242_v54 = vpop.f32.mrb[32].mxu1  ;;  %v7253_v49 = vcombine.low %v312_v14, %v316_v15  ;;  %v7265_v14 = vcombine.low %v322_v45, %v326_v46 }
 0x355   :  { %v5332_v57 = vpop.f32.mrb[32].mxu0  ;;  %v4244_v58 = vpop.f32.mrb[33].mxu1 }
 0x356   :  { %v6560_v61 = vadd.f32 %v6559_v43, %v6433_v52  ;;  %v6695_v62 = vmul.f32 %v6433_v52, %v6433_v52  ;;  %v8186_v63 = vadd.f32 %v5332_v57, %v4242_v54  ;;  %v5334_v1 = vpop.f32.mrb[33].mxu0  ;;  %v4245_v2 = vpop.f32.mrb[34].mxu1  ;;  %v6696_v8 = vmul.f32 %v6434_v53, %v6434_v53 }
 0x357   :  { %v5335_v4 = vpop.f32.mrb[34].mxu0  ;;  %v4247_v5 = vpop.f32.mrb[35].mxu1 }
 0x358   :  { %v6561_v7 = vadd.f32 %v6560_v61, %v6434_v53  ;;  %v6822_v9 = vadd.f32 %v6821_v48, %v6695_v62  ;;  %v8187_v10 = vadd.f32 %v5335_v4, %v4245_v2  ;;  %v5337_v11 = vpop.f32.mrb[35].mxu0  ;;  %v328_v4 = vld [vmem:[%s10904_s0 + $0x9c8] sm:$0xff] }
 0x359   :  { %4457 = vmatmul.mubr.bf16.gmra.mrb[140].mxu1 %v7237_v59  ;;  %v7266_v59 = vcombine.high %v322_v45, %v326_v46  ;;  %v332_v5 = vld [vmem:[%s10904_s0 + $0x9e8] sm:$0xff] }
 0x35a   :  { %v6823_v12 = vadd.f32 %v6822_v9, %v6696_v8  ;;  %v5787_v13 = vpack.c.bf16 %v8187_v10, %v8186_v63  ;;  %5547 = vmatmul.mubr.bf16.gmra.mrb[140].mxu0 %v7241_v60  ;;  %4464 = vmatprep.mubr.bf16.mxu1 %v7246_v3  ;;  %v330_v9 = vld [vmem:[%s10904_s0 + $0x9d8] sm:$0xff]  ;;  %v7270_v20 = vcombine.high %v328_v4, %v332_v5 }
 0x35b   :  { %5554 = vmatprep.mubr.bf16.mxu0 %v7250_v6  ;;  %v334_v10 = vld [vmem:[%s10904_s0 + $0x9f8] sm:$0xff] }
 0x35c   :  { %8114 = vst [vmem:[%s10905_s2 + $0x40] sm:$0xff] %v5787_v13   ;;  %v6435_v16 = vunpack.c.l.bf16 %v5787_v13  ;;  %v6436_v17 = vunpack.c.h.bf16 %v5787_v13  ;;  %v4250_v18 = vpop.f32.mrb[36].mxu1  ;;  %v7261_v13 = vcombine.low %v320_v40, %v324_v41  ;;  %v7273_v40 = vcombine.low %v330_v9, %v334_v10 }
 0x35d   :  { %v5340_v21 = vpop.f32.mrb[36].mxu0  ;;  %v4252_v22 = vpop.f32.mrb[37].mxu1 }
 0x35e   :  { %v6562_v25 = vadd.f32 %v6561_v7, %v6435_v16  ;;  %v6697_v26 = vmul.f32 %v6435_v16, %v6435_v16  ;;  %v8188_v27 = vadd.f32 %v5340_v21, %v4250_v18  ;;  %v5342_v28 = vpop.f32.mrb[37].mxu0  ;;  %v4253_v29 = vpop.f32.mrb[38].mxu1  ;;  %v6698_v34 = vmul.f32 %v6436_v17, %v6436_v17 }
 0x35f   :  { %v5343_v30 = vpop.f32.mrb[38].mxu0  ;;  %v4255_v31 = vpop.f32.mrb[39].mxu1 }
 0x360   :  { %v6563_v33 = vadd.f32 %v6562_v25, %v6436_v17  ;;  %v6824_v35 = vadd.f32 %v6823_v12, %v6697_v26  ;;  %v8189_v36 = vadd.f32 %v5343_v30, %v4253_v29  ;;  %v5345_v37 = vpop.f32.mrb[39].mxu0  ;;  %v336_v30 = vld [vmem:[%s10904_s0 + $0xa08] sm:$0xff] }
 0x361   :  { %4465 = vmatmul.mubr.bf16.gmra.mrb[144].mxu1 %v7245_v23  ;;  %v7274_v23 = vcombine.high %v330_v9, %v334_v10  ;;  %v340_v31 = vld [vmem:[%s10904_s0 + $0xa28] sm:$0xff] }
 0x362   :  { %v6825_v38 = vadd.f32 %v6824_v35, %v6698_v34  ;;  %v5788_v39 = vpack.c.bf16 %v8189_v36, %v8188_v27  ;;  %5555 = vmatmul.mubr.bf16.gmra.mrb[144].mxu0 %v7249_v24  ;;  %4472 = vmatprep.mubr.bf16.mxu1 %v7254_v0  ;;  %v338_v35 = vld [vmem:[%s10904_s0 + $0xa18] sm:$0xff]  ;;  %v7278_v46 = vcombine.high %v336_v30, %v340_v31 }
 0x363   :  { %5562 = vmatprep.mubr.bf16.mxu0 %v7258_v32  ;;  %v342_v36 = vld [vmem:[%s10904_s0 + $0xa38] sm:$0xff] }
 0x364   :  { %8115 = vst [vmem:[%s10905_s2 + $0x48] sm:$0xff] %v5788_v39   ;;  %v6437_v42 = vunpack.c.l.bf16 %v5788_v39  ;;  %v6438_v43 = vunpack.c.h.bf16 %v5788_v39  ;;  %v4258_v44 = vpop.f32.mrb[40].mxu1  ;;  %v7269_v39 = vcombine.low %v328_v4, %v332_v5  ;;  %v7281_v4 = vcombine.low %v338_v35, %v342_v36 }
 0x365   :  { %v5348_v47 = vpop.f32.mrb[40].mxu0  ;;  %v4260_v48 = vpop.f32.mrb[41].mxu1 }
 0x366   :  { %v6564_v51 = vadd.f32 %v6563_v33, %v6437_v42  ;;  %v6699_v52 = vmul.f32 %v6437_v42, %v6437_v42  ;;  %v8190_v53 = vadd.f32 %v5348_v47, %v4258_v44  ;;  %v5350_v54 = vpop.f32.mrb[41].mxu0  ;;  %v4261_v55 = vpop.f32.mrb[42].mxu1  ;;  %v6700_v61 = vmul.f32 %v6438_v43, %v6438_v43 }
 0x367   :  { %v5351_v57 = vpop.f32.mrb[42].mxu0  ;;  %v4263_v58 = vpop.f32.mrb[43].mxu1 }
 0x368   :  { %v6565_v60 = vadd.f32 %v6564_v51, %v6438_v43  ;;  %v6826_v62 = vadd.f32 %v6825_v38, %v6699_v52  ;;  %v8191_v63 = vadd.f32 %v5351_v57, %v4261_v55  ;;  %v5353_v1 = vpop.f32.mrb[43].mxu0  ;;  %v344_v57 = vld [vmem:[%s10904_s0 + $0xa48] sm:$0xff] }
 0x369   :  { %4473 = vmatmul.mubr.bf16.gmra.mrb[148].mxu1 %v7253_v49  ;;  %v7282_v49 = vcombine.high %v338_v35, %v342_v36  ;;  %v348_v58 = vld [vmem:[%s10904_s0 + $0xa68] sm:$0xff] }
 0x36a   :  { %v6827_v2 = vadd.f32 %v6826_v62, %v6700_v61  ;;  %v5789_v3 = vpack.c.bf16 %v8191_v63, %v8190_v53  ;;  %5563 = vmatmul.mubr.bf16.gmra.mrb[148].mxu0 %v7257_v50  ;;  %4480 = vmatprep.mubr.bf16.mxu1 %v7262_v56  ;;  %v346_v62 = vld [vmem:[%s10904_s0 + $0xa58] sm:$0xff]  ;;  %v7286_v10 = vcombine.high %v344_v57, %v348_v58 }
 0x36b   :  { %5570 = vmatprep.mubr.bf16.mxu0 %v7266_v59  ;;  %v350_v63 = vld [vmem:[%s10904_s0 + $0xa78] sm:$0xff] }
 0x36c   :  { %8116 = vst [vmem:[%s10905_s2 + $0x50] sm:$0xff] %v5789_v3   ;;  %v6439_v6 = vunpack.c.l.bf16 %v5789_v3  ;;  %v6440_v7 = vunpack.c.h.bf16 %v5789_v3  ;;  %v4266_v8 = vpop.f32.mrb[44].mxu1  ;;  %v7277_v3 = vcombine.low %v336_v30, %v340_v31  ;;  %v7289_v30 = vcombine.low %v346_v62, %v350_v63 }
 0x36d   :  { %v5356_v11 = vpop.f32.mrb[44].mxu0  ;;  %v4268_v12 = vpop.f32.mrb[45].mxu1 }
 0x36e   :  { %v6566_v15 = vadd.f32 %v6565_v60, %v6439_v6  ;;  %v6701_v16 = vmul.f32 %v6439_v6, %v6439_v6  ;;  %v8192_v17 = vadd.f32 %v5356_v11, %v4266_v8  ;;  %v5358_v18 = vpop.f32.mrb[45].mxu0  ;;  %v4269_v19 = vpop.f32.mrb[46].mxu1  ;;  %v6702_v25 = vmul.f32 %v6440_v7, %v6440_v7 }
 0x36f   :  { %v5359_v21 = vpop.f32.mrb[46].mxu0  ;;  %v4271_v22 = vpop.f32.mrb[47].mxu1 }
 0x370   :  { %v6567_v24 = vadd.f32 %v6566_v15, %v6440_v7  ;;  %v6828_v26 = vadd.f32 %v6827_v2, %v6701_v16  ;;  %v8193_v27 = vadd.f32 %v5359_v21, %v4269_v19  ;;  %v5361_v28 = vpop.f32.mrb[47].mxu0  ;;  %v352_v21 = vld [vmem:[%s10904_s0 + $0xa88] sm:$0xff] }
 0x371   :  { %4481 = vmatmul.mubr.bf16.gmra.mrb[152].mxu1 %v7261_v13  ;;  %v7290_v13 = vcombine.high %v346_v62, %v350_v63  ;;  %v356_v22 = vld [vmem:[%s10904_s0 + $0xaa8] sm:$0xff] }
 0x372   :  { %v6829_v29 = vadd.f32 %v6828_v26, %v6702_v25  ;;  %v5790_v0 = vpack.c.bf16 %v8193_v27, %v8192_v17  ;;  %5571 = vmatmul.mubr.bf16.gmra.mrb[152].mxu0 %v7265_v14  ;;  %4488 = vmatprep.mubr.bf16.mxu1 %v7270_v20  ;;  %v354_v26 = vld [vmem:[%s10904_s0 + $0xa98] sm:$0xff]  ;;  %v7294_v36 = vcombine.high %v352_v21, %v356_v22 }
 0x373   :  { %5578 = vmatprep.mubr.bf16.mxu0 %v7274_v23  ;;  %v358_v27 = vld [vmem:[%s10904_s0 + $0xab8] sm:$0xff] }
 0x374   :  { %8117 = vst [vmem:[%s10905_s2 + $0x58] sm:$0xff] %v5790_v0   ;;  %v6441_v32 = vunpack.c.l.bf16 %v5790_v0  ;;  %v6442_v33 = vunpack.c.h.bf16 %v5790_v0  ;;  %v4274_v34 = vpop.f32.mrb[48].mxu1  ;;  %v7285_v0 = vcombine.low %v344_v57, %v348_v58  ;;  %v7297_v57 = vcombine.low %v354_v26, %v358_v27 }
 0x375   :  { %v5364_v37 = vpop.f32.mrb[48].mxu0  ;;  %v4276_v38 = vpop.f32.mrb[49].mxu1 }
 0x376   :  { %v6568_v41 = vadd.f32 %v6567_v24, %v6441_v32  ;;  %v6703_v42 = vmul.f32 %v6441_v32, %v6441_v32  ;;  %v8194_v43 = vadd.f32 %v5364_v37, %v4274_v34  ;;  %v5366_v44 = vpop.f32.mrb[49].mxu0  ;;  %v4277_v45 = vpop.f32.mrb[50].mxu1  ;;  %v6704_v51 = vmul.f32 %v6442_v33, %v6442_v33 }
 0x377   :  { %v5367_v47 = vpop.f32.mrb[50].mxu0  ;;  %v4279_v48 = vpop.f32.mrb[51].mxu1 }
 0x378   :  { %v6569_v50 = vadd.f32 %v6568_v41, %v6442_v33  ;;  %v6830_v52 = vadd.f32 %v6829_v29, %v6703_v42  ;;  %v8195_v53 = vadd.f32 %v5367_v47, %v4277_v45  ;;  %v5369_v54 = vpop.f32.mrb[51].mxu0  ;;  %v360_v47 = vld [vmem:[%s10904_s0 + $0xac8] sm:$0xff] }
 0x379   :  { %4489 = vmatmul.mubr.bf16.gmra.mrb[156].mxu1 %v7269_v39  ;;  %v7298_v39 = vcombine.high %v354_v26, %v358_v27  ;;  %v364_v48 = vld [vmem:[%s10904_s0 + $0xae8] sm:$0xff] }
 0x37a   :  { %v6831_v55 = vadd.f32 %v6830_v52, %v6704_v51  ;;  %v5791_v56 = vpack.c.bf16 %v8195_v53, %v8194_v43  ;;  %5579 = vmatmul.mubr.bf16.gmra.mrb[156].mxu0 %v7273_v40  ;;  %4496 = vmatprep.mubr.bf16.mxu1 %v7278_v46  ;;  %v362_v52 = vld [vmem:[%s10904_s0 + $0xad8] sm:$0xff]  ;;  %v7302_v63 = vcombine.high %v360_v47, %v364_v48 }
 0x37b   :  { %5586 = vmatprep.mubr.bf16.mxu0 %v7282_v49  ;;  %v366_v53 = vld [vmem:[%s10904_s0 + $0xaf8] sm:$0xff] }
 0x37c   :  { %8118 = vst [vmem:[%s10905_s2 + $0x60] sm:$0xff] %v5791_v56   ;;  %v6443_v59 = vunpack.c.l.bf16 %v5791_v56  ;;  %v6444_v60 = vunpack.c.h.bf16 %v5791_v56  ;;  %v4282_v61 = vpop.f32.mrb[52].mxu1  ;;  %v7293_v56 = vcombine.low %v352_v21, %v356_v22  ;;  %v7305_v21 = vcombine.low %v362_v52, %v366_v53 }
 0x37d   :  { %v5372_v1 = vpop.f32.mrb[52].mxu0  ;;  %v4284_v2 = vpop.f32.mrb[53].mxu1 }
 0x37e   :  { %v6570_v5 = vadd.f32 %v6569_v50, %v6443_v59  ;;  %v6705_v6 = vmul.f32 %v6443_v59, %v6443_v59  ;;  %v8196_v7 = vadd.f32 %v5372_v1, %v4282_v61  ;;  %v5374_v8 = vpop.f32.mrb[53].mxu0  ;;  %v4285_v9 = vpop.f32.mrb[54].mxu1  ;;  %v6706_v15 = vmul.f32 %v6444_v60, %v6444_v60 }
 0x37f   :  { %v5375_v11 = vpop.f32.mrb[54].mxu0  ;;  %v4287_v12 = vpop.f32.mrb[55].mxu1 }
 0x380   :  { %v6571_v14 = vadd.f32 %v6570_v5, %v6444_v60  ;;  %v6832_v16 = vadd.f32 %v6831_v55, %v6705_v6  ;;  %v8197_v17 = vadd.f32 %v5375_v11, %v4285_v9  ;;  %v5377_v18 = vpop.f32.mrb[55].mxu0  ;;  %v368_v11 = vld [vmem:[%s10904_s0 + $0xb08] sm:$0xff] }
 0x381   :  { %4497 = vmatmul.mubr.bf16.gmra.mrb[160].mxu1 %v7277_v3  ;;  %v7306_v3 = vcombine.high %v362_v52, %v366_v53  ;;  %v372_v12 = vld [vmem:[%s10904_s0 + $0xb28] sm:$0xff] }
 0x382   :  { %v6833_v19 = vadd.f32 %v6832_v16, %v6706_v15  ;;  %v5792_v20 = vpack.c.bf16 %v8197_v17, %v8196_v7  ;;  %5587 = vmatmul.mubr.bf16.gmra.mrb[160].mxu0 %v7281_v4  ;;  %4504 = vmatprep.mubr.bf16.mxu1 %v7286_v10  ;;  %v370_v16 = vld [vmem:[%s10904_s0 + $0xb18] sm:$0xff]  ;;  %v7310_v27 = vcombine.high %v368_v11, %v372_v12 }
 0x383   :  { %5594 = vmatprep.mubr.bf16.mxu0 %v7290_v13  ;;  %v374_v17 = vld [vmem:[%s10904_s0 + $0xb38] sm:$0xff] }
 0x384   :  { %8119 = vst [vmem:[%s10905_s2 + $0x68] sm:$0xff] %v5792_v20   ;;  %v6445_v23 = vunpack.c.l.bf16 %v5792_v20  ;;  %v6446_v24 = vunpack.c.h.bf16 %v5792_v20  ;;  %v4290_v25 = vpop.f32.mrb[56].mxu1  ;;  %v7301_v20 = vcombine.low %v360_v47, %v364_v48  ;;  %v7313_v47 = vcombine.low %v370_v16, %v374_v17 }
 0x385   :  { %v5380_v28 = vpop.f32.mrb[56].mxu0  ;;  %v4292_v29 = vpop.f32.mrb[57].mxu1 }
 0x386   :  { %v6572_v31 = vadd.f32 %v6571_v14, %v6445_v23  ;;  %v6707_v32 = vmul.f32 %v6445_v23, %v6445_v23  ;;  %v8198_v33 = vadd.f32 %v5380_v28, %v4290_v25  ;;  %v5382_v34 = vpop.f32.mrb[57].mxu0  ;;  %v4293_v35 = vpop.f32.mrb[58].mxu1  ;;  %v6708_v41 = vmul.f32 %v6446_v24, %v6446_v24 }
 0x387   :  { %v5383_v37 = vpop.f32.mrb[58].mxu0  ;;  %v4295_v38 = vpop.f32.mrb[59].mxu1 }
 0x388   :  { %v6573_v40 = vadd.f32 %v6572_v31, %v6446_v24  ;;  %v6834_v42 = vadd.f32 %v6833_v19, %v6707_v32  ;;  %v8199_v43 = vadd.f32 %v5383_v37, %v4293_v35  ;;  %v5385_v44 = vpop.f32.mrb[59].mxu0  ;;  %v376_v37 = vld [vmem:[%s10904_s0 + $0xb48] sm:$0xff] }
 0x389   :  { %4505 = vmatmul.mubr.bf16.gmra.mrb[164].mxu1 %v7285_v0  ;;  %v7314_v0 = vcombine.high %v370_v16, %v374_v17  ;;  %v380_v38 = vld [vmem:[%s10904_s0 + $0xb68] sm:$0xff] }
 0x38a   :  { %v6835_v45 = vadd.f32 %v6834_v42, %v6708_v41  ;;  %v5793_v46 = vpack.c.bf16 %v8199_v43, %v8198_v33  ;;  %5595 = vmatmul.mubr.bf16.gmra.mrb[164].mxu0 %v7289_v30  ;;  %4512 = vmatprep.mubr.bf16.mxu1 %v7294_v36  ;;  %v378_v42 = vld [vmem:[%s10904_s0 + $0xb58] sm:$0xff]  ;;  %v7318_v53 = vcombine.high %v376_v37, %v380_v38 }
 0x38b   :  { %5602 = vmatprep.mubr.bf16.mxu0 %v7298_v39  ;;  %v382_v43 = vld [vmem:[%s10904_s0 + $0xb78] sm:$0xff] }
 0x38c   :  { %8120 = vst [vmem:[%s10905_s2 + $0x70] sm:$0xff] %v5793_v46   ;;  %v6447_v49 = vunpack.c.l.bf16 %v5793_v46  ;;  %v6448_v50 = vunpack.c.h.bf16 %v5793_v46  ;;  %v4298_v51 = vpop.f32.mrb[60].mxu1  ;;  %v7309_v46 = vcombine.low %v368_v11, %v372_v12  ;;  %v7321_v11 = vcombine.low %v378_v42, %v382_v43 }
 0x38d   :  { %v5388_v54 = vpop.f32.mrb[60].mxu0  ;;  %v4300_v55 = vpop.f32.mrb[61].mxu1 }
 0x38e   :  { %v6574_v58 = vadd.f32 %v6573_v40, %v6447_v49  ;;  %v6709_v59 = vmul.f32 %v6447_v49, %v6447_v49  ;;  %v8200_v60 = vadd.f32 %v5388_v54, %v4298_v51  ;;  %v5390_v61 = vpop.f32.mrb[61].mxu0  ;;  %v4301_v62 = vpop.f32.mrb[62].mxu1  ;;  %v6710_v5 = vmul.f32 %v6448_v50, %v6448_v50 }
 0x38f   :  { %v5391_v1 = vpop.f32.mrb[62].mxu0  ;;  %v4303_v2 = vpop.f32.mrb[63].mxu1 }
 0x390   :  { %v6575_v4 = vadd.f32 %v6574_v58, %v6448_v50  ;;  %v6836_v6 = vadd.f32 %v6835_v45, %v6709_v59  ;;  %v8201_v7 = vadd.f32 %v5391_v1, %v4301_v62  ;;  %v5393_v8 = vpop.f32.mrb[63].mxu0  ;;  %v384_v1 = vld [vmem:[%s10904_s0 + $0xb88] sm:$0xff] }
 0x391   :  { %4513 = vmatmul.mubr.bf16.gmra.mrb[168].mxu1 %v7293_v56  ;;  %v7322_v56 = vcombine.high %v378_v42, %v382_v43  ;;  %v388_v2 = vld [vmem:[%s10904_s0 + $0xba8] sm:$0xff] }
 0x392   :  { %v6837_v9 = vadd.f32 %v6836_v6, %v6710_v5  ;;  %v5794_v10 = vpack.c.bf16 %v8201_v7, %v8200_v60  ;;  %5603 = vmatmul.mubr.bf16.gmra.mrb[168].mxu0 %v7297_v57  ;;  %4520 = vmatprep.mubr.bf16.mxu1 %v7302_v63  ;;  %v386_v6 = vld [vmem:[%s10904_s0 + $0xb98] sm:$0xff]  ;;  %v7326_v17 = vcombine.high %v384_v1, %v388_v2 }
 0x393   :  { %5610 = vmatprep.mubr.bf16.mxu0 %v7306_v3  ;;  %v390_v7 = vld [vmem:[%s10904_s0 + $0xbb8] sm:$0xff] }
 0x394   :  { %8121 = vst [vmem:[%s10905_s2 + $0x78] sm:$0xff] %v5794_v10   ;;  %v6449_v13 = vunpack.c.l.bf16 %v5794_v10  ;;  %v6450_v14 = vunpack.c.h.bf16 %v5794_v10  ;;  %v4306_v15 = vpop.f32.mrb[64].mxu1  ;;  %v7317_v10 = vcombine.low %v376_v37, %v380_v38  ;;  %v7329_v37 = vcombine.low %v386_v6, %v390_v7 }
 0x395   :  { %v5396_v18 = vpop.f32.mrb[64].mxu0  ;;  %v4308_v19 = vpop.f32.mrb[65].mxu1 }
 0x396   :  { %v6576_v22 = vadd.f32 %v6575_v4, %v6449_v13  ;;  %v6711_v23 = vmul.f32 %v6449_v13, %v6449_v13  ;;  %v8202_v24 = vadd.f32 %v5396_v18, %v4306_v15  ;;  %v5398_v25 = vpop.f32.mrb[65].mxu0  ;;  %v4309_v26 = vpop.f32.mrb[66].mxu1  ;;  %v6712_v31 = vmul.f32 %v6450_v14, %v6450_v14 }
 0x397   :  { %v5399_v28 = vpop.f32.mrb[66].mxu0  ;;  %v4311_v29 = vpop.f32.mrb[67].mxu1 }
 0x398   :  { %v6577_v30 = vadd.f32 %v6576_v22, %v6450_v14  ;;  %v6838_v32 = vadd.f32 %v6837_v9, %v6711_v23  ;;  %v8203_v33 = vadd.f32 %v5399_v28, %v4309_v26  ;;  %v5401_v34 = vpop.f32.mrb[67].mxu0  ;;  %v392_v28 = vld [vmem:[%s10904_s0 + $0xbc8] sm:$0xff] }
 0x399   :  { %4521 = vmatmul.mubr.bf16.gmra.mrb[172].mxu1 %v7301_v20  ;;  %v7330_v20 = vcombine.high %v386_v6, %v390_v7  ;;  %v396_v29 = vld [vmem:[%s10904_s0 + $0xbe8] sm:$0xff] }
 0x39a   :  { %v6839_v35 = vadd.f32 %v6838_v32, %v6712_v31  ;;  %v5795_v36 = vpack.c.bf16 %v8203_v33, %v8202_v24  ;;  %5611 = vmatmul.mubr.bf16.gmra.mrb[172].mxu0 %v7305_v21  ;;  %4528 = vmatprep.mubr.bf16.mxu1 %v7310_v27  ;;  %v394_v32 = vld [vmem:[%s10904_s0 + $0xbd8] sm:$0xff]  ;;  %v7334_v43 = vcombine.high %v392_v28, %v396_v29 }
 0x39b   :  { %5618 = vmatprep.mubr.bf16.mxu0 %v7314_v0  ;;  %v398_v33 = vld [vmem:[%s10904_s0 + $0xbf8] sm:$0xff] }
 0x39c   :  { %8122 = vst [vmem:[%s10905_s2 + $0x80] sm:$0xff] %v5795_v36   ;;  %v6451_v39 = vunpack.c.l.bf16 %v5795_v36  ;;  %v6452_v40 = vunpack.c.h.bf16 %v5795_v36  ;;  %v4314_v41 = vpop.f32.mrb[68].mxu1  ;;  %v7325_v36 = vcombine.low %v384_v1, %v388_v2  ;;  %v7337_v1 = vcombine.low %v394_v32, %v398_v33 }
 0x39d   :  { %v5404_v44 = vpop.f32.mrb[68].mxu0  ;;  %v4316_v45 = vpop.f32.mrb[69].mxu1 }
 0x39e   :  { %v6578_v48 = vadd.f32 %v6577_v30, %v6451_v39  ;;  %v6713_v49 = vmul.f32 %v6451_v39, %v6451_v39  ;;  %v8204_v50 = vadd.f32 %v5404_v44, %v4314_v41  ;;  %v5406_v51 = vpop.f32.mrb[69].mxu0  ;;  %v4317_v52 = vpop.f32.mrb[70].mxu1  ;;  %v6714_v58 = vmul.f32 %v6452_v40, %v6452_v40 }
 0x39f   :  { %v5407_v54 = vpop.f32.mrb[70].mxu0  ;;  %v4319_v55 = vpop.f32.mrb[71].mxu1 }
 0x3a0   :  { %v6579_v57 = vadd.f32 %v6578_v48, %v6452_v40  ;;  %v6840_v59 = vadd.f32 %v6839_v35, %v6713_v49  ;;  %v8205_v60 = vadd.f32 %v5407_v54, %v4317_v52  ;;  %v5409_v61 = vpop.f32.mrb[71].mxu0  ;;  %v400_v54 = vld [vmem:[%s10904_s0 + $0xc08] sm:$0xff] }
 0x3a1   :  { %4529 = vmatmul.mubr.bf16.gmra.mrb[176].mxu1 %v7309_v46  ;;  %v7338_v46 = vcombine.high %v394_v32, %v398_v33  ;;  %v404_v55 = vld [vmem:[%s10904_s0 + $0xc28] sm:$0xff] }
 0x3a2   :  { %v6841_v62 = vadd.f32 %v6840_v59, %v6714_v58  ;;  %v5796_v63 = vpack.c.bf16 %v8205_v60, %v8204_v50  ;;  %5619 = vmatmul.mubr.bf16.gmra.mrb[176].mxu0 %v7313_v47  ;;  %4536 = vmatprep.mubr.bf16.mxu1 %v7318_v53  ;;  %v402_v59 = vld [vmem:[%s10904_s0 + $0xc18] sm:$0xff]  ;;  %v7342_v7 = vcombine.high %v400_v54, %v404_v55 }
 0x3a3   :  { %5626 = vmatprep.mubr.bf16.mxu0 %v7322_v56  ;;  %v406_v60 = vld [vmem:[%s10904_s0 + $0xc38] sm:$0xff] }
 0x3a4   :  { %8123 = vst [vmem:[%s10905_s2 + $0x88] sm:$0xff] %v5796_v63   ;;  %v6453_v3 = vunpack.c.l.bf16 %v5796_v63  ;;  %v6454_v4 = vunpack.c.h.bf16 %v5796_v63  ;;  %v4322_v5 = vpop.f32.mrb[72].mxu1  ;;  %v7333_v63 = vcombine.low %v392_v28, %v396_v29  ;;  %v7345_v28 = vcombine.low %v402_v59, %v406_v60 }
 0x3a5   :  { %v5412_v8 = vpop.f32.mrb[72].mxu0  ;;  %v4324_v9 = vpop.f32.mrb[73].mxu1 }
 0x3a6   :  { %v6580_v12 = vadd.f32 %v6579_v57, %v6453_v3  ;;  %v6715_v13 = vmul.f32 %v6453_v3, %v6453_v3  ;;  %v8206_v14 = vadd.f32 %v5412_v8, %v4322_v5  ;;  %v5414_v15 = vpop.f32.mrb[73].mxu0  ;;  %v4325_v16 = vpop.f32.mrb[74].mxu1  ;;  %v6716_v22 = vmul.f32 %v6454_v4, %v6454_v4 }
 0x3a7   :  { %v5415_v18 = vpop.f32.mrb[74].mxu0  ;;  %v4327_v19 = vpop.f32.mrb[75].mxu1 }
 0x3a8   :  { %v6581_v21 = vadd.f32 %v6580_v12, %v6454_v4  ;;  %v6842_v23 = vadd.f32 %v6841_v62, %v6715_v13  ;;  %v8207_v24 = vadd.f32 %v5415_v18, %v4325_v16  ;;  %v5417_v25 = vpop.f32.mrb[75].mxu0  ;;  %v408_v18 = vld [vmem:[%s10904_s0 + $0xc48] sm:$0xff] }
 0x3a9   :  { %4537 = vmatmul.mubr.bf16.gmra.mrb[180].mxu1 %v7317_v10  ;;  %v7346_v10 = vcombine.high %v402_v59, %v406_v60  ;;  %v412_v19 = vld [vmem:[%s10904_s0 + $0xc68] sm:$0xff] }
 0x3aa   :  { %v6843_v26 = vadd.f32 %v6842_v23, %v6716_v22  ;;  %v5797_v27 = vpack.c.bf16 %v8207_v24, %v8206_v14  ;;  %5627 = vmatmul.mubr.bf16.gmra.mrb[180].mxu0 %v7321_v11  ;;  %4544 = vmatprep.mubr.bf16.mxu1 %v7326_v17  ;;  %v410_v23 = vld [vmem:[%s10904_s0 + $0xc58] sm:$0xff]  ;;  %v7350_v33 = vcombine.high %v408_v18, %v412_v19 }
 0x3ab   :  { %5634 = vmatprep.mubr.bf16.mxu0 %v7330_v20  ;;  %v414_v24 = vld [vmem:[%s10904_s0 + $0xc78] sm:$0xff] }
 0x3ac   :  { %8124 = vst [vmem:[%s10905_s2 + $0x90] sm:$0xff] %v5797_v27   ;;  %v6455_v0 = vunpack.c.l.bf16 %v5797_v27  ;;  %v6456_v30 = vunpack.c.h.bf16 %v5797_v27  ;;  %v4330_v31 = vpop.f32.mrb[76].mxu1  ;;  %v7341_v27 = vcombine.low %v400_v54, %v404_v55  ;;  %v7353_v54 = vcombine.low %v410_v23, %v414_v24 }
 0x3ad   :  { %v5420_v34 = vpop.f32.mrb[76].mxu0  ;;  %v4332_v35 = vpop.f32.mrb[77].mxu1 }
 0x3ae   :  { %v6582_v38 = vadd.f32 %v6581_v21, %v6455_v0  ;;  %v6717_v39 = vmul.f32 %v6455_v0, %v6455_v0  ;;  %v8208_v40 = vadd.f32 %v5420_v34, %v4330_v31  ;;  %v5422_v41 = vpop.f32.mrb[77].mxu0  ;;  %v4333_v42 = vpop.f32.mrb[78].mxu1  ;;  %v6718_v48 = vmul.f32 %v6456_v30, %v6456_v30 }
 0x3af   :  { %v5423_v44 = vpop.f32.mrb[78].mxu0  ;;  %v4335_v45 = vpop.f32.mrb[79].mxu1 }
 0x3b0   :  { %v6583_v47 = vadd.f32 %v6582_v38, %v6456_v30  ;;  %v6844_v49 = vadd.f32 %v6843_v26, %v6717_v39  ;;  %v8209_v50 = vadd.f32 %v5423_v44, %v4333_v42  ;;  %v5425_v51 = vpop.f32.mrb[79].mxu0  ;;  %v416_v44 = vld [vmem:[%s10904_s0 + $0xc88] sm:$0xff] }
 0x3b1   :  { %4545 = vmatmul.mubr.bf16.gmra.mrb[184].mxu1 %v7325_v36  ;;  %v7354_v36 = vcombine.high %v410_v23, %v414_v24  ;;  %v420_v45 = vld [vmem:[%s10904_s0 + $0xca8] sm:$0xff] }
 0x3b2   :  { %v6845_v52 = vadd.f32 %v6844_v49, %v6718_v48  ;;  %v5798_v53 = vpack.c.bf16 %v8209_v50, %v8208_v40  ;;  %5635 = vmatmul.mubr.bf16.gmra.mrb[184].mxu0 %v7329_v37  ;;  %4552 = vmatprep.mubr.bf16.mxu1 %v7334_v43  ;;  %v418_v49 = vld [vmem:[%s10904_s0 + $0xc98] sm:$0xff]  ;;  %v7358_v60 = vcombine.high %v416_v44, %v420_v45 }
 0x3b3   :  { %5642 = vmatprep.mubr.bf16.mxu0 %v7338_v46  ;;  %v422_v50 = vld [vmem:[%s10904_s0 + $0xcb8] sm:$0xff] }
 0x3b4   :  { %8125 = vst [vmem:[%s10905_s2 + $0x98] sm:$0xff] %v5798_v53   ;;  %v6457_v56 = vunpack.c.l.bf16 %v5798_v53  ;;  %v6458_v57 = vunpack.c.h.bf16 %v5798_v53  ;;  %v4338_v58 = vpop.f32.mrb[80].mxu1  ;;  %v7349_v53 = vcombine.low %v408_v18, %v412_v19  ;;  %v7361_v18 = vcombine.low %v418_v49, %v422_v50 }
 0x3b5   :  { %v5428_v61 = vpop.f32.mrb[80].mxu0  ;;  %v4340_v62 = vpop.f32.mrb[81].mxu1 }
 0x3b6   :  { %v6584_v2 = vadd.f32 %v6583_v47, %v6457_v56  ;;  %v6719_v3 = vmul.f32 %v6457_v56, %v6457_v56  ;;  %v8210_v4 = vadd.f32 %v5428_v61, %v4338_v58  ;;  %v5430_v5 = vpop.f32.mrb[81].mxu0  ;;  %v4341_v6 = vpop.f32.mrb[82].mxu1  ;;  %v6720_v12 = vmul.f32 %v6458_v57, %v6458_v57 }
 0x3b7   :  { %v5431_v8 = vpop.f32.mrb[82].mxu0  ;;  %v4343_v9 = vpop.f32.mrb[83].mxu1 }
 0x3b8   :  { %v6585_v11 = vadd.f32 %v6584_v2, %v6458_v57  ;;  %v6846_v13 = vadd.f32 %v6845_v52, %v6719_v3  ;;  %v8211_v14 = vadd.f32 %v5431_v8, %v4341_v6  ;;  %v5433_v15 = vpop.f32.mrb[83].mxu0  ;;  %v424_v8 = vld [vmem:[%s10904_s0 + $0xcc8] sm:$0xff] }
 0x3b9   :  { %4553 = vmatmul.mubr.bf16.gmra.mrb[188].mxu1 %v7333_v63  ;;  %v7362_v63 = vcombine.high %v418_v49, %v422_v50  ;;  %v428_v9 = vld [vmem:[%s10904_s0 + $0xce8] sm:$0xff] }
 0x3ba   :  { %v6847_v16 = vadd.f32 %v6846_v13, %v6720_v12  ;;  %v5799_v17 = vpack.c.bf16 %v8211_v14, %v8210_v4  ;;  %5643 = vmatmul.mubr.bf16.gmra.mrb[188].mxu0 %v7337_v1  ;;  %4560 = vmatprep.mubr.bf16.mxu1 %v7342_v7  ;;  %v426_v13 = vld [vmem:[%s10904_s0 + $0xcd8] sm:$0xff]  ;;  %v7366_v24 = vcombine.high %v424_v8, %v428_v9 }
 0x3bb   :  { %5650 = vmatprep.mubr.bf16.mxu0 %v7346_v10  ;;  %v430_v14 = vld [vmem:[%s10904_s0 + $0xcf8] sm:$0xff] }
 0x3bc   :  { %8126 = vst [vmem:[%s10905_s2 + $0xa0] sm:$0xff] %v5799_v17   ;;  %v6459_v20 = vunpack.c.l.bf16 %v5799_v17  ;;  %v6460_v21 = vunpack.c.h.bf16 %v5799_v17  ;;  %v4346_v22 = vpop.f32.mrb[84].mxu1  ;;  %v7357_v17 = vcombine.low %v416_v44, %v420_v45  ;;  %v7369_v44 = vcombine.low %v426_v13, %v430_v14 }
 0x3bd   :  { %v5436_v25 = vpop.f32.mrb[84].mxu0  ;;  %v4348_v26 = vpop.f32.mrb[85].mxu1 }
 0x3be   :  { %v6586_v29 = vadd.f32 %v6585_v11, %v6459_v20  ;;  %v6721_v0 = vmul.f32 %v6459_v20, %v6459_v20  ;;  %v8212_v30 = vadd.f32 %v5436_v25, %v4346_v22  ;;  %v5438_v31 = vpop.f32.mrb[85].mxu0  ;;  %v4349_v32 = vpop.f32.mrb[86].mxu1  ;;  %v6722_v38 = vmul.f32 %v6460_v21, %v6460_v21 }
 0x3bf   :  { %v5439_v34 = vpop.f32.mrb[86].mxu0  ;;  %v4351_v35 = vpop.f32.mrb[87].mxu1 }
 0x3c0   :  { %v6587_v37 = vadd.f32 %v6586_v29, %v6460_v21  ;;  %v6848_v39 = vadd.f32 %v6847_v16, %v6721_v0  ;;  %v8213_v40 = vadd.f32 %v5439_v34, %v4349_v32  ;;  %v5441_v41 = vpop.f32.mrb[87].mxu0  ;;  %v432_v34 = vld [vmem:[%s10904_s0 + $0xd08] sm:$0xff] }
 0x3c1   :  { %4561 = vmatmul.mubr.bf16.gmra.mrb[192].mxu1 %v7341_v27  ;;  %v7370_v27 = vcombine.high %v426_v13, %v430_v14  ;;  %v436_v35 = vld [vmem:[%s10904_s0 + $0xd28] sm:$0xff] }
 0x3c2   :  { %v6849_v42 = vadd.f32 %v6848_v39, %v6722_v38  ;;  %v5800_v43 = vpack.c.bf16 %v8213_v40, %v8212_v30  ;;  %5651 = vmatmul.mubr.bf16.gmra.mrb[192].mxu0 %v7345_v28  ;;  %4568 = vmatprep.mubr.bf16.mxu1 %v7350_v33  ;;  %v434_v39 = vld [vmem:[%s10904_s0 + $0xd18] sm:$0xff]  ;;  %v7374_v50 = vcombine.high %v432_v34, %v436_v35 }
 0x3c3   :  { %5658 = vmatprep.mubr.bf16.mxu0 %v7354_v36  ;;  %v438_v40 = vld [vmem:[%s10904_s0 + $0xd38] sm:$0xff] }
 0x3c4   :  { %8127 = vst [vmem:[%s10905_s2 + $0xa8] sm:$0xff] %v5800_v43   ;;  %v6461_v46 = vunpack.c.l.bf16 %v5800_v43  ;;  %v6462_v47 = vunpack.c.h.bf16 %v5800_v43  ;;  %v4354_v48 = vpop.f32.mrb[88].mxu1  ;;  %v7365_v43 = vcombine.low %v424_v8, %v428_v9  ;;  %v7377_v8 = vcombine.low %v434_v39, %v438_v40 }
 0x3c5   :  { %v5444_v51 = vpop.f32.mrb[88].mxu0  ;;  %v4356_v52 = vpop.f32.mrb[89].mxu1 }
 0x3c6   :  { %v6588_v55 = vadd.f32 %v6587_v37, %v6461_v46  ;;  %v6723_v56 = vmul.f32 %v6461_v46, %v6461_v46  ;;  %v8214_v57 = vadd.f32 %v5444_v51, %v4354_v48  ;;  %v5446_v58 = vpop.f32.mrb[89].mxu0  ;;  %v4357_v59 = vpop.f32.mrb[90].mxu1  ;;  %v6724_v2 = vmul.f32 %v6462_v47, %v6462_v47 }
 0x3c7   :  { %v5447_v61 = vpop.f32.mrb[90].mxu0  ;;  %v4359_v62 = vpop.f32.mrb[91].mxu1 }
 0x3c8   :  { %v6589_v1 = vadd.f32 %v6588_v55, %v6462_v47  ;;  %v6850_v3 = vadd.f32 %v6849_v42, %v6723_v56  ;;  %v8215_v4 = vadd.f32 %v5447_v61, %v4357_v59  ;;  %v5449_v5 = vpop.f32.mrb[91].mxu0  ;;  %v440_v61 = vld [vmem:[%s10904_s0 + $0xd48] sm:$0xff] }
 0x3c9   :  { %4569 = vmatmul.mubr.bf16.gmra.mrb[196].mxu1 %v7349_v53  ;;  %v7378_v53 = vcombine.high %v434_v39, %v438_v40  ;;  %v444_v62 = vld [vmem:[%s10904_s0 + $0xd68] sm:$0xff] }
 0x3ca   :  { %v6851_v6 = vadd.f32 %v6850_v3, %v6724_v2  ;;  %v5801_v7 = vpack.c.bf16 %v8215_v4, %v8214_v57  ;;  %5659 = vmatmul.mubr.bf16.gmra.mrb[196].mxu0 %v7353_v54  ;;  %4576 = vmatprep.mubr.bf16.mxu1 %v7358_v60  ;;  %v442_v3 = vld [vmem:[%s10904_s0 + $0xd58] sm:$0xff]  ;;  %v7382_v14 = vcombine.high %v440_v61, %v444_v62 }
 0x3cb   :  { %5666 = vmatprep.mubr.bf16.mxu0 %v7362_v63  ;;  %v446_v4 = vld [vmem:[%s10904_s0 + $0xd78] sm:$0xff] }
 0x3cc   :  { %8128 = vst [vmem:[%s10905_s2 + $0xb0] sm:$0xff] %v5801_v7   ;;  %v6463_v10 = vunpack.c.l.bf16 %v5801_v7  ;;  %v6464_v11 = vunpack.c.h.bf16 %v5801_v7  ;;  %v4362_v12 = vpop.f32.mrb[92].mxu1  ;;  %v7373_v7 = vcombine.low %v432_v34, %v436_v35  ;;  %v7385_v34 = vcombine.low %v442_v3, %v446_v4 }
 0x3cd   :  { %v5452_v15 = vpop.f32.mrb[92].mxu0  ;;  %v4364_v16 = vpop.f32.mrb[93].mxu1 }
 0x3ce   :  { %v6590_v19 = vadd.f32 %v6589_v1, %v6463_v10  ;;  %v6725_v20 = vmul.f32 %v6463_v10, %v6463_v10  ;;  %v8216_v21 = vadd.f32 %v5452_v15, %v4362_v12  ;;  %v5454_v22 = vpop.f32.mrb[93].mxu0  ;;  %v4365_v23 = vpop.f32.mrb[94].mxu1  ;;  %v6726_v29 = vmul.f32 %v6464_v11, %v6464_v11 }
 0x3cf   :  { %v5455_v25 = vpop.f32.mrb[94].mxu0  ;;  %v4367_v26 = vpop.f32.mrb[95].mxu1 }
 0x3d0   :  { %v6591_v28 = vadd.f32 %v6590_v19, %v6464_v11  ;;  %v6852_v0 = vadd.f32 %v6851_v6, %v6725_v20  ;;  %v8217_v30 = vadd.f32 %v5455_v25, %v4365_v23  ;;  %v5457_v31 = vpop.f32.mrb[95].mxu0  ;;  %v448_v25 = vld [vmem:[%s10904_s0 + $0xd88] sm:$0xff] }
 0x3d1   :  { %4577 = vmatmul.mubr.bf16.gmra.mrb[200].mxu1 %v7357_v17  ;;  %v7386_v17 = vcombine.high %v442_v3, %v446_v4  ;;  %v452_v26 = vld [vmem:[%s10904_s0 + $0xda8] sm:$0xff] }
 0x3d2   :  { %v6853_v32 = vadd.f32 %v6852_v0, %v6726_v29  ;;  %v5802_v33 = vpack.c.bf16 %v8217_v30, %v8216_v21  ;;  %5667 = vmatmul.mubr.bf16.gmra.mrb[200].mxu0 %v7361_v18  ;;  %4584 = vmatprep.mubr.bf16.mxu1 %v7366_v24  ;;  %v450_v0 = vld [vmem:[%s10904_s0 + $0xd98] sm:$0xff]  ;;  %v7390_v40 = vcombine.high %v448_v25, %v452_v26 }
 0x3d3   :  { %5674 = vmatprep.mubr.bf16.mxu0 %v7370_v27  ;;  %v454_v30 = vld [vmem:[%s10904_s0 + $0xdb8] sm:$0xff] }
 0x3d4   :  { %8129 = vst [vmem:[%s10905_s2 + $0xb8] sm:$0xff] %v5802_v33   ;;  %v6465_v36 = vunpack.c.l.bf16 %v5802_v33  ;;  %v6466_v37 = vunpack.c.h.bf16 %v5802_v33  ;;  %v4370_v38 = vpop.f32.mrb[96].mxu1  ;;  %v7381_v33 = vcombine.low %v440_v61, %v444_v62  ;;  %v7393_v61 = vcombine.low %v450_v0, %v454_v30 }
 0x3d5   :  { %v5460_v41 = vpop.f32.mrb[96].mxu0  ;;  %v4372_v42 = vpop.f32.mrb[97].mxu1 }
 0x3d6   :  { %v6592_v45 = vadd.f32 %v6591_v28, %v6465_v36  ;;  %v6727_v46 = vmul.f32 %v6465_v36, %v6465_v36  ;;  %v8218_v47 = vadd.f32 %v5460_v41, %v4370_v38  ;;  %v5462_v48 = vpop.f32.mrb[97].mxu0  ;;  %v4373_v49 = vpop.f32.mrb[98].mxu1  ;;  %v6728_v55 = vmul.f32 %v6466_v37, %v6466_v37 }
 0x3d7   :  { %v5463_v51 = vpop.f32.mrb[98].mxu0  ;;  %v4375_v52 = vpop.f32.mrb[99].mxu1 }
 0x3d8   :  { %v6593_v54 = vadd.f32 %v6592_v45, %v6466_v37  ;;  %v6854_v56 = vadd.f32 %v6853_v32, %v6727_v46  ;;  %v8219_v57 = vadd.f32 %v5463_v51, %v4373_v49  ;;  %v5465_v58 = vpop.f32.mrb[99].mxu0  ;;  %v456_v51 = vld [vmem:[%s10904_s0 + $0xdc8] sm:$0xff] }
 0x3d9   :  { %4585 = vmatmul.mubr.bf16.gmra.mrb[204].mxu1 %v7365_v43  ;;  %v7394_v43 = vcombine.high %v450_v0, %v454_v30  ;;  %v460_v52 = vld [vmem:[%s10904_s0 + $0xde8] sm:$0xff] }
 0x3da   :  { %v6855_v59 = vadd.f32 %v6854_v56, %v6728_v55  ;;  %v5803_v60 = vpack.c.bf16 %v8219_v57, %v8218_v47  ;;  %5675 = vmatmul.mubr.bf16.gmra.mrb[204].mxu0 %v7369_v44  ;;  %4592 = vmatprep.mubr.bf16.mxu1 %v7374_v50  ;;  %v458_v56 = vld [vmem:[%s10904_s0 + $0xdd8] sm:$0xff]  ;;  %v7398_v4 = vcombine.high %v456_v51, %v460_v52 }
 0x3db   :  { %5682 = vmatprep.mubr.bf16.mxu0 %v7378_v53  ;;  %v462_v57 = vld [vmem:[%s10904_s0 + $0xdf8] sm:$0xff] }
 0x3dc   :  { %8130 = vst [vmem:[%s10905_s2 + $0xc0] sm:$0xff] %v5803_v60   ;;  %v6467_v63 = vunpack.c.l.bf16 %v5803_v60  ;;  %v6468_v1 = vunpack.c.h.bf16 %v5803_v60  ;;  %v4378_v2 = vpop.f32.mrb[100].mxu1  ;;  %v7389_v60 = vcombine.low %v448_v25, %v452_v26  ;;  %v7401_v25 = vcombine.low %v458_v56, %v462_v57 }
 0x3dd   :  { %v5468_v5 = vpop.f32.mrb[100].mxu0  ;;  %v4380_v6 = vpop.f32.mrb[101].mxu1 }
 0x3de   :  { %v6594_v9 = vadd.f32 %v6593_v54, %v6467_v63  ;;  %v6729_v10 = vmul.f32 %v6467_v63, %v6467_v63  ;;  %v8220_v11 = vadd.f32 %v5468_v5, %v4378_v2  ;;  %v5470_v12 = vpop.f32.mrb[101].mxu0  ;;  %v4381_v13 = vpop.f32.mrb[102].mxu1  ;;  %v6730_v19 = vmul.f32 %v6468_v1, %v6468_v1 }
 0x3df   :  { %v5471_v15 = vpop.f32.mrb[102].mxu0  ;;  %v4383_v16 = vpop.f32.mrb[103].mxu1 }
 0x3e0   :  { %v6595_v18 = vadd.f32 %v6594_v9, %v6468_v1  ;;  %v6856_v20 = vadd.f32 %v6855_v59, %v6729_v10  ;;  %v8221_v21 = vadd.f32 %v5471_v15, %v4381_v13  ;;  %v5473_v22 = vpop.f32.mrb[103].mxu0  ;;  %v464_v15 = vld [vmem:[%s10904_s0 + $0xe08] sm:$0xff] }
 0x3e1   :  { %4593 = vmatmul.mubr.bf16.gmra.mrb[208].mxu1 %v7373_v7  ;;  %v7402_v7 = vcombine.high %v458_v56, %v462_v57  ;;  %v468_v16 = vld [vmem:[%s10904_s0 + $0xe28] sm:$0xff] }
 0x3e2   :  { %v6857_v23 = vadd.f32 %v6856_v20, %v6730_v19  ;;  %v5804_v24 = vpack.c.bf16 %v8221_v21, %v8220_v11  ;;  %5683 = vmatmul.mubr.bf16.gmra.mrb[208].mxu0 %v7377_v8  ;;  %4600 = vmatprep.mubr.bf16.mxu1 %v7382_v14  ;;  %v466_v20 = vld [vmem:[%s10904_s0 + $0xe18] sm:$0xff]  ;;  %v7406_v30 = vcombine.high %v464_v15, %v468_v16 }
 0x3e3   :  { %5690 = vmatprep.mubr.bf16.mxu0 %v7386_v17  ;;  %v470_v21 = vld [vmem:[%s10904_s0 + $0xe38] sm:$0xff] }
 0x3e4   :  { %8131 = vst [vmem:[%s10905_s2 + $0xc8] sm:$0xff] %v5804_v24   ;;  %v6469_v27 = vunpack.c.l.bf16 %v5804_v24  ;;  %v6470_v28 = vunpack.c.h.bf16 %v5804_v24  ;;  %v4386_v29 = vpop.f32.mrb[104].mxu1  ;;  %v7397_v24 = vcombine.low %v456_v51, %v460_v52  ;;  %v7409_v51 = vcombine.low %v466_v20, %v470_v21 }
 0x3e5   :  { %v5476_v31 = vpop.f32.mrb[104].mxu0  ;;  %v4388_v32 = vpop.f32.mrb[105].mxu1 }
 0x3e6   :  { %v6596_v35 = vadd.f32 %v6595_v18, %v6469_v27  ;;  %v6731_v36 = vmul.f32 %v6469_v27, %v6469_v27  ;;  %v8222_v37 = vadd.f32 %v5476_v31, %v4386_v29  ;;  %v5478_v38 = vpop.f32.mrb[105].mxu0  ;;  %v4389_v39 = vpop.f32.mrb[106].mxu1  ;;  %v6732_v45 = vmul.f32 %v6470_v28, %v6470_v28 }
 0x3e7   :  { %v5479_v41 = vpop.f32.mrb[106].mxu0  ;;  %v4391_v42 = vpop.f32.mrb[107].mxu1 }
 0x3e8   :  { %v6597_v44 = vadd.f32 %v6596_v35, %v6470_v28  ;;  %v6858_v46 = vadd.f32 %v6857_v23, %v6731_v36  ;;  %v8223_v47 = vadd.f32 %v5479_v41, %v4389_v39  ;;  %v5481_v48 = vpop.f32.mrb[107].mxu0  ;;  %v472_v41 = vld [vmem:[%s10904_s0 + $0xe48] sm:$0xff] }
 0x3e9   :  { %4601 = vmatmul.mubr.bf16.gmra.mrb[212].mxu1 %v7381_v33  ;;  %v7410_v33 = vcombine.high %v466_v20, %v470_v21  ;;  %v476_v42 = vld [vmem:[%s10904_s0 + $0xe68] sm:$0xff] }
 0x3ea   :  { %v6859_v49 = vadd.f32 %v6858_v46, %v6732_v45  ;;  %v5805_v50 = vpack.c.bf16 %v8223_v47, %v8222_v37  ;;  %5691 = vmatmul.mubr.bf16.gmra.mrb[212].mxu0 %v7385_v34  ;;  %4608 = vmatprep.mubr.bf16.mxu1 %v7390_v40  ;;  %v474_v46 = vld [vmem:[%s10904_s0 + $0xe58] sm:$0xff]  ;;  %v7414_v57 = vcombine.high %v472_v41, %v476_v42 }
 0x3eb   :  { %5698 = vmatprep.mubr.bf16.mxu0 %v7394_v43  ;;  %v478_v47 = vld [vmem:[%s10904_s0 + $0xe78] sm:$0xff] }
 0x3ec   :  { %8132 = vst [vmem:[%s10905_s2 + $0xd0] sm:$0xff] %v5805_v50   ;;  %v6471_v53 = vunpack.c.l.bf16 %v5805_v50  ;;  %v6472_v54 = vunpack.c.h.bf16 %v5805_v50  ;;  %v4394_v55 = vpop.f32.mrb[108].mxu1  ;;  %v7405_v50 = vcombine.low %v464_v15, %v468_v16  ;;  %v7417_v15 = vcombine.low %v474_v46, %v478_v47 }
 0x3ed   :  { %v5484_v58 = vpop.f32.mrb[108].mxu0  ;;  %v4396_v59 = vpop.f32.mrb[109].mxu1 }
 0x3ee   :  { %v6598_v62 = vadd.f32 %v6597_v44, %v6471_v53  ;;  %v6733_v63 = vmul.f32 %v6471_v53, %v6471_v53  ;;  %v8224_v1 = vadd.f32 %v5484_v58, %v4394_v55  ;;  %v5486_v2 = vpop.f32.mrb[109].mxu0  ;;  %v4397_v3 = vpop.f32.mrb[110].mxu1  ;;  %v6734_v9 = vmul.f32 %v6472_v54, %v6472_v54 }
 0x3ef   :  { %v5487_v5 = vpop.f32.mrb[110].mxu0  ;;  %v4399_v6 = vpop.f32.mrb[111].mxu1 }
 0x3f0   :  { %v6599_v8 = vadd.f32 %v6598_v62, %v6472_v54  ;;  %v6860_v10 = vadd.f32 %v6859_v49, %v6733_v63  ;;  %v8225_v11 = vadd.f32 %v5487_v5, %v4397_v3  ;;  %v5489_v12 = vpop.f32.mrb[111].mxu0  ;;  %v480_v5 = vld [vmem:[%s10904_s0 + $0xe88] sm:$0xff] }
 0x3f1   :  { %4609 = vmatmul.mubr.bf16.gmra.mrb[216].mxu1 %v7389_v60  ;;  %v7418_v60 = vcombine.high %v474_v46, %v478_v47  ;;  %v484_v6 = vld [vmem:[%s10904_s0 + $0xea8] sm:$0xff] }
 0x3f2   :  { %v6861_v13 = vadd.f32 %v6860_v10, %v6734_v9  ;;  %v5806_v14 = vpack.c.bf16 %v8225_v11, %v8224_v1  ;;  %5699 = vmatmul.mubr.bf16.gmra.mrb[216].mxu0 %v7393_v61  ;;  %4616 = vmatprep.mubr.bf16.mxu1 %v7398_v4  ;;  %v482_v10 = vld [vmem:[%s10904_s0 + $0xe98] sm:$0xff]  ;;  %v7422_v21 = vcombine.high %v480_v5, %v484_v6 }
 0x3f3   :  { %5706 = vmatprep.mubr.bf16.mxu0 %v7402_v7  ;;  %v486_v11 = vld [vmem:[%s10904_s0 + $0xeb8] sm:$0xff] }
 0x3f4   :  { %8133 = vst [vmem:[%s10905_s2 + $0xd8] sm:$0xff] %v5806_v14   ;;  %v6473_v17 = vunpack.c.l.bf16 %v5806_v14  ;;  %v6474_v18 = vunpack.c.h.bf16 %v5806_v14  ;;  %v4402_v19 = vpop.f32.mrb[112].mxu1  ;;  %v7413_v14 = vcombine.low %v472_v41, %v476_v42  ;;  %v7425_v41 = vcombine.low %v482_v10, %v486_v11 }
 0x3f5   :  { %v5492_v22 = vpop.f32.mrb[112].mxu0  ;;  %v4404_v23 = vpop.f32.mrb[113].mxu1 }
 0x3f6   :  { %v6600_v26 = vadd.f32 %v6599_v8, %v6473_v17  ;;  %v6735_v27 = vmul.f32 %v6473_v17, %v6473_v17  ;;  %v8226_v28 = vadd.f32 %v5492_v22, %v4402_v19  ;;  %v5494_v29 = vpop.f32.mrb[113].mxu0  ;;  %v4405_v0 = vpop.f32.mrb[114].mxu1  ;;  %v6736_v35 = vmul.f32 %v6474_v18, %v6474_v18 }
 0x3f7   :  { %v5495_v31 = vpop.f32.mrb[114].mxu0  ;;  %v4407_v32 = vpop.f32.mrb[115].mxu1 }
 0x3f8   :  { %v6601_v34 = vadd.f32 %v6600_v26, %v6474_v18  ;;  %v6862_v36 = vadd.f32 %v6861_v13, %v6735_v27  ;;  %v8227_v37 = vadd.f32 %v5495_v31, %v4405_v0  ;;  %v5497_v38 = vpop.f32.mrb[115].mxu0  ;;  %v488_v31 = vld [vmem:[%s10904_s0 + $0xec8] sm:$0xff] }
 0x3f9   :  { %4617 = vmatmul.mubr.bf16.gmra.mrb[220].mxu1 %v7397_v24  ;;  %v7426_v24 = vcombine.high %v482_v10, %v486_v11  ;;  %v492_v32 = vld [vmem:[%s10904_s0 + $0xee8] sm:$0xff] }
 0x3fa   :  { %v6863_v39 = vadd.f32 %v6862_v36, %v6736_v35  ;;  %v5807_v40 = vpack.c.bf16 %v8227_v37, %v8226_v28  ;;  %5707 = vmatmul.mubr.bf16.gmra.mrb[220].mxu0 %v7401_v25  ;;  %4624 = vmatprep.mubr.bf16.mxu1 %v7406_v30  ;;  %v490_v36 = vld [vmem:[%s10904_s0 + $0xed8] sm:$0xff]  ;;  %v7430_v47 = vcombine.high %v488_v31, %v492_v32 }
 0x3fb   :  { %5714 = vmatprep.mubr.bf16.mxu0 %v7410_v33  ;;  %v494_v37 = vld [vmem:[%s10904_s0 + $0xef8] sm:$0xff] }
 0x3fc   :  { %8134 = vst [vmem:[%s10905_s2 + $0xe0] sm:$0xff] %v5807_v40   ;;  %v6475_v43 = vunpack.c.l.bf16 %v5807_v40  ;;  %v6476_v44 = vunpack.c.h.bf16 %v5807_v40  ;;  %v4410_v45 = vpop.f32.mrb[116].mxu1  ;;  %v7421_v40 = vcombine.low %v480_v5, %v484_v6  ;;  %v7433_v5 = vcombine.low %v490_v36, %v494_v37 }
 0x3fd   :  { %v5500_v48 = vpop.f32.mrb[116].mxu0  ;;  %v4412_v49 = vpop.f32.mrb[117].mxu1 }
 0x3fe   :  { %v6602_v52 = vadd.f32 %v6601_v34, %v6475_v43  ;;  %v6737_v53 = vmul.f32 %v6475_v43, %v6475_v43  ;;  %v8228_v54 = vadd.f32 %v5500_v48, %v4410_v45  ;;  %v5502_v55 = vpop.f32.mrb[117].mxu0  ;;  %v4413_v56 = vpop.f32.mrb[118].mxu1  ;;  %v6738_v62 = vmul.f32 %v6476_v44, %v6476_v44 }
 0x3ff   :  { %v5503_v58 = vpop.f32.mrb[118].mxu0  ;;  %v4415_v59 = vpop.f32.mrb[119].mxu1 }
 0x400   :  { %v6603_v61 = vadd.f32 %v6602_v52, %v6476_v44  ;;  %v6864_v63 = vadd.f32 %v6863_v39, %v6737_v53  ;;  %v8229_v1 = vadd.f32 %v5503_v58, %v4413_v56  ;;  %v5505_v2 = vpop.f32.mrb[119].mxu0  ;;  %v496_v58 = vld [vmem:[%s10904_s0 + $0xf08] sm:$0xff] }
 0x401   :  { %4625 = vmatmul.mubr.bf16.gmra.mrb[224].mxu1 %v7405_v50  ;;  %v7434_v50 = vcombine.high %v490_v36, %v494_v37  ;;  %v500_v59 = vld [vmem:[%s10904_s0 + $0xf28] sm:$0xff] }
 0x402   :  { %v6865_v3 = vadd.f32 %v6864_v63, %v6738_v62  ;;  %v5808_v4 = vpack.c.bf16 %v8229_v1, %v8228_v54  ;;  %5715 = vmatmul.mubr.bf16.gmra.mrb[224].mxu0 %v7409_v51  ;;  %4632 = vmatprep.mubr.bf16.mxu1 %v7414_v57  ;;  %v498_v63 = vld [vmem:[%s10904_s0 + $0xf18] sm:$0xff]  ;;  %v7438_v11 = vcombine.high %v496_v58, %v500_v59 }
 0x403   :  { %5722 = vmatprep.mubr.bf16.mxu0 %v7418_v60  ;;  %v502_v1 = vld [vmem:[%s10904_s0 + $0xf38] sm:$0xff] }
 0x404   :  { %8135 = vst [vmem:[%s10905_s2 + $0xe8] sm:$0xff] %v5808_v4   ;;  %v6477_v7 = vunpack.c.l.bf16 %v5808_v4  ;;  %v6478_v8 = vunpack.c.h.bf16 %v5808_v4  ;;  %v4418_v9 = vpop.f32.mrb[120].mxu1  ;;  %v7429_v4 = vcombine.low %v488_v31, %v492_v32  ;;  %v7441_v31 = vcombine.low %v498_v63, %v502_v1 }
 0x405   :  { %v5508_v12 = vpop.f32.mrb[120].mxu0  ;;  %v4420_v13 = vpop.f32.mrb[121].mxu1 }
 0x406   :  { %v6604_v16 = vadd.f32 %v6603_v61, %v6477_v7  ;;  %v6739_v17 = vmul.f32 %v6477_v7, %v6477_v7  ;;  %v8230_v18 = vadd.f32 %v5508_v12, %v4418_v9  ;;  %v5510_v19 = vpop.f32.mrb[121].mxu0  ;;  %v4421_v20 = vpop.f32.mrb[122].mxu1  ;;  %v6740_v26 = vmul.f32 %v6478_v8, %v6478_v8 }
 0x407   :  { %v5511_v22 = vpop.f32.mrb[122].mxu0  ;;  %v4423_v23 = vpop.f32.mrb[123].mxu1 }
 0x408   :  { %v6605_v25 = vadd.f32 %v6604_v16, %v6478_v8  ;;  %v6866_v27 = vadd.f32 %v6865_v3, %v6739_v17  ;;  %v8231_v28 = vadd.f32 %v5511_v22, %v4421_v20  ;;  %v5513_v29 = vpop.f32.mrb[123].mxu0  ;;  %v504_v22 = vld [vmem:[%s10904_s0 + $0xf48] sm:$0xff] }
 0x409   :  { %4633 = vmatmul.mubr.bf16.gmra.mrb[228].mxu1 %v7413_v14  ;;  %v7442_v14 = vcombine.high %v498_v63, %v502_v1  ;;  %v508_v23 = vld [vmem:[%s10904_s0 + $0xf68] sm:$0xff] }
 0x40a   :  { %v6867_v0 = vadd.f32 %v6866_v27, %v6740_v26  ;;  %v5809_v30 = vpack.c.bf16 %v8231_v28, %v8230_v18  ;;  %5723 = vmatmul.mubr.bf16.gmra.mrb[228].mxu0 %v7417_v15  ;;  %4640 = vmatprep.mubr.bf16.mxu1 %v7422_v21  ;;  %v506_v27 = vld [vmem:[%s10904_s0 + $0xf58] sm:$0xff]  ;;  %v7446_v37 = vcombine.high %v504_v22, %v508_v23 }
 0x40b   :  { %5730 = vmatprep.mubr.bf16.mxu0 %v7426_v24  ;;  %v510_v28 = vld [vmem:[%s10904_s0 + $0xf78] sm:$0xff] }
 0x40c   :  { %8136 = vst [vmem:[%s10905_s2 + $0xf0] sm:$0xff] %v5809_v30   ;;  %v6479_v33 = vunpack.c.l.bf16 %v5809_v30  ;;  %v6480_v34 = vunpack.c.h.bf16 %v5809_v30  ;;  %v4426_v35 = vpop.f32.mrb[124].mxu1  ;;  %v7437_v30 = vcombine.low %v496_v58, %v500_v59  ;;  %v7449_v58 = vcombine.low %v506_v27, %v510_v28 }
 0x40d   :  { %v5516_v38 = vpop.f32.mrb[124].mxu0  ;;  %v4428_v39 = vpop.f32.mrb[125].mxu1 }
 0x40e   :  { %v6606_v42 = vadd.f32 %v6605_v25, %v6479_v33  ;;  %v6741_v43 = vmul.f32 %v6479_v33, %v6479_v33  ;;  %v8232_v44 = vadd.f32 %v5516_v38, %v4426_v35  ;;  %v5518_v45 = vpop.f32.mrb[125].mxu0  ;;  %v4429_v46 = vpop.f32.mrb[126].mxu1  ;;  %v6742_v52 = vmul.f32 %v6480_v34, %v6480_v34 }
 0x40f   :  { %v5519_v48 = vpop.f32.mrb[126].mxu0  ;;  %v4431_v49 = vpop.f32.mrb[127].mxu1 }
 0x410   :  { %v6607_v51 = vadd.f32 %v6606_v42, %v6480_v34  ;;  %v6868_v53 = vadd.f32 %v6867_v0, %v6741_v43  ;;  %v8233_v54 = vadd.f32 %v5519_v48, %v4429_v46  ;;  %v5521_v55 = vpop.f32.mrb[127].mxu0  ;;  %v512_v48 = vld [vmem:[%s10904_s0 + $0xf88] sm:$0xff] }
 0x411   :  { %4641 = vmatmul.mubr.bf16.gmra.mrb[232].mxu1 %v7421_v40  ;;  %v7450_v40 = vcombine.high %v506_v27, %v510_v28  ;;  %v516_v49 = vld [vmem:[%s10904_s0 + $0xfa8] sm:$0xff] }
 0x412   :  { %v6869_v56 = vadd.f32 %v6868_v53, %v6742_v52  ;;  %v5810_v57 = vpack.c.bf16 %v8233_v54, %v8232_v44  ;;  %5731 = vmatmul.mubr.bf16.gmra.mrb[232].mxu0 %v7425_v41  ;;  %4648 = vmatprep.mubr.bf16.mxu1 %v7430_v47  ;;  %v514_v53 = vld [vmem:[%s10904_s0 + $0xf98] sm:$0xff]  ;;  %v7454_v1 = vcombine.high %v512_v48, %v516_v49 }
 0x413   :  { %5738 = vmatprep.mubr.bf16.mxu0 %v7434_v50  ;;  %v518_v54 = vld [vmem:[%s10904_s0 + $0xfb8] sm:$0xff] }
 0x414   :  { %8137 = vst [vmem:[%s10905_s2 + $0xf8] sm:$0xff] %v5810_v57   ;;  %v6481_v60 = vunpack.c.l.bf16 %v5810_v57  ;;  %v6482_v61 = vunpack.c.h.bf16 %v5810_v57  ;;  %v4434_v62 = vpop.f32.mrb[128].mxu1  ;;  %v7445_v57 = vcombine.low %v504_v22, %v508_v23  ;;  %v7457_v22 = vcombine.low %v514_v53, %v518_v54 }
 0x415   :  { %v5524_v2 = vpop.f32.mrb[128].mxu0  ;;  %v4436_v3 = vpop.f32.mrb[129].mxu1 }
 0x416   :  { %v6608_v6 = vadd.f32 %v6607_v51, %v6481_v60  ;;  %v6743_v7 = vmul.f32 %v6481_v60, %v6481_v60  ;;  %v8234_v8 = vadd.f32 %v5524_v2, %v4434_v62  ;;  %v5526_v9 = vpop.f32.mrb[129].mxu0  ;;  %v4437_v10 = vpop.f32.mrb[130].mxu1  ;;  %v6744_v16 = vmul.f32 %v6482_v61, %v6482_v61 }
 0x417   :  { %v5527_v12 = vpop.f32.mrb[130].mxu0  ;;  %v4439_v13 = vpop.f32.mrb[131].mxu1 }
 0x418   :  { %v6609_v15 = vadd.f32 %v6608_v6, %v6482_v61  ;;  %v6870_v17 = vadd.f32 %v6869_v56, %v6743_v7  ;;  %v8235_v18 = vadd.f32 %v5527_v12, %v4437_v10  ;;  %v5529_v19 = vpop.f32.mrb[131].mxu0  ;;  %v520_v12 = vld [vmem:[%s10904_s0 + $0xfc8] sm:$0xff] }
 0x419   :  { %4649 = vmatmul.mubr.bf16.gmra.mrb[236].mxu1 %v7429_v4  ;;  %v7458_v4 = vcombine.high %v514_v53, %v518_v54  ;;  %v524_v13 = vld [vmem:[%s10904_s0 + $0xfe8] sm:$0xff] }
 0x41a   :  { %v6871_v20 = vadd.f32 %v6870_v17, %v6744_v16  ;;  %v5811_v21 = vpack.c.bf16 %v8235_v18, %v8234_v8  ;;  %5739 = vmatmul.mubr.bf16.gmra.mrb[236].mxu0 %v7433_v5  ;;  %4656 = vmatprep.mubr.bf16.mxu1 %v7438_v11  ;;  %v522_v17 = vld [vmem:[%s10904_s0 + $0xfd8] sm:$0xff]  ;;  %v7462_v28 = vcombine.high %v520_v12, %v524_v13 }
 0x41b   :  { %5746 = vmatprep.mubr.bf16.mxu0 %v7442_v14  ;;  %v526_v18 = vld [vmem:[%s10904_s0 + $0xff8] sm:$0xff] }
 0x41c   :  { %8138 = vst [vmem:[%s10905_s2 + $0x100] sm:$0xff] %v5811_v21   ;;  %v6483_v24 = vunpack.c.l.bf16 %v5811_v21  ;;  %v6484_v25 = vunpack.c.h.bf16 %v5811_v21  ;;  %v4442_v26 = vpop.f32.mrb[132].mxu1  ;;  %v7453_v21 = vcombine.low %v512_v48, %v516_v49  ;;  %v7465_v49 = vcombine.low %v522_v17, %v526_v18 }
 0x41d   :  { %v5532_v29 = vpop.f32.mrb[132].mxu0  ;;  %v4444_v0 = vpop.f32.mrb[133].mxu1 }
 0x41e   :  { %v6610_v32 = vadd.f32 %v6609_v15, %v6483_v24  ;;  %v6745_v33 = vmul.f32 %v6483_v24, %v6483_v24  ;;  %v8236_v34 = vadd.f32 %v5532_v29, %v4442_v26  ;;  %v5534_v35 = vpop.f32.mrb[133].mxu0  ;;  %v4445_v36 = vpop.f32.mrb[134].mxu1  ;;  %v6746_v42 = vmul.f32 %v6484_v25, %v6484_v25 }
 0x41f   :  { %v5535_v38 = vpop.f32.mrb[134].mxu0  ;;  %v4447_v39 = vpop.f32.mrb[135].mxu1 }
 0x420   :  { %v6611_v41 = vadd.f32 %v6610_v32, %v6484_v25  ;;  %v6872_v43 = vadd.f32 %v6871_v20, %v6745_v33  ;;  %v8237_v44 = vadd.f32 %v5535_v38, %v4445_v36  ;;  %v5537_v45 = vpop.f32.mrb[135].mxu0 }
 0x421   :  { %4657 = vmatmul.mubr.bf16.gmra.mrb[240].mxu1 %v7437_v30  ;;  %v7466_v30 = vcombine.high %v522_v17, %v526_v18 }
 0x422   :  { %v6873_v46 = vadd.f32 %v6872_v43, %v6746_v42  ;;  %v5812_v47 = vpack.c.bf16 %v8237_v44, %v8236_v34  ;;  %5747 = vmatmul.mubr.bf16.gmra.mrb[240].mxu0 %v7441_v31  ;;  %4664 = vmatprep.mubr.bf16.mxu1 %v7446_v37  ;;  %v7461_v43 = vcombine.low %v520_v12, %v524_v13 }
 0x423   :  { %5754 = vmatprep.mubr.bf16.mxu0 %v7450_v40 }
 0x424   :  { %8139 = vst [vmem:[%s10905_s2 + $0x108] sm:$0xff] %v5812_v47   ;;  %v6485_v50 = vunpack.c.l.bf16 %v5812_v47  ;;  %v6486_v51 = vunpack.c.h.bf16 %v5812_v47  ;;  %v4450_v52 = vpop.f32.mrb[136].mxu1 }
 0x425   :  { %v5540_v55 = vpop.f32.mrb[136].mxu0  ;;  %v4452_v56 = vpop.f32.mrb[137].mxu1 }
 0x426   :  { %v6612_v59 = vadd.f32 %v6611_v41, %v6485_v50  ;;  %v6747_v60 = vmul.f32 %v6485_v50, %v6485_v50  ;;  %v8238_v61 = vadd.f32 %v5540_v55, %v4450_v52  ;;  %v5542_v62 = vpop.f32.mrb[137].mxu0  ;;  %v4453_v63 = vpop.f32.mrb[138].mxu1  ;;  %v6748_v6 = vmul.f32 %v6486_v51, %v6486_v51 }
 0x427   :  { %v5543_v2 = vpop.f32.mrb[138].mxu0  ;;  %v4455_v3 = vpop.f32.mrb[139].mxu1 }
 0x428   :  { %v6613_v5 = vadd.f32 %v6612_v59, %v6486_v51  ;;  %v6874_v7 = vadd.f32 %v6873_v46, %v6747_v60  ;;  %v8239_v8 = vadd.f32 %v5543_v2, %v4453_v63  ;;  %v5545_v9 = vpop.f32.mrb[139].mxu0 }
 0x429   :  { %4665 = vmatmul.mubr.bf16.gmra.mrb[244].mxu1 %v7445_v57 }
 0x42a   :  { %v6875_v10 = vadd.f32 %v6874_v7, %v6748_v6  ;;  %v5813_v11 = vpack.c.bf16 %v8239_v8, %v8238_v61  ;;  %5755 = vmatmul.mubr.bf16.gmra.mrb[244].mxu0 %v7449_v58  ;;  %4672 = vmatprep.mubr.bf16.mxu1 %v7454_v1 }
 0x42b   :  { %5762 = vmatprep.mubr.bf16.mxu0 %v7458_v4 }
 0x42c   :  { %8140 = vst [vmem:[%s10905_s2 + $0x110] sm:$0xff] %v5813_v11   ;;  %v6487_v14 = vunpack.c.l.bf16 %v5813_v11  ;;  %v6488_v15 = vunpack.c.h.bf16 %v5813_v11  ;;  %v4458_v16 = vpop.f32.mrb[140].mxu1 }
 0x42d   :  { %v5548_v19 = vpop.f32.mrb[140].mxu0  ;;  %v4460_v20 = vpop.f32.mrb[141].mxu1 }
 0x42e   :  { %v6614_v23 = vadd.f32 %v6613_v5, %v6487_v14  ;;  %v6749_v24 = vmul.f32 %v6487_v14, %v6487_v14  ;;  %v8240_v25 = vadd.f32 %v5548_v19, %v4458_v16  ;;  %v5550_v26 = vpop.f32.mrb[141].mxu0  ;;  %v4461_v27 = vpop.f32.mrb[142].mxu1  ;;  %v6750_v32 = vmul.f32 %v6488_v15, %v6488_v15 }
 0x42f   :  { %v5551_v29 = vpop.f32.mrb[142].mxu0  ;;  %v4463_v0 = vpop.f32.mrb[143].mxu1 }
 0x430   :  { %v6615_v31 = vadd.f32 %v6614_v23, %v6488_v15  ;;  %v6876_v33 = vadd.f32 %v6875_v10, %v6749_v24  ;;  %v8241_v34 = vadd.f32 %v5551_v29, %v4461_v27  ;;  %v5553_v35 = vpop.f32.mrb[143].mxu0 }
 0x431   :  { %4673 = vmatmul.mubr.bf16.gmra.mrb[248].mxu1 %v7453_v21 }
 0x432   :  { %v6877_v36 = vadd.f32 %v6876_v33, %v6750_v32  ;;  %v5814_v37 = vpack.c.bf16 %v8241_v34, %v8240_v25  ;;  %5763 = vmatmul.mubr.bf16.gmra.mrb[248].mxu0 %v7457_v22  ;;  %4680 = vmatprep.mubr.bf16.mxu1 %v7462_v28 }
 0x433   :  { %5770 = vmatprep.mubr.bf16.mxu0 %v7466_v30 }
 0x434   :  { %8141 = vst [vmem:[%s10905_s2 + $0x118] sm:$0xff] %v5814_v37   ;;  %v6489_v38 = vunpack.c.l.bf16 %v5814_v37  ;;  %v6490_v39 = vunpack.c.h.bf16 %v5814_v37  ;;  %v4466_v40 = vpop.f32.mrb[144].mxu1 }
 0x435   :  { %v5556_v41 = vpop.f32.mrb[144].mxu0  ;;  %v4468_v42 = vpop.f32.mrb[145].mxu1 }
 0x436   :  { %v6616_v44 = vadd.f32 %v6615_v31, %v6489_v38  ;;  %v6751_v45 = vmul.f32 %v6489_v38, %v6489_v38  ;;  %v8242_v46 = vadd.f32 %v5556_v41, %v4466_v40  ;;  %v5558_v47 = vpop.f32.mrb[145].mxu0  ;;  %v4469_v48 = vpop.f32.mrb[146].mxu1  ;;  %v6752_v53 = vmul.f32 %v6490_v39, %v6490_v39 }
 0x437   :  { %v5559_v50 = vpop.f32.mrb[146].mxu0  ;;  %v4471_v51 = vpop.f32.mrb[147].mxu1 }
 0x438   :  { %v6617_v52 = vadd.f32 %v6616_v44, %v6490_v39  ;;  %v6878_v54 = vadd.f32 %v6877_v36, %v6751_v45  ;;  %v8243_v55 = vadd.f32 %v5559_v50, %v4469_v48  ;;  %v5561_v56 = vpop.f32.mrb[147].mxu0 }
 0x439   :  { %4681 = vmatmul.mubr.bf16.gmra.mrb[252].mxu1 %v7461_v43 }
 0x43a   :  { %v6879_v57 = vadd.f32 %v6878_v54, %v6752_v53  ;;  %v5815_v58 = vpack.c.bf16 %v8243_v55, %v8242_v46  ;;  %5771 = vmatmul.mubr.bf16.gmra.mrb[252].mxu0 %v7465_v49 }
 0x43c   :  { %8142 = vst [vmem:[%s10905_s2 + $0x120] sm:$0xff] %v5815_v58   ;;  %v6491_v59 = vunpack.c.l.bf16 %v5815_v58  ;;  %v6492_v60 = vunpack.c.h.bf16 %v5815_v58  ;;  %v4474_v61 = vpop.f32.mrb[148].mxu1 }
 0x43d   :  { %v5564_v62 = vpop.f32.mrb[148].mxu0  ;;  %v4476_v63 = vpop.f32.mrb[149].mxu1 }
 0x43e   :  { %v6618_v1 = vadd.f32 %v6617_v52, %v6491_v59  ;;  %v6753_v2 = vmul.f32 %v6491_v59, %v6491_v59  ;;  %v8244_v3 = vadd.f32 %v5564_v62, %v4474_v61  ;;  %v5566_v4 = vpop.f32.mrb[149].mxu0  ;;  %v4477_v5 = vpop.f32.mrb[150].mxu1  ;;  %v6754_v9 = vmul.f32 %v6492_v60, %v6492_v60 }
 0x43f   :  { %v5567_v6 = vpop.f32.mrb[150].mxu0  ;;  %v4479_v7 = vpop.f32.mrb[151].mxu1 }
 0x440   :  { %v6619_v8 = vadd.f32 %v6618_v1, %v6492_v60  ;;  %v6880_v10 = vadd.f32 %v6879_v57, %v6753_v2  ;;  %v8245_v11 = vadd.f32 %v5567_v6, %v4477_v5  ;;  %v5569_v12 = vpop.f32.mrb[151].mxu0 }
 0x442   :  { %v6881_v13 = vadd.f32 %v6880_v10, %v6754_v9  ;;  %v5816_v14 = vpack.c.bf16 %v8245_v11, %v8244_v3 }
 0x444   :  { %8143 = vst [vmem:[%s10905_s2 + $0x128] sm:$0xff] %v5816_v14   ;;  %v6493_v15 = vunpack.c.l.bf16 %v5816_v14  ;;  %v6494_v16 = vunpack.c.h.bf16 %v5816_v14  ;;  %v4482_v17 = vpop.f32.mrb[152].mxu1 }
 0x445   :  { %v5572_v18 = vpop.f32.mrb[152].mxu0  ;;  %v4484_v19 = vpop.f32.mrb[153].mxu1 }
 0x446   :  { %v6620_v20 = vadd.f32 %v6619_v8, %v6493_v15  ;;  %v6755_v21 = vmul.f32 %v6493_v15, %v6493_v15  ;;  %v8246_v22 = vadd.f32 %v5572_v18, %v4482_v17  ;;  %v5574_v23 = vpop.f32.mrb[153].mxu0  ;;  %v4485_v24 = vpop.f32.mrb[154].mxu1  ;;  %v6756_v28 = vmul.f32 %v6494_v16, %v6494_v16 }
 0x447   :  { %v5575_v25 = vpop.f32.mrb[154].mxu0  ;;  %v4487_v26 = vpop.f32.mrb[155].mxu1 }
 0x448   :  { %v6621_v27 = vadd.f32 %v6620_v20, %v6494_v16  ;;  %v6882_v29 = vadd.f32 %v6881_v13, %v6755_v21  ;;  %v8247_v0 = vadd.f32 %v5575_v25, %v4485_v24  ;;  %v5577_v30 = vpop.f32.mrb[155].mxu0 }
 0x44a   :  { %v6883_v31 = vadd.f32 %v6882_v29, %v6756_v28  ;;  %v5817_v32 = vpack.c.bf16 %v8247_v0, %v8246_v22 }
 0x44c   :  { %8144 = vst [vmem:[%s10905_s2 + $0x130] sm:$0xff] %v5817_v32   ;;  %v6495_v33 = vunpack.c.l.bf16 %v5817_v32  ;;  %v6496_v34 = vunpack.c.h.bf16 %v5817_v32  ;;  %v4490_v35 = vpop.f32.mrb[156].mxu1 }
 0x44d   :  { %v5580_v36 = vpop.f32.mrb[156].mxu0  ;;  %v4492_v37 = vpop.f32.mrb[157].mxu1 }
 0x44e   :  { %v6622_v38 = vadd.f32 %v6621_v27, %v6495_v33  ;;  %v6757_v39 = vmul.f32 %v6495_v33, %v6495_v33  ;;  %v8248_v40 = vadd.f32 %v5580_v36, %v4490_v35  ;;  %v5582_v41 = vpop.f32.mrb[157].mxu0  ;;  %v4493_v42 = vpop.f32.mrb[158].mxu1  ;;  %v6758_v46 = vmul.f32 %v6496_v34, %v6496_v34 }
 0x44f   :  { %v5583_v43 = vpop.f32.mrb[158].mxu0  ;;  %v4495_v44 = vpop.f32.mrb[159].mxu1 }
 0x450   :  { %v6623_v45 = vadd.f32 %v6622_v38, %v6496_v34  ;;  %v6884_v47 = vadd.f32 %v6883_v31, %v6757_v39  ;;  %v8249_v48 = vadd.f32 %v5583_v43, %v4493_v42  ;;  %v5585_v49 = vpop.f32.mrb[159].mxu0 }
 0x452   :  { %v6885_v50 = vadd.f32 %v6884_v47, %v6758_v46  ;;  %v5818_v51 = vpack.c.bf16 %v8249_v48, %v8248_v40 }
 0x454   :  { %8145 = vst [vmem:[%s10905_s2 + $0x138] sm:$0xff] %v5818_v51   ;;  %v6497_v52 = vunpack.c.l.bf16 %v5818_v51  ;;  %v6498_v53 = vunpack.c.h.bf16 %v5818_v51  ;;  %v4498_v54 = vpop.f32.mrb[160].mxu1 }
 0x455   :  { %v5588_v55 = vpop.f32.mrb[160].mxu0  ;;  %v4500_v56 = vpop.f32.mrb[161].mxu1 }
 0x456   :  { %v6624_v57 = vadd.f32 %v6623_v45, %v6497_v52  ;;  %v6759_v58 = vmul.f32 %v6497_v52, %v6497_v52  ;;  %v8250_v59 = vadd.f32 %v5588_v55, %v4498_v54  ;;  %v5590_v60 = vpop.f32.mrb[161].mxu0  ;;  %v4501_v61 = vpop.f32.mrb[162].mxu1  ;;  %v6760_v2 = vmul.f32 %v6498_v53, %v6498_v53 }
 0x457   :  { %v5591_v62 = vpop.f32.mrb[162].mxu0  ;;  %v4503_v63 = vpop.f32.mrb[163].mxu1 }
 0x458   :  { %v6625_v1 = vadd.f32 %v6624_v57, %v6498_v53  ;;  %v6886_v3 = vadd.f32 %v6885_v50, %v6759_v58  ;;  %v8251_v4 = vadd.f32 %v5591_v62, %v4501_v61  ;;  %v5593_v5 = vpop.f32.mrb[163].mxu0 }
 0x45a   :  { %v6887_v6 = vadd.f32 %v6886_v3, %v6760_v2  ;;  %v5819_v7 = vpack.c.bf16 %v8251_v4, %v8250_v59 }
 0x45c   :  { %8146 = vst [vmem:[%s10905_s2 + $0x140] sm:$0xff] %v5819_v7   ;;  %v6499_v8 = vunpack.c.l.bf16 %v5819_v7  ;;  %v6500_v9 = vunpack.c.h.bf16 %v5819_v7  ;;  %v4506_v10 = vpop.f32.mrb[164].mxu1 }
 0x45d   :  { %v5596_v11 = vpop.f32.mrb[164].mxu0  ;;  %v4508_v12 = vpop.f32.mrb[165].mxu1 }
 0x45e   :  { %v6626_v13 = vadd.f32 %v6625_v1, %v6499_v8  ;;  %v6761_v14 = vmul.f32 %v6499_v8, %v6499_v8  ;;  %v8252_v15 = vadd.f32 %v5596_v11, %v4506_v10  ;;  %v5598_v16 = vpop.f32.mrb[165].mxu0  ;;  %v4509_v17 = vpop.f32.mrb[166].mxu1  ;;  %v6762_v21 = vmul.f32 %v6500_v9, %v6500_v9 }
 0x45f   :  { %v5599_v18 = vpop.f32.mrb[166].mxu0  ;;  %v4511_v19 = vpop.f32.mrb[167].mxu1 }
 0x460   :  { %v6627_v20 = vadd.f32 %v6626_v13, %v6500_v9  ;;  %v6888_v22 = vadd.f32 %v6887_v6, %v6761_v14  ;;  %v8253_v23 = vadd.f32 %v5599_v18, %v4509_v17  ;;  %v5601_v24 = vpop.f32.mrb[167].mxu0 }
 0x462   :  { %v6889_v25 = vadd.f32 %v6888_v22, %v6762_v21  ;;  %v5820_v26 = vpack.c.bf16 %v8253_v23, %v8252_v15 }
 0x464   :  { %8147 = vst [vmem:[%s10905_s2 + $0x148] sm:$0xff] %v5820_v26   ;;  %v6501_v27 = vunpack.c.l.bf16 %v5820_v26  ;;  %v6502_v28 = vunpack.c.h.bf16 %v5820_v26  ;;  %v4514_v29 = vpop.f32.mrb[168].mxu1 }
 0x465   :  { %v5604_v0 = vpop.f32.mrb[168].mxu0  ;;  %v4516_v30 = vpop.f32.mrb[169].mxu1 }
 0x466   :  { %v6628_v31 = vadd.f32 %v6627_v20, %v6501_v27  ;;  %v6763_v32 = vmul.f32 %v6501_v27, %v6501_v27  ;;  %v8254_v33 = vadd.f32 %v5604_v0, %v4514_v29  ;;  %v5606_v34 = vpop.f32.mrb[169].mxu0  ;;  %v4517_v35 = vpop.f32.mrb[170].mxu1  ;;  %v6764_v39 = vmul.f32 %v6502_v28, %v6502_v28 }
 0x467   :  { %v5607_v36 = vpop.f32.mrb[170].mxu0  ;;  %v4519_v37 = vpop.f32.mrb[171].mxu1 }
 0x468   :  { %v6629_v38 = vadd.f32 %v6628_v31, %v6502_v28  ;;  %v6890_v40 = vadd.f32 %v6889_v25, %v6763_v32  ;;  %v8255_v41 = vadd.f32 %v5607_v36, %v4517_v35  ;;  %v5609_v42 = vpop.f32.mrb[171].mxu0 }
 0x46a   :  { %v6891_v43 = vadd.f32 %v6890_v40, %v6764_v39  ;;  %v5821_v44 = vpack.c.bf16 %v8255_v41, %v8254_v33 }
 0x46c   :  { %8148 = vst [vmem:[%s10905_s2 + $0x150] sm:$0xff] %v5821_v44   ;;  %v6503_v45 = vunpack.c.l.bf16 %v5821_v44  ;;  %v6504_v46 = vunpack.c.h.bf16 %v5821_v44  ;;  %v4522_v47 = vpop.f32.mrb[172].mxu1 }
 0x46d   :  { %v5612_v48 = vpop.f32.mrb[172].mxu0  ;;  %v4524_v49 = vpop.f32.mrb[173].mxu1 }
 0x46e   :  { %v6630_v50 = vadd.f32 %v6629_v38, %v6503_v45  ;;  %v6765_v51 = vmul.f32 %v6503_v45, %v6503_v45  ;;  %v8256_v52 = vadd.f32 %v5612_v48, %v4522_v47  ;;  %v5614_v53 = vpop.f32.mrb[173].mxu0  ;;  %v4525_v54 = vpop.f32.mrb[174].mxu1  ;;  %v6766_v58 = vmul.f32 %v6504_v46, %v6504_v46 }
 0x46f   :  { %v5615_v55 = vpop.f32.mrb[174].mxu0  ;;  %v4527_v56 = vpop.f32.mrb[175].mxu1 }
 0x470   :  { %v6631_v57 = vadd.f32 %v6630_v50, %v6504_v46  ;;  %v6892_v59 = vadd.f32 %v6891_v43, %v6765_v51  ;;  %v8257_v60 = vadd.f32 %v5615_v55, %v4525_v54  ;;  %v5617_v61 = vpop.f32.mrb[175].mxu0 }
 0x472   :  { %v6893_v62 = vadd.f32 %v6892_v59, %v6766_v58  ;;  %v5822_v63 = vpack.c.bf16 %v8257_v60, %v8256_v52 }
 0x474   :  { %8149 = vst [vmem:[%s10905_s2 + $0x158] sm:$0xff] %v5822_v63   ;;  %v6505_v1 = vunpack.c.l.bf16 %v5822_v63  ;;  %v6506_v2 = vunpack.c.h.bf16 %v5822_v63  ;;  %v4530_v3 = vpop.f32.mrb[176].mxu1 }
 0x475   :  { %v5620_v4 = vpop.f32.mrb[176].mxu0  ;;  %v4532_v5 = vpop.f32.mrb[177].mxu1 }
 0x476   :  { %v6632_v6 = vadd.f32 %v6631_v57, %v6505_v1  ;;  %v6767_v7 = vmul.f32 %v6505_v1, %v6505_v1  ;;  %v8258_v8 = vadd.f32 %v5620_v4, %v4530_v3  ;;  %v5622_v9 = vpop.f32.mrb[177].mxu0  ;;  %v4533_v10 = vpop.f32.mrb[178].mxu1  ;;  %v6768_v14 = vmul.f32 %v6506_v2, %v6506_v2 }
 0x477   :  { %v5623_v11 = vpop.f32.mrb[178].mxu0  ;;  %v4535_v12 = vpop.f32.mrb[179].mxu1 }
 0x478   :  { %v6633_v13 = vadd.f32 %v6632_v6, %v6506_v2  ;;  %v6894_v15 = vadd.f32 %v6893_v62, %v6767_v7  ;;  %v8259_v16 = vadd.f32 %v5623_v11, %v4533_v10  ;;  %v5625_v17 = vpop.f32.mrb[179].mxu0 }
 0x47a   :  { %v6895_v18 = vadd.f32 %v6894_v15, %v6768_v14  ;;  %v5823_v19 = vpack.c.bf16 %v8259_v16, %v8258_v8 }
 0x47c   :  { %8150 = vst [vmem:[%s10905_s2 + $0x160] sm:$0xff] %v5823_v19   ;;  %v6507_v20 = vunpack.c.l.bf16 %v5823_v19  ;;  %v6508_v21 = vunpack.c.h.bf16 %v5823_v19  ;;  %v4538_v22 = vpop.f32.mrb[180].mxu1 }
 0x47d   :  { %v5628_v23 = vpop.f32.mrb[180].mxu0  ;;  %v4540_v24 = vpop.f32.mrb[181].mxu1 }
 0x47e   :  { %v6634_v25 = vadd.f32 %v6633_v13, %v6507_v20  ;;  %v6769_v26 = vmul.f32 %v6507_v20, %v6507_v20  ;;  %v8260_v27 = vadd.f32 %v5628_v23, %v4538_v22  ;;  %v5630_v28 = vpop.f32.mrb[181].mxu0  ;;  %v4541_v29 = vpop.f32.mrb[182].mxu1  ;;  %v6770_v32 = vmul.f32 %v6508_v21, %v6508_v21 }
 0x47f   :  { %v5631_v0 = vpop.f32.mrb[182].mxu0  ;;  %v4543_v30 = vpop.f32.mrb[183].mxu1 }
 0x480   :  { %v6635_v31 = vadd.f32 %v6634_v25, %v6508_v21  ;;  %v6896_v33 = vadd.f32 %v6895_v18, %v6769_v26  ;;  %v8261_v34 = vadd.f32 %v5631_v0, %v4541_v29  ;;  %v5633_v35 = vpop.f32.mrb[183].mxu0 }
 0x482   :  { %v6897_v36 = vadd.f32 %v6896_v33, %v6770_v32  ;;  %v5824_v37 = vpack.c.bf16 %v8261_v34, %v8260_v27 }
 0x484   :  { %8151 = vst [vmem:[%s10905_s2 + $0x168] sm:$0xff] %v5824_v37   ;;  %v6509_v38 = vunpack.c.l.bf16 %v5824_v37  ;;  %v6510_v39 = vunpack.c.h.bf16 %v5824_v37  ;;  %v4546_v40 = vpop.f32.mrb[184].mxu1 }
 0x485   :  { %v5636_v41 = vpop.f32.mrb[184].mxu0  ;;  %v4548_v42 = vpop.f32.mrb[185].mxu1 }
 0x486   :  { %v6636_v43 = vadd.f32 %v6635_v31, %v6509_v38  ;;  %v6771_v44 = vmul.f32 %v6509_v38, %v6509_v38  ;;  %v8262_v45 = vadd.f32 %v5636_v41, %v4546_v40  ;;  %v5638_v46 = vpop.f32.mrb[185].mxu0  ;;  %v4549_v47 = vpop.f32.mrb[186].mxu1  ;;  %v6772_v51 = vmul.f32 %v6510_v39, %v6510_v39 }
 0x487   :  { %v5639_v48 = vpop.f32.mrb[186].mxu0  ;;  %v4551_v49 = vpop.f32.mrb[187].mxu1 }
 0x488   :  { %v6637_v50 = vadd.f32 %v6636_v43, %v6510_v39  ;;  %v6898_v52 = vadd.f32 %v6897_v36, %v6771_v44  ;;  %v8263_v53 = vadd.f32 %v5639_v48, %v4549_v47  ;;  %v5641_v54 = vpop.f32.mrb[187].mxu0 }
 0x48a   :  { %v6899_v55 = vadd.f32 %v6898_v52, %v6772_v51  ;;  %v5825_v56 = vpack.c.bf16 %v8263_v53, %v8262_v45 }
 0x48c   :  { %8152 = vst [vmem:[%s10905_s2 + $0x170] sm:$0xff] %v5825_v56   ;;  %v6511_v57 = vunpack.c.l.bf16 %v5825_v56  ;;  %v6512_v58 = vunpack.c.h.bf16 %v5825_v56  ;;  %v4554_v59 = vpop.f32.mrb[188].mxu1 }
 0x48d   :  { %v5644_v60 = vpop.f32.mrb[188].mxu0  ;;  %v4556_v61 = vpop.f32.mrb[189].mxu1 }
 0x48e   :  { %v6638_v62 = vadd.f32 %v6637_v50, %v6511_v57  ;;  %v6773_v63 = vmul.f32 %v6511_v57, %v6511_v57  ;;  %v8264_v1 = vadd.f32 %v5644_v60, %v4554_v59  ;;  %v5646_v2 = vpop.f32.mrb[189].mxu0  ;;  %v4557_v3 = vpop.f32.mrb[190].mxu1  ;;  %v6774_v7 = vmul.f32 %v6512_v58, %v6512_v58 }
 0x48f   :  { %v5647_v4 = vpop.f32.mrb[190].mxu0  ;;  %v4559_v5 = vpop.f32.mrb[191].mxu1 }
 0x490   :  { %v6639_v6 = vadd.f32 %v6638_v62, %v6512_v58  ;;  %v6900_v8 = vadd.f32 %v6899_v55, %v6773_v63  ;;  %v8265_v9 = vadd.f32 %v5647_v4, %v4557_v3  ;;  %v5649_v10 = vpop.f32.mrb[191].mxu0 }
 0x492   :  { %v6901_v11 = vadd.f32 %v6900_v8, %v6774_v7  ;;  %v5826_v12 = vpack.c.bf16 %v8265_v9, %v8264_v1 }
 0x494   :  { %8153 = vst [vmem:[%s10905_s2 + $0x178] sm:$0xff] %v5826_v12   ;;  %v6513_v13 = vunpack.c.l.bf16 %v5826_v12  ;;  %v6514_v14 = vunpack.c.h.bf16 %v5826_v12  ;;  %v4562_v15 = vpop.f32.mrb[192].mxu1 }
 0x495   :  { %v5652_v16 = vpop.f32.mrb[192].mxu0  ;;  %v4564_v17 = vpop.f32.mrb[193].mxu1 }
 0x496   :  { %v6640_v18 = vadd.f32 %v6639_v6, %v6513_v13  ;;  %v6775_v19 = vmul.f32 %v6513_v13, %v6513_v13  ;;  %v8266_v20 = vadd.f32 %v5652_v16, %v4562_v15  ;;  %v5654_v21 = vpop.f32.mrb[193].mxu0  ;;  %v4565_v22 = vpop.f32.mrb[194].mxu1  ;;  %v6776_v26 = vmul.f32 %v6514_v14, %v6514_v14 }
 0x497   :  { %v5655_v23 = vpop.f32.mrb[194].mxu0  ;;  %v4567_v24 = vpop.f32.mrb[195].mxu1 }
 0x498   :  { %v6641_v25 = vadd.f32 %v6640_v18, %v6514_v14  ;;  %v6902_v27 = vadd.f32 %v6901_v11, %v6775_v19  ;;  %v8267_v28 = vadd.f32 %v5655_v23, %v4565_v22  ;;  %v5657_v29 = vpop.f32.mrb[195].mxu0 }
 0x49a   :  { %v6903_v0 = vadd.f32 %v6902_v27, %v6776_v26  ;;  %v5827_v30 = vpack.c.bf16 %v8267_v28, %v8266_v20 }
 0x49c   :  { %8154 = vst [vmem:[%s10905_s2 + $0x180] sm:$0xff] %v5827_v30   ;;  %v6515_v31 = vunpack.c.l.bf16 %v5827_v30  ;;  %v6516_v32 = vunpack.c.h.bf16 %v5827_v30  ;;  %v4570_v33 = vpop.f32.mrb[196].mxu1 }
 0x49d   :  { %v5660_v34 = vpop.f32.mrb[196].mxu0  ;;  %v4572_v35 = vpop.f32.mrb[197].mxu1 }
 0x49e   :  { %v6642_v36 = vadd.f32 %v6641_v25, %v6515_v31  ;;  %v6777_v37 = vmul.f32 %v6515_v31, %v6515_v31  ;;  %v8268_v38 = vadd.f32 %v5660_v34, %v4570_v33  ;;  %v5662_v39 = vpop.f32.mrb[197].mxu0  ;;  %v4573_v40 = vpop.f32.mrb[198].mxu1  ;;  %v6778_v44 = vmul.f32 %v6516_v32, %v6516_v32 }
 0x49f   :  { %v5663_v41 = vpop.f32.mrb[198].mxu0  ;;  %v4575_v42 = vpop.f32.mrb[199].mxu1 }
 0x4a0   :  { %v6643_v43 = vadd.f32 %v6642_v36, %v6516_v32  ;;  %v6904_v45 = vadd.f32 %v6903_v0, %v6777_v37  ;;  %v8269_v46 = vadd.f32 %v5663_v41, %v4573_v40  ;;  %v5665_v47 = vpop.f32.mrb[199].mxu0 }
 0x4a2   :  { %v6905_v48 = vadd.f32 %v6904_v45, %v6778_v44  ;;  %v5828_v49 = vpack.c.bf16 %v8269_v46, %v8268_v38 }
 0x4a4   :  { %8155 = vst [vmem:[%s10905_s2 + $0x188] sm:$0xff] %v5828_v49   ;;  %v6517_v50 = vunpack.c.l.bf16 %v5828_v49  ;;  %v6518_v51 = vunpack.c.h.bf16 %v5828_v49  ;;  %v4578_v52 = vpop.f32.mrb[200].mxu1 }
 0x4a5   :  { %v5668_v53 = vpop.f32.mrb[200].mxu0  ;;  %v4580_v54 = vpop.f32.mrb[201].mxu1 }
 0x4a6   :  { %v6644_v55 = vadd.f32 %v6643_v43, %v6517_v50  ;;  %v6779_v56 = vmul.f32 %v6517_v50, %v6517_v50  ;;  %v8270_v57 = vadd.f32 %v5668_v53, %v4578_v52  ;;  %v5670_v58 = vpop.f32.mrb[201].mxu0  ;;  %v4581_v59 = vpop.f32.mrb[202].mxu1  ;;  %v6780_v63 = vmul.f32 %v6518_v51, %v6518_v51 }
 0x4a7   :  { %v5671_v60 = vpop.f32.mrb[202].mxu0  ;;  %v4583_v61 = vpop.f32.mrb[203].mxu1 }
 0x4a8   :  { %v6645_v62 = vadd.f32 %v6644_v55, %v6518_v51  ;;  %v6906_v1 = vadd.f32 %v6905_v48, %v6779_v56  ;;  %v8271_v2 = vadd.f32 %v5671_v60, %v4581_v59  ;;  %v5673_v3 = vpop.f32.mrb[203].mxu0 }
 0x4aa   :  { %v6907_v4 = vadd.f32 %v6906_v1, %v6780_v63  ;;  %v5829_v5 = vpack.c.bf16 %v8271_v2, %v8270_v57 }
 0x4ac   :  { %8156 = vst [vmem:[%s10905_s2 + $0x190] sm:$0xff] %v5829_v5   ;;  %v6519_v6 = vunpack.c.l.bf16 %v5829_v5  ;;  %v6520_v7 = vunpack.c.h.bf16 %v5829_v5  ;;  %v4586_v8 = vpop.f32.mrb[204].mxu1 }
 0x4ad   :  { %v5676_v9 = vpop.f32.mrb[204].mxu0  ;;  %v4588_v10 = vpop.f32.mrb[205].mxu1 }
 0x4ae   :  { %v6646_v11 = vadd.f32 %v6645_v62, %v6519_v6  ;;  %v6781_v12 = vmul.f32 %v6519_v6, %v6519_v6  ;;  %v8272_v13 = vadd.f32 %v5676_v9, %v4586_v8  ;;  %v5678_v14 = vpop.f32.mrb[205].mxu0  ;;  %v4589_v15 = vpop.f32.mrb[206].mxu1  ;;  %v6782_v19 = vmul.f32 %v6520_v7, %v6520_v7 }
 0x4af   :  { %v5679_v16 = vpop.f32.mrb[206].mxu0  ;;  %v4591_v17 = vpop.f32.mrb[207].mxu1 }
 0x4b0   :  { %v6647_v18 = vadd.f32 %v6646_v11, %v6520_v7  ;;  %v6908_v20 = vadd.f32 %v6907_v4, %v6781_v12  ;;  %v8273_v21 = vadd.f32 %v5679_v16, %v4589_v15  ;;  %v5681_v22 = vpop.f32.mrb[207].mxu0 }
 0x4b2   :  { %v6909_v23 = vadd.f32 %v6908_v20, %v6782_v19  ;;  %v5830_v24 = vpack.c.bf16 %v8273_v21, %v8272_v13 }
 0x4b4   :  { %8157 = vst [vmem:[%s10905_s2 + $0x198] sm:$0xff] %v5830_v24   ;;  %v6521_v25 = vunpack.c.l.bf16 %v5830_v24  ;;  %v6522_v26 = vunpack.c.h.bf16 %v5830_v24  ;;  %v4594_v27 = vpop.f32.mrb[208].mxu1 }
 0x4b5   :  { %v5684_v28 = vpop.f32.mrb[208].mxu0  ;;  %v4596_v29 = vpop.f32.mrb[209].mxu1 }
 0x4b6   :  { %v6648_v0 = vadd.f32 %v6647_v18, %v6521_v25  ;;  %v6783_v30 = vmul.f32 %v6521_v25, %v6521_v25  ;;  %v8274_v31 = vadd.f32 %v5684_v28, %v4594_v27  ;;  %v5686_v32 = vpop.f32.mrb[209].mxu0  ;;  %v4597_v33 = vpop.f32.mrb[210].mxu1  ;;  %v6784_v37 = vmul.f32 %v6522_v26, %v6522_v26 }
 0x4b7   :  { %v5687_v34 = vpop.f32.mrb[210].mxu0  ;;  %v4599_v35 = vpop.f32.mrb[211].mxu1 }
 0x4b8   :  { %v6649_v36 = vadd.f32 %v6648_v0, %v6522_v26  ;;  %v6910_v38 = vadd.f32 %v6909_v23, %v6783_v30  ;;  %v8275_v39 = vadd.f32 %v5687_v34, %v4597_v33  ;;  %v5689_v40 = vpop.f32.mrb[211].mxu0 }
 0x4ba   :  { %v6911_v41 = vadd.f32 %v6910_v38, %v6784_v37  ;;  %v5831_v42 = vpack.c.bf16 %v8275_v39, %v8274_v31 }
 0x4bc   :  { %8158 = vst [vmem:[%s10905_s2 + $0x1a0] sm:$0xff] %v5831_v42   ;;  %v6523_v43 = vunpack.c.l.bf16 %v5831_v42  ;;  %v6524_v44 = vunpack.c.h.bf16 %v5831_v42  ;;  %v4602_v45 = vpop.f32.mrb[212].mxu1 }
 0x4bd   :  { %v5692_v46 = vpop.f32.mrb[212].mxu0  ;;  %v4604_v47 = vpop.f32.mrb[213].mxu1 }
 0x4be   :  { %v6650_v48 = vadd.f32 %v6649_v36, %v6523_v43  ;;  %v6785_v49 = vmul.f32 %v6523_v43, %v6523_v43  ;;  %v8276_v50 = vadd.f32 %v5692_v46, %v4602_v45  ;;  %v5694_v51 = vpop.f32.mrb[213].mxu0  ;;  %v4605_v52 = vpop.f32.mrb[214].mxu1  ;;  %v6786_v56 = vmul.f32 %v6524_v44, %v6524_v44 }
 0x4bf   :  { %v5695_v53 = vpop.f32.mrb[214].mxu0  ;;  %v4607_v54 = vpop.f32.mrb[215].mxu1 }
 0x4c0   :  { %v6651_v55 = vadd.f32 %v6650_v48, %v6524_v44  ;;  %v6912_v57 = vadd.f32 %v6911_v41, %v6785_v49  ;;  %v8277_v58 = vadd.f32 %v5695_v53, %v4605_v52  ;;  %v5697_v59 = vpop.f32.mrb[215].mxu0 }
 0x4c2   :  { %v6913_v60 = vadd.f32 %v6912_v57, %v6786_v56  ;;  %v5832_v61 = vpack.c.bf16 %v8277_v58, %v8276_v50 }
 0x4c4   :  { %8159 = vst [vmem:[%s10905_s2 + $0x1a8] sm:$0xff] %v5832_v61   ;;  %v6525_v62 = vunpack.c.l.bf16 %v5832_v61  ;;  %v6526_v63 = vunpack.c.h.bf16 %v5832_v61  ;;  %v4610_v1 = vpop.f32.mrb[216].mxu1 }
 0x4c5   :  { %v5700_v2 = vpop.f32.mrb[216].mxu0  ;;  %v4612_v3 = vpop.f32.mrb[217].mxu1 }
 0x4c6   :  { %v6652_v4 = vadd.f32 %v6651_v55, %v6525_v62  ;;  %v6787_v5 = vmul.f32 %v6525_v62, %v6525_v62  ;;  %v8278_v6 = vadd.f32 %v5700_v2, %v4610_v1  ;;  %v5702_v7 = vpop.f32.mrb[217].mxu0  ;;  %v4613_v8 = vpop.f32.mrb[218].mxu1  ;;  %v6788_v12 = vmul.f32 %v6526_v63, %v6526_v63 }
 0x4c7   :  { %v5703_v9 = vpop.f32.mrb[218].mxu0  ;;  %v4615_v10 = vpop.f32.mrb[219].mxu1 }
 0x4c8   :  { %v6653_v11 = vadd.f32 %v6652_v4, %v6526_v63  ;;  %v6914_v13 = vadd.f32 %v6913_v60, %v6787_v5  ;;  %v8279_v14 = vadd.f32 %v5703_v9, %v4613_v8  ;;  %v5705_v15 = vpop.f32.mrb[219].mxu0 }
 0x4ca   :  { %v6915_v16 = vadd.f32 %v6914_v13, %v6788_v12  ;;  %v5833_v17 = vpack.c.bf16 %v8279_v14, %v8278_v6 }
 0x4cc   :  { %8160 = vst [vmem:[%s10905_s2 + $0x1b0] sm:$0xff] %v5833_v17   ;;  %v6527_v18 = vunpack.c.l.bf16 %v5833_v17  ;;  %v6528_v19 = vunpack.c.h.bf16 %v5833_v17  ;;  %v4618_v20 = vpop.f32.mrb[220].mxu1 }
 0x4cd   :  { %v5708_v21 = vpop.f32.mrb[220].mxu0  ;;  %v4620_v22 = vpop.f32.mrb[221].mxu1 }
 0x4ce   :  { %v6654_v23 = vadd.f32 %v6653_v11, %v6527_v18  ;;  %v6789_v24 = vmul.f32 %v6527_v18, %v6527_v18  ;;  %v8280_v25 = vadd.f32 %v5708_v21, %v4618_v20  ;;  %v5710_v26 = vpop.f32.mrb[221].mxu0  ;;  %v4621_v27 = vpop.f32.mrb[222].mxu1  ;;  %v6790_v30 = vmul.f32 %v6528_v19, %v6528_v19 }
 0x4cf   :  { %v5711_v28 = vpop.f32.mrb[222].mxu0  ;;  %v4623_v29 = vpop.f32.mrb[223].mxu1 }
 0x4d0   :  { %v6655_v0 = vadd.f32 %v6654_v23, %v6528_v19  ;;  %v6916_v31 = vadd.f32 %v6915_v16, %v6789_v24  ;;  %v8281_v32 = vadd.f32 %v5711_v28, %v4621_v27  ;;  %v5713_v33 = vpop.f32.mrb[223].mxu0 }
 0x4d2   :  { %v6917_v34 = vadd.f32 %v6916_v31, %v6790_v30  ;;  %v5834_v35 = vpack.c.bf16 %v8281_v32, %v8280_v25 }
 0x4d4   :  { %8161 = vst [vmem:[%s10905_s2 + $0x1b8] sm:$0xff] %v5834_v35   ;;  %v6529_v36 = vunpack.c.l.bf16 %v5834_v35  ;;  %v6530_v37 = vunpack.c.h.bf16 %v5834_v35  ;;  %v4626_v38 = vpop.f32.mrb[224].mxu1 }
 0x4d5   :  { %v5716_v39 = vpop.f32.mrb[224].mxu0  ;;  %v4628_v40 = vpop.f32.mrb[225].mxu1 }
 0x4d6   :  { %v6656_v41 = vadd.f32 %v6655_v0, %v6529_v36  ;;  %v6791_v42 = vmul.f32 %v6529_v36, %v6529_v36  ;;  %v8282_v43 = vadd.f32 %v5716_v39, %v4626_v38  ;;  %v5718_v44 = vpop.f32.mrb[225].mxu0  ;;  %v4629_v45 = vpop.f32.mrb[226].mxu1  ;;  %v6792_v49 = vmul.f32 %v6530_v37, %v6530_v37 }
 0x4d7   :  { %v5719_v46 = vpop.f32.mrb[226].mxu0  ;;  %v4631_v47 = vpop.f32.mrb[227].mxu1 }
 0x4d8   :  { %v6657_v48 = vadd.f32 %v6656_v41, %v6530_v37  ;;  %v6918_v50 = vadd.f32 %v6917_v34, %v6791_v42  ;;  %v8283_v51 = vadd.f32 %v5719_v46, %v4629_v45  ;;  %v5721_v52 = vpop.f32.mrb[227].mxu0 }
 0x4da   :  { %v6919_v53 = vadd.f32 %v6918_v50, %v6792_v49  ;;  %v5835_v54 = vpack.c.bf16 %v8283_v51, %v8282_v43 }
 0x4dc   :  { %8162 = vst [vmem:[%s10905_s2 + $0x1c0] sm:$0xff] %v5835_v54   ;;  %v6531_v55 = vunpack.c.l.bf16 %v5835_v54  ;;  %v6532_v56 = vunpack.c.h.bf16 %v5835_v54  ;;  %v4634_v57 = vpop.f32.mrb[228].mxu1 }
 0x4dd   :  { %v5724_v58 = vpop.f32.mrb[228].mxu0  ;;  %v4636_v59 = vpop.f32.mrb[229].mxu1 }
 0x4de   :  { %v6658_v60 = vadd.f32 %v6657_v48, %v6531_v55  ;;  %v6793_v61 = vmul.f32 %v6531_v55, %v6531_v55  ;;  %v8284_v62 = vadd.f32 %v5724_v58, %v4634_v57  ;;  %v5726_v63 = vpop.f32.mrb[229].mxu0  ;;  %v4637_v1 = vpop.f32.mrb[230].mxu1  ;;  %v6794_v5 = vmul.f32 %v6532_v56, %v6532_v56 }
 0x4df   :  { %v5727_v2 = vpop.f32.mrb[230].mxu0  ;;  %v4639_v3 = vpop.f32.mrb[231].mxu1 }
 0x4e0   :  { %v6659_v4 = vadd.f32 %v6658_v60, %v6532_v56  ;;  %v6920_v6 = vadd.f32 %v6919_v53, %v6793_v61  ;;  %v8285_v7 = vadd.f32 %v5727_v2, %v4637_v1  ;;  %v5729_v8 = vpop.f32.mrb[231].mxu0 }
 0x4e2   :  { %v6921_v9 = vadd.f32 %v6920_v6, %v6794_v5  ;;  %v5836_v10 = vpack.c.bf16 %v8285_v7, %v8284_v62 }
 0x4e4   :  { %8163 = vst [vmem:[%s10905_s2 + $0x1c8] sm:$0xff] %v5836_v10   ;;  %v6533_v11 = vunpack.c.l.bf16 %v5836_v10  ;;  %v6534_v12 = vunpack.c.h.bf16 %v5836_v10  ;;  %v4642_v13 = vpop.f32.mrb[232].mxu1 }
 0x4e5   :  { %v5732_v14 = vpop.f32.mrb[232].mxu0  ;;  %v4644_v15 = vpop.f32.mrb[233].mxu1 }
 0x4e6   :  { %v6660_v16 = vadd.f32 %v6659_v4, %v6533_v11  ;;  %v6795_v17 = vmul.f32 %v6533_v11, %v6533_v11  ;;  %v8286_v18 = vadd.f32 %v5732_v14, %v4642_v13  ;;  %v5734_v19 = vpop.f32.mrb[233].mxu0  ;;  %v4645_v20 = vpop.f32.mrb[234].mxu1  ;;  %v6796_v24 = vmul.f32 %v6534_v12, %v6534_v12 }
 0x4e7   :  { %v5735_v21 = vpop.f32.mrb[234].mxu0  ;;  %v4647_v22 = vpop.f32.mrb[235].mxu1 }
 0x4e8   :  { %v6661_v23 = vadd.f32 %v6660_v16, %v6534_v12  ;;  %v6922_v25 = vadd.f32 %v6921_v9, %v6795_v17  ;;  %v8287_v26 = vadd.f32 %v5735_v21, %v4645_v20  ;;  %v5737_v27 = vpop.f32.mrb[235].mxu0 }
 0x4ea   :  { %v6923_v28 = vadd.f32 %v6922_v25, %v6796_v24  ;;  %v5837_v29 = vpack.c.bf16 %v8287_v26, %v8286_v18 }
 0x4ec   :  { %8164 = vst [vmem:[%s10905_s2 + $0x1d0] sm:$0xff] %v5837_v29   ;;  %v6535_v0 = vunpack.c.l.bf16 %v5837_v29  ;;  %v6536_v30 = vunpack.c.h.bf16 %v5837_v29  ;;  %v4650_v31 = vpop.f32.mrb[236].mxu1 }
 0x4ed   :  { %v5740_v32 = vpop.f32.mrb[236].mxu0  ;;  %v4652_v33 = vpop.f32.mrb[237].mxu1 }
 0x4ee   :  { %v6662_v34 = vadd.f32 %v6661_v23, %v6535_v0  ;;  %v6797_v35 = vmul.f32 %v6535_v0, %v6535_v0  ;;  %v8288_v36 = vadd.f32 %v5740_v32, %v4650_v31  ;;  %v5742_v37 = vpop.f32.mrb[237].mxu0  ;;  %v4653_v38 = vpop.f32.mrb[238].mxu1  ;;  %v6798_v42 = vmul.f32 %v6536_v30, %v6536_v30 }
 0x4ef   :  { %v5743_v39 = vpop.f32.mrb[238].mxu0  ;;  %v4655_v40 = vpop.f32.mrb[239].mxu1 }
 0x4f0   :  { %v6663_v41 = vadd.f32 %v6662_v34, %v6536_v30  ;;  %v6924_v43 = vadd.f32 %v6923_v28, %v6797_v35  ;;  %v8289_v44 = vadd.f32 %v5743_v39, %v4653_v38  ;;  %v5745_v45 = vpop.f32.mrb[239].mxu0 }
 0x4f2   :  { %v6925_v46 = vadd.f32 %v6924_v43, %v6798_v42  ;;  %v5838_v47 = vpack.c.bf16 %v8289_v44, %v8288_v36 }
 0x4f4   :  { %8165 = vst [vmem:[%s10905_s2 + $0x1d8] sm:$0xff] %v5838_v47   ;;  %v6537_v48 = vunpack.c.l.bf16 %v5838_v47  ;;  %v6538_v49 = vunpack.c.h.bf16 %v5838_v47  ;;  %v4658_v50 = vpop.f32.mrb[240].mxu1 }
 0x4f5   :  { %v5748_v51 = vpop.f32.mrb[240].mxu0  ;;  %v4660_v52 = vpop.f32.mrb[241].mxu1 }
 0x4f6   :  { %v6664_v53 = vadd.f32 %v6663_v41, %v6537_v48  ;;  %v6799_v54 = vmul.f32 %v6537_v48, %v6537_v48  ;;  %v8290_v55 = vadd.f32 %v5748_v51, %v4658_v50  ;;  %v5750_v56 = vpop.f32.mrb[241].mxu0  ;;  %v4661_v57 = vpop.f32.mrb[242].mxu1  ;;  %v6800_v61 = vmul.f32 %v6538_v49, %v6538_v49 }
 0x4f7   :  { %v5751_v58 = vpop.f32.mrb[242].mxu0  ;;  %v4663_v59 = vpop.f32.mrb[243].mxu1 }
 0x4f8   :  { %v6665_v60 = vadd.f32 %v6664_v53, %v6538_v49  ;;  %v6926_v62 = vadd.f32 %v6925_v46, %v6799_v54  ;;  %v8291_v63 = vadd.f32 %v5751_v58, %v4661_v57  ;;  %v5753_v1 = vpop.f32.mrb[243].mxu0 }
 0x4fa   :  { %v6927_v2 = vadd.f32 %v6926_v62, %v6800_v61  ;;  %v5839_v3 = vpack.c.bf16 %v8291_v63, %v8290_v55 }
 0x4fc   :  { %8166 = vst [vmem:[%s10905_s2 + $0x1e0] sm:$0xff] %v5839_v3   ;;  %v6539_v4 = vunpack.c.l.bf16 %v5839_v3  ;;  %v6540_v5 = vunpack.c.h.bf16 %v5839_v3  ;;  %v4666_v6 = vpop.f32.mrb[244].mxu1 }
 0x4fd   :  { %v5756_v7 = vpop.f32.mrb[244].mxu0  ;;  %v4668_v8 = vpop.f32.mrb[245].mxu1 }
 0x4fe   :  { %v6666_v9 = vadd.f32 %v6665_v60, %v6539_v4  ;;  %v6801_v10 = vmul.f32 %v6539_v4, %v6539_v4  ;;  %v8292_v11 = vadd.f32 %v5756_v7, %v4666_v6  ;;  %v5758_v12 = vpop.f32.mrb[245].mxu0  ;;  %v4669_v13 = vpop.f32.mrb[246].mxu1  ;;  %v6802_v17 = vmul.f32 %v6540_v5, %v6540_v5 }
 0x4ff   :  { %v5759_v14 = vpop.f32.mrb[246].mxu0  ;;  %v4671_v15 = vpop.f32.mrb[247].mxu1 }
 0x500   :  { %v6667_v16 = vadd.f32 %v6666_v9, %v6540_v5  ;;  %v6928_v18 = vadd.f32 %v6927_v2, %v6801_v10  ;;  %v8293_v19 = vadd.f32 %v5759_v14, %v4669_v13  ;;  %v5761_v20 = vpop.f32.mrb[247].mxu0 }
 0x502   :  { %v6929_v21 = vadd.f32 %v6928_v18, %v6802_v17  ;;  %v5840_v22 = vpack.c.bf16 %v8293_v19, %v8292_v11 }
 0x504   :  { %8167 = vst [vmem:[%s10905_s2 + $0x1e8] sm:$0xff] %v5840_v22   ;;  %v6541_v23 = vunpack.c.l.bf16 %v5840_v22  ;;  %v6542_v24 = vunpack.c.h.bf16 %v5840_v22  ;;  %v4674_v25 = vpop.f32.mrb[248].mxu1 }
 0x505   :  { %v5764_v26 = vpop.f32.mrb[248].mxu0  ;;  %v4676_v27 = vpop.f32.mrb[249].mxu1 }
 0x506   :  { %v6668_v28 = vadd.f32 %v6667_v16, %v6541_v23  ;;  %v6803_v29 = vmul.f32 %v6541_v23, %v6541_v23  ;;  %v8294_v0 = vadd.f32 %v5764_v26, %v4674_v25  ;;  %v5766_v30 = vpop.f32.mrb[249].mxu0  ;;  %v4677_v31 = vpop.f32.mrb[250].mxu1  ;;  %v6804_v35 = vmul.f32 %v6542_v24, %v6542_v24 }
 0x507   :  { %v5767_v32 = vpop.f32.mrb[250].mxu0  ;;  %v4679_v33 = vpop.f32.mrb[251].mxu1 }
 0x508   :  { %v6669_v34 = vadd.f32 %v6668_v28, %v6542_v24  ;;  %v6930_v36 = vadd.f32 %v6929_v21, %v6803_v29  ;;  %v8295_v37 = vadd.f32 %v5767_v32, %v4677_v31  ;;  %v5769_v38 = vpop.f32.mrb[251].mxu0 }
 0x50a   :  { %v6931_v39 = vadd.f32 %v6930_v36, %v6804_v35  ;;  %v5841_v40 = vpack.c.bf16 %v8295_v37, %v8294_v0 }
 0x50c   :  { %8168 = vst [vmem:[%s10905_s2 + $0x1f0] sm:$0xff] %v5841_v40   ;;  %v6543_v41 = vunpack.c.l.bf16 %v5841_v40  ;;  %v6544_v42 = vunpack.c.h.bf16 %v5841_v40  ;;  %v4682_v43 = vpop.f32.mrb[252].mxu1 }
 0x50d   :  { %v5772_v44 = vpop.f32.mrb[252].mxu0  ;;  %v4684_v45 = vpop.f32.mrb[253].mxu1 }
 0x50e   :  { %v6670_v46 = vadd.f32 %v6669_v34, %v6543_v41  ;;  %v6805_v47 = vmul.f32 %v6543_v41, %v6543_v41  ;;  %v8296_v48 = vadd.f32 %v5772_v44, %v4682_v43  ;;  %v5774_v49 = vpop.f32.mrb[253].mxu0  ;;  %v4685_v50 = vpop.f32.mrb[254].mxu1  ;;  %v6806_v54 = vmul.f32 %v6544_v42, %v6544_v42 }
 0x50f   :  { %v5775_v51 = vpop.f32.mrb[254].mxu0  ;;  %v4687_v52 = vpop.f32.mrb[255].mxu1 }
 0x510   :  { %v6671_v53 = vadd.f32 %v6670_v46, %v6544_v42  ;;  %v6932_v55 = vadd.f32 %v6931_v39, %v6805_v47  ;;  %v8297_v56 = vadd.f32 %v5775_v51, %v4685_v50  ;;  %v5777_v57 = vpop.f32.mrb[255].mxu0 }
 0x512   :  { %v6933_v58 = vadd.f32 %v6932_v55, %v6806_v54  ;;  %v5842_v59 = vpack.c.bf16 %v8297_v56, %v8296_v48 }
 0x514   :  { %8169 = vst [vmem:[%s10905_s2 + $0x1f8] sm:$0xff] %v5842_v59   ;;  %v6545_v60 = vunpack.c.l.bf16 %v5842_v59  ;;  %v6546_v61 = vunpack.c.h.bf16 %v5842_v59 }
 0x516   :  { %v6672_v62 = vadd.f32 %v6671_v53, %v6545_v60  ;;  %v6807_v63 = vmul.f32 %v6545_v60, %v6545_v60  ;;  %v6808_v2 = vmul.f32 %v6546_v61, %v6546_v61 }
 0x518   :  { %v6673_v1 = vadd.f32 %v6672_v62, %v6546_v61  ;;  %v6934_v3 = vadd.f32 %v6933_v58, %v6807_v63 }
 0x51a   :  { %v6674_v4 = vrot.slane %v6673_v1, 4  ;;  %v6935_v5 = vadd.f32 %v6934_v3, %v6808_v2 }
 0x51c   :  { %v6675_v6 = vadd.f32 %v6674_v4, %v6673_v1  ;;  %v6936_v7 = vrot.slane %v6935_v5, 4 }
 0x51e   :  { %v6676_v8 = vrot.slane %v6675_v6, 2  ;;  %v6937_v9 = vadd.f32 %v6936_v7, %v6935_v5 }
 0x520   :  { %v6677_v10 = vadd.f32 %v6676_v8, %v6675_v6  ;;  %v6938_v11 = vrot.slane %v6937_v9, 2 }
 0x522   :  { %v6678_v12 = vrot.slane %v6677_v10, 1  ;;  %v6939_v13 = vadd.f32 %v6938_v11, %v6937_v9 }
 0x524   :  { %v6679_v14 = vadd.f32 %v6678_v12, %v6677_v10  ;;  %v6940_v15 = vrot.slane %v6939_v13, 1 }
 0x526   :  { %6680 = vst [vmem:[%s10906_s3] sm:$0x1] %v6679_v14  ;;  %v6941_v16 = vadd.f32 %v6940_v15, %v6939_v13 }
 0x528   :  { %6942 = vst [vmem:[%s10907_s4] sm:$0x1] %v6941_v16 }

</bundles_post_ra>
